<compile_context>
chip_gen: v7x
topology: tpu7x:2x2x1
jax: 0.10.0
libtpu: 0.0.40
codegen_flags: <defaults>
</compile_context>

<pallas_src>
import jax
import jax.numpy as jnp
from jax import lax
from jax.experimental import pallas as pl
from jax.experimental.pallas import tpu as pltpu

BN_EPS = 1e-5

# ----------------------------- geometry (h=w=16) -----------------------------
B = 2
H = W = 16
C_IN, C1, C2, C3 = 3, 32, 64, 64
C_IN_PAD = 8                                # layer-1 contraction padded 3 -> 8
K1, K2, K3 = 3, 3, 2
OH1, OW1 = H - K1 + 1, W - K1 + 1           # 14, 14
OH2, OW2 = OH1 - K2 + 1, OW1 - K2 + 1       # 12, 12
OH3, OW3 = OH2 - K3 + 1, OW2 - K3 + 1       # 11, 11
OUTPUTS = 4

OH1W, OH2W, OH3W = OH1 * W, OH2 * W, OH3 * W          # 224, 192, 176
# Wide-layout row counts per image (+W padding rows so shifted slices stay in bounds).
XROWS = H * W + W            # 272
A1ROWS = OH1W + W            # 240
A2ROWS = OH2W + W            # 208
K1SZ = K1 * K1 * C_IN_PAD    # 72
K2SZ = K2 * K2 * C1          # 288
K3SZ = K3 * K3 * C2          # 256


# ------------------------------ fused kernel --------------------------------
def _dqn_kernel(x_ref, w1_ref, s1_ref, w2_ref, s2_ref, w3_ref, s3_ref,
                wh_ref, bh_ref, o_ref, st1, st2, st3, a1_ref, a2_ref):
    # Zero ONLY the per-image padding rows of the activation scratches: they are
    # read by the next layer's shifted window copies and must be zero/finite.
    # (Valid rows are fully overwritten below.)
    for b in range(B):
        a1_ref[b * A1ROWS + OH1W:(b + 1) * A1ROWS, :] = jnp.zeros((W, C1), jnp.bfloat16)
        a2_ref[b * A2ROWS + OH2W:(b + 1) * A2ROWS, :] = jnp.zeros((W, C2), jnp.bfloat16)

    def conv_bn_relu(read, out_rows, kh, kw, cin, st_ref, w_ref, s_ref):
        """VALID conv (+folded BN/bias shift) + ReLU for the whole batch:
        copy the kh*kw shifted windows of each image into the bf16 staging
        scratch (K columns are tap-major / cin-minor, matching the K-concat
        weight layout) and run ONE bf16 MXU matmul with f32 accumulation."""
        for b in range(B):
            ob = b * out_rows
            for i in range(kh):
                for j in range(kw):
                    t = i * kw + j
                    st_ref[ob:ob + out_rows, t * cin:(t + 1) * cin] = \
                        read(b, i * W + j, out_rows)
        y = jnp.dot(st_ref[...], w_ref[...], preferred_element_type=jnp.float32)
        return jnp.maximum(y + s_ref[...], 0.0)

    # ---- layer 1 (conv1 + bn1 + relu) ----
    y1 = conv_bn_relu(lambda b, s, n: x_ref[b * XROWS + s:b * XROWS + s + n, :],
                      OH1W, K1, K1, C_IN_PAD, st1, w1_ref, s1_ref)
    y1 = y1.astype(jnp.bfloat16)                       # cast once, not per-window
    for b in range(B):
        a1_ref[b * A1ROWS:b * A1ROWS + OH1W, :] = y1[b * OH1W:(b + 1) * OH1W, :]

    # ---- layer 2 (conv2 + bn2 + relu) ----
    y2 = conv_bn_relu(lambda b, s, n: a1_ref[b * A1ROWS + s:b * A1ROWS + s + n, :],
                      OH2W, K2, K2, C1, st2, w2_ref, s2_ref)
    y2 = y2.astype(jnp.bfloat16)
    for b in range(B):
        a2_ref[b * A2ROWS:b * A2ROWS + OH2W, :] = y2[b * OH2W:(b + 1) * OH2W, :]

    # ---- layer 3 (conv3 + bn3 + relu), kept in f32 for the head ----
    y3 = conv_bn_relu(lambda b, s, n: a2_ref[b * A2ROWS + s:b * A2ROWS + s + n, :],
                      OH3W, K3, K3, C2, st3, w3_ref, s3_ref)

    # ---- linear head: out[b, o] = <y3_b, wh_o> + bias_o (f32 accumulation) ----
    # wh rows are already in the wide NHWC order with garbage columns zeroed.
    rows = []
    for b in range(B):
        y3b = y3[b * OH3W:(b + 1) * OH3W, :]                    # [176, 64] f32
        cols = []
        for o in range(OUTPUTS):
            p = y3b * wh_ref[o].astype(jnp.float32)             # [176, 64] f32
            cols.append(jnp.sum(p, axis=1, keepdims=True))      # [176, 1]
        s = jnp.concatenate(cols, axis=1)                       # [176, 4]
        rows.append(jnp.sum(s, axis=0, keepdims=True))          # [1, 4]
    o_ref[...] = jnp.concatenate(rows, axis=0) + bh_ref[...]    # [B, 4]


# ------------------------------ param prep ----------------------------------
def prepare_params(params):
    """Fold inference BN (+conv bias) into (bf16 K-concatenated weight, f32 shift)
    and pre-permute the head weight into the kernel's wide NHWC layout."""
    def fold(layer, cin_pad=None):
        w, b, gamma, beta, mean, var = layer
        kh, kw, cin, cout = w.shape
        inv = gamma / jnp.sqrt(var + BN_EPS)
        wf = (w * inv).reshape(kh * kw, cin, cout)
        if cin_pad is not None and cin_pad > cin:
            wf = jnp.pad(wf, ((0, 0), (0, cin_pad - cin), (0, 0)))
            cin = cin_pad
        wf = wf.reshape(kh * kw * cin, cout)                    # K-concat (tap-major)
        shift = (beta + (b - mean) * inv).reshape(1, cout).astype(jnp.float32)
        return wf.astype(jnp.bfloat16), shift

    w1, s1 = fold(params["layer1"], C_IN_PAD)
    w2, s2 = fold(params["layer2"])
    w3, s3 = fold(params["layer3"])

    # head_w rows follow PyTorch's NCHW flatten (c, h, w); re-index to rows = h*W + w,
    # lanes = c, and zero the w >= OW3 garbage columns of the wide layout.
    hw = params["head_w"].reshape(C3, OH3, OW3, OUTPUTS)        # (c, h, w, o)
    hw = jnp.transpose(hw, (3, 1, 2, 0))                        # (o, h, w, c)
    hw = jnp.pad(hw, ((0, 0), (0, 0), (0, W - OW3), (0, 0)))
    wh = hw.reshape(OUTPUTS, OH3W, C3).astype(jnp.bfloat16)     # bf16 storage, f32 accum
    bh = params["head_b"].reshape(1, OUTPUTS).astype(jnp.float32)
    return dict(w1=w1, s1=s1, w2=w2, s2=s2, w3=w3, s3=s3, wh=wh, bh=bh)


# ------------------------------ forward wrapper ------------------------------
def dqn_forward(prep, x_nchw):
    assert x_nchw.shape[0] == B
    # NCHW -> NHWC -> wide 2D [B*XROWS, C] bf16; zero-pad rows/channels so every
    # shifted in-kernel slice stays in bounds (tiny one-time layout glue).
    x = jnp.transpose(x_nchw, (0, 2, 3, 1)).reshape(B, H * W, C_IN)
    x = jnp.pad(x, ((0, 0), (0, XROWS - H * W), (0, C_IN_PAD - C_IN)))
    x = x.reshape(B * XROWS, C_IN_PAD).astype(jnp.bfloat16)

    flops = 2 * B * (OH1 * OW1 * K1 * K1 * C_IN * C1
                     + OH2 * OW2 * K2 * K2 * C1 * C2
                     + OH3 * OW3 * K3 * K3 * C2 * C3
                     + OH3 * OW3 * C3 * OUTPUTS)
    bytes_accessed = (x.size * 2
                      + (prep["w1"].size + prep["w2"].size + prep["w3"].size
                         + prep["wh"].size) * 2
                      + (prep["s1"].size + prep["s2"].size + prep["s3"].size
                         + prep["bh"].size) * 4
                      + B * OUTPUTS * 4)

    out = pl.pallas_call(
        _dqn_kernel,
        out_shape=jax.ShapeDtypeStruct((B, OUTPUTS), jnp.float32),
        grid_spec=pltpu.PrefetchScalarGridSpec(
            num_scalar_prefetch=0,
            grid=(1,),                                    # single step: batch folded into M
            in_specs=[
                pl.BlockSpec((B * XROWS, C_IN_PAD), lambda i: (0, 0)),
                pl.BlockSpec((K1SZ, C1), lambda i: (0, 0)),
                pl.BlockSpec((1, C1), lambda i: (0, 0)),
                pl.BlockSpec((K2SZ, C2), lambda i: (0, 0)),
                pl.BlockSpec((1, C2), lambda i: (0, 0)),
                pl.BlockSpec((K3SZ, C3), lambda i: (0, 0)),
                pl.BlockSpec((1, C3), lambda i: (0, 0)),
                pl.BlockSpec((OUTPUTS, OH3W, C3), lambda i: (0, 0, 0)),
                pl.BlockSpec((1, OUTPUTS), lambda i: (0, 0)),
            ],
            out_specs=pl.BlockSpec((B, OUTPUTS), lambda i: (0, 0)),
            scratch_shapes=[
                pltpu.VMEM((B * OH1W, K1SZ), jnp.bfloat16),   # layer-1 im2col staging
                pltpu.VMEM((B * OH2W, K2SZ), jnp.bfloat16),   # layer-2 im2col staging
                pltpu.VMEM((B * OH3W, K3SZ), jnp.bfloat16),   # layer-3 im2col staging
                pltpu.VMEM((B * A1ROWS, C1), jnp.bfloat16),   # layer-1 wide activation
                pltpu.VMEM((B * A2ROWS, C2), jnp.bfloat16),   # layer-2 wide activation
            ],
        ),
        compiler_params=pltpu.CompilerParams(
            dimension_semantics=("arbitrary",)),
        cost_estimate=pl.CostEstimate(flops=flops, transcendentals=0,
                                      bytes_accessed=bytes_accessed),
    )(x, prep["w1"], prep["s1"], prep["w2"], prep["s2"],
      prep["w3"], prep["s3"], prep["wh"], prep["bh"])
    return out


# ---------------------------- pure-JAX reference -----------------------------
def ref_forward(params, x_nchw):
    x = jnp.transpose(x_nchw, (0, 2, 3, 1))
    for name in ("layer1", "layer2", "layer3"):
        w, b, gamma, beta, mean, var = params[name]
        y = lax.conv_general_dilated(
            x, w, (1, 1), "VALID",
            dimension_numbers=("NHWC", "HWIO", "NHWC"),
            precision=lax.Precision.HIGHEST) + b
        y = (y - mean) / jnp.sqrt(var + BN_EPS) * gamma + beta
        x = jnp.maximum(y, 0.0)
    x = jnp.transpose(x, (0, 3, 1, 2)).reshape(x.shape[0], -1)   # NCHW flatten
    return jnp.dot(x, params["head_w"],
                   precision=lax.Precision.HIGHEST) + params["head_b"]


# ------------------------------ param init ----------------------------------
def make_conv_layer(key, kh, kw, cin, cout, wscale):
    kw_, kb, kg, kbe, km, kv = jax.random.split(key, 6)
    w = wscale * jax.random.normal(kw_, (kh, kw, cin, cout), jnp.float32)
    b = 0.05 * jax.random.normal(kb, (cout,), jnp.float32)
    gamma = 1.0 + 0.1 * jax.random.normal(kg, (cout,), jnp.float32)
    beta = 0.1 * jax.random.normal(kbe, (cout,), jnp.float32)
    mean = 0.1 * jax.random.normal(km, (cout,), jnp.float32)
    var = 0.5 + 0.5 * jnp.abs(jax.random.normal(kv, (cout,), jnp.float32))
    return (w, b, gamma, beta, mean, var)


if __name__ == "__main__":
    key = jax.random.PRNGKey(0)
    kx, k1, k2, k3, khw, khb = jax.random.split(key, 6)

    # DQN(h=16, w=16, outputs=4), batch=2, NCHW input as in PyTorch
    x = jax.random.normal(kx, (B, C_IN, H, W), jnp.float32)

    params = {
        "layer1": make_conv_layer(k1, K1, K1, C_IN, C1, 0.10),   # conv1 + bn1
        "layer2": make_conv_layer(k2, K2, K2, C1, C2, 0.05),     # conv2 + bn2
        "layer3": make_conv_layer(k3, K3, K3, C2, C3, 0.05),     # conv3 + bn3
    }
    feat = OH3 * OW3 * C3                               # actual flattened size
    params["head_w"] = 0.02 * jax.random.normal(khw, (feat, OUTPUTS), jnp.float32)
    params["head_b"] = 0.05 * jax.random.normal(khb, (OUTPUTS,), jnp.float32)

    prep = prepare_params(params)                       # one-time folding/permutation
    fwd = jax.jit(dqn_forward)
    out = jax.block_until_ready(fwd(prep, x))
    assert out.shape == (B, OUTPUTS), out.shape

    ref = jax.block_until_ready(ref_forward(params, x))
    # bf16 MXU inputs / bf16 head weights (f32 accumulation) vs f32 HIGHEST reference.
    if not bool(jnp.allclose(out, ref, atol=2e-2, rtol=2e-2)):
        raise SystemExit("Pallas result does not match JAX reference")

    print("KERNEL_OK")
</pallas_src>

<mosaic_0001>
module attributes {stable_mosaic.version = 11 : i64} {
  func.func @_dqn_kernel(%arg0: i32, %arg1: memref<544x8xbf16, #tpu.memory_space<vmem>>, %arg2: memref<72x32xbf16, #tpu.memory_space<vmem>>, %arg3: memref<1x32xf32, #tpu.memory_space<vmem>>, %arg4: memref<288x64xbf16, #tpu.memory_space<vmem>>, %arg5: memref<1x64xf32, #tpu.memory_space<vmem>>, %arg6: memref<256x64xbf16, #tpu.memory_space<vmem>>, %arg7: memref<1x64xf32, #tpu.memory_space<vmem>>, %arg8: memref<4x176x64xbf16, #tpu.memory_space<vmem>>, %arg9: memref<1x4xf32, #tpu.memory_space<vmem>>, %arg10: memref<2x4xf32, #tpu.memory_space<vmem>>, %arg11: memref<448x72xbf16, #tpu.memory_space<vmem>>, %arg12: memref<384x288xbf16, #tpu.memory_space<vmem>>, %arg13: memref<352x256xbf16, #tpu.memory_space<vmem>>, %arg14: memref<480x32xbf16, #tpu.memory_space<vmem>>, %arg15: memref<416x64xbf16, #tpu.memory_space<vmem>>) attributes {dimension_semantics = [#tpu.dimension_semantics<arbitrary>], iteration_bounds = array<i64: 1>, scalar_prefetch = 0 : i64, scratch_operands = 5 : i64, tpu.core_type = #tpu.core_type<tc>, window_params = [{pipeline_mode = #tpu.pipeline_mode<synchronous>, transform_indices = @transform_0, window_bounds = array<i64: 544, 8>}, {pipeline_mode = #tpu.pipeline_mode<synchronous>, transform_indices = @transform_1, window_bounds = array<i64: 72, 32>}, {pipeline_mode = #tpu.pipeline_mode<synchronous>, transform_indices = @transform_2, window_bounds = array<i64: 1, 32>}, {pipeline_mode = #tpu.pipeline_mode<synchronous>, transform_indices = @transform_3, window_bounds = array<i64: 288, 64>}, {pipeline_mode = #tpu.pipeline_mode<synchronous>, transform_indices = @transform_4, window_bounds = array<i64: 1, 64>}, {pipeline_mode = #tpu.pipeline_mode<synchronous>, transform_indices = @transform_5, window_bounds = array<i64: 256, 64>}, {pipeline_mode = #tpu.pipeline_mode<synchronous>, transform_indices = @transform_6, window_bounds = array<i64: 1, 64>}, {pipeline_mode = #tpu.pipeline_mode<synchronous>, transform_indices = @transform_7, window_bounds = array<i64: 4, 176, 64>}, {pipeline_mode = #tpu.pipeline_mode<synchronous>, transform_indices = @transform_8, window_bounds = array<i64: 1, 4>}, {pipeline_mode = #tpu.pipeline_mode<synchronous>, transform_indices = @transform_9, window_bounds = array<i64: 2, 4>}]} {
    %cst = arith.constant 0.000000e+00 : bf16
    %0 = vector.broadcast %cst : bf16 to vector<16x32xbf16>
    %c224 = arith.constant 224 : index
    %c0 = arith.constant 0 : index
    %1 = vector.load %arg14[%c224, %c0] : memref<480x32xbf16, #tpu.memory_space<vmem>>, vector<16x32xbf16>
    tpu.vector_store %arg14[%c224, %c0], %0 {strides = array<i32>} : memref<480x32xbf16, #tpu.memory_space<vmem>>, vector<16x32xbf16>,
    %cst_0 = arith.constant 0.000000e+00 : bf16
    %2 = vector.broadcast %cst_0 : bf16 to vector<16x64xbf16>
    %c192 = arith.constant 192 : index
    %c0_1 = arith.constant 0 : index
    %3 = vector.load %arg15[%c192, %c0_1] : memref<416x64xbf16, #tpu.memory_space<vmem>>, vector<16x64xbf16>
    tpu.vector_store %arg15[%c192, %c0_1], %2 {strides = array<i32>} : memref<416x64xbf16, #tpu.memory_space<vmem>>, vector<16x64xbf16>,
    %cst_2 = arith.constant 0.000000e+00 : bf16
    %4 = vector.broadcast %cst_2 : bf16 to vector<16x32xbf16>
    %c464 = arith.constant 464 : index
    %c0_3 = arith.constant 0 : index
    %5 = vector.load %arg14[%c464, %c0_3] : memref<480x32xbf16, #tpu.memory_space<vmem>>, vector<16x32xbf16>
    tpu.vector_store %arg14[%c464, %c0_3], %4 {strides = array<i32>} : memref<480x32xbf16, #tpu.memory_space<vmem>>, vector<16x32xbf16>,
    %cst_4 = arith.constant 0.000000e+00 : bf16
    %6 = vector.broadcast %cst_4 : bf16 to vector<16x64xbf16>
    %c400 = arith.constant 400 : index
    %c0_5 = arith.constant 0 : index
    %7 = vector.load %arg15[%c400, %c0_5] : memref<416x64xbf16, #tpu.memory_space<vmem>>, vector<16x64xbf16>
    tpu.vector_store %arg15[%c400, %c0_5], %6 {strides = array<i32>} : memref<416x64xbf16, #tpu.memory_space<vmem>>, vector<16x64xbf16>,
    %c0_6 = arith.constant 0 : index
    %c0_7 = arith.constant 0 : index
    %8 = vector.load %arg1[%c0_6, %c0_7] : memref<544x8xbf16, #tpu.memory_space<vmem>>, vector<224x8xbf16>
    %c0_8 = arith.constant 0 : index
    %c0_9 = arith.constant 0 : index
    %9 = vector.load %arg11[%c0_8, %c0_9] : memref<448x72xbf16, #tpu.memory_space<vmem>>, vector<224x8xbf16>
    tpu.vector_store %arg11[%c0_8, %c0_9], %8 {strides = array<i32>} : memref<448x72xbf16, #tpu.memory_space<vmem>>, vector<224x8xbf16>,
    %c1 = arith.constant 1 : index
    %c0_10 = arith.constant 0 : index
    %10 = vector.load %arg1[%c1, %c0_10] : memref<544x8xbf16, #tpu.memory_space<vmem>>, vector<224x8xbf16>
    %c0_11 = arith.constant 0 : index
    %c8 = arith.constant 8 : index
    %11 = vector.load %arg11[%c0_11, %c8] : memref<448x72xbf16, #tpu.memory_space<vmem>>, vector<224x8xbf16>
    tpu.vector_store %arg11[%c0_11, %c8], %10 {strides = array<i32>} : memref<448x72xbf16, #tpu.memory_space<vmem>>, vector<224x8xbf16>,
    %c2 = arith.constant 2 : index
    %c0_12 = arith.constant 0 : index
    %12 = vector.load %arg1[%c2, %c0_12] : memref<544x8xbf16, #tpu.memory_space<vmem>>, vector<224x8xbf16>
    %c0_13 = arith.constant 0 : index
    %c16 = arith.constant 16 : index
    %13 = vector.load %arg11[%c0_13, %c16] : memref<448x72xbf16, #tpu.memory_space<vmem>>, vector<224x8xbf16>
    tpu.vector_store %arg11[%c0_13, %c16], %12 {strides = array<i32>} : memref<448x72xbf16, #tpu.memory_space<vmem>>, vector<224x8xbf16>,
    %c16_14 = arith.constant 16 : index
    %c0_15 = arith.constant 0 : index
    %14 = vector.load %arg1[%c16_14, %c0_15] : memref<544x8xbf16, #tpu.memory_space<vmem>>, vector<224x8xbf16>
    %c0_16 = arith.constant 0 : index
    %c24 = arith.constant 24 : index
    %15 = vector.load %arg11[%c0_16, %c24] : memref<448x72xbf16, #tpu.memory_space<vmem>>, vector<224x8xbf16>
    tpu.vector_store %arg11[%c0_16, %c24], %14 {strides = array<i32>} : memref<448x72xbf16, #tpu.memory_space<vmem>>, vector<224x8xbf16>,
    %c17 = arith.constant 17 : index
    %c0_17 = arith.constant 0 : index
    %16 = vector.load %arg1[%c17, %c0_17] : memref<544x8xbf16, #tpu.memory_space<vmem>>, vector<224x8xbf16>
    %c0_18 = arith.constant 0 : index
    %c32 = arith.constant 32 : index
    %17 = vector.load %arg11[%c0_18, %c32] : memref<448x72xbf16, #tpu.memory_space<vmem>>, vector<224x8xbf16>
    tpu.vector_store %arg11[%c0_18, %c32], %16 {strides = array<i32>} : memref<448x72xbf16, #tpu.memory_space<vmem>>, vector<224x8xbf16>,
    %c18 = arith.constant 18 : index
    %c0_19 = arith.constant 0 : index
    %18 = vector.load %arg1[%c18, %c0_19] : memref<544x8xbf16, #tpu.memory_space<vmem>>, vector<224x8xbf16>
    %c0_20 = arith.constant 0 : index
    %c40 = arith.constant 40 : index
    %19 = vector.load %arg11[%c0_20, %c40] : memref<448x72xbf16, #tpu.memory_space<vmem>>, vector<224x8xbf16>
    tpu.vector_store %arg11[%c0_20, %c40], %18 {strides = array<i32>} : memref<448x72xbf16, #tpu.memory_space<vmem>>, vector<224x8xbf16>,
    %c32_21 = arith.constant 32 : index
    %c0_22 = arith.constant 0 : index
    %20 = vector.load %arg1[%c32_21, %c0_22] : memref<544x8xbf16, #tpu.memory_space<vmem>>, vector<224x8xbf16>
    %c0_23 = arith.constant 0 : index
    %c48 = arith.constant 48 : index
    %21 = vector.load %arg11[%c0_23, %c48] : memref<448x72xbf16, #tpu.memory_space<vmem>>, vector<224x8xbf16>
    tpu.vector_store %arg11[%c0_23, %c48], %20 {strides = array<i32>} : memref<448x72xbf16, #tpu.memory_space<vmem>>, vector<224x8xbf16>,
    %c33 = arith.constant 33 : index
    %c0_24 = arith.constant 0 : index
    %22 = vector.load %arg1[%c33, %c0_24] : memref<544x8xbf16, #tpu.memory_space<vmem>>, vector<224x8xbf16>
    %c0_25 = arith.constant 0 : index
    %c56 = arith.constant 56 : index
    %23 = vector.load %arg11[%c0_25, %c56] : memref<448x72xbf16, #tpu.memory_space<vmem>>, vector<224x8xbf16>
    tpu.vector_store %arg11[%c0_25, %c56], %22 {strides = array<i32>} : memref<448x72xbf16, #tpu.memory_space<vmem>>, vector<224x8xbf16>,
    %c34 = arith.constant 34 : index
    %c0_26 = arith.constant 0 : index
    %24 = vector.load %arg1[%c34, %c0_26] : memref<544x8xbf16, #tpu.memory_space<vmem>>, vector<224x8xbf16>
    %c0_27 = arith.constant 0 : index
    %c64 = arith.constant 64 : index
    %25 = vector.load %arg11[%c0_27, %c64] : memref<448x72xbf16, #tpu.memory_space<vmem>>, vector<224x8xbf16>
    tpu.vector_store %arg11[%c0_27, %c64], %24 {strides = array<i32>} : memref<448x72xbf16, #tpu.memory_space<vmem>>, vector<224x8xbf16>,
    %c272 = arith.constant 272 : index
    %c0_28 = arith.constant 0 : index
    %26 = vector.load %arg1[%c272, %c0_28] : memref<544x8xbf16, #tpu.memory_space<vmem>>, vector<224x8xbf16>
    %c224_29 = arith.constant 224 : index
    %c0_30 = arith.constant 0 : index
    %27 = vector.load %arg11[%c224_29, %c0_30] : memref<448x72xbf16, #tpu.memory_space<vmem>>, vector<224x8xbf16>
    tpu.vector_store %arg11[%c224_29, %c0_30], %26 {strides = array<i32>} : memref<448x72xbf16, #tpu.memory_space<vmem>>, vector<224x8xbf16>,
    %c273 = arith.constant 273 : index
    %c0_31 = arith.constant 0 : index
    %28 = vector.load %arg1[%c273, %c0_31] : memref<544x8xbf16, #tpu.memory_space<vmem>>, vector<224x8xbf16>
    %c224_32 = arith.constant 224 : index
    %c8_33 = arith.constant 8 : index
    %29 = vector.load %arg11[%c224_32, %c8_33] : memref<448x72xbf16, #tpu.memory_space<vmem>>, vector<224x8xbf16>
    tpu.vector_store %arg11[%c224_32, %c8_33], %28 {strides = array<i32>} : memref<448x72xbf16, #tpu.memory_space<vmem>>, vector<224x8xbf16>,
    %c274 = arith.constant 274 : index
    %c0_34 = arith.constant 0 : index
    %30 = vector.load %arg1[%c274, %c0_34] : memref<544x8xbf16, #tpu.memory_space<vmem>>, vector<224x8xbf16>
    %c224_35 = arith.constant 224 : index
    %c16_36 = arith.constant 16 : index
    %31 = vector.load %arg11[%c224_35, %c16_36] : memref<448x72xbf16, #tpu.memory_space<vmem>>, vector<224x8xbf16>
    tpu.vector_store %arg11[%c224_35, %c16_36], %30 {strides = array<i32>} : memref<448x72xbf16, #tpu.memory_space<vmem>>, vector<224x8xbf16>,
    %c288 = arith.constant 288 : index
    %c0_37 = arith.constant 0 : index
    %32 = vector.load %arg1[%c288, %c0_37] : memref<544x8xbf16, #tpu.memory_space<vmem>>, vector<224x8xbf16>
    %c224_38 = arith.constant 224 : index
    %c24_39 = arith.constant 24 : index
    %33 = vector.load %arg11[%c224_38, %c24_39] : memref<448x72xbf16, #tpu.memory_space<vmem>>, vector<224x8xbf16>
    tpu.vector_store %arg11[%c224_38, %c24_39], %32 {strides = array<i32>} : memref<448x72xbf16, #tpu.memory_space<vmem>>, vector<224x8xbf16>,
    %c289 = arith.constant 289 : index
    %c0_40 = arith.constant 0 : index
    %34 = vector.load %arg1[%c289, %c0_40] : memref<544x8xbf16, #tpu.memory_space<vmem>>, vector<224x8xbf16>
    %c224_41 = arith.constant 224 : index
    %c32_42 = arith.constant 32 : index
    %35 = vector.load %arg11[%c224_41, %c32_42] : memref<448x72xbf16, #tpu.memory_space<vmem>>, vector<224x8xbf16>
    tpu.vector_store %arg11[%c224_41, %c32_42], %34 {strides = array<i32>} : memref<448x72xbf16, #tpu.memory_space<vmem>>, vector<224x8xbf16>,
    %c290 = arith.constant 290 : index
    %c0_43 = arith.constant 0 : index
    %36 = vector.load %arg1[%c290, %c0_43] : memref<544x8xbf16, #tpu.memory_space<vmem>>, vector<224x8xbf16>
    %c224_44 = arith.constant 224 : index
    %c40_45 = arith.constant 40 : index
    %37 = vector.load %arg11[%c224_44, %c40_45] : memref<448x72xbf16, #tpu.memory_space<vmem>>, vector<224x8xbf16>
    tpu.vector_store %arg11[%c224_44, %c40_45], %36 {strides = array<i32>} : memref<448x72xbf16, #tpu.memory_space<vmem>>, vector<224x8xbf16>,
    %c304 = arith.constant 304 : index
    %c0_46 = arith.constant 0 : index
    %38 = vector.load %arg1[%c304, %c0_46] : memref<544x8xbf16, #tpu.memory_space<vmem>>, vector<224x8xbf16>
    %c224_47 = arith.constant 224 : index
    %c48_48 = arith.constant 48 : index
    %39 = vector.load %arg11[%c224_47, %c48_48] : memref<448x72xbf16, #tpu.memory_space<vmem>>, vector<224x8xbf16>
    tpu.vector_store %arg11[%c224_47, %c48_48], %38 {strides = array<i32>} : memref<448x72xbf16, #tpu.memory_space<vmem>>, vector<224x8xbf16>,
    %c305 = arith.constant 305 : index
    %c0_49 = arith.constant 0 : index
    %40 = vector.load %arg1[%c305, %c0_49] : memref<544x8xbf16, #tpu.memory_space<vmem>>, vector<224x8xbf16>
    %c224_50 = arith.constant 224 : index
    %c56_51 = arith.constant 56 : index
    %41 = vector.load %arg11[%c224_50, %c56_51] : memref<448x72xbf16, #tpu.memory_space<vmem>>, vector<224x8xbf16>
    tpu.vector_store %arg11[%c224_50, %c56_51], %40 {strides = array<i32>} : memref<448x72xbf16, #tpu.memory_space<vmem>>, vector<224x8xbf16>,
    %c306 = arith.constant 306 : index
    %c0_52 = arith.constant 0 : index
    %42 = vector.load %arg1[%c306, %c0_52] : memref<544x8xbf16, #tpu.memory_space<vmem>>, vector<224x8xbf16>
    %c224_53 = arith.constant 224 : index
    %c64_54 = arith.constant 64 : index
    %43 = vector.load %arg11[%c224_53, %c64_54] : memref<448x72xbf16, #tpu.memory_space<vmem>>, vector<224x8xbf16>
    tpu.vector_store %arg11[%c224_53, %c64_54], %42 {strides = array<i32>} : memref<448x72xbf16, #tpu.memory_space<vmem>>, vector<224x8xbf16>,
    %c0_55 = arith.constant 0 : index
    %c0_56 = arith.constant 0 : index
    %44 = vector.load %arg11[%c0_55, %c0_56] : memref<448x72xbf16, #tpu.memory_space<vmem>>, vector<448x72xbf16>
    %c0_57 = arith.constant 0 : index
    %c0_58 = arith.constant 0 : index
    %45 = vector.load %arg2[%c0_57, %c0_58] : memref<72x32xbf16, #tpu.memory_space<vmem>>, vector<72x32xbf16>
    %cst_59 = arith.constant dense<0.000000e+00> : vector<448x32xf32>
    %46 = tpu.matmul %44, %45, %cst_59 {dimension_numbers = #tpu.dot_dimension_numbers<[1], [0], [0], [1], [0, 0, 1, 1], [], []>} : vector<448x72xbf16>, vector<72x32xbf16>, vector<448x32xf32> -> vector<448x32xf32>
    %c0_60 = arith.constant 0 : index
    %c0_61 = arith.constant 0 : index
    %47 = vector.load %arg3[%c0_60, %c0_61] : memref<1x32xf32, #tpu.memory_space<vmem>>, vector<1x32xf32>
    %48 = vector.broadcast %47 : vector<1x32xf32> to vector<448x32xf32>
    %49 = arith.addf %46, %48 : vector<448x32xf32>
    %cst_62 = arith.constant 0.000000e+00 : f32
    %50 = vector.broadcast %cst_62 : f32 to vector<448x32xf32>
    %51 = arith.maximumf %49, %50 : vector<448x32xf32>
    %52 = arith.truncf %51 : vector<448x32xf32> to vector<448x32xbf16>
    %53 = vector.extract_strided_slice %52 {offsets = [0, 0], sizes = [224, 32], strides = [1, 1]} : vector<448x32xbf16> to vector<224x32xbf16>
    %c0_63 = arith.constant 0 : index
    %c0_64 = arith.constant 0 : index
    %54 = vector.load %arg14[%c0_63, %c0_64] : memref<480x32xbf16, #tpu.memory_space<vmem>>, vector<224x32xbf16>
    tpu.vector_store %arg14[%c0_63, %c0_64], %53 {strides = array<i32>} : memref<480x32xbf16, #tpu.memory_space<vmem>>, vector<224x32xbf16>,
    %55 = vector.extract_strided_slice %52 {offsets = [224, 0], sizes = [224, 32], strides = [1, 1]} : vector<448x32xbf16> to vector<224x32xbf16>
    %c240 = arith.constant 240 : index
    %c0_65 = arith.constant 0 : index
    %56 = vector.load %arg14[%c240, %c0_65] : memref<480x32xbf16, #tpu.memory_space<vmem>>, vector<224x32xbf16>
    tpu.vector_store %arg14[%c240, %c0_65], %55 {strides = array<i32>} : memref<480x32xbf16, #tpu.memory_space<vmem>>, vector<224x32xbf16>,
    %c0_66 = arith.constant 0 : index
    %c0_67 = arith.constant 0 : index
    %57 = vector.load %arg14[%c0_66, %c0_67] : memref<480x32xbf16, #tpu.memory_space<vmem>>, vector<192x32xbf16>
    %c0_68 = arith.constant 0 : index
    %c0_69 = arith.constant 0 : index
    %58 = vector.load %arg12[%c0_68, %c0_69] : memref<384x288xbf16, #tpu.memory_space<vmem>>, vector<192x32xbf16>
    tpu.vector_store %arg12[%c0_68, %c0_69], %57 {strides = array<i32>} : memref<384x288xbf16, #tpu.memory_space<vmem>>, vector<192x32xbf16>,
    %c1_70 = arith.constant 1 : index
    %c0_71 = arith.constant 0 : index
    %59 = vector.load %arg14[%c1_70, %c0_71] : memref<480x32xbf16, #tpu.memory_space<vmem>>, vector<192x32xbf16>
    %c0_72 = arith.constant 0 : index
    %c32_73 = arith.constant 32 : index
    %60 = vector.load %arg12[%c0_72, %c32_73] : memref<384x288xbf16, #tpu.memory_space<vmem>>, vector<192x32xbf16>
    tpu.vector_store %arg12[%c0_72, %c32_73], %59 {strides = array<i32>} : memref<384x288xbf16, #tpu.memory_space<vmem>>, vector<192x32xbf16>,
    %c2_74 = arith.constant 2 : index
    %c0_75 = arith.constant 0 : index
    %61 = vector.load %arg14[%c2_74, %c0_75] : memref<480x32xbf16, #tpu.memory_space<vmem>>, vector<192x32xbf16>
    %c0_76 = arith.constant 0 : index
    %c64_77 = arith.constant 64 : index
    %62 = vector.load %arg12[%c0_76, %c64_77] : memref<384x288xbf16, #tpu.memory_space<vmem>>, vector<192x32xbf16>
    tpu.vector_store %arg12[%c0_76, %c64_77], %61 {strides = array<i32>} : memref<384x288xbf16, #tpu.memory_space<vmem>>, vector<192x32xbf16>,
    %c16_78 = arith.constant 16 : index
    %c0_79 = arith.constant 0 : index
    %63 = vector.load %arg14[%c16_78, %c0_79] : memref<480x32xbf16, #tpu.memory_space<vmem>>, vector<192x32xbf16>
    %c0_80 = arith.constant 0 : index
    %c96 = arith.constant 96 : index
    %64 = vector.load %arg12[%c0_80, %c96] : memref<384x288xbf16, #tpu.memory_space<vmem>>, vector<192x32xbf16>
    tpu.vector_store %arg12[%c0_80, %c96], %63 {strides = array<i32>} : memref<384x288xbf16, #tpu.memory_space<vmem>>, vector<192x32xbf16>,
    %c17_81 = arith.constant 17 : index
    %c0_82 = arith.constant 0 : index
    %65 = vector.load %arg14[%c17_81, %c0_82] : memref<480x32xbf16, #tpu.memory_space<vmem>>, vector<192x32xbf16>
    %c0_83 = arith.constant 0 : index
    %c128 = arith.constant 128 : index
    %66 = vector.load %arg12[%c0_83, %c128] : memref<384x288xbf16, #tpu.memory_space<vmem>>, vector<192x32xbf16>
    tpu.vector_store %arg12[%c0_83, %c128], %65 {strides = array<i32>} : memref<384x288xbf16, #tpu.memory_space<vmem>>, vector<192x32xbf16>,
    %c18_84 = arith.constant 18 : index
    %c0_85 = arith.constant 0 : index
    %67 = vector.load %arg14[%c18_84, %c0_85] : memref<480x32xbf16, #tpu.memory_space<vmem>>, vector<192x32xbf16>
    %c0_86 = arith.constant 0 : index
    %c160 = arith.constant 160 : index
    %68 = vector.load %arg12[%c0_86, %c160] : memref<384x288xbf16, #tpu.memory_space<vmem>>, vector<192x32xbf16>
    tpu.vector_store %arg12[%c0_86, %c160], %67 {strides = array<i32>} : memref<384x288xbf16, #tpu.memory_space<vmem>>, vector<192x32xbf16>,
    %c32_87 = arith.constant 32 : index
    %c0_88 = arith.constant 0 : index
    %69 = vector.load %arg14[%c32_87, %c0_88] : memref<480x32xbf16, #tpu.memory_space<vmem>>, vector<192x32xbf16>
    %c0_89 = arith.constant 0 : index
    %c192_90 = arith.constant 192 : index
    %70 = vector.load %arg12[%c0_89, %c192_90] : memref<384x288xbf16, #tpu.memory_space<vmem>>, vector<192x32xbf16>
    tpu.vector_store %arg12[%c0_89, %c192_90], %69 {strides = array<i32>} : memref<384x288xbf16, #tpu.memory_space<vmem>>, vector<192x32xbf16>,
    %c33_91 = arith.constant 33 : index
    %c0_92 = arith.constant 0 : index
    %71 = vector.load %arg14[%c33_91, %c0_92] : memref<480x32xbf16, #tpu.memory_space<vmem>>, vector<192x32xbf16>
    %c0_93 = arith.constant 0 : index
    %c224_94 = arith.constant 224 : index
    %72 = vector.load %arg12[%c0_93, %c224_94] : memref<384x288xbf16, #tpu.memory_space<vmem>>, vector<192x32xbf16>
    tpu.vector_store %arg12[%c0_93, %c224_94], %71 {strides = array<i32>} : memref<384x288xbf16, #tpu.memory_space<vmem>>, vector<192x32xbf16>,
    %c34_95 = arith.constant 34 : index
    %c0_96 = arith.constant 0 : index
    %73 = vector.load %arg14[%c34_95, %c0_96] : memref<480x32xbf16, #tpu.memory_space<vmem>>, vector<192x32xbf16>
    %c0_97 = arith.constant 0 : index
    %c256 = arith.constant 256 : index
    %74 = vector.load %arg12[%c0_97, %c256] : memref<384x288xbf16, #tpu.memory_space<vmem>>, vector<192x32xbf16>
    tpu.vector_store %arg12[%c0_97, %c256], %73 {strides = array<i32>} : memref<384x288xbf16, #tpu.memory_space<vmem>>, vector<192x32xbf16>,
    %c240_98 = arith.constant 240 : index
    %c0_99 = arith.constant 0 : index
    %75 = vector.load %arg14[%c240_98, %c0_99] : memref<480x32xbf16, #tpu.memory_space<vmem>>, vector<192x32xbf16>
    %c192_100 = arith.constant 192 : index
    %c0_101 = arith.constant 0 : index
    %76 = vector.load %arg12[%c192_100, %c0_101] : memref<384x288xbf16, #tpu.memory_space<vmem>>, vector<192x32xbf16>
    tpu.vector_store %arg12[%c192_100, %c0_101], %75 {strides = array<i32>} : memref<384x288xbf16, #tpu.memory_space<vmem>>, vector<192x32xbf16>,
    %c241 = arith.constant 241 : index
    %c0_102 = arith.constant 0 : index
    %77 = vector.load %arg14[%c241, %c0_102] : memref<480x32xbf16, #tpu.memory_space<vmem>>, vector<192x32xbf16>
    %c192_103 = arith.constant 192 : index
    %c32_104 = arith.constant 32 : index
    %78 = vector.load %arg12[%c192_103, %c32_104] : memref<384x288xbf16, #tpu.memory_space<vmem>>, vector<192x32xbf16>
    tpu.vector_store %arg12[%c192_103, %c32_104], %77 {strides = array<i32>} : memref<384x288xbf16, #tpu.memory_space<vmem>>, vector<192x32xbf16>,
    %c242 = arith.constant 242 : index
    %c0_105 = arith.constant 0 : index
    %79 = vector.load %arg14[%c242, %c0_105] : memref<480x32xbf16, #tpu.memory_space<vmem>>, vector<192x32xbf16>
    %c192_106 = arith.constant 192 : index
    %c64_107 = arith.constant 64 : index
    %80 = vector.load %arg12[%c192_106, %c64_107] : memref<384x288xbf16, #tpu.memory_space<vmem>>, vector<192x32xbf16>
    tpu.vector_store %arg12[%c192_106, %c64_107], %79 {strides = array<i32>} : memref<384x288xbf16, #tpu.memory_space<vmem>>, vector<192x32xbf16>,
    %c256_108 = arith.constant 256 : index
    %c0_109 = arith.constant 0 : index
    %81 = vector.load %arg14[%c256_108, %c0_109] : memref<480x32xbf16, #tpu.memory_space<vmem>>, vector<192x32xbf16>
    %c192_110 = arith.constant 192 : index
    %c96_111 = arith.constant 96 : index
    %82 = vector.load %arg12[%c192_110, %c96_111] : memref<384x288xbf16, #tpu.memory_space<vmem>>, vector<192x32xbf16>
    tpu.vector_store %arg12[%c192_110, %c96_111], %81 {strides = array<i32>} : memref<384x288xbf16, #tpu.memory_space<vmem>>, vector<192x32xbf16>,
    %c257 = arith.constant 257 : index
    %c0_112 = arith.constant 0 : index
    %83 = vector.load %arg14[%c257, %c0_112] : memref<480x32xbf16, #tpu.memory_space<vmem>>, vector<192x32xbf16>
    %c192_113 = arith.constant 192 : index
    %c128_114 = arith.constant 128 : index
    %84 = vector.load %arg12[%c192_113, %c128_114] : memref<384x288xbf16, #tpu.memory_space<vmem>>, vector<192x32xbf16>
    tpu.vector_store %arg12[%c192_113, %c128_114], %83 {strides = array<i32>} : memref<384x288xbf16, #tpu.memory_space<vmem>>, vector<192x32xbf16>,
    %c258 = arith.constant 258 : index
    %c0_115 = arith.constant 0 : index
    %85 = vector.load %arg14[%c258, %c0_115] : memref<480x32xbf16, #tpu.memory_space<vmem>>, vector<192x32xbf16>
    %c192_116 = arith.constant 192 : index
    %c160_117 = arith.constant 160 : index
    %86 = vector.load %arg12[%c192_116, %c160_117] : memref<384x288xbf16, #tpu.memory_space<vmem>>, vector<192x32xbf16>
    tpu.vector_store %arg12[%c192_116, %c160_117], %85 {strides = array<i32>} : memref<384x288xbf16, #tpu.memory_space<vmem>>, vector<192x32xbf16>,
    %c272_118 = arith.constant 272 : index
    %c0_119 = arith.constant 0 : index
    %87 = vector.load %arg14[%c272_118, %c0_119] : memref<480x32xbf16, #tpu.memory_space<vmem>>, vector<192x32xbf16>
    %c192_120 = arith.constant 192 : index
    %c192_121 = arith.constant 192 : index
    %88 = vector.load %arg12[%c192_120, %c192_121] : memref<384x288xbf16, #tpu.memory_space<vmem>>, vector<192x32xbf16>
    tpu.vector_store %arg12[%c192_120, %c192_121], %87 {strides = array<i32>} : memref<384x288xbf16, #tpu.memory_space<vmem>>, vector<192x32xbf16>,
    %c273_122 = arith.constant 273 : index
    %c0_123 = arith.constant 0 : index
    %89 = vector.load %arg14[%c273_122, %c0_123] : memref<480x32xbf16, #tpu.memory_space<vmem>>, vector<192x32xbf16>
    %c192_124 = arith.constant 192 : index
    %c224_125 = arith.constant 224 : index
    %90 = vector.load %arg12[%c192_124, %c224_125] : memref<384x288xbf16, #tpu.memory_space<vmem>>, vector<192x32xbf16>
    tpu.vector_store %arg12[%c192_124, %c224_125], %89 {strides = array<i32>} : memref<384x288xbf16, #tpu.memory_space<vmem>>, vector<192x32xbf16>,
    %c274_126 = arith.constant 274 : index
    %c0_127 = arith.constant 0 : index
    %91 = vector.load %arg14[%c274_126, %c0_127] : memref<480x32xbf16, #tpu.memory_space<vmem>>, vector<192x32xbf16>
    %c192_128 = arith.constant 192 : index
    %c256_129 = arith.constant 256 : index
    %92 = vector.load %arg12[%c192_128, %c256_129] : memref<384x288xbf16, #tpu.memory_space<vmem>>, vector<192x32xbf16>
    tpu.vector_store %arg12[%c192_128, %c256_129], %91 {strides = array<i32>} : memref<384x288xbf16, #tpu.memory_space<vmem>>, vector<192x32xbf16>,
    %c0_130 = arith.constant 0 : index
    %c0_131 = arith.constant 0 : index
    %93 = vector.load %arg12[%c0_130, %c0_131] : memref<384x288xbf16, #tpu.memory_space<vmem>>, vector<384x288xbf16>
    %c0_132 = arith.constant 0 : index
    %c0_133 = arith.constant 0 : index
    %94 = vector.load %arg4[%c0_132, %c0_133] : memref<288x64xbf16, #tpu.memory_space<vmem>>, vector<288x64xbf16>
    %cst_134 = arith.constant dense<0.000000e+00> : vector<384x64xf32>
    %95 = tpu.matmul %93, %94, %cst_134 {dimension_numbers = #tpu.dot_dimension_numbers<[1], [0], [0], [1], [0, 0, 1, 1], [], []>} : vector<384x288xbf16>, vector<288x64xbf16>, vector<384x64xf32> -> vector<384x64xf32>
    %c0_135 = arith.constant 0 : index
    %c0_136 = arith.constant 0 : index
    %96 = vector.load %arg5[%c0_135, %c0_136] : memref<1x64xf32, #tpu.memory_space<vmem>>, vector<1x64xf32>
    %97 = vector.broadcast %96 : vector<1x64xf32> to vector<384x64xf32>
    %98 = arith.addf %95, %97 : vector<384x64xf32>
    %cst_137 = arith.constant 0.000000e+00 : f32
    %99 = vector.broadcast %cst_137 : f32 to vector<384x64xf32>
    %100 = arith.maximumf %98, %99 : vector<384x64xf32>
    %101 = arith.truncf %100 : vector<384x64xf32> to vector<384x64xbf16>
    %102 = vector.extract_strided_slice %101 {offsets = [0, 0], sizes = [192, 64], strides = [1, 1]} : vector<384x64xbf16> to vector<192x64xbf16>
    %c0_138 = arith.constant 0 : index
    %c0_139 = arith.constant 0 : index
    %103 = vector.load %arg15[%c0_138, %c0_139] : memref<416x64xbf16, #tpu.memory_space<vmem>>, vector<192x64xbf16>
    tpu.vector_store %arg15[%c0_138, %c0_139], %102 {strides = array<i32>} : memref<416x64xbf16, #tpu.memory_space<vmem>>, vector<192x64xbf16>,
    %104 = vector.extract_strided_slice %101 {offsets = [192, 0], sizes = [192, 64], strides = [1, 1]} : vector<384x64xbf16> to vector<192x64xbf16>
    %c208 = arith.constant 208 : index
    %c0_140 = arith.constant 0 : index
    %105 = vector.load %arg15[%c208, %c0_140] : memref<416x64xbf16, #tpu.memory_space<vmem>>, vector<192x64xbf16>
    tpu.vector_store %arg15[%c208, %c0_140], %104 {strides = array<i32>} : memref<416x64xbf16, #tpu.memory_space<vmem>>, vector<192x64xbf16>,
    %c0_141 = arith.constant 0 : index
    %c0_142 = arith.constant 0 : index
    %106 = vector.load %arg15[%c0_141, %c0_142] : memref<416x64xbf16, #tpu.memory_space<vmem>>, vector<176x64xbf16>
    %c0_143 = arith.constant 0 : index
    %c0_144 = arith.constant 0 : index
    %107 = vector.load %arg13[%c0_143, %c0_144] : memref<352x256xbf16, #tpu.memory_space<vmem>>, vector<176x64xbf16>
    tpu.vector_store %arg13[%c0_143, %c0_144], %106 {strides = array<i32>} : memref<352x256xbf16, #tpu.memory_space<vmem>>, vector<176x64xbf16>,
    %c1_145 = arith.constant 1 : index
    %c0_146 = arith.constant 0 : index
    %108 = vector.load %arg15[%c1_145, %c0_146] : memref<416x64xbf16, #tpu.memory_space<vmem>>, vector<176x64xbf16>
    %c0_147 = arith.constant 0 : index
    %c64_148 = arith.constant 64 : index
    %109 = vector.load %arg13[%c0_147, %c64_148] : memref<352x256xbf16, #tpu.memory_space<vmem>>, vector<176x64xbf16>
    tpu.vector_store %arg13[%c0_147, %c64_148], %108 {strides = array<i32>} : memref<352x256xbf16, #tpu.memory_space<vmem>>, vector<176x64xbf16>,
    %c16_149 = arith.constant 16 : index
    %c0_150 = arith.constant 0 : index
    %110 = vector.load %arg15[%c16_149, %c0_150] : memref<416x64xbf16, #tpu.memory_space<vmem>>, vector<176x64xbf16>
    %c0_151 = arith.constant 0 : index
    %c128_152 = arith.constant 128 : index
    %111 = vector.load %arg13[%c0_151, %c128_152] : memref<352x256xbf16, #tpu.memory_space<vmem>>, vector<176x64xbf16>
    tpu.vector_store %arg13[%c0_151, %c128_152], %110 {strides = array<i32>} : memref<352x256xbf16, #tpu.memory_space<vmem>>, vector<176x64xbf16>,
    %c17_153 = arith.constant 17 : index
    %c0_154 = arith.constant 0 : index
    %112 = vector.load %arg15[%c17_153, %c0_154] : memref<416x64xbf16, #tpu.memory_space<vmem>>, vector<176x64xbf16>
    %c0_155 = arith.constant 0 : index
    %c192_156 = arith.constant 192 : index
    %113 = vector.load %arg13[%c0_155, %c192_156] : memref<352x256xbf16, #tpu.memory_space<vmem>>, vector<176x64xbf16>
    tpu.vector_store %arg13[%c0_155, %c192_156], %112 {strides = array<i32>} : memref<352x256xbf16, #tpu.memory_space<vmem>>, vector<176x64xbf16>,
    %c208_157 = arith.constant 208 : index
    %c0_158 = arith.constant 0 : index
    %114 = vector.load %arg15[%c208_157, %c0_158] : memref<416x64xbf16, #tpu.memory_space<vmem>>, vector<176x64xbf16>
    %c176 = arith.constant 176 : index
    %c0_159 = arith.constant 0 : index
    %115 = vector.load %arg13[%c176, %c0_159] : memref<352x256xbf16, #tpu.memory_space<vmem>>, vector<176x64xbf16>
    tpu.vector_store %arg13[%c176, %c0_159], %114 {strides = array<i32>} : memref<352x256xbf16, #tpu.memory_space<vmem>>, vector<176x64xbf16>,
    %c209 = arith.constant 209 : index
    %c0_160 = arith.constant 0 : index
    %116 = vector.load %arg15[%c209, %c0_160] : memref<416x64xbf16, #tpu.memory_space<vmem>>, vector<176x64xbf16>
    %c176_161 = arith.constant 176 : index
    %c64_162 = arith.constant 64 : index
    %117 = vector.load %arg13[%c176_161, %c64_162] : memref<352x256xbf16, #tpu.memory_space<vmem>>, vector<176x64xbf16>
    tpu.vector_store %arg13[%c176_161, %c64_162], %116 {strides = array<i32>} : memref<352x256xbf16, #tpu.memory_space<vmem>>, vector<176x64xbf16>,
    %c224_163 = arith.constant 224 : index
    %c0_164 = arith.constant 0 : index
    %118 = vector.load %arg15[%c224_163, %c0_164] : memref<416x64xbf16, #tpu.memory_space<vmem>>, vector<176x64xbf16>
    %c176_165 = arith.constant 176 : index
    %c128_166 = arith.constant 128 : index
    %119 = vector.load %arg13[%c176_165, %c128_166] : memref<352x256xbf16, #tpu.memory_space<vmem>>, vector<176x64xbf16>
    tpu.vector_store %arg13[%c176_165, %c128_166], %118 {strides = array<i32>} : memref<352x256xbf16, #tpu.memory_space<vmem>>, vector<176x64xbf16>,
    %c225 = arith.constant 225 : index
    %c0_167 = arith.constant 0 : index
    %120 = vector.load %arg15[%c225, %c0_167] : memref<416x64xbf16, #tpu.memory_space<vmem>>, vector<176x64xbf16>
    %c176_168 = arith.constant 176 : index
    %c192_169 = arith.constant 192 : index
    %121 = vector.load %arg13[%c176_168, %c192_169] : memref<352x256xbf16, #tpu.memory_space<vmem>>, vector<176x64xbf16>
    tpu.vector_store %arg13[%c176_168, %c192_169], %120 {strides = array<i32>} : memref<352x256xbf16, #tpu.memory_space<vmem>>, vector<176x64xbf16>,
    %c0_170 = arith.constant 0 : index
    %c0_171 = arith.constant 0 : index
    %122 = vector.load %arg13[%c0_170, %c0_171] : memref<352x256xbf16, #tpu.memory_space<vmem>>, vector<352x256xbf16>
    %c0_172 = arith.constant 0 : index
    %c0_173 = arith.constant 0 : index
    %123 = vector.load %arg6[%c0_172, %c0_173] : memref<256x64xbf16, #tpu.memory_space<vmem>>, vector<256x64xbf16>
    %cst_174 = arith.constant dense<0.000000e+00> : vector<352x64xf32>
    %124 = tpu.matmul %122, %123, %cst_174 {dimension_numbers = #tpu.dot_dimension_numbers<[1], [0], [0], [1], [0, 0, 1, 1], [], []>} : vector<352x256xbf16>, vector<256x64xbf16>, vector<352x64xf32> -> vector<352x64xf32>
    %c0_175 = arith.constant 0 : index
    %c0_176 = arith.constant 0 : index
    %125 = vector.load %arg7[%c0_175, %c0_176] : memref<1x64xf32, #tpu.memory_space<vmem>>, vector<1x64xf32>
    %126 = vector.broadcast %125 : vector<1x64xf32> to vector<352x64xf32>
    %127 = arith.addf %124, %126 : vector<352x64xf32>
    %cst_177 = arith.constant 0.000000e+00 : f32
    %128 = vector.broadcast %cst_177 : f32 to vector<352x64xf32>
    %129 = arith.maximumf %127, %128 : vector<352x64xf32>
    %130 = vector.extract_strided_slice %129 {offsets = [0, 0], sizes = [176, 64], strides = [1, 1]} : vector<352x64xf32> to vector<176x64xf32>
    %c0_178 = arith.constant 0 : index
    %c0_179 = arith.constant 0 : index
    %c0_180 = arith.constant 0 : index
    %131 = vector.load %arg8[%c0_178, %c0_179, %c0_180] : memref<4x176x64xbf16, #tpu.memory_space<vmem>>, vector<1x176x64xbf16>
    %132 = vector.shape_cast %131 : vector<1x176x64xbf16> to vector<176x64xbf16>
    %133 = arith.extf %132 : vector<176x64xbf16> to vector<176x64xf32>
    %134 = arith.mulf %130, %133 : vector<176x64xf32>
    %cst_181 = arith.constant dense<0.000000e+00> : vector<176xf32>
    %135 = vector.multi_reduction <add>, %134, %cst_181 [1] : vector<176x64xf32> to vector<176xf32>
    %136 = vector.shape_cast %135 : vector<176xf32> to vector<176x1xf32>
    %c1_182 = arith.constant 1 : index
    %c0_183 = arith.constant 0 : index
    %c0_184 = arith.constant 0 : index
    %137 = vector.load %arg8[%c1_182, %c0_183, %c0_184] : memref<4x176x64xbf16, #tpu.memory_space<vmem>>, vector<1x176x64xbf16>
    %138 = vector.shape_cast %137 : vector<1x176x64xbf16> to vector<176x64xbf16>
    %139 = arith.extf %138 : vector<176x64xbf16> to vector<176x64xf32>
    %140 = arith.mulf %130, %139 : vector<176x64xf32>
    %cst_185 = arith.constant dense<0.000000e+00> : vector<176xf32>
    %141 = vector.multi_reduction <add>, %140, %cst_185 [1] : vector<176x64xf32> to vector<176xf32>
    %142 = vector.shape_cast %141 : vector<176xf32> to vector<176x1xf32>
    %c2_186 = arith.constant 2 : index
    %c0_187 = arith.constant 0 : index
    %c0_188 = arith.constant 0 : index
    %143 = vector.load %arg8[%c2_186, %c0_187, %c0_188] : memref<4x176x64xbf16, #tpu.memory_space<vmem>>, vector<1x176x64xbf16>
    %144 = vector.shape_cast %143 : vector<1x176x64xbf16> to vector<176x64xbf16>
    %145 = arith.extf %144 : vector<176x64xbf16> to vector<176x64xf32>
    %146 = arith.mulf %130, %145 : vector<176x64xf32>
    %cst_189 = arith.constant dense<0.000000e+00> : vector<176xf32>
    %147 = vector.multi_reduction <add>, %146, %cst_189 [1] : vector<176x64xf32> to vector<176xf32>
    %148 = vector.shape_cast %147 : vector<176xf32> to vector<176x1xf32>
    %c3 = arith.constant 3 : index
    %c0_190 = arith.constant 0 : index
    %c0_191 = arith.constant 0 : index
    %149 = vector.load %arg8[%c3, %c0_190, %c0_191] : memref<4x176x64xbf16, #tpu.memory_space<vmem>>, vector<1x176x64xbf16>
    %150 = vector.shape_cast %149 : vector<1x176x64xbf16> to vector<176x64xbf16>
    %151 = arith.extf %150 : vector<176x64xbf16> to vector<176x64xf32>
    %152 = arith.mulf %130, %151 : vector<176x64xf32>
    %cst_192 = arith.constant dense<0.000000e+00> : vector<176xf32>
    %153 = vector.multi_reduction <add>, %152, %cst_192 [1] : vector<176x64xf32> to vector<176xf32>
    %154 = vector.shape_cast %153 : vector<176xf32> to vector<176x1xf32>
    %155 = tpu.concatenate %136, %142, %148, %154 in 1 : vector<176x1xf32>, vector<176x1xf32>, vector<176x1xf32>, vector<176x1xf32> -> vector<176x4xf32>
    %cst_193 = arith.constant dense<0.000000e+00> : vector<4xf32>
    %156 = vector.multi_reduction <add>, %155, %cst_193 [0] : vector<176x4xf32> to vector<4xf32>
    %157 = vector.shape_cast %156 : vector<4xf32> to vector<1x4xf32>
    %158 = vector.extract_strided_slice %129 {offsets = [176, 0], sizes = [176, 64], strides = [1, 1]} : vector<352x64xf32> to vector<176x64xf32>
    %c0_194 = arith.constant 0 : index
    %c0_195 = arith.constant 0 : index
    %c0_196 = arith.constant 0 : index
    %159 = vector.load %arg8[%c0_194, %c0_195, %c0_196] : memref<4x176x64xbf16, #tpu.memory_space<vmem>>, vector<1x176x64xbf16>
    %160 = vector.shape_cast %159 : vector<1x176x64xbf16> to vector<176x64xbf16>
    %161 = arith.extf %160 : vector<176x64xbf16> to vector<176x64xf32>
    %162 = arith.mulf %158, %161 : vector<176x64xf32>
    %cst_197 = arith.constant dense<0.000000e+00> : vector<176xf32>
    %163 = vector.multi_reduction <add>, %162, %cst_197 [1] : vector<176x64xf32> to vector<176xf32>
    %164 = vector.shape_cast %163 : vector<176xf32> to vector<176x1xf32>
    %c1_198 = arith.constant 1 : index
    %c0_199 = arith.constant 0 : index
    %c0_200 = arith.constant 0 : index
    %165 = vector.load %arg8[%c1_198, %c0_199, %c0_200] : memref<4x176x64xbf16, #tpu.memory_space<vmem>>, vector<1x176x64xbf16>
    %166 = vector.shape_cast %165 : vector<1x176x64xbf16> to vector<176x64xbf16>
    %167 = arith.extf %166 : vector<176x64xbf16> to vector<176x64xf32>
    %168 = arith.mulf %158, %167 : vector<176x64xf32>
    %cst_201 = arith.constant dense<0.000000e+00> : vector<176xf32>
    %169 = vector.multi_reduction <add>, %168, %cst_201 [1] : vector<176x64xf32> to vector<176xf32>
    %170 = vector.shape_cast %169 : vector<176xf32> to vector<176x1xf32>
    %c2_202 = arith.constant 2 : index
    %c0_203 = arith.constant 0 : index
    %c0_204 = arith.constant 0 : index
    %171 = vector.load %arg8[%c2_202, %c0_203, %c0_204] : memref<4x176x64xbf16, #tpu.memory_space<vmem>>, vector<1x176x64xbf16>
    %172 = vector.shape_cast %171 : vector<1x176x64xbf16> to vector<176x64xbf16>
    %173 = arith.extf %172 : vector<176x64xbf16> to vector<176x64xf32>
    %174 = arith.mulf %158, %173 : vector<176x64xf32>
    %cst_205 = arith.constant dense<0.000000e+00> : vector<176xf32>
    %175 = vector.multi_reduction <add>, %174, %cst_205 [1] : vector<176x64xf32> to vector<176xf32>
    %176 = vector.shape_cast %175 : vector<176xf32> to vector<176x1xf32>
    %c3_206 = arith.constant 3 : index
    %c0_207 = arith.constant 0 : index
    %c0_208 = arith.constant 0 : index
    %177 = vector.load %arg8[%c3_206, %c0_207, %c0_208] : memref<4x176x64xbf16, #tpu.memory_space<vmem>>, vector<1x176x64xbf16>
    %178 = vector.shape_cast %177 : vector<1x176x64xbf16> to vector<176x64xbf16>
    %179 = arith.extf %178 : vector<176x64xbf16> to vector<176x64xf32>
    %180 = arith.mulf %158, %179 : vector<176x64xf32>
    %cst_209 = arith.constant dense<0.000000e+00> : vector<176xf32>
    %181 = vector.multi_reduction <add>, %180, %cst_209 [1] : vector<176x64xf32> to vector<176xf32>
    %182 = vector.shape_cast %181 : vector<176xf32> to vector<176x1xf32>
    %183 = tpu.concatenate %164, %170, %176, %182 in 1 : vector<176x1xf32>, vector<176x1xf32>, vector<176x1xf32>, vector<176x1xf32> -> vector<176x4xf32>
    %cst_210 = arith.constant dense<0.000000e+00> : vector<4xf32>
    %184 = vector.multi_reduction <add>, %183, %cst_210 [0] : vector<176x4xf32> to vector<4xf32>
    %185 = vector.shape_cast %184 : vector<4xf32> to vector<1x4xf32>
    %186 = tpu.concatenate %157, %185 in 0 : vector<1x4xf32>, vector<1x4xf32> -> vector<2x4xf32>
    %c0_211 = arith.constant 0 : index
    %c0_212 = arith.constant 0 : index
    %187 = vector.load %arg9[%c0_211, %c0_212] : memref<1x4xf32, #tpu.memory_space<vmem>>, vector<1x4xf32>
    %188 = vector.broadcast %187 : vector<1x4xf32> to vector<2x4xf32>
    %189 = arith.addf %186, %188 : vector<2x4xf32>
    %c0_213 = arith.constant 0 : index
    %c0_214 = arith.constant 0 : index
    %190 = vector.load %arg10[%c0_213, %c0_214] : memref<2x4xf32, #tpu.memory_space<vmem>>, vector<2x4xf32>
    tpu.vector_store %arg10[%c0_213, %c0_214], %189 {strides = array<i32>} : memref<2x4xf32, #tpu.memory_space<vmem>>, vector<2x4xf32>,
    return
  }
  func.func @transform_0(%arg0: i32) -> (i32, i32) {
    %c0_i32 = arith.constant 0 : i32
    %c0_i32_0 = arith.constant 0 : i32
    %c0_i32_1 = arith.constant 0 : i32
    return %c0_i32, %c0_i32_0 : i32, i32
  }
  func.func @transform_1(%arg0: i32) -> (i32, i32) {
    %c0_i32 = arith.constant 0 : i32
    %c0_i32_0 = arith.constant 0 : i32
    %c0_i32_1 = arith.constant 0 : i32
    return %c0_i32, %c0_i32_0 : i32, i32
  }
  func.func @transform_2(%arg0: i32) -> (i32, i32) {
    %c0_i32 = arith.constant 0 : i32
    %c0_i32_0 = arith.constant 0 : i32
    %c0_i32_1 = arith.constant 0 : i32
    return %c0_i32, %c0_i32_0 : i32, i32
  }
  func.func @transform_3(%arg0: i32) -> (i32, i32) {
    %c0_i32 = arith.constant 0 : i32
    %c0_i32_0 = arith.constant 0 : i32
    %c0_i32_1 = arith.constant 0 : i32
    return %c0_i32, %c0_i32_0 : i32, i32
  }
  func.func @transform_4(%arg0: i32) -> (i32, i32) {
    %c0_i32 = arith.constant 0 : i32
    %c0_i32_0 = arith.constant 0 : i32
    %c0_i32_1 = arith.constant 0 : i32
    return %c0_i32, %c0_i32_0 : i32, i32
  }
  func.func @transform_5(%arg0: i32) -> (i32, i32) {
    %c0_i32 = arith.constant 0 : i32
    %c0_i32_0 = arith.constant 0 : i32
    %c0_i32_1 = arith.constant 0 : i32
    return %c0_i32, %c0_i32_0 : i32, i32
  }
  func.func @transform_6(%arg0: i32) -> (i32, i32) {
    %c0_i32 = arith.constant 0 : i32
    %c0_i32_0 = arith.constant 0 : i32
    %c0_i32_1 = arith.constant 0 : i32
    return %c0_i32, %c0_i32_0 : i32, i32
  }
  func.func @transform_7(%arg0: i32) -> (i32, i32, i32) {
    %c0_i32 = arith.constant 0 : i32
    %c0_i32_0 = arith.constant 0 : i32
    %c0_i32_1 = arith.constant 0 : i32
    %c0_i32_2 = arith.constant 0 : i32
    return %c0_i32, %c0_i32_0, %c0_i32_1 : i32, i32, i32
  }
  func.func @transform_8(%arg0: i32) -> (i32, i32) {
    %c0_i32 = arith.constant 0 : i32
    %c0_i32_0 = arith.constant 0 : i32
    %c0_i32_1 = arith.constant 0 : i32
    return %c0_i32, %c0_i32_0 : i32, i32
  }
  func.func @transform_9(%arg0: i32) -> (i32, i32) {
    %c0_i32 = arith.constant 0 : i32
    %c0_i32_0 = arith.constant 0 : i32
    %c0_i32_1 = arith.constant 0 : i32
    return %c0_i32, %c0_i32_0 : i32, i32
  }
}

</mosaic_0001>

<bundles_post_ra>
// kernel: dqn_forward.1
= control target key start
LH: loop header
LB: loop body
LE: loop exit
PB: predicated region body
PF: predicated region fallthrough
CT: control target
= control target key end

     0   :  { %s10290_s11 = smov 24   ;;  %vm545_vm0 = vcmask 1046528   ;;  %vm269_vm1 = vsmask.f32 7424  ;;  %s10291_s22 = smov 16   ;;  %vm152_vm2 = vcmask 64512   ;;  %s15056_s0 = inlined_call_operand.vmem [shape: bf16[544,8], index: 0, kind: input, shape index: {}]   ;;  %s15057_s1 = inlined_call_operand.vmem [shape: bf16[72,32], index: 1, kind: input, shape index: {}]   ;;  %s15058_s2 = inlined_call_operand.vmem [shape: f32[1,32], index: 2, kind: input, shape index: {}]   ;;  %s15059_s3 = inlined_call_operand.vmem [shape: bf16[288,64], index: 3, kind: input, shape index: {}]   ;;  %s15060_s4 = inlined_call_operand.vmem [shape: f32[1,64], index: 4, kind: input, shape index: {}]   ;;  %s15061_s5 = inlined_call_operand.vmem [shape: bf16[256,64], index: 5, kind: input, shape index: {}]   ;;  %s15062_s6 = inlined_call_operand.vmem [shape: f32[1,64], index: 6, kind: input, shape index: {}]   ;;  %s15063_s7 = inlined_call_operand.vmem [shape: bf16[4,176,64], index: 7, kind: input, shape index: {}]   ;;  %s15064_s8 = inlined_call_operand.vmem [shape: f32[1,4], index: 8, kind: input, shape index: {}]   ;;  %s15065_s9 = inlined_call_operand.hbm [shape: f32[2,4], index: 9, kind: output, shape index: {}]  }
   0x1   :  { %v9958_v0 = vld [vmem:[%s15056_s0 + $0x8] sm:$0xff]   ;;  %v9959_v1 = vld [vmem:[%s15056_s0] sm:$0xfe]   ;;  %v10364_v3 = vld [vmem:[%s15056_s0 + $0x10] sm:$0xff]   ;;  %s10292_s15 = smov 8   ;;  %s10293_s23 = smov 32  }
   0x2   :  { %730 = vrot.lane.b32.xlu0 %v9958_v0, %s10290_s11  ;;  %v9960_v2 = vld [vmem:[%s15056_s0 + $0x8] sm:$0xff]   ;;  %v546_v4 = vrot.slane %v9959_v1, 1  ;;  %v549_v6 = vrot.slane %v10364_v3, 1  ;;  %v9962_v7 = vld [vmem:[%s15056_s0] sm:$0xff]   ;;  %v10378_v12 = vld [vmem:[%s15056_s0 + $0x10] sm:$0xff]   ;;  %s10294_s30 = smov 40  }
   0x3   :  { %v547_v5 = vrot.slane %v9960_v2, 1  ;;  %v9963_v9 = vld [vmem:[%s15056_s0 + $0x8] sm:$0xff]   ;;  %v271_v10 = vshrl.u32 %v9962_v7, 16  ;;  %v273_v11 = vshll.u32 %v9962_v7, 16  ;;  %v9964_v17 = vld [vmem:[%s15056_s0 + $0x10] sm:$0xff]   ;;  %v286_v18 = vshll.u32 %v10378_v12, 16 }
   0x4   :  { %v278_v14 = vshll.u32 %v9963_v9, 16  ;;  %v282_v15 = vshrl.u32 %v9963_v9, 16  ;;  %v9966_v20 = vld [vmem:[%s15056_s0 + $0x10] sm:$0xff]   ;;  %v10394_v23 = vld [vmem:[%s15056_s0 + $0x18] sm:$0xff]   ;;  %v9968_v24 = vld [vmem:[%s15056_s0 + $0x8] sm:$0xff]   ;;  %v290_v61 = vshrl.u32 %v10378_v12, 16 }
   0x5   :  { %v548_v8 = vsel %vm545_vm0, %v546_v4, %v547_v5  ;;  %v550_v13 = vsel %vm545_vm0, %v547_v5, %v549_v6  ;;  %v275_v16 = vrot.slane %v273_v11, 1  ;;  %v288_v22 = vrot.slane %v286_v18, 1  ;;  %v9969_v32 = vld [vmem:[%s15056_s0 + $0x10] sm:$0xff]   ;;  %v10408_v34 = vld [vmem:[%s15056_s0 + $0x18] sm:$0xff]   ;;  %v9971_v41 = vld [vmem:[%s15056_s0 + $0x8] sm:$0xfe]  }
   0x6   :  { %575 = vrot.lane.b32.xlu1 %v548_v8, %s10291_s22  ;;  %v280_v19 = vrot.slane %v278_v14, 1  ;;  %v897_v26 = vshll.u32 %v9966_v20, 16  ;;  %v901_v27 = vshrl.u32 %v9966_v20, 16  ;;  %v905_v29 = vshll.u32 %v10394_v23, 16  ;;  %v9974_v45 = vld [vmem:[%s15056_s0 + $0x18] sm:$0xff]   ;;  %v10432_v48 = vld [vmem:[%s15056_s0 + $0x20] sm:$0xff]  }
   0x7   :  { %v276_v21 = vor.u32 %v275_v16, %v271_v10  ;;  %v890_v30 = vshrl.u32 %v9968_v24, 16  ;;  %v892_v31 = vshll.u32 %v9968_v24, 16  ;;  %v1165_v39 = vrot.slane %v9969_v32, 1  ;;  %v9972_v51 = vld [vmem:[%s15056_s0 + $0x18] sm:$0xff]   ;;  %v9976_v52 = vld [vmem:[%s15056_s0 + $0x10] sm:$0xff]   ;;  %v10460_v2 = vld [vmem:[%s15056_s0 + $0x20] sm:$0xff]  }
   0x8   :  { %v284_v25 = vor.u32 %v282_v15, %v280_v19  ;;  %v899_v33 = vrot.slane %v897_v26, 1  ;;  %v10412_v36 = vrot.slane %v905_v29, 1  ;;  %v1167_v40 = vrot.slane %v10408_v34, 1  ;;  %v9977_v58 = vld [vmem:[%s15056_s0 + $0x18] sm:$0xff]   ;;  %v9973_v62 = vld [vmem:[%s15056_s0 + $0x10] sm:$0xff]   ;;  %s10295_s20 = smov 48  }
   0x9   :  { %v281_v28 = vsel %vm269_vm1, %v276_v21, %v280_v19  ;;  %v894_v37 = vrot.slane %v892_v31, 1  ;;  %v1164_v44 = vrot.slane %v9971_v41, 1  ;;  %v1515_v49 = vshll.u32 %v9974_v45, 16  ;;  %v9979_v1 = vld [vmem:[%s15056_s0 + $0x18] sm:$0xff]   ;;  %v9978_v7 = vld [vmem:[%s15056_s0 + $0x10] sm:$0xfe]  }
   0xa   :  { %577 = vrot.lane.b32.xlu1 %v550_v13, %s10291_s22  ;;  %386 = vrot.lane.b32.xlu0 %v281_v28, %s10292_s15  ;;  %v289_v35 = vsel %vm269_vm1, %v284_v25, %v288_v22  ;;  %v903_v38 = vor.u32 %v901_v27, %v899_v33  ;;  %v1168_v47 = vsel %vm545_vm0, %v1165_v39, %v1167_v40  ;;  %v1519_v50 = vshrl.u32 %v9974_v45, 16  ;;  %v10473_v13 = vld [vmem:[%s15056_s0 + $0x20] sm:$0xff]   ;;  %s10296_s27 = smov 56   ;;  %v9982_v16 = vld [vmem:[%s15056_s0 + $0x18] sm:$0xff]   ;;  %s10297_s18 = smov 64  }
   0xb   :  { %v895_v42 = vor.u32 %v894_v37, %v890_v30  ;;  %v1517_v53 = vrot.slane %v1515_v49, 1  ;;  %v1523_v54 = vshll.u32 %v10432_v48, 16  ;;  %v1166_v55 = vsel %vm545_vm0, %v1164_v44, %v1165_v39  ;;  %v10486_v20 = vld [vmem:[%s15056_s0 + $0x20] sm:$0xff]   ;;  %v10501_v28 = vld [vmem:[%s15056_s0 + $0x28] sm:$0xff]   ;;  %v10546_v49 = vld [vmem:[%s15056_s0 + $0x30] sm:$0xff]  }
   0xc   :  { %v908_v43 = vsel %vm269_vm1, %v903_v38, %v10412_v36  ;;  %v1508_v56 = vshrl.u32 %v9976_v52, 16  ;;  %v1510_v57 = vshll.u32 %v9976_v52, 16  ;;  %v294_v0 = vshll.u32 %v9977_v58, 16  ;;  %v9984_v37 = vld [vmem:[%s15056_s0 + $0x20] sm:$0xff]   ;;  %v9992_v3 = vld [vmem:[%s15056_s0 + $0x28] sm:$0xff]  }
   0xd   :  { %v900_v46 = vsel %vm269_vm1, %v895_v42, %v899_v33  ;;  %v1521_v59 = vor.u32 %v1519_v50, %v1517_v53  ;;  %v10447_v60 = vrot.slane %v1523_v54, 1  ;;  %v292_v9 = vor.u32 %v290_v61, %v288_v22  ;;  %v9986_v22 = vld [vmem:[%s15056_s0 + $0x20] sm:$0xff]   ;;  %v10527_v42 = vld [vmem:[%s15056_s0 + $0x28] sm:$0xff]  }
   0xe   :  { %732 = vrot.lane.b32.xlu1 %v9964_v17, %s10290_s11  ;;  %388 = vrot.lane.b32.xlu0 %v289_v35, %s10292_s15  ;;  %v1512_v63 = vrot.slane %v1510_v57, 1  ;;  %v296_v5 = vrot.slane %v294_v0, 1  ;;  %v298_v10 = vshrl.u32 %v9977_v58, 16  ;;  %v302_v11 = vshll.u32 %v10460_v2, 16  ;;  %v9988_v41 = vld [vmem:[%s15056_s0 + $0x20] sm:$0xff]   ;;  %v10565_v57 = vld [vmem:[%s15056_s0 + $0x30] sm:$0xff]  }
   0xf   :  { %v1526_v8 = vsel %vm269_vm1, %v1521_v59, %v10447_v60  ;;  %v1783_v12 = vrot.slane %v9979_v1, 1  ;;  %v1782_v15 = vrot.slane %v9978_v7, 1  ;;  %v1785_v21 = vrot.slane %v10473_v13, 1  ;;  %v9990_v59 = vld [vmem:[%s15056_s0 + $0x28] sm:$0xff]   ;;  %v10580_v0 = vld [vmem:[%s15056_s0 + $0x30] sm:$0xff]   ;;  %v9991_v34 = vld [vmem:[%s15056_s0 + $0x20] sm:$0xff]  }
  0x10   :  { %v1513_v4 = vor.u32 %v1512_v63, %v1508_v56  ;;  %v297_v17 = vsel %vm269_vm1, %v292_v9, %v296_v5  ;;  %v300_v18 = vor.u32 %v298_v10, %v296_v5  ;;  %v10481_v19 = vrot.slane %v302_v11, 1  ;;  %v9994_v56 = vld [vmem:[%s15056_s0 + $0x28] sm:$0xff]  }
  0x11   :  { %v1784_v24 = vsel %vm545_vm0, %v1782_v15, %v1783_v12  ;;  %v551_v26 = vrot.slane %v9982_v16, 1  ;;  %v553_v27 = vrot.slane %v10486_v20, 1  ;;  %v913_v29 = vshll.u32 %v9986_v22, 16  ;;  %v9998_v10 = vld [vmem:[%s15056_s0 + $0x28] sm:$0xff]  }
  0x12   :  { %1007 = vrot.lane.b32.xlu1 %v908_v43, %s10293_s23  ;;  %1005 = vrot.lane.b32.xlu0 %v900_v46, %s10293_s23  ;;  %v1518_v14 = vsel %vm269_vm1, %v1513_v4, %v1517_v53  ;;  %v305_v25 = vsel %vm269_vm1, %v300_v18, %v10481_v19  ;;  %v1786_v30 = vsel %vm545_vm0, %v1783_v12, %v1785_v21  ;;  %v917_v31 = vshrl.u32 %v9986_v22, 16  ;;  %v10600_v12 = vld [vmem:[%s15056_s0 + $0x30] sm:$0xff]   ;;  %v10027_v20 = vld [vmem:[%s15056_s0 + $0x8] sm:$0xff]  }
  0x13   :  { %v554_v32 = vsel %vm545_vm0, %v551_v26, %v553_v27  ;;  %v915_v33 = vrot.slane %v913_v29, 1  ;;  %v921_v35 = vshll.u32 %v10501_v28, 16  ;;  %v552_v38 = vsel %vm545_vm0, %v549_v6, %v551_v26  ;;  %v9985_v6 = vld [vmem:[%s15056_s0 + $0x18] sm:$0xff]   ;;  %154 = vst.msk [vmem:[#allocation2 + $0x8] sm:$0xff] %vm152_vm2, %v10027_v20  ;;  %v10016_v20 = vld [vmem:[%s15056_s0 + $0x40] sm:$0xff]  }
  0x14   :  { %v909_v39 = vshrl.u32 %v10394_v23, 16  ;;  %v1169_v45 = vrot.slane %v9988_v41, 1  ;;  %v1171_v46 = vrot.slane %v10527_v42, 1  ;;  %v1531_v50 = vshll.u32 %v9992_v3, 16  ;;  %v10654_v41 = vld [vmem:[%s15056_s0 + $0x38] sm:$0xff]   ;;  %v10037_v42 = vld [vmem:[%s15057_s1 + $0x8] sm:$0xff]  }
  0x15   :  { %v919_v43 = vor.u32 %v917_v31, %v915_v33  ;;  %v10529_v44 = vrot.slane %v921_v35, 1  ;;  %v1535_v53 = vshrl.u32 %v9992_v3, 16  ;;  %v1539_v54 = vshll.u32 %v10546_v49, 16  ;;  %v10024_v35 = vld [vmem:[%s15056_s0] sm:$0xff]  }
  0x16   :  { %1195 = vrot.lane.b32.xlu1 %v1168_v47, %s10294_s30  ;;  %1193 = vrot.lane.b32.xlu0 %v1166_v55, %s10294_s30  ;;  %v911_v23 = vor.u32 %v909_v39, %v10412_v36  ;;  %v1172_v36 = vsel %vm545_vm0, %v1169_v45, %v1171_v46  ;;  %v1533_v52 = vrot.slane %v1531_v50, 1  ;;  %v9996_v55 = vld [vmem:[%s15056_s0 + $0x28] sm:$0xff]   ;;  %v1170_v58 = vsel %vm545_vm0, %v1167_v40, %v1169_v45 }
  0x17   :  { %v924_v47 = vsel %vm269_vm1, %v919_v43, %v10529_v44  ;;  %v1527_v61 = vshrl.u32 %v10432_v48, 16  ;;  %v10575_v63 = vrot.slane %v1539_v54, 1  ;;  %v310_v1 = vshll.u32 %v9996_v55, 16  ;;  %153 = vst.msk [vmem:[#allocation2] sm:$0xff] %vm152_vm2, %v10024_v35  ;;  %v10008_v43 = vld [vmem:[%s15056_s0 + $0x38] sm:$0xff]  }
  0x18   :  { %v1787_v40 = vrot.slane %v9994_v56, 1  ;;  %v1789_v4 = vrot.slane %v10565_v57, 1  ;;  %v318_v9 = vshll.u32 %v10580_v0, 16  ;;  %v306_v11 = vshrl.u32 %v10460_v2, 16  ;;  %v10012_v54 = vld [vmem:[%s15056_s0 + $0x38] sm:$0xff]  }
  0x19   :  { %v1529_v48 = vor.u32 %v1527_v61, %v10447_v60  ;;  %v312_v7 = vrot.slane %v310_v1, 1  ;;  %v10002_v60 = vld [vmem:[%s15056_s0 + $0x30] sm:$0xff]   ;;  %v555_v2 = vrot.slane %v9998_v10, 1  ;;  %v557_v18 = vrot.slane %v10600_v12, 1  ;;  %v10010_v56 = vld [vmem:[%s15056_s0 + $0x38] sm:$0xff]   ;;  %v10034_v61 = vld [vmem:[%s15057_s1] sm:$0xff]  }
  0x1a   :  { %1350 = vrot.lane.b32.xlu1 %v9972_v51, %s10295_s20  ;;  %1348 = vrot.lane.b32.xlu0 %v9973_v62, %s10295_s20  ;;  %v916_v51 = vsel %vm269_vm1, %v911_v23, %v915_v33  ;;  %v1537_v62 = vor.u32 %v1535_v53, %v1533_v52  ;;  %v1790_v15 = vsel %vm545_vm0, %v1787_v40, %v1789_v4  ;;  %v929_v26 = vshll.u32 %v10002_v60, 16  ;;  %v10710_v1 = vld [vmem:[%s15056_s0 + $0x40] sm:$0xff]   ;;  %v10017_v12 = vld [vmem:[%s15056_s0 + $0x38] sm:$0xff]  }
  0x1b   :  { %v1788_v22 = vsel %vm545_vm0, %v1785_v21, %v1787_v40  ;;  %v933_v13 = vshrl.u32 %v10002_v60, 16  ;;  %v925_v33 = vshrl.u32 %v10501_v28, 16  ;;  %v1175_v45 = vrot.slane %v10654_v41, 1  ;;  %9817 = vmatprep.subr.bf16.mxu0 %v10034_v61  ;;  %9935 = vmatprep.subr.bf16.mxu1 %v10034_v61  ;;  %v10040_v60 = vld [vmem:[%s15056_s0 + $0x10] sm:$0xff]   ;;  %v10048_v57 = vld [vmem:[%s15057_s1 + $0x20] ss:$0 sps:$4 sm:$0xff]  }
  0x1c   :  { %v1542_v5 = vsel %vm269_vm1, %v1537_v62, %v10575_v63  ;;  %v931_v21 = vrot.slane %v929_v26, 1  ;;  %v1547_v50 = vshll.u32 %v10008_v43, 16  ;;  %9818 = vmatpush3.bf16.msra.mxu0 %v10034_v61  ;;  %9940 = vmatpush3.bf16.msra.mxu1 %v10034_v61  ;;  %155 = vst.msk [vmem:[#allocation2 + $0x10] sm:$0xff] %vm152_vm2, %v10040_v60  ;;  %vm3841_vm3 = vcmask 1043456  }
  0x1d   :  { %v927_v3 = vor.u32 %v925_v33, %v10529_v44  ;;  %9819 = vmatprep.subr.bf16.mxu0 %v10037_v42  ;;  %9936 = vmatprep.subr.bf16.mxu1 %v10037_v42  ;;  %v10773_v33 = vld [vmem:[%s15056_s0 + $0x48] sm:$0xff]   ;;  %vm428_vm4 = vcmask 130112   ;;  %vm617_vm5 = vcmask 195712   ;;  %vm772_vm6 = vcmask 261312  }
  0x1e   :  { %1625 = vrot.lane.b32.xlu1 %v1526_v8, %s10296_s27  ;;  %1623 = vrot.lane.b32.xlu0 %v1518_v14, %s10296_s27  ;;  %v314_v8 = vshrl.u32 %v9996_v55, 16  ;;  %v1534_v14 = vsel %vm269_vm1, %v1529_v48, %v1533_v52  ;;  %v935_v28 = vor.u32 %v933_v13, %v931_v21  ;;  %v1551_v52 = vshrl.u32 %v10008_v43, 16  ;;  %v10006_v55 = vld [vmem:[%s15056_s0 + $0x38] sm:$0xff]  }
  0x1f   :  { %v932_v44 = vsel %vm269_vm1, %v927_v3, %v931_v21  ;;  %v326_v48 = vshll.u32 %v10012_v54, 16  ;;  %v10045_v13 = vld [vmem:[%s15057_s1 + $0x18] sm:$0xff]   ;;  %v953_v43 = vshll.u32 %v10773_v33, 16  ;;  %vm1047_vm7 = vcmask 326912  }
  0x20   :  { %v316_v16 = vor.u32 %v314_v8, %v312_v7  ;;  %v330_v8 = vshrl.u32 %v10012_v54, 16  ;;  %9820 = vmatpush3.bf16.msra.mxu0 %v10037_v42  ;;  %9941 = vmatpush3.bf16.msra.mxu1 %v10037_v42  ;;  %v10847_v42 = vld [vmem:[%s15056_s0 + $0x50] sm:$0xff]   ;;  %vm1235_vm8 = vcmask 392512   ;;  %vm1390_vm9 = vcmask 458112  }
  0x21   :  { %vm1665_vm10 = vcmask 523712   ;;  %vm1853_vm11 = vcmask 589312   ;;  %vm3756_vm12 = vcmask 588800  }
  0x22   :  { %390 = vrot.lane.b32.xlu1 %v297_v17, %s10292_s15  ;;  %1811 = vrot.lane.b32.xlu0 %v1784_v24, %s10297_s18  ;;  %v10610_v17 = vrot.slane %v318_v9, 1  ;;  %v308_v24 = vor.u32 %v306_v11, %v10481_v19  ;;  %v558_v19 = vsel %vm545_vm0, %v555_v2, %v557_v18  ;;  %v334_v9 = vshll.u32 %v10710_v1, 16 }
  0x23   :  { %v328_v11 = vrot.slane %v326_v48, 1  ;;  %v10063_v48 = vld [vmem:[%s15056_s0 + $0x28] sm:$0xff]  }
  0x24   :  { %v321_v29 = vsel %vm269_vm1, %v316_v16, %v10610_v17  ;;  %v322_v16 = vshrl.u32 %v10580_v0, 16  ;;  %v10044_v0 = vld [vmem:[%s15056_s0 + $0x18] sm:$0xff]   ;;  %158 = vst.msk [vmem:[#allocation2 + $0x28] sm:$0xff] %vm152_vm2, %v10063_v48  ;;  %v10036_v48 = vld [vmem:[%s15056_s0 + $0x48] sm:$0xff]  }
  0x25   :  { %v332_v26 = vor.u32 %v330_v8, %v328_v11  ;;  %156 = vst.msk [vmem:[#allocation2 + $0x18] sm:$0xff] %vm152_vm2, %v10044_v0 }
  0x26   :  { %392 = vrot.lane.b32.xlu1 %v305_v25, %s10292_s15  ;;  %1813 = vrot.lane.b32.xlu0 %v1786_v30, %s10297_s18  ;;  %v10622_v25 = vld [vmem:[%s15056_s0 + $0x38] sm:$0xff]   ;;  %v313_v30 = vsel %vm269_vm1, %v308_v24, %v312_v7  ;;  %v324_v21 = vor.u32 %v322_v16, %v10610_v17 }
  0x27   :  { %v937_v31 = vshll.u32 %v10622_v25, 16 }
  0x28   :  { %v329_v17 = vsel %vm269_vm1, %v324_v21, %v328_v11  ;;  %v10863_v11 = vld [vmem:[%s15056_s0 + $0x50] sm:$0xff]  }
  0x29   :  { %v10649_v39 = vrot.slane %v937_v31, 1 }
  0x2a   :  { %581 = vrot.lane.b32.xlu1 %v554_v32, %s10291_s22  ;;  %579 = vrot.lane.b32.xlu0 %v552_v38, %s10291_s22  ;;  %v10000_v32 = vld [vmem:[%s15056_s0 + $0x30] sm:$0xff]   ;;  %v556_v38 = vsel %vm545_vm0, %v553_v27, %v555_v2  ;;  %v10001_v27 = vld [vmem:[%s15056_s0 + $0x28] sm:$0xff]  }
  0x2b   :  { %v10744_v2 = vld [vmem:[%s15056_s0 + $0x40] sm:$0xff]  }
  0x2c   :  { %v561_v31 = vrot.slane %v10744_v2, 1 }
  0x2e   :  { %736 = vrot.lane.b32.xlu1 %v9984_v37, %s10290_s11  ;;  %734 = vrot.lane.b32.xlu0 %v9985_v6, %s10290_s11  ;;  %v10004_v37 = vld [vmem:[%s15056_s0 + $0x30] sm:$0xff]   ;;  %v940_v6 = vsel %vm269_vm1, %v935_v28, %v10649_v39 }
  0x2f   :  { %v1173_v23 = vrot.slane %v10004_v37, 1 }
  0x31   :  { %v1174_v62 = vsel %vm545_vm0, %v1171_v46, %v1173_v23 }
  0x32   :  { %1011 = vrot.lane.b32.xlu1 %v924_v47, %s10293_s23  ;;  %1009 = vrot.lane.b32.xlu0 %v916_v51, %s10293_s23  ;;  %v10675_v47 = vld [vmem:[%s15056_s0 + $0x40] sm:$0xff]   ;;  %v1176_v51 = vsel %vm545_vm0, %v1173_v23, %v1175_v45  ;;  %v10803_v23 = vld [vmem:[%s15056_s0 + $0x48] sm:$0xff]  }
  0x33   :  { %v1555_v53 = vshll.u32 %v10675_v47, 16 }
  0x35   :  { %v10715_v40 = vrot.slane %v1555_v53, 1  ;;  %v1179_v53 = vrot.slane %v10803_v23, 1 }
  0x36   :  { %1199 = vrot.lane.b32.xlu1 %v1172_v36, %s10294_s30  ;;  %1197 = vrot.lane.b32.xlu0 %v1170_v58, %s10294_s30  ;;  %v1549_v36 = vrot.slane %v1547_v50, 1  ;;  %v1543_v58 = vshrl.u32 %v10546_v49, 16  ;;  %v10007_v49 = vld [vmem:[%s15056_s0 + $0x30] sm:$0xff]  }
  0x38   :  { %v1545_v46 = vor.u32 %v1543_v58, %v10575_v63  ;;  %v10014_v63 = vld [vmem:[%s15056_s0 + $0x38] sm:$0xff]  }
  0x3a   :  { %1354 = vrot.lane.b32.xlu1 %v9990_v59, %s10295_s20  ;;  %1352 = vrot.lane.b32.xlu0 %v9991_v34, %s10295_s20  ;;  %v10698_v59 = vld [vmem:[%s15056_s0 + $0x40] sm:$0xff]   ;;  %v1553_v34 = vor.u32 %v1551_v52, %v1549_v36 }
  0x3b   :  { %v1793_v7 = vrot.slane %v10698_v59, 1 }
  0x3c   :  { %v1558_v10 = vsel %vm269_vm1, %v1553_v34, %v10715_v40  ;;  %v10022_v34 = vld [vmem:[%s15056_s0 + $0x48] sm:$0xff]  }
  0x3e   :  { %1629 = vrot.lane.b32.xlu1 %v1542_v5, %s10296_s27  ;;  %1627 = vrot.lane.b32.xlu0 %v1534_v14, %s10296_s27  ;;  %v1791_v5 = vrot.slane %v10010_v56, 1  ;;  %v10041_v14 = vld [vmem:[%s15057_s1 + $0x10] sm:$0xff]  }
  0x3f   :  { %9821 = vmatprep.subr.bf16.mxu0 %v10041_v14  ;;  %9937 = vmatprep.subr.bf16.mxu1 %v10041_v14 }
  0x40   :  { %v1794_v24 = vsel %vm545_vm0, %v1791_v5, %v1793_v7  ;;  %9822 = vmatpush3.bf16.msra.mxu0 %v10041_v14  ;;  %9942 = vmatpush3.bf16.msra.mxu1 %v10041_v14  ;;  %v1797_v14 = vrot.slane %v10847_v42, 1 }
  0x41   :  { %9823 = vmatprep.subr.bf16.mxu0 %v10045_v13  ;;  %9938 = vmatprep.subr.bf16.mxu1 %v10045_v13 }
  0x42   :  { %1817 = vrot.lane.b32.xlu1 %v1790_v15, %s10297_s18  ;;  %1815 = vrot.lane.b32.xlu0 %v1788_v22, %s10297_s18  ;;  %v1550_v15 = vsel %vm269_vm1, %v1545_v46, %v1549_v36  ;;  %v10018_v22 = vld [vmem:[%s15056_s0 + $0x40] sm:$0xff]   ;;  %v10819_v36 = vld [vmem:[%s15056_s0 + $0x50] sm:$0xff]  }
  0x43   :  { %v945_v35 = vshll.u32 %v10018_v22, 16  ;;  %v949_v28 = vshrl.u32 %v10018_v22, 16  ;;  %v10064_v46 = vld [vmem:[%s15056_s0 + $0x20] sm:$0xff]  }
  0x44   :  { %9824 = vmatpush3.bf16.msra.mxu0 %v10045_v13  ;;  %9943 = vmatpush3.bf16.msra.mxu1 %v10045_v13  ;;  %157 = vst.msk [vmem:[#allocation2 + $0x20] sm:$0xff] %vm152_vm2, %v10064_v46  ;;  %v338_v13 = vshrl.u32 %v10710_v1, 16  ;;  %v10038_v1 = vld [vmem:[%s15056_s0 + $0x50] sm:$0xff]  }
  0x45   :  { %9945 = vmatprep.subr.msk.bf16.mxu0 %vm3841_vm3, %v10048_v57  ;;  %9946 = vmatprep.subr.msk.bf16.mxu1 %vm3841_vm3, %v10048_v57 }
  0x46   :  { %396 = vrot.lane.b32.xlu1 %v321_v29, %s10292_s15  ;;  %394 = vrot.lane.b32.xlu0 %v313_v30, %s10292_s15  ;;  %v10752_v29 = vrot.slane %v334_v9, 1  ;;  %v559_v30 = vrot.slane %v10014_v63, 1  ;;  %v1559_v9 = vshrl.u32 %v10675_v47, 16 }
  0x48   :  { %v562_v37 = vsel %vm545_vm0, %v559_v30, %v561_v31  ;;  %v560_v3 = vsel %vm545_vm0, %v557_v18, %v559_v30 }
  0x4a   :  { %585 = vrot.lane.b32.xlu1 %v558_v19, %s10291_s22  ;;  %583 = vrot.lane.b32.xlu0 %v556_v38, %s10291_s22  ;;  %v1792_v19 = vsel %vm545_vm0, %v1789_v4, %v1791_v5  ;;  %v3843_v4 = vsel %vm3841_vm3, %v10048_v57, 0  ;;  %v947_v38 = vrot.slane %v945_v35, 1 }
  0x4b   :  { %9826 = vmatpush3.bf16.msra.mxu0 %v3843_v4  ;;  %9944 = vmatpush3.bf16.msra.mxu1 %v3843_v4 }
  0x4c   :  { %v951_v50 = vor.u32 %v949_v28, %v947_v38 }
  0x4e   :  { %740 = vrot.lane.b32.xlu1 %v10000_v32, %s10290_s11  ;;  %738 = vrot.lane.b32.xlu0 %v10001_v27, %s10290_s11  ;;  %v337_v32 = vsel %vm269_vm1, %v332_v26, %v10752_v29  ;;  %v10020_v27 = vld [vmem:[%s15056_s0 + $0x40] sm:$0xff]   ;;  %v350_v26 = vshll.u32 %v10863_v11, 16 }
  0x50   :  { %v10891_v57 = vrot.slane %v350_v26, 1  ;;  %v10046_v26 = vld [vmem:[%s15056_s0 + $0x58] sm:$0xff]  }
  0x52   :  { %1015 = vrot.lane.b32.xlu1 %v940_v6, %s10293_s23  ;;  %1013 = vrot.lane.b32.xlu0 %v932_v44, %s10293_s23  ;;  %v941_v6 = vshrl.u32 %v10622_v25, 16  ;;  %v10805_v44 = vrot.slane %v953_v43, 1  ;;  %v1177_v25 = vrot.slane %v10020_v27, 1  ;;  %v10911_v27 = vld [vmem:[%s15056_s0 + $0x58] sm:$0xff]  }
  0x54   :  { %v943_v18 = vor.u32 %v941_v6, %v10649_v39  ;;  %v956_v52 = vsel %vm269_vm1, %v951_v50, %v10805_v44  ;;  %v1571_v39 = vshll.u32 %v10819_v36, 16  ;;  %v1180_v56 = vsel %vm545_vm0, %v1177_v25, %v1179_v53 }
  0x55   :  { %v1178_v5 = vsel %vm545_vm0, %v1175_v45, %v1177_v25  ;;  %v10023_v45 = vld [vmem:[%s15056_s0 + $0x40] sm:$0xff]  }
  0x56   :  { %1203 = vrot.lane.b32.xlu1 %v1176_v51, %s10294_s30  ;;  %1201 = vrot.lane.b32.xlu0 %v1174_v62, %s10294_s30  ;;  %v10025_v51 = vld [vmem:[%s15056_s0 + $0x48] sm:$0xff]   ;;  %v10856_v8 = vrot.slane %v1571_v39, 1  ;;  %v10042_v39 = vld [vmem:[%s15056_s0 + $0x50] sm:$0xff]  }
  0x57   :  { %v1563_v54 = vshll.u32 %v10025_v51, 16  ;;  %v1567_v61 = vshrl.u32 %v10025_v51, 16  ;;  %v10028_v62 = vld [vmem:[%s15056_s0 + $0x48] sm:$0xff]   ;;  %v965_v51 = vshrl.u32 %v10038_v1, 16 }
  0x58   :  { %v1795_v47 = vrot.slane %v10028_v62, 1 }
  0x59   :  { %v1565_v58 = vrot.slane %v1563_v54, 1  ;;  %v10082_v54 = vld [vmem:[%s15056_s0 + $0x30] sm:$0xff]  }
  0x5a   :  { %1358 = vrot.lane.b32.xlu1 %v10006_v55, %s10295_s20  ;;  %1356 = vrot.lane.b32.xlu0 %v10007_v49, %s10295_s20  ;;  %v948_v55 = vsel %vm269_vm1, %v943_v18, %v947_v38  ;;  %v10030_v49 = vld [vmem:[%s15056_s0 + $0x48] sm:$0xff]   ;;  %v10081_v18 = vld [vmem:[%s15056_s0 + $0x38] sm:$0xff]   ;;  %159 = vst.msk [vmem:[#allocation2 + $0x30] sm:$0xff] %vm152_vm2, %v10082_v54 }
  0x5b   :  { %v342_v60 = vshll.u32 %v10030_v49, 16  ;;  %160 = vst.msk [vmem:[#allocation2 + $0x38] sm:$0xff] %vm152_vm2, %v10081_v18  ;;  %v10059_v54 = vld [vmem:[%s15056_s0 + $0x60] sm:$0xff]  }
  0x5d   :  { %v344_v22 = vrot.slane %v342_v60, 1 }
  0x5e   :  { %1633 = vrot.lane.b32.xlu1 %v1558_v10, %s10296_s27  ;;  %1631 = vrot.lane.b32.xlu0 %v1550_v15, %s10296_s27  ;;  %v1569_v10 = vor.u32 %v1567_v61, %v1565_v58  ;;  %v1561_v15 = vor.u32 %v1559_v9, %v10715_v40  ;;  %v10032_v40 = vld [vmem:[%s15056_s0 + $0x48] sm:$0xff]   ;;  %v1181_v9 = vrot.slane %v10042_v39, 1 }
  0x5f   :  { %v563_v38 = vrot.slane %v10032_v40, 1 }
  0x60   :  { %v1574_v16 = vsel %vm269_vm1, %v1569_v10, %v10856_v8  ;;  %v1566_v30 = vsel %vm269_vm1, %v1561_v15, %v1565_v58 }
  0x61   :  { %v564_v58 = vsel %vm545_vm0, %v561_v31, %v563_v38  ;;  %v10967_v31 = vld [vmem:[%s15056_s0 + $0x60] sm:$0xff]  }
  0x62   :  { %1821 = vrot.lane.b32.xlu1 %v1794_v24, %s10297_s18  ;;  %1819 = vrot.lane.b32.xlu0 %v1792_v19, %s10297_s18  ;;  %v346_v24 = vshrl.u32 %v10030_v49, 16  ;;  %v10886_v19 = vld [vmem:[%s15056_s0 + $0x50] sm:$0xff]   ;;  %v10049_v49 = vld [vmem:[%s15056_s0 + $0x58] sm:$0xff]  }
  0x63   :  { %v565_v28 = vrot.slane %v10886_v19, 1  ;;  %v1579_v60 = vshll.u32 %v10049_v49, 16 }
  0x64   :  { %v348_v35 = vor.u32 %v346_v24, %v344_v22 }
  0x65   :  { %v566_v6 = vsel %vm545_vm0, %v563_v38, %v565_v28  ;;  %v1581_v15 = vrot.slane %v1579_v60, 1 }
  0x66   :  { %400 = vrot.lane.b32.xlu1 %v337_v32, %s10292_s15  ;;  %398 = vrot.lane.b32.xlu0 %v329_v17, %s10292_s15  ;;  %v1798_v32 = vsel %vm545_vm0, %v1795_v47, %v1797_v14  ;;  %v1796_v17 = vsel %vm545_vm0, %v1793_v7, %v1795_v47 }
  0x6a   :  { %589 = vrot.lane.b32.xlu1 %v562_v37, %s10291_s22  ;;  %587 = vrot.lane.b32.xlu0 %v560_v3, %s10291_s22  ;;  %v340_v37 = vor.u32 %v338_v13, %v10752_v29  ;;  %v961_v3 = vshll.u32 %v10038_v1, 16  ;;  %v1182_v13 = vsel %vm545_vm0, %v1179_v53, %v1181_v9  ;;  %v10047_v53 = vld [vmem:[%s15056_s0 + $0x50] sm:$0xff]  }
  0x6c   :  { %v345_v7 = vsel %vm269_vm1, %v340_v37, %v344_v22  ;;  %v963_v50 = vrot.slane %v961_v3, 1  ;;  %v10053_v22 = vld [vmem:[%s15056_s0 + $0x58] sm:$0xff]  }
  0x6d   :  { %v358_v1 = vshll.u32 %v10053_v22, 16  ;;  %v362_v38 = vshrl.u32 %v10053_v22, 16  ;;  %v11096_v22 = vld [vmem:[%s15056_s0 + $0x68] sm:$0xff]  }
  0x6e   :  { %744 = vrot.lane.b32.xlu1 %v10016_v20, %s10290_s11  ;;  %742 = vrot.lane.b32.xlu0 %v10017_v12, %s10290_s11  ;;  %v353_v20 = vsel %vm269_vm1, %v348_v35, %v10891_v57  ;;  %v969_v12 = vshll.u32 %v10911_v27, 16  ;;  %v967_v61 = vor.u32 %v965_v51, %v963_v50 }
  0x6f   :  { %v360_v3 = vrot.slane %v358_v1, 1 }
  0x70   :  { %v10951_v62 = vrot.slane %v969_v12, 1 }
  0x72   :  { %1019 = vrot.lane.b32.xlu1 %v956_v52, %s10293_s23  ;;  %1017 = vrot.lane.b32.xlu0 %v948_v55, %s10293_s23  ;;  %v10035_v52 = vld [vmem:[%s15056_s0 + $0x50] sm:$0xff]   ;;  %v957_v55 = vshrl.u32 %v10773_v33, 16 }
  0x74   :  { %v731_v41 = vpop.permute.xlu0 %730  ;;  %v959_v2 = vor.u32 %v957_v55, %v10805_v44  ;;  %v10103_v55 = vld [vmem:[%s15056_s0 + $0x48] sm:$0xff]  }
  0x75   :  { %162 = vst.msk [vmem:[#allocation2 + $0x48] sm:$0xff] %vm152_vm2, %v10103_v55 }
  0x76   :  { %1207 = vrot.lane.b32.xlu1 %v1180_v56, %s10294_s30  ;;  %1205 = vrot.lane.b32.xlu0 %v1178_v5, %s10294_s30  ;;  %v10943_v56 = vld [vmem:[%s15056_s0 + $0x58] sm:$0xff]   ;;  %v972_v5 = vsel %vm269_vm1, %v967_v61, %v10951_v62  ;;  %v964_v44 = vsel %vm269_vm1, %v959_v2, %v963_v50  ;;  %v11034_v50 = vld [vmem:[%s15056_s0 + $0x60] sm:$0xff]  }
  0x77   :  { %v1183_v10 = vrot.slane %v10943_v56, 1  ;;  %v10124_v56 = vld [vmem:[%s15056_s0 + $0x50] sm:$0xff]  }
  0x78   :  { %v576_v63 = vpop.permute.xlu1 %575  ;;  %163 = vst.msk [vmem:[#allocation2 + $0x50] sm:$0xff] %vm152_vm2, %v10124_v56 }
  0x79   :  { %v1184_v47 = vsel %vm545_vm0, %v1181_v9, %v1183_v10 }
  0x7a   :  { %1362 = vrot.lane.b32.xlu1 %v10022_v34, %s10295_s20  ;;  %1360 = vrot.lane.b32.xlu0 %v10023_v45, %s10295_s20 }
  0x7c   :  { %v578_v0 = vpop.permute.xlu1 %577  ;;  %v387_v21 = vpop.permute.xlu0 %386 }
  0x7d   :  { %429 = vst.msk [vmem:[#allocation2] sm:$0xff] %vm428_vm4, %v387_v21  ;;  %v11003_v21 = vld [vmem:[%s15056_s0 + $0x60] sm:$0xff]  }
  0x7e   :  { %1637 = vrot.lane.b32.xlu1 %v1574_v16, %s10296_s27  ;;  %618 = vst.msk [vmem:[#allocation2] sm:$0xff] %vm617_vm5, %v576_v63  ;;  %1635 = vrot.lane.b32.xlu0 %v1566_v30, %s10296_s27  ;;  %v1583_v16 = vshrl.u32 %v10049_v49, 16  ;;  %v10051_v30 = vld [vmem:[%s15056_s0 + $0x58] sm:$0xff]   ;;  %v1801_v37 = vrot.slane %v11003_v21, 1  ;;  %v569_v49 = vrot.slane %v11034_v50, 1 }
  0x7f   :  { %773 = vst.msk [vmem:[#allocation2] sm:$0xff] %vm772_vm6, %v731_v41  ;;  %v1587_v41 = vshll.u32 %v10967_v31, 16 }
  0x80   :  { %v733_v4 = vpop.permute.xlu1 %732  ;;  %v389_v43 = vpop.permute.xlu0 %388  ;;  %v1585_v35 = vor.u32 %v1583_v16, %v1581_v15  ;;  %v973_v16 = vshrl.u32 %v10911_v27, 16 }
  0x81   :  { %430 = vst.msk [vmem:[#allocation2 + $0x8] sm:$0xff] %vm428_vm4, %v389_v43  ;;  %v10998_v40 = vrot.slane %v1587_v41, 1 }
  0x82   :  { %1825 = vrot.lane.b32.xlu1 %v1798_v32, %s10297_s18  ;;  %619 = vst.msk [vmem:[#allocation2 + $0x8] sm:$0xff] %vm617_vm5, %v578_v0  ;;  %1823 = vrot.lane.b32.xlu0 %v1796_v17, %s10297_s18  ;;  %v1575_v0 = vshrl.u32 %v10819_v36, 16  ;;  %v11008_v36 = vld [vmem:[%s15056_s0 + $0x60] sm:$0xff]   ;;  %v1799_v17 = vrot.slane %v10051_v30, 1  ;;  %v10067_v30 = vld [vmem:[%s15056_s0 + $0x68] sm:$0xff]   ;;  %v975_v27 = vor.u32 %v973_v16, %v10951_v62 }
  0x83   :  { %774 = vst.msk [vmem:[#allocation2 + $0x8] sm:$0xff] %vm772_vm6, %v733_v4  ;;  %v1599_v62 = vshrl.u32 %v10067_v30, 16 }
  0x84   :  { %v1008_v59 = vpop.permute.xlu1 %1007  ;;  %v1006_v29 = vpop.permute.xlu0 %1005  ;;  %v1577_v4 = vor.u32 %v1575_v0, %v10856_v8  ;;  %v10055_v8 = vld [vmem:[%s15056_s0 + $0x58] sm:$0xff]   ;;  %v1802_v18 = vsel %vm545_vm0, %v1799_v17, %v1801_v37 }
  0x85   :  { %1049 = vst.msk [vmem:[#allocation2 + $0x8] sm:$0xff] %vm1047_vm7, %v1008_v59  ;;  %1048 = vst.msk [vmem:[#allocation2] sm:$0xff] %vm1047_vm7, %v1006_v29  ;;  %v366_v59 = vshll.u32 %v11008_v36, 16  ;;  %v567_v39 = vrot.slane %v10055_v8, 1 }
  0x86   :  { %404 = vrot.lane.b32.xlu1 %v353_v20, %s10292_s15  ;;  %402 = vrot.lane.b32.xlu0 %v345_v7, %s10292_s15  ;;  %v1590_v20 = vsel %vm269_vm1, %v1585_v35, %v10998_v40  ;;  %v1582_v29 = vsel %vm269_vm1, %v1577_v4, %v1581_v15 }
  0x87   :  { %v570_v9 = vsel %vm545_vm0, %v567_v39, %v569_v49  ;;  %v568_v15 = vsel %vm545_vm0, %v565_v28, %v567_v39  ;;  %v10058_v28 = vld [vmem:[%s15056_s0 + $0x58] sm:$0xff]  }
  0x88   :  { %v1196_v25 = vpop.permute.xlu1 %1195  ;;  %v1194_v33 = vpop.permute.xlu0 %1193 }
  0x89   :  { %1237 = vst.msk [vmem:[#allocation2 + $0x8] sm:$0xff] %vm1235_vm8, %v1196_v25  ;;  %1236 = vst.msk [vmem:[#allocation2] sm:$0xff] %vm1235_vm8, %v1194_v33  ;;  %v364_v25 = vor.u32 %v362_v38, %v360_v3  ;;  %v1800_v33 = vsel %vm545_vm0, %v1797_v14, %v1799_v17 }
  0x8a   :  { %593 = vrot.lane.b32.xlu1 %v566_v6, %s10291_s22  ;;  %591 = vrot.lane.b32.xlu0 %v564_v58, %s10291_s22  ;;  %v354_v6 = vshrl.u32 %v10863_v11, 16  ;;  %v10104_v58 = vld [vmem:[%s15056_s0 + $0x40] sm:$0xff]  }
  0x8b   :  { %161 = vst.msk [vmem:[#allocation2 + $0x40] sm:$0xff] %vm152_vm2, %v10104_v58 }
  0x8c   :  { %v1351_v34 = vpop.permute.xlu1 %1350  ;;  %v1349_v46 = vpop.permute.xlu0 %1348  ;;  %v356_v61 = vor.u32 %v354_v6, %v10891_v57  ;;  %v11143_v6 = vld [vmem:[%s15056_s0 + $0x70] sm:$0xff]  }
  0x8d   :  { %1392 = vst.msk [vmem:[#allocation2 + $0x8] sm:$0xff] %vm1390_vm9, %v1351_v34  ;;  %1391 = vst.msk [vmem:[#allocation2] sm:$0xff] %vm1390_vm9, %v1349_v46  ;;  %v11063_v34 = vld [vmem:[%s15056_s0 + $0x68] sm:$0xff]  }
  0x8e   :  { %748 = vrot.lane.b32.xlu1 %v10035_v52, %s10290_s11  ;;  %746 = vrot.lane.b32.xlu0 %v10036_v48, %s10290_s11  ;;  %v11039_v52 = vrot.slane %v366_v59, 1  ;;  %v361_v14 = vsel %vm269_vm1, %v356_v61, %v360_v3  ;;  %v10069_v59 = vld [vmem:[%s15056_s0 + $0x68] sm:$0xff]   ;;  %v1805_v61 = vrot.slane %v11143_v6, 1 }
  0x90   :  { %v1626_v63 = vpop.permute.xlu1 %1625  ;;  %v1624_v45 = vpop.permute.xlu0 %1623  ;;  %v369_v46 = vsel %vm269_vm1, %v364_v25, %v11039_v52  ;;  %v10123_v25 = vld [vmem:[%s15056_s0 + $0x58] sm:$0xff]  }
  0x91   :  { %1667 = vst.msk [vmem:[#allocation2 + $0x8] sm:$0xff] %vm1665_vm10, %v1626_v63  ;;  %1666 = vst.msk [vmem:[#allocation2] sm:$0xff] %vm1665_vm10, %v1624_v45  ;;  %v981_v63 = vshrl.u32 %v10059_v54, 16  ;;  %v10057_v45 = vld [vmem:[%s15056_s0 + $0x60] sm:$0xff]  }
  0x92   :  { %1023 = vrot.lane.b32.xlu1 %v972_v5, %s10293_s23  ;;  %1021 = vrot.lane.b32.xlu0 %v964_v44, %s10293_s23  ;;  %v977_v5 = vshll.u32 %v10059_v54, 16  ;;  %v985_v44 = vshll.u32 %v11063_v34, 16  ;;  %164 = vst.msk [vmem:[#allocation2 + $0x58] sm:$0xff] %vm152_vm2, %v10123_v25 }
  0x94   :  { %v391_v24 = vpop.permute.xlu1 %390  ;;  %v1812_v32 = vpop.permute.xlu0 %1811  ;;  %v979_v60 = vrot.slane %v977_v5, 1  ;;  %v11098_v0 = vrot.slane %v985_v44, 1  ;;  %v10077_v44 = vld [vmem:[%s15056_s0 + $0x70] sm:$0xff]  }
  0x95   :  { %431 = vst.msk [vmem:[#allocation2 + $0x10] sm:$0xff] %vm428_vm4, %v391_v24  ;;  %v997_v21 = vshrl.u32 %v10077_v44, 16 }
  0x96   :  { %1211 = vrot.lane.b32.xlu1 %v1184_v47, %s10294_s30  ;;  %1854 = vst.msk [vmem:[#allocation2] sm:$0xff] %vm1853_vm11, %v1812_v32  ;;  %1209 = vrot.lane.b32.xlu0 %v1182_v13, %s10294_s30  ;;  %v10061_v47 = vld [vmem:[%s15056_s0 + $0x60] sm:$0xff]   ;;  %v1187_v32 = vrot.slane %v11096_v22, 1  ;;  %v980_v17 = vsel %vm269_vm1, %v975_v27, %v979_v60 }
  0x97   :  { %v1185_v13 = vrot.slane %v10061_v47, 1 }
  0x98   :  { %v393_v23 = vpop.permute.xlu1 %392  ;;  %v1814_v43 = vpop.permute.xlu0 %1813 }
  0x99   :  { %432 = vst.msk [vmem:[#allocation2 + $0x18] sm:$0xff] %vm428_vm4, %v393_v23  ;;  %v11117_v23 = vld [vmem:[%s15056_s0 + $0x70] sm:$0xff]  }
  0x9a   :  { %1366 = vrot.lane.b32.xlu1 %v10046_v26, %s10295_s20  ;;  %1855 = vst.msk [vmem:[#allocation2 + $0x8] sm:$0xff] %vm1853_vm11, %v1814_v43  ;;  %1364 = vrot.lane.b32.xlu0 %v10047_v53, %s10295_s20  ;;  %v983_v26 = vor.u32 %v981_v63, %v979_v60  ;;  %v1595_v53 = vshll.u32 %v10067_v30, 16  ;;  %v1188_v43 = vsel %vm545_vm0, %v1185_v13, %v1187_v32  ;;  %v1603_v3 = vshll.u32 %v11117_v23, 16 }
  0x9b   :  { %v370_v63 = vshrl.u32 %v11008_v36, 16 }
  0x9c   :  { %v582_v7 = vpop.permute.xlu1 %581  ;;  %v580_v51 = vpop.permute.xlu0 %579  ;;  %v988_v1 = vsel %vm269_vm1, %v983_v26, %v11098_v0  ;;  %v11156_v55 = vrot.slane %v1603_v3, 1 }
  0x9d   :  { %621 = vst.msk [vmem:[#allocation2 + $0x18] sm:$0xff] %vm617_vm5, %v582_v7  ;;  %v3685_v12 = vld [vmem:[#allocation2] sm:$0xff]  ;;  %620 = vst.msk [vmem:[#allocation2 + $0x10] sm:$0xff] %vm617_vm5, %v580_v51  ;;  %v10071_v7 = vld [vmem:[%s15056_s0 + $0x68] sm:$0xff]   ;;  %v372_v26 = vor.u32 %v370_v63, %v11039_v52 }
  0x9e   :  { %1641 = vrot.lane.b32.xlu1 %v1590_v20, %s10296_s27  ;;  %9827 = vmatprep.mubr.msk.bf16.mxu0 %vm3756_vm12, %v3685_v12  ;;  %v1597_v20 = vrot.slane %v1595_v53, 1  ;;  %v10072_v51 = vld [vmem:[%s15056_s0 + $0x70] ss:$0 sps:$4 sm:$0x11]   ;;  %v1186_v12 = vsel %vm545_vm0, %v1183_v10, %v1185_v13  ;;  %v374_v39 = vshll.u32 %v10071_v7, 16  ;;  %v1803_v10 = vrot.slane %v10069_v59, 1 }
  0x9f   :  { %1639 = vrot.lane.b32.xlu0 %v1582_v29, %s10296_s27  ;;  %v10065_v29 = vld [vmem:[%s15056_s0 + $0x68] sm:$0xff]   ;;  %v10078_v13 = vld [vmem:[%s15056_s0 + $0x78] ss:$0 sps:$4 sm:$0x11]  }
  0xa0   :  { %v737_v11 = vpop.permute.xlu1 %736  ;;  %v735_v48 = vpop.permute.xlu0 %734  ;;  %v376_v5 = vrot.slane %v374_v39, 1  ;;  %v1806_v47 = vsel %vm545_vm0, %v1803_v10, %v1805_v61  ;;  %v1804_v36 = vsel %vm545_vm0, %v1801_v37, %v1803_v10  ;;  %v10080_v59 = vld [vmem:[%s15056_s0 + $0x78] ss:$0 sps:$4 sm:$0x11]   ;;  %v10091_v63 = vld [vmem:[%s15056_s0 + $0x88] sm:$0xff]  }
  0xa1   :  { %776 = vst.msk [vmem:[#allocation2 + $0x18] sm:$0xff] %vm772_vm6, %v737_v11  ;;  %v3686_v2 = vld [vmem:[#allocation2 + $0x8] sm:$0xff]  ;;  %775 = vst.msk [vmem:[#allocation2 + $0x10] sm:$0xff] %vm772_vm6, %v735_v48  ;;  %v1601_v11 = vor.u32 %v1599_v62, %v1597_v20  ;;  %v378_v48 = vshrl.u32 %v10071_v7, 16  ;;  %v1001_v62 = vshll.u32 %v10078_v13, 16  ;;  %v10085_v7 = vld [vmem:[%s15056_s0 + $0x78] sm:$0xff]  }
  0xa2   :  { %1829 = vrot.lane.b32.xlu1 %v1802_v18, %s10297_s18  ;;  %9828 = vmatmul.mubr.msk.bf16.vlgmr.msra.gmra.mrb[0].mxu0 %vm3756_vm12, %v3686_v2  ;;  %v1591_v18 = vshrl.u32 %v10967_v31, 16  ;;  %v10066_v31 = vld [vmem:[%s15056_s0 + $0x60] sm:$0xff]   ;;  %v377_v37 = vsel %vm269_vm1, %v372_v26, %v376_v5  ;;  %v1611_v39 = vshll.u32 %v10085_v7, 16  ;;  %v2099_v26 = vshll.u32 %v10091_v63, 16 }
  0xa3   :  { %1827 = vrot.lane.b32.xlu0 %v1800_v33, %s10297_s18 }
  0xa4   :  { %v1012_v42 = vpop.permute.xlu1 %1011  ;;  %v1010_v57 = vpop.permute.xlu0 %1009  ;;  %v1593_v33 = vor.u32 %v1591_v18, %v10998_v40  ;;  %v10073_v40 = vld [vmem:[%s15056_s0 + $0x68] sm:$0xff]  }
  0xa5   :  { %1051 = vst.msk [vmem:[#allocation2 + $0x18] sm:$0xff] %vm1047_vm7, %v1012_v42  ;;  %1050 = vst.msk [vmem:[#allocation2 + $0x10] sm:$0xff] %vm1047_vm7, %v1010_v57  ;;  %v382_v42 = vshll.u32 %v10072_v51, 16  ;;  %v10074_v57 = vld [vmem:[%s15056_s0 + $0x70] ss:$0 sps:$4 sm:$0x11]  }
  0xa6   :  { %408 = vrot.lane.b32.xlu1 %v369_v46, %s10292_s15  ;;  %v1606_v46 = vsel %vm269_vm1, %v1601_v11, %v11156_v55  ;;  %v571_v30 = vrot.slane %v10073_v40, 1  ;;  %v10141_v51 = vld [vmem:[%s15056_s0 + $0x68] sm:$0xff]   ;;  %v1191_v11 = vrot.slane %v10080_v59, 1  ;;  %v10087_v40 = vld [vmem:[%s15056_s0 + $0x78] sm:$0xff]  }
  0xa7   :  { %406 = vrot.lane.b32.xlu0 %v361_v14, %s10292_s15  ;;  %v384_v16 = vrot.slane %v382_v42, 1  ;;  %v10076_v18 = vld [vmem:[%s15056_s0 + $0x68] sm:$0xff]   ;;  %166 = vst.msk [vmem:[#allocation2 + $0x68] sm:$0xff] %vm152_vm2, %v10141_v51 }
  0xa8   :  { %v1200_v41 = vpop.permute.xlu1 %1199  ;;  %v1198_v24 = vpop.permute.xlu0 %1197  ;;  %v572_v3 = vsel %vm545_vm0, %v569_v49, %v571_v30  ;;  %v10086_v49 = vld [vmem:[%s15056_s0 + $0x80] ss:$0 sps:$4 sm:$0x11]  }
  0xa9   :  { %1239 = vst.msk [vmem:[#allocation2 + $0x18] sm:$0xff] %vm1235_vm8, %v1200_v41  ;;  %1238 = vst.msk [vmem:[#allocation2 + $0x10] sm:$0xff] %vm1235_vm8, %v1198_v24 }
  0xaa   :  { %597 = vrot.lane.b32.xlu1 %v570_v9, %s10291_s22  ;;  %v1598_v9 = vsel %vm269_vm1, %v1593_v33, %v1597_v20  ;;  %v10079_v20 = vld [vmem:[%s15056_s0 + $0x70] sm:$0xff]   ;;  %v1615_v33 = vshrl.u32 %v10085_v7, 16 }
  0xab   :  { %595 = vrot.lane.b32.xlu0 %v568_v15, %s10291_s22  ;;  %v380_v15 = vor.u32 %v378_v48, %v376_v5  ;;  %v1189_v25 = vrot.slane %v10079_v20, 1  ;;  %v10089_v5 = vld [vmem:[%s15056_s0 + $0x90] sm:$0xff]   ;;  %v10094_v20 = vld [vmem:[%s15056_s0 + $0x88] sm:$0xfe]  }
  0xac   :  { %v1355_v19 = vpop.permute.xlu1 %1354  ;;  %v1353_v35 = vpop.permute.xlu0 %1352  ;;  %v10099_v7 = vld [vmem:[%s15056_s0 + $0x90] sm:$0xff]   ;;  %v2370_v6 = vrot.slane %v10094_v20, 1 }
  0xad   :  { %1394 = vst.msk [vmem:[#allocation2 + $0x18] sm:$0xff] %vm1390_vm9, %v1355_v19  ;;  %1393 = vst.msk [vmem:[#allocation2 + $0x10] sm:$0xff] %vm1390_vm9, %v1353_v35  ;;  %v573_v19 = vrot.slane %v10074_v57, 1  ;;  %v385_v27 = vsel %vm269_vm1, %v380_v15, %v384_v16  ;;  %v993_v35 = vshll.u32 %v10077_v44, 16  ;;  %v2104_v15 = vshll.u32 %v10089_v5, 16 }
  0xae   :  { %752 = vrot.lane.b32.xlu1 %v10057_v45, %s10290_s11  ;;  %v10088_v57 = vld [vmem:[%s15056_s0 + $0x80] ss:$0 sps:$4 sm:$0x11]  }
  0xaf   :  { %750 = vrot.lane.b32.xlu0 %v10058_v28, %s10290_s11  ;;  %v574_v53 = vsel %vm545_vm0, %v571_v30, %v573_v19  ;;  %v1809_v16 = vrot.slane %v10088_v57, 1  ;;  %v10107_v57 = vld [vmem:[%s15056_s0 + $0xa0] sm:$0xff]  }
  0xb0   :  { %v1630_v4 = vpop.permute.xlu1 %1629  ;;  %v1628_v38 = vpop.permute.xlu0 %1627 }
  0xb1   :  { %1669 = vst.msk [vmem:[#allocation2 + $0x18] sm:$0xff] %vm1665_vm10, %v1630_v4  ;;  %1668 = vst.msk [vmem:[#allocation2 + $0x10] sm:$0xff] %vm1665_vm10, %v1628_v38  ;;  %v995_v4 = vrot.slane %v993_v35, 1  ;;  %v10075_v38 = vld [vmem:[%s15056_s0 + $0x70] sm:$0xff]  }
  0xb2   :  { %1027 = vrot.lane.b32.xlu1 %v988_v1, %s10293_s23  ;;  %v10092_v35 = vld [vmem:[%s15056_s0 + $0x90] sm:$0xff]  }
  0xb3   :  { %1025 = vrot.lane.b32.xlu0 %v980_v17, %s10293_s23 }
  0xb4   :  { %v1818_v8 = vpop.permute.xlu1 %1817  ;;  %v1816_v54 = vpop.permute.xlu0 %1815 }
  0xb5   :  { %1857 = vst.msk [vmem:[#allocation2 + $0x18] sm:$0xff] %vm1853_vm11, %v1818_v8  ;;  %1856 = vst.msk [vmem:[#allocation2 + $0x10] sm:$0xff] %vm1853_vm11, %v1816_v54 }
  0xb6   :  { %1215 = vrot.lane.b32.xlu1 %v1188_v43, %s10294_s30  ;;  %v989_v43 = vshrl.u32 %v11063_v34, 16  ;;  %v999_v34 = vor.u32 %v997_v21, %v995_v4 }
  0xb7   :  { %1213 = vrot.lane.b32.xlu0 %v1186_v12, %s10294_s30  ;;  %v10142_v12 = vld [vmem:[%s15056_s0 + $0x60] sm:$0xff]  }
  0xb8   :  { %v397_v58 = vpop.permute.xlu1 %396  ;;  %v395_v2 = vpop.permute.xlu0 %394  ;;  %v991_v54 = vor.u32 %v989_v43, %v11098_v0  ;;  %165 = vst.msk [vmem:[#allocation2 + $0x60] sm:$0xff] %vm152_vm2, %v10142_v12  ;;  %v1619_v0 = vshll.u32 %v10086_v49, 16 }
  0xb9   :  { %434 = vst.msk [vmem:[#allocation2 + $0x28] sm:$0xff] %vm428_vm4, %v397_v58  ;;  %433 = vst.msk [vmem:[#allocation2 + $0x20] sm:$0xff] %vm428_vm4, %v395_v2  ;;  %v1192_v2 = vsel %vm545_vm0, %v1189_v25, %v1191_v11  ;;  %v2714_v11 = vshll.u32 %v10099_v7, 16 }
  0xba   :  { %1370 = vrot.lane.b32.xlu1 %v10065_v29, %s10295_s20  ;;  %v1003_v29 = vrot.slane %v1001_v62, 1  ;;  %v996_v10 = vsel %vm269_vm1, %v991_v54, %v995_v4 }
  0xbb   :  { %1368 = vrot.lane.b32.xlu0 %v10066_v31, %s10295_s20 }
  0xbc   :  { %v586_v14 = vpop.permute.xlu1 %585  ;;  %v3688_v60 = vld [vmem:[#allocation2 + $0x18] sm:$0xff]  ;;  %v584_v41 = vpop.permute.xlu0 %583  ;;  %v3687_v45 = vld [vmem:[#allocation2 + $0x10] sm:$0xff]  ;;  %v1004_v56 = vsel %vm269_vm1, %v999_v34, %v1003_v29  ;;  %v10160_v34 = vld [vmem:[%s15056_s0 + $0x88] sm:$0xff]  }
  0xbd   :  { %623 = vst.msk [vmem:[#allocation2 + $0x28] sm:$0xff] %vm617_vm5, %v586_v14  ;;  %622 = vst.msk [vmem:[#allocation2 + $0x20] sm:$0xff] %vm617_vm5, %v584_v41  ;;  %9831 = vmatprep.mubr.msk.bf16.mxu0 %vm3756_vm12, %v3687_v45  ;;  %v10083_v14 = vld [vmem:[%s15056_s0 + $0x78] sm:$0xff]   ;;  %v1621_v45 = vrot.slane %v1619_v0, 1 }
  0xbe   :  { %1645 = vrot.lane.b32.xlu1 %v1606_v46, %s10296_s27  ;;  %9832 = vmatmul.mubr.msk.bf16.gmra.mrb[4].mxu0 %vm3756_vm12, %v3688_v60  ;;  %v1613_v46 = vrot.slane %v1611_v39, 1  ;;  %v1607_v60 = vshrl.u32 %v11117_v23, 16  ;;  %v1807_v23 = vrot.slane %v10087_v40, 1  ;;  %1980 = vst.msk [vmem:[#allocation2 + $0x70] sm:$0xff] %vm152_vm2, %v10160_v34  ;;  %v10095_v0 = vld [vmem:[%s15056_s0 + $0x98] sm:$0xff]  }
  0xbf   :  { %1643 = vrot.lane.b32.xlu0 %v1598_v9, %s10296_s27  ;;  %v1190_v9 = vsel %vm545_vm0, %v1187_v32, %v1189_v25  ;;  %v10084_v32 = vld [vmem:[%s15056_s0 + $0x70] sm:$0xff]  }
  0xc0   :  { %v741_v24 = vpop.permute.xlu1 %740  ;;  %v739_v28 = vpop.permute.xlu0 %738  ;;  %v1617_v41 = vor.u32 %v1615_v33, %v1613_v46  ;;  %v1808_v29 = vsel %vm545_vm0, %v1805_v61, %v1807_v23 }
  0xc1   :  { %778 = vst.msk [vmem:[#allocation2 + $0x28] sm:$0xff] %vm772_vm6, %v741_v24  ;;  %777 = vst.msk [vmem:[#allocation2 + $0x20] sm:$0xff] %vm772_vm6, %v739_v28  ;;  %v1609_v24 = vor.u32 %v1607_v60, %v11156_v55  ;;  %v2106_v28 = vrot.slane %v2104_v15, 1  ;;  %v11305_v55 = vld [vmem:[%s15056_s0 + $0x98] sm:$0xff]   ;;  %v3334_v15 = vshll.u32 %v10107_v57, 16 }
  0xc2   :  { %1833 = vrot.lane.b32.xlu1 %v1806_v47, %s10297_s18  ;;  %v11284_v47 = vld [vmem:[%s15056_s0 + $0x98] sm:$0xff]   ;;  %v1622_v19 = vsel %vm269_vm1, %v1617_v41, %v1621_v45  ;;  %v11386_v41 = vld [vmem:[%s15056_s0 + $0xa8] sm:$0xff]  }
  0xc3   :  { %1831 = vrot.lane.b32.xlu0 %v1804_v36, %s10297_s18  ;;  %v2108_v36 = vshrl.u32 %v10089_v5, 16 }
  0xc4   :  { %v1016_v1 = vpop.permute.xlu1 %1015  ;;  %v1014_v52 = vpop.permute.xlu0 %1013 }
  0xc5   :  { %1053 = vst.msk [vmem:[#allocation2 + $0x28] sm:$0xff] %vm1047_vm7, %v1016_v1  ;;  %1052 = vst.msk [vmem:[#allocation2 + $0x20] sm:$0xff] %vm1047_vm7, %v1014_v52  ;;  %v1614_v1 = vsel %vm269_vm1, %v1609_v24, %v1613_v46  ;;  %v2101_v52 = vrot.slane %v2099_v26, 1 }
  0xc6   :  { %412 = vrot.lane.b32.xlu1 %v385_v27, %s10292_s15  ;;  %v2112_v27 = vshll.u32 %v11284_v47, 16 }
  0xc7   :  { %410 = vrot.lane.b32.xlu0 %v377_v37, %s10292_s15  ;;  %v2097_v37 = vshrl.u32 %v10091_v63, 16 }
  0xc8   :  { %v1204_v17 = vpop.permute.xlu1 %1203  ;;  %v1202_v8 = vpop.permute.xlu0 %1201  ;;  %v11313_v43 = vrot.slane %v2112_v27, 1  ;;  %v3342_v27 = vshll.u32 %v11386_v41, 16 }
  0xc9   :  { %1241 = vst.msk [vmem:[#allocation2 + $0x28] sm:$0xff] %vm1235_vm8, %v1204_v17  ;;  %1240 = vst.msk [vmem:[#allocation2 + $0x20] sm:$0xff] %vm1235_vm8, %v1202_v8  ;;  %v1810_v17 = vsel %vm545_vm0, %v1807_v23, %v1809_v16  ;;  %v10159_v8 = vld [vmem:[%s15056_s0 + $0x90] sm:$0xff]   ;;  %v2102_v51 = vor.u32 %v2101_v52, %v2097_v37  ;;  %v10105_v52 = vld [vmem:[%s15056_s0 + $0xa0] sm:$0xff]  }
  0xca   :  { %601 = vrot.lane.b32.xlu1 %v574_v53, %s10291_s22  ;;  %v10097_v53 = vld [vmem:[%s15056_s0 + $0x98] sm:$0xff]   ;;  %1981 = vst.msk [vmem:[#allocation2 + $0x78] sm:$0xff] %vm152_vm2, %v10159_v8  ;;  %v11429_v34 = vrot.slane %v3342_v27, 1 }
  0xcb   :  { %599 = vrot.lane.b32.xlu0 %v572_v3, %s10291_s22  ;;  %v11321_v3 = vld [vmem:[%s15056_s0 + $0xa0] sm:$0xff]   ;;  %v2719_v25 = vshll.u32 %v10097_v53, 16  ;;  %v2107_v39 = vsel %vm269_vm1, %v2102_v51, %v2106_v28 }
  0xcc   :  { %v1359_v50 = vpop.permute.xlu1 %1358  ;;  %v1357_v58 = vpop.permute.xlu0 %1356  ;;  %v2727_v61 = vshll.u32 %v11321_v3, 16 }
  0xcd   :  { %1396 = vst.msk [vmem:[#allocation2 + $0x28] sm:$0xff] %vm1390_vm9, %v1359_v50  ;;  %1395 = vst.msk [vmem:[#allocation2 + $0x20] sm:$0xff] %vm1390_vm9, %v1357_v58  ;;  %v2371_v50 = vrot.slane %v10092_v35, 1  ;;  %v10110_v35 = vld [vmem:[%s15056_s0 + $0xa0] sm:$0xff]  }
  0xce   :  { %756 = vrot.lane.b32.xlu1 %v10075_v38, %s10290_s11  ;;  %v2110_v38 = vor.u32 %v2108_v36, %v2106_v28  ;;  %v11366_v5 = vrot.slane %v2727_v61, 1  ;;  %v3336_v28 = vrot.slane %v3334_v15, 1  ;;  %v2120_v20 = vshll.u32 %v10110_v35, 16 }
  0xcf   :  { %754 = vrot.lane.b32.xlu0 %v10076_v18, %s10290_s11  ;;  %v2373_v18 = vrot.slane %v11305_v55, 1  ;;  %v2372_v46 = vsel %vm545_vm0, %v2370_v6, %v2371_v50  ;;  %v11535_v55 = vld [vmem:[%s15056_s0 + $0xb8] sm:$0xff]  }
  0xd0   :  { %v1634_v31 = vpop.permute.xlu1 %1633  ;;  %v1632_v48 = vpop.permute.xlu0 %1631  ;;  %v2115_v12 = vsel %vm269_vm1, %v2110_v38, %v11313_v43  ;;  %v2122_v61 = vrot.slane %v2120_v20, 1 }
  0xd1   :  { %1671 = vst.msk [vmem:[#allocation2 + $0x28] sm:$0xff] %vm1665_vm10, %v1634_v31  ;;  %1670 = vst.msk [vmem:[#allocation2 + $0x20] sm:$0xff] %vm1665_vm10, %v1632_v48  ;;  %v2721_v31 = vrot.slane %v2719_v25, 1  ;;  %v2712_v48 = vshrl.u32 %v10099_v7, 16  ;;  %v10106_v7 = vld [vmem:[%s15056_s0 + $0x98] sm:$0xff]   ;;  %v10178_v25 = vld [vmem:[%s15056_s0 + $0xa0] sm:$0xff]  }
  0xd2   :  { %1031 = vrot.lane.b32.xlu1 %v1004_v56, %s10293_s23  ;;  %v2374_v56 = vsel %vm545_vm0, %v2371_v50, %v2373_v18  ;;  %v10111_v50 = vld [vmem:[%s15056_s0 + $0x98] sm:$0xfe]   ;;  %1983 = vst.msk [vmem:[#allocation2 + $0x88] sm:$0xff] %vm152_vm2, %v10178_v25 }
  0xd3   :  { %1029 = vrot.lane.b32.xlu0 %v996_v10, %s10293_s23  ;;  %v2723_v10 = vshrl.u32 %v10097_v53, 16  ;;  %v2116_v53 = vshrl.u32 %v11284_v47, 16 }
  0xd4   :  { %v1822_v42 = vpop.permute.xlu1 %1821  ;;  %v1820_v44 = vpop.permute.xlu0 %1819 }
  0xd5   :  { %1859 = vst.msk [vmem:[#allocation2 + $0x28] sm:$0xff] %vm1853_vm11, %v1822_v42  ;;  %1858 = vst.msk [vmem:[#allocation2 + $0x20] sm:$0xff] %vm1853_vm11, %v1820_v44  ;;  %v2716_v42 = vrot.slane %v2714_v11, 1  ;;  %v2725_v60 = vor.u32 %v2723_v10, %v2721_v31  ;;  %v10102_v44 = vld [vmem:[%s15056_s0 + $0x90] sm:$0xfe]   ;;  %v2124_v11 = vshrl.u32 %v10110_v35, 16 }
  0xd6   :  { %1219 = vrot.lane.b32.xlu1 %v1192_v2, %s10294_s30  ;;  %v10100_v2 = vld [vmem:[%s15056_s0 + $0x98] sm:$0xff]   ;;  %v2985_v26 = vrot.slane %v10102_v44, 1  ;;  %v10115_v10 = vld [vmem:[%s15056_s0 + $0xa0] sm:$0xff]  }
  0xd7   :  { %1217 = vrot.lane.b32.xlu0 %v1190_v9, %s10294_s30  ;;  %v10096_v9 = vld [vmem:[%s15056_s0 + $0x90] sm:$0xff]   ;;  %v2717_v45 = vor.u32 %v2716_v42, %v2712_v48  ;;  %v2730_v23 = vsel %vm269_vm1, %v2725_v60, %v11366_v5  ;;  %v2986_v16 = vrot.slane %v10100_v2, 1  ;;  %v2375_v15 = vrot.slane %v10115_v10, 1  ;;  %v11569_v10 = vld [vmem:[%s15056_s0 + $0xb8] sm:$0xff]  }
  0xd8   :  { %v401_v22 = vpop.permute.xlu1 %400  ;;  %v399_v30 = vpop.permute.xlu0 %398 }
  0xd9   :  { %436 = vst.msk [vmem:[#allocation2 + $0x38] sm:$0xff] %vm428_vm4, %v401_v22  ;;  %435 = vst.msk [vmem:[#allocation2 + $0x30] sm:$0xff] %vm428_vm4, %v399_v30  ;;  %v10109_v22 = vld [vmem:[%s15056_s0 + $0x98] sm:$0xff]   ;;  %v3338_v30 = vshrl.u32 %v10107_v57, 16 }
  0xda   :  { %1374 = vrot.lane.b32.xlu1 %v10083_v14, %s10295_s20  ;;  %v11371_v14 = vld [vmem:[%s15056_s0 + $0xa0] sm:$0xff]  }
  0xdb   :  { %1372 = vrot.lane.b32.xlu0 %v10084_v32, %s10295_s20  ;;  %v2988_v24 = vrot.slane %v11371_v14, 1  ;;  %v3340_v8 = vor.u32 %v3338_v30, %v3336_v28  ;;  %v10196_v14 = vld [vmem:[%s15056_s0 + $0xa8] sm:$0xff]  }
  0xdc   :  { %v590_v13 = vpop.permute.xlu1 %589  ;;  %v3690_v21 = vld [vmem:[#allocation2 + $0x28] sm:$0xff]  ;;  %v588_v4 = vpop.permute.xlu0 %587  ;;  %v3689_v62 = vld [vmem:[#allocation2 + $0x20] sm:$0xff]  ;;  %1984 = vst.msk [vmem:[#allocation2 + $0x90] sm:$0xff] %vm152_vm2, %v10196_v14 }
  0xdd   :  { %625 = vst.msk [vmem:[#allocation2 + $0x38] sm:$0xff] %vm617_vm5, %v590_v13  ;;  %624 = vst.msk [vmem:[#allocation2 + $0x30] sm:$0xff] %vm617_vm5, %v588_v4  ;;  %9835 = vmatprep.mubr.msk.bf16.mxu1 %vm3756_vm12, %v3689_v62  ;;  %v3329_v13 = vshll.u32 %v10109_v22, 16  ;;  %v3327_v4 = vshrl.u32 %v10109_v22, 16  ;;  %v10175_v62 = vld [vmem:[%s15056_s0 + $0x98] sm:$0xff]   ;;  %v3345_v6 = vsel %vm269_vm1, %v3340_v8, %v11429_v34 }
  0xde   :  { %1649 = vrot.lane.b32.xlu1 %v1622_v19, %s10296_s27  ;;  %9836 = vmatmul.mubr.msk.bf16.vlgmr.msra.gmra.mrb[0].mxu1 %vm3756_vm12, %v3690_v21  ;;  %v2722_v19 = vsel %vm269_vm1, %v2717_v45, %v2721_v31  ;;  %v2989_v21 = vsel %vm545_vm0, %v2986_v16, %v2988_v24  ;;  %1982 = vst.msk [vmem:[#allocation2 + $0x80] sm:$0xff] %vm152_vm2, %v10175_v62 }
  0xdf   :  { %1647 = vrot.lane.b32.xlu0 %v1614_v1, %s10296_s27  ;;  %v3331_v38 = vrot.slane %v3329_v13, 1 }
  0xe0   :  { %v745_v59 = vpop.permute.xlu1 %744  ;;  %v743_v49 = vpop.permute.xlu0 %742 }
  0xe1   :  { %780 = vst.msk [vmem:[#allocation2 + $0x38] sm:$0xff] %vm772_vm6, %v745_v59  ;;  %779 = vst.msk [vmem:[#allocation2 + $0x30] sm:$0xff] %vm772_vm6, %v743_v49  ;;  %v11424_v59 = vld [vmem:[%s15056_s0 + $0xa0] sm:$0xff]   ;;  %v3332_v49 = vor.u32 %v3331_v38, %v3327_v4  ;;  %v10127_v4 = vld [vmem:[%s15056_s0 + $0xb0] sm:$0xff]  }
  0xe2   :  { %1837 = vrot.lane.b32.xlu1 %v1810_v17, %s10297_s18  ;;  %v2987_v17 = vsel %vm545_vm0, %v2985_v26, %v2986_v16  ;;  %v3601_v31 = vrot.slane %v11424_v59, 1  ;;  %v3350_v59 = vshll.u32 %v10127_v4, 16 }
  0xe3   :  { %1835 = vrot.lane.b32.xlu0 %v1808_v29, %s10297_s18  ;;  %v11434_v29 = vld [vmem:[%s15056_s0 + $0xa8] sm:$0xff]   ;;  %v3337_v48 = vsel %vm269_vm1, %v3332_v49, %v3336_v28  ;;  %v3354_v49 = vshrl.u32 %v10127_v4, 16  ;;  %v11629_v4 = vld [vmem:[%s15056_s0 + $0xc0] sm:$0xff]  }
  0xe4   :  { %v1020_v54 = vpop.permute.xlu1 %1019  ;;  %v1018_v58 = vpop.permute.xlu0 %1017  ;;  %v3352_v25 = vrot.slane %v3350_v59, 1 }
  0xe5   :  { %1055 = vst.msk [vmem:[#allocation2 + $0x38] sm:$0xff] %vm1047_vm7, %v1020_v54  ;;  %1054 = vst.msk [vmem:[#allocation2 + $0x30] sm:$0xff] %vm1047_vm7, %v1018_v58 }
  0xe6   :  { %2214 = vrot.lane.b32.xlu1 %v2115_v12, %s10292_s15  ;;  %v2118_v12 = vor.u32 %v2116_v53, %v11313_v43  ;;  %v11456_v43 = vld [vmem:[%s15056_s0 + $0xa8] sm:$0xff]   ;;  %v2376_v53 = vsel %vm545_vm0, %v2373_v18, %v2375_v15 }
  0xe7   :  { %2212 = vrot.lane.b32.xlu0 %v2107_v39, %s10292_s15  ;;  %v2128_v39 = vshll.u32 %v11434_v29, 16  ;;  %v3603_v45 = vrot.slane %v11456_v43, 1 }
  0xe8   :  { %v1208_v33 = vpop.permute.xlu1 %1207  ;;  %v1206_v40 = vpop.permute.xlu0 %1205  ;;  %v2123_v57 = vsel %vm269_vm1, %v2118_v12, %v2122_v61  ;;  %v3358_v12 = vshll.u32 %v11535_v55, 16 }
  0xe9   :  { %1243 = vst.msk [vmem:[#allocation2 + $0x38] sm:$0xff] %vm1235_vm8, %v1208_v33  ;;  %1242 = vst.msk [vmem:[#allocation2 + $0x30] sm:$0xff] %vm1235_vm8, %v1206_v40  ;;  %v11464_v33 = vld [vmem:[%s15056_s0 + $0xa8] sm:$0xff]   ;;  %v2126_v40 = vor.u32 %v2124_v11, %v2122_v61  ;;  %v3604_v30 = vsel %vm545_vm0, %v3601_v31, %v3603_v45 }
  0xea   :  { %2401 = vrot.lane.b32.xlu1 %v2374_v56, %s10291_s22  ;;  %v3600_v56 = vrot.slane %v10111_v50, 1  ;;  %v2377_v22 = vrot.slane %v11464_v33, 1  ;;  %v11682_v33 = vld [vmem:[%s15056_s0 + $0xc8] sm:$0xff]  }
  0xeb   :  { %2399 = vrot.lane.b32.xlu0 %v2372_v46, %s10291_s22 }
  0xec   :  { %v1363_v63 = vpop.permute.xlu1 %1362  ;;  %v1361_v32 = vpop.permute.xlu0 %1360  ;;  %v3602_v44 = vsel %vm545_vm0, %v3600_v56, %v3601_v31  ;;  %v2378_v28 = vsel %vm545_vm0, %v2375_v15, %v2377_v22  ;;  %v3346_v56 = vshrl.u32 %v11386_v41, 16  ;;  %v10129_v31 = vld [vmem:[%s15056_s0 + $0xb0] sm:$0xff]   ;;  %v11580_v41 = vld [vmem:[%s15056_s0 + $0xb8] sm:$0xff]  }
  0xed   :  { %1398 = vst.msk [vmem:[#allocation2 + $0x38] sm:$0xff] %vm1390_vm9, %v1363_v63  ;;  %1397 = vst.msk [vmem:[#allocation2 + $0x30] sm:$0xff] %vm1390_vm9, %v1361_v32  ;;  %v11482_v63 = vld [vmem:[%s15056_s0 + $0xb0] sm:$0xff]  }
  0xee   :  { %2555 = vrot.lane.b32.xlu1 %v10095_v0, %s10290_s11  ;;  %v10119_v0 = vld [vmem:[%s15056_s0 + $0xa8] sm:$0xff]   ;;  %v2743_v26 = vshll.u32 %v11482_v63, 16 }
  0xef   :  { %2553 = vrot.lane.b32.xlu0 %v10096_v9, %s10290_s11  ;;  %v11475_v9 = vrot.slane %v2128_v39, 1  ;;  %v2735_v32 = vshll.u32 %v10119_v0, 16  ;;  %v2739_v13 = vshrl.u32 %v10119_v0, 16  ;;  %v10125_v39 = vld [vmem:[%s15056_s0 + $0xb0] sm:$0xff]  }
  0xf0   :  { %v1638_v36 = vpop.permute.xlu1 %1637  ;;  %v1636_v1 = vpop.permute.xlu0 %1635 }
  0xf1   :  { %1673 = vst.msk [vmem:[#allocation2 + $0x38] sm:$0xff] %vm1665_vm10, %v1638_v36  ;;  %1672 = vst.msk [vmem:[#allocation2 + $0x30] sm:$0xff] %vm1665_vm10, %v1636_v1  ;;  %v2131_v16 = vsel %vm269_vm1, %v2126_v40, %v11475_v9  ;;  %v2737_v27 = vrot.slane %v2735_v32, 1  ;;  %v10117_v1 = vld [vmem:[%s15056_s0 + $0xa8] sm:$0xff]   ;;  %v3605_v40 = vrot.slane %v10129_v31, 1 }
  0xf2   :  { %2829 = vrot.lane.b32.xlu1 %v2730_v23, %s10293_s23 }
  0xf3   :  { %2827 = vrot.lane.b32.xlu0 %v2722_v19, %s10293_s23  ;;  %v2741_v38 = vor.u32 %v2739_v13, %v2737_v27 }
  0xf4   :  { %v1826_v37 = vpop.permute.xlu1 %1825  ;;  %v1824_v47 = vpop.permute.xlu0 %1823 }
  0xf5   :  { %1861 = vst.msk [vmem:[#allocation2 + $0x38] sm:$0xff] %vm1853_vm11, %v1826_v37  ;;  %1860 = vst.msk [vmem:[#allocation2 + $0x30] sm:$0xff] %vm1853_vm11, %v1824_v47  ;;  %v10121_v37 = vld [vmem:[%s15056_s0 + $0xa8] sm:$0xff]  }
  0xf6   :  { %3016 = vrot.lane.b32.xlu1 %v2989_v21, %s10294_s30  ;;  %v2731_v21 = vshrl.u32 %v11321_v3, 16  ;;  %v11523_v3 = vrot.slane %v2743_v26, 1  ;;  %v2990_v8 = vrot.slane %v10121_v37, 1  ;;  %v2132_v26 = vshrl.u32 %v11434_v29, 16 }
  0xf7   :  { %3014 = vrot.lane.b32.xlu0 %v2987_v17, %s10294_s30  ;;  %v10118_v17 = vld [vmem:[%s15056_s0 + $0xa0] sm:$0xff]  }
  0xf8   :  { %v405_v51 = vpop.permute.xlu1 %404  ;;  %v403_v54 = vpop.permute.xlu0 %402  ;;  %v2733_v18 = vor.u32 %v2731_v21, %v11366_v5  ;;  %v2991_v0 = vsel %vm545_vm0, %v2988_v24, %v2990_v8  ;;  %v3348_v24 = vor.u32 %v3346_v56, %v11429_v34  ;;  %v10136_v56 = vld [vmem:[%s15056_s0 + $0xb0] sm:$0xff]  }
  0xf9   :  { %438 = vst.msk [vmem:[#allocation2 + $0x48] sm:$0xff] %vm428_vm4, %v405_v51  ;;  %437 = vst.msk [vmem:[#allocation2 + $0x40] sm:$0xff] %vm428_vm4, %v403_v54  ;;  %v10131_v54 = vld [vmem:[%s15056_s0 + $0xb0] sm:$0xff]  }
  0xfa   :  { %3170 = vrot.lane.b32.xlu1 %v10105_v52, %s10295_s20  ;;  %v11517_v52 = vld [vmem:[%s15056_s0 + $0xb0] sm:$0xff]   ;;  %v2738_v5 = vsel %vm269_vm1, %v2733_v18, %v2737_v27  ;;  %v3353_v29 = vsel %vm269_vm1, %v3348_v24, %v3352_v25 }
  0xfb   :  { %3168 = vrot.lane.b32.xlu0 %v10106_v7, %s10295_s20  ;;  %v2746_v7 = vsel %vm269_vm1, %v2741_v38, %v11523_v3  ;;  %v2992_v51 = vrot.slane %v11517_v52, 1  ;;  %v10214_v52 = vld [vmem:[%s15056_s0 + $0xb8] sm:$0xff]  }
  0xfc   :  { %v594_v58 = vpop.permute.xlu1 %593  ;;  %v3692_v2 = vld [vmem:[#allocation2 + $0x38] sm:$0xff]  ;;  %v592_v46 = vpop.permute.xlu0 %591  ;;  %v3691_v42 = vld [vmem:[#allocation2 + $0x30] sm:$0xff]  ;;  %1986 = vst.msk [vmem:[#allocation2 + $0xa0] sm:$0xff] %vm152_vm2, %v10214_v52 }
  0xfd   :  { %627 = vst.msk [vmem:[#allocation2 + $0x48] sm:$0xff] %vm617_vm5, %v594_v58  ;;  %626 = vst.msk [vmem:[#allocation2 + $0x40] sm:$0xff] %vm617_vm5, %v592_v46  ;;  %9839 = vmatprep.mubr.msk.bf16.mxu1 %vm3756_vm12, %v3691_v42  ;;  %v2993_v61 = vsel %vm545_vm0, %v2990_v8, %v2992_v51  ;;  %v11560_v58 = vrot.slane %v3358_v12, 1  ;;  %v3356_v46 = vor.u32 %v3354_v49, %v3352_v25  ;;  %v2747_v25 = vshrl.u32 %v11482_v63, 16 }
  0xfe   :  { %3444 = vrot.lane.b32.xlu1 %v3345_v6, %s10296_s27  ;;  %9840 = vmatmul.mubr.msk.bf16.gmra.mrb[4].mxu1 %vm3756_vm12, %v3692_v2 }
  0xff   :  { %3442 = vrot.lane.b32.xlu0 %v3337_v48, %s10296_s27  ;;  %v2136_v48 = vshll.u32 %v10131_v54, 16  ;;  %v3361_v32 = vsel %vm269_vm1, %v3356_v46, %v11560_v58 }
 0x100   :  { %v749_v60 = vpop.permute.xlu1 %748  ;;  %v747_v23 = vpop.permute.xlu0 %746 }
 0x101   :  { %782 = vst.msk [vmem:[#allocation2 + $0x48] sm:$0xff] %vm772_vm6, %v749_v60  ;;  %781 = vst.msk [vmem:[#allocation2 + $0x40] sm:$0xff] %vm772_vm6, %v747_v23  ;;  %v3607_v60 = vrot.slane %v11569_v10, 1  ;;  %v2138_v23 = vrot.slane %v2136_v48, 1 }
 0x102   :  { %2216 = vrot.lane.b32.xlu1 %v2123_v57, %s10292_s15  ;;  %v10126_v57 = vld [vmem:[%s15056_s0 + $0xa8] sm:$0xff]  }
 0x103   :  { %3629 = vrot.lane.b32.xlu0 %v3602_v44, %s10297_s18  ;;  %v10195_v44 = vld [vmem:[%s15056_s0 + $0xb0] sm:$0xff]  }
 0x104   :  { %v1024_v36 = vpop.permute.xlu1 %1023  ;;  %v1022_v19 = vpop.permute.xlu0 %1021  ;;  %1985 = vst.msk [vmem:[#allocation2 + $0x98] sm:$0xff] %vm152_vm2, %v10195_v44 }
 0x105   :  { %1057 = vst.msk [vmem:[#allocation2 + $0x48] sm:$0xff] %vm1047_vm7, %v1024_v36  ;;  %1056 = vst.msk [vmem:[#allocation2 + $0x40] sm:$0xff] %vm1047_vm7, %v1022_v19  ;;  %v2144_v36 = vshll.u32 %v11580_v41, 16  ;;  %v11609_v19 = vld [vmem:[%s15056_s0 + $0xb8] sm:$0xff]  }
 0x106   :  { %2218 = vrot.lane.b32.xlu1 %v2131_v16, %s10292_s15  ;;  %v2140_v16 = vshrl.u32 %v10131_v54, 16  ;;  %v10139_v54 = vld [vmem:[%s15056_s0 + $0xb8] sm:$0xff]  }
 0x107   :  { %3631 = vrot.lane.b32.xlu0 %v3604_v30, %s10297_s18  ;;  %v10133_v30 = vld [vmem:[%s15056_s0 + $0xb0] sm:$0xff]   ;;  %v11622_v37 = vrot.slane %v2144_v36, 1  ;;  %v10143_v36 = vld [vmem:[%s15056_s0 + $0xc0] sm:$0xff]  }
 0x108   :  { %v1212_v35 = vpop.permute.xlu1 %1211  ;;  %v1210_v62 = vpop.permute.xlu0 %1209  ;;  %v2142_v21 = vor.u32 %v2140_v16, %v2138_v23  ;;  %v2379_v38 = vrot.slane %v10133_v30, 1  ;;  %v10147_v30 = vld [vmem:[%s15056_s0 + $0xc0] sm:$0xff]  }
 0x109   :  { %1245 = vst.msk [vmem:[#allocation2 + $0x48] sm:$0xff] %vm1235_vm8, %v1212_v35  ;;  %1244 = vst.msk [vmem:[#allocation2 + $0x40] sm:$0xff] %vm1235_vm8, %v1210_v62  ;;  %v2134_v62 = vor.u32 %v2132_v26, %v11475_v9  ;;  %v2759_v9 = vshll.u32 %v11629_v4, 16  ;;  %v3362_v26 = vshrl.u32 %v11535_v55, 16  ;;  %v11727_v55 = vld [vmem:[%s15056_s0 + $0xc8] sm:$0xff]  }
 0x10a   :  { %2405 = vrot.lane.b32.xlu1 %v2378_v28, %s10291_s22  ;;  %v10137_v28 = vld [vmem:[%s15056_s0 + $0xb8] sm:$0xff]  }
 0x10b   :  { %2403 = vrot.lane.b32.xlu0 %v2376_v53, %s10291_s22  ;;  %v2751_v18 = vshll.u32 %v10137_v28, 16  ;;  %v2139_v43 = vsel %vm269_vm1, %v2134_v62, %v2138_v23  ;;  %v2755_v49 = vshrl.u32 %v10137_v28, 16  ;;  %v11670_v63 = vrot.slane %v2759_v9, 1  ;;  %v11716_v28 = vld [vmem:[%s15056_s0 + $0xc8] sm:$0xff]   ;;  %v10151_v9 = vld [vmem:[%s15056_s0 + $0xc0] sm:$0xff]  }
 0x10c   :  { %v1367_v20 = vpop.permute.xlu1 %1366  ;;  %v1365_v47 = vpop.permute.xlu0 %1364  ;;  %v3611_v62 = vrot.slane %v11716_v28, 1 }
 0x10d   :  { %1400 = vst.msk [vmem:[#allocation2 + $0x48] sm:$0xff] %vm1390_vm9, %v1367_v20  ;;  %1399 = vst.msk [vmem:[#allocation2 + $0x40] sm:$0xff] %vm1390_vm9, %v1365_v47  ;;  %v2381_v20 = vrot.slane %v11609_v19, 1  ;;  %v2147_v47 = vsel %vm269_vm1, %v2142_v21, %v11622_v37  ;;  %v10144_v21 = vld [vmem:[%s15056_s0 + $0xb8] sm:$0xff]  }
 0x10e   :  { %2559 = vrot.lane.b32.xlu1 %v10117_v1, %s10290_s11  ;;  %v3608_v1 = vsel %vm545_vm0, %v3605_v40, %v3607_v60 }
 0x10f   :  { %2557 = vrot.lane.b32.xlu0 %v10118_v17, %s10290_s11  ;;  %v3606_v17 = vsel %vm545_vm0, %v3603_v45, %v3605_v40  ;;  %v2382_v8 = vsel %vm545_vm0, %v2379_v38, %v2381_v20  ;;  %v3374_v40 = vshll.u32 %v11682_v33, 16 }
 0x110   :  { %v1642_v50 = vpop.permute.xlu1 %1641 }
 0x111   :  { %1675 = vst.msk [vmem:[#allocation2 + $0x48] sm:$0xff] %vm1665_vm10, %v1642_v50  ;;  %v1640_v6 = vpop.permute.xlu0 %1639  ;;  %v2753_v50 = vrot.slane %v2751_v18, 1 }
 0x112   :  { %2833 = vrot.lane.b32.xlu1 %v2746_v7, %s10293_s23  ;;  %1674 = vst.msk [vmem:[#allocation2 + $0x40] sm:$0xff] %vm1665_vm10, %v1640_v6  ;;  %v11664_v6 = vld [vmem:[%s15056_s0 + $0xc0] sm:$0xff]  }
 0x113   :  { %2831 = vrot.lane.b32.xlu0 %v2738_v5, %s10293_s23  ;;  %v10135_v5 = vld [vmem:[%s15056_s0 + $0xb8] sm:$0xff]   ;;  %v2757_v31 = vor.u32 %v2755_v49, %v2753_v50  ;;  %v2148_v49 = vshrl.u32 %v11580_v41, 16 }
 0x114   :  { %v1830_v11 = vpop.permute.xlu1 %1829 }
 0x115   :  { %1863 = vst.msk [vmem:[#allocation2 + $0x48] sm:$0xff] %vm1853_vm11, %v1830_v11  ;;  %v1828_v2 = vpop.permute.xlu0 %1827  ;;  %v10145_v11 = vld [vmem:[%s15056_s0 + $0xc0] sm:$0xff]   ;;  %v2762_v46 = vsel %vm269_vm1, %v2757_v31, %v11670_v63  ;;  %v2150_v31 = vor.u32 %v2148_v49, %v11622_v37 }
 0x116   :  { %3020 = vrot.lane.b32.xlu1 %v2993_v61, %s10294_s30  ;;  %1862 = vst.msk [vmem:[#allocation2 + $0x40] sm:$0xff] %vm1853_vm11, %v1828_v2  ;;  %v2380_v61 = vsel %vm545_vm0, %v2377_v22, %v2379_v38  ;;  %v2749_v22 = vor.u32 %v2747_v25, %v11523_v3  ;;  %v3366_v48 = vshll.u32 %v10145_v11, 16  ;;  %v3370_v24 = vshrl.u32 %v10145_v11, 16 }
 0x117   :  { %3018 = vrot.lane.b32.xlu0 %v2991_v0, %s10294_s30 }
 0x118   :  { %v409_v42 = vpop.permute.xlu1 %408  ;;  %v2754_v3 = vsel %vm269_vm1, %v2749_v22, %v2753_v50  ;;  %v3368_v44 = vrot.slane %v3366_v48, 1 }
 0x119   :  { %440 = vst.msk [vmem:[#allocation2 + $0x58] sm:$0xff] %vm428_vm4, %v409_v42  ;;  %v407_v15 = vpop.permute.xlu0 %406  ;;  %v2994_v42 = vrot.slane %v10139_v54, 1 }
 0x11a   :  { %3174 = vrot.lane.b32.xlu1 %v10125_v39, %s10295_s20  ;;  %439 = vst.msk [vmem:[#allocation2 + $0x50] sm:$0xff] %vm428_vm4, %v407_v15  ;;  %v10149_v15 = vld [vmem:[%s15056_s0 + $0xc0] sm:$0xff]  }
 0x11b   :  { %3172 = vrot.lane.b32.xlu0 %v10126_v57, %s10295_s20  ;;  %v2996_v57 = vrot.slane %v11664_v6, 1 }
 0x11c   :  { %v598_v34 = vpop.permute.xlu1 %597  ;;  %v3694_v27 = vld [vmem:[#allocation2 + $0x48] sm:$0xff] }
 0x11d   :  { %629 = vst.msk [vmem:[#allocation2 + $0x58] sm:$0xff] %vm617_vm5, %v598_v34  ;;  %v596_v13 = vpop.permute.xlu0 %595  ;;  %v3693_v35 = vld [vmem:[#allocation2 + $0x40] sm:$0xff]  ;;  %v2997_v23 = vsel %vm545_vm0, %v2994_v42, %v2996_v57  ;;  %v11707_v34 = vrot.slane %v3374_v40, 1 }
 0x11e   :  { %3448 = vrot.lane.b32.xlu1 %v3361_v32, %s10296_s27  ;;  %628 = vst.msk [vmem:[#allocation2 + $0x50] sm:$0xff] %vm617_vm5, %v596_v13  ;;  %9843 = vmatprep.mubr.msk.bf16.mxu1 %vm3756_vm12, %v3693_v35  ;;  %v3372_v35 = vor.u32 %v3370_v24, %v3368_v44 }
 0x11f   :  { %3446 = vrot.lane.b32.xlu0 %v3353_v29, %s10296_s27  ;;  %9844 = vmatmul.mubr.msk.bf16.gmra.mrb[8].mxu1 %vm3756_vm12, %v3694_v27  ;;  %v2995_v29 = vsel %vm545_vm0, %v2992_v51, %v2994_v42  ;;  %v2152_v27 = vshll.u32 %v10149_v15, 16  ;;  %v3364_v51 = vor.u32 %v3362_v26, %v11560_v58 }
 0x120   :  { %v753_v53 = vpop.permute.xlu1 %752  ;;  %v3377_v18 = vsel %vm269_vm1, %v3372_v35, %v11707_v34 }
 0x121   :  { %784 = vst.msk [vmem:[#allocation2 + $0x58] sm:$0xff] %vm772_vm6, %v753_v53  ;;  %v751_v59 = vpop.permute.xlu0 %750  ;;  %v3609_v53 = vrot.slane %v10147_v30, 1 }
 0x122   :  { %3635 = vrot.lane.b32.xlu1 %v3608_v1, %s10297_s18  ;;  %783 = vst.msk [vmem:[#allocation2 + $0x50] sm:$0xff] %vm772_vm6, %v751_v59  ;;  %v2154_v59 = vrot.slane %v2152_v27, 1 }
 0x123   :  { %3633 = vrot.lane.b32.xlu0 %v3606_v17, %s10297_s18  ;;  %v10213_v17 = vld [vmem:[%s15056_s0 + $0xc0] sm:$0xff]   ;;  %v3612_v25 = vsel %vm545_vm0, %v3609_v53, %v3611_v62  ;;  %v3610_v41 = vsel %vm545_vm0, %v3607_v60, %v3609_v53 }
 0x124   :  { %v1028_v7 = vpop.permute.xlu1 %1027  ;;  %1987 = vst.msk [vmem:[#allocation2 + $0xa8] sm:$0xff] %vm152_vm2, %v10213_v17 }
 0x125   :  { %1059 = vst.msk [vmem:[#allocation2 + $0x58] sm:$0xff] %vm1047_vm7, %v1028_v7  ;;  %v1026_v45 = vpop.permute.xlu0 %1025  ;;  %v2160_v7 = vshll.u32 %v11727_v55, 16 }
 0x126   :  { %2222 = vrot.lane.b32.xlu1 %v2147_v47, %s10292_s15  ;;  %1058 = vst.msk [vmem:[#allocation2 + $0x50] sm:$0xff] %vm1047_vm7, %v1026_v45  ;;  %v2156_v47 = vshrl.u32 %v10149_v15, 16  ;;  %v10155_v45 = vld [vmem:[%s15056_s0 + $0xc8] sm:$0xff]  }
 0x127   :  { %2220 = vrot.lane.b32.xlu0 %v2139_v43, %s10292_s15  ;;  %v11755_v43 = vld [vmem:[%s15056_s0 + $0xc8] sm:$0xff]   ;;  %v2767_v22 = vshll.u32 %v10155_v45, 16 }
 0x128   :  { %v1216_v12 = vpop.permute.xlu1 %1215  ;;  %v2158_v54 = vor.u32 %v2156_v47, %v2154_v59 }
 0x129   :  { %1247 = vst.msk [vmem:[#allocation2 + $0x58] sm:$0xff] %vm1235_vm8, %v1216_v12  ;;  %v1214_v39 = vpop.permute.xlu0 %1213 }
 0x12a   :  { %2409 = vrot.lane.b32.xlu1 %v2382_v8, %s10291_s22  ;;  %1246 = vst.msk [vmem:[#allocation2 + $0x50] sm:$0xff] %vm1235_vm8, %v1214_v39  ;;  %v3369_v8 = vsel %vm269_vm1, %v3364_v51, %v3368_v44  ;;  %v2383_v39 = vrot.slane %v10151_v9, 1 }
 0x12b   :  { %2407 = vrot.lane.b32.xlu0 %v2380_v61, %s10291_s22  ;;  %v11769_v61 = vrot.slane %v2160_v7, 1 }
 0x12c   :  { %v1371_v0 = vpop.permute.xlu1 %1370 }
 0x12d   :  { %1402 = vst.msk [vmem:[#allocation2 + $0x58] sm:$0xff] %vm1390_vm9, %v1371_v0  ;;  %v1369_v2 = vpop.permute.xlu0 %1368  ;;  %v11785_v0 = vld [vmem:[%s15056_s0 + $0xd0] sm:$0xff]  }
 0x12e   :  { %2563 = vrot.lane.b32.xlu1 %v10135_v5, %s10290_s11  ;;  %1401 = vst.msk [vmem:[#allocation2 + $0x50] sm:$0xff] %vm1390_vm9, %v1369_v2  ;;  %v2163_v2 = vsel %vm269_vm1, %v2158_v54, %v11769_v61 }
 0x12f   :  { %2561 = vrot.lane.b32.xlu0 %v10136_v56, %s10290_s11  ;;  %v2385_v56 = vrot.slane %v11755_v43, 1 }
 0x130   :  { %v1646_v14 = vpop.permute.xlu1 %1645 }
 0x131   :  { %1677 = vst.msk [vmem:[#allocation2 + $0x58] sm:$0xff] %vm1665_vm10, %v1646_v14  ;;  %v1644_v32 = vpop.permute.xlu0 %1643 }
 0x132   :  { %2837 = vrot.lane.b32.xlu1 %v2762_v46, %s10293_s23  ;;  %1676 = vst.msk [vmem:[#allocation2 + $0x50] sm:$0xff] %vm1665_vm10, %v1644_v32 }
 0x133   :  { %2835 = vrot.lane.b32.xlu0 %v2754_v3, %s10293_s23 }
 0x134   :  { %v1834_v16 = vpop.permute.xlu1 %1833 }
 0x135   :  { %1865 = vst.msk [vmem:[#allocation2 + $0x58] sm:$0xff] %vm1853_vm11, %v1834_v16  ;;  %v1832_v13 = vpop.permute.xlu0 %1831 }
 0x136   :  { %3024 = vrot.lane.b32.xlu1 %v2997_v23, %s10294_s30  ;;  %1864 = vst.msk [vmem:[#allocation2 + $0x50] sm:$0xff] %vm1853_vm11, %v1832_v13 }
 0x137   :  { %3022 = vrot.lane.b32.xlu0 %v2995_v29, %s10294_s30 }
 0x138   :  { %v413_v1 = vpop.permute.xlu1 %412 }
 0x139   :  { %442 = vst.msk [vmem:[#allocation2 + $0x68] sm:$0xff] %vm428_vm4, %v413_v1  ;;  %v411_v38 = vpop.permute.xlu0 %410 }
 0x13a   :  { %3178 = vrot.lane.b32.xlu1 %v10143_v36, %s10295_s20  ;;  %441 = vst.msk [vmem:[#allocation2 + $0x60] sm:$0xff] %vm428_vm4, %v411_v38 }
 0x13b   :  { %3176 = vrot.lane.b32.xlu0 %v10144_v21, %s10295_s20 }
 0x13c   :  { %v602_v58 = vpop.permute.xlu1 %601  ;;  %v3696_v50 = vld [vmem:[#allocation2 + $0x58] sm:$0xff] }
 0x13d   :  { %631 = vst.msk [vmem:[#allocation2 + $0x68] sm:$0xff] %vm617_vm5, %v602_v58  ;;  %v600_v12 = vpop.permute.xlu0 %599  ;;  %v3695_v5 = vld [vmem:[#allocation2 + $0x50] sm:$0xff] }
 0x13e   :  { %3452 = vrot.lane.b32.xlu1 %v3377_v18, %s10296_s27  ;;  %630 = vst.msk [vmem:[#allocation2 + $0x60] sm:$0xff] %vm617_vm5, %v600_v12  ;;  %9847 = vmatprep.mubr.msk.bf16.mxu1 %vm3756_vm12, %v3695_v5 }
 0x13f   :  { %3450 = vrot.lane.b32.xlu0 %v3369_v8, %s10296_s27  ;;  %9848 = vmatmul.mubr.msk.bf16.gmra.mrb[12].mxu1 %vm3756_vm12, %v3696_v50 }
 0x140   :  { %v757_v11 = vpop.permute.xlu1 %756 }
 0x141   :  { %786 = vst.msk [vmem:[#allocation2 + $0x68] sm:$0xff] %vm772_vm6, %v757_v11  ;;  %v755_v48 = vpop.permute.xlu0 %754 }
 0x142   :  { %3639 = vrot.lane.b32.xlu1 %v3612_v25, %s10297_s18  ;;  %785 = vst.msk [vmem:[#allocation2 + $0x60] sm:$0xff] %vm772_vm6, %v755_v48 }
 0x143   :  { %3637 = vrot.lane.b32.xlu0 %v3610_v41, %s10297_s18 }
 0x144   :  { %v1032_v46 = vpop.permute.xlu1 %1031 }
 0x145   :  { %1061 = vst.msk [vmem:[#allocation2 + $0x68] sm:$0xff] %vm1047_vm7, %v1032_v46 }
 0x146   :  { %14 = vsyncpa [#allocation8], 0  ;;  %2226 = vrot.lane.b32.xlu1 %v2163_v2, %s10292_s15  ;;  %v2155_v10 = vsel %vm269_vm1, %v2150_v31, %v2154_v59  ;;  %v1030_v60 = vpop.permute.xlu0 %1029  ;;  %v2386_v37 = vsel %vm545_vm0, %v2383_v39, %v2385_v56  ;;  %v2769_v42 = vrot.slane %v2767_v22, 1  ;;  %v2771_v14 = vshrl.u32 %v10155_v45, 16  ;;  %v10221_v40 = vld [vmem:[%s15059_s3 + $0x80] sm:$0xff]   ;;  %v10153_v15 = vld [vmem:[%s15056_s0 + $0xc8] sm:$0xff]  }
 0x147   :  { %v2775_v24 = vshll.u32 %v11785_v0, 16  ;;  %1060 = vst.msk [vmem:[#allocation2 + $0x60] sm:$0xff] %vm1047_vm7, %v1030_v60  ;;  %2224 = vrot.lane.b32.xlu0 %v2155_v10, %s10292_s15  ;;  %9883 = vmatprep.subr.bf16.mxu0 %v10221_v40  ;;  %v2384_v44 = vsel %vm545_vm0, %v2381_v20, %v2383_v39  ;;  %v2763_v32 = vshrl.u32 %v11629_v4, 16  ;;  %v10157_v23 = vld [vmem:[%s15056_s0 + $0xc8] sm:$0xff]   ;;  %v11820_v19 = vld [vmem:[%s15056_s0 + $0xd0] sm:$0xff]   ;;  %v10154_v29 = vld [vmem:[%s15056_s0 + $0xc0] sm:$0xff]  }
 0x148   :  { %v1220_v3 = vpop.permute.xlu1 %1219  ;;  %9884 = vmatpush3.bf16.msra.mxu0 %v10221_v40  ;;  %v2773_v36 = vor.u32 %v2771_v14, %v2769_v42  ;;  %v10163_v20 = vld [vmem:[%s15056_s0 + $0xd0] sm:$0xff]   ;;  %v10222_v4 = vld [vmem:[%s15059_s3 + $0x88] sm:$0xff]   ;;  %v2998_v1 = vrot.slane %v10157_v23, 1  ;;  %v3000_v21 = vrot.slane %v11820_v19, 1  ;;  %v11842_v52 = vld [vmem:[%s15056_s0 + $0xd8] sm:$0xff]   ;;  %v3378_v8 = vshrl.u32 %v11682_v33, 16 }
 0x149   :  { %1249 = vst.msk [vmem:[#allocation2 + $0x68] sm:$0xff] %vm1235_vm8, %v1220_v3  ;;  %v11815_v26 = vrot.slane %v2775_v24, 1  ;;  %9885 = vmatprep.subr.bf16.mxu0 %v10222_v4  ;;  %v2765_v27 = vor.u32 %v2763_v32, %v11670_v63  ;;  %v3382_v51 = vshll.u32 %v10163_v20, 16  ;;  %v3386_v59 = vshrl.u32 %v10163_v20, 16  ;;  %v10167_v7 = vld [vmem:[%s15056_s0 + $0xd0] sm:$0xff]   ;;  %v11873_v49 = vld [vmem:[%s15056_s0 + $0xd8] sm:$0xff]  }
 0x14a   :  { %2413 = vrot.lane.b32.xlu1 %v2386_v37, %s10291_s22  ;;  %v1218_v16 = vpop.permute.xlu0 %1217  ;;  %v3001_v38 = vsel %vm545_vm0, %v2998_v1, %v3000_v21  ;;  %v3390_v47 = vshll.u32 %v11842_v52, 16  ;;  %v2999_v9 = vsel %vm545_vm0, %v2996_v57, %v2998_v1  ;;  %v10161_v45 = vld [vmem:[%s15056_s0 + $0xd0] sm:$0xff]   ;;  %v11880_v57 = vld [vmem:[%s15056_s0 + $0xd8] sm:$0xff]   ;;  %v2168_v25 = vshll.u32 %v10167_v7, 16  ;;  %v10162_v54 = vld [vmem:[%s15056_s0 + $0xc8] sm:$0xff]  }
 0x14b   :  { %1248 = vst.msk [vmem:[#allocation2 + $0x60] sm:$0xff] %vm1235_vm8, %v1218_v16  ;;  %2411 = vrot.lane.b32.xlu0 %v2384_v44, %s10291_s22  ;;  %v2778_v35 = vsel %vm269_vm1, %v2773_v36, %v11815_v26  ;;  %v2770_v63 = vsel %vm269_vm1, %v2765_v27, %v2769_v42  ;;  %v3384_v18 = vrot.slane %v3382_v51, 1  ;;  %v10165_v50 = vld [vmem:[%s15056_s0 + $0xd0] sm:$0xff]   ;;  %v3380_v11 = vor.u32 %v3378_v8, %v11707_v34  ;;  %v10224_v31 = vld [vmem:[%s15056_s0 + $0xc8] sm:$0xff]   ;;  %v11919_v23 = vld [vmem:[%s15056_s0 + $0xd8] sm:$0xff]  }
 0x14c   :  { %v1375_v30 = vpop.permute.xlu1 %1374  ;;  %9886 = vmatpush3.bf16.msra.mxu0 %v10222_v4  ;;  %v11875_v6 = vrot.slane %v3390_v47, 1  ;;  %v3613_v39 = vrot.slane %v10165_v50, 1  ;;  %v3615_v41 = vrot.slane %v11873_v49, 1  ;;  %v2170_v2 = vrot.slane %v2168_v25, 1  ;;  %v10223_v60 = vld [vmem:[%s15056_s0 + $0xd0] sm:$0xff]   ;;  %1988 = vst.msk [vmem:[#allocation2 + $0xb0] sm:$0xff] %vm152_vm2, %v10224_v31 }
 0x14d   :  { %1404 = vst.msk [vmem:[#allocation2 + $0x68] sm:$0xff] %vm1390_vm9, %v1375_v30  ;;  %v3388_v5 = vor.u32 %v3386_v59, %v3384_v18  ;;  %v2172_v46 = vshrl.u32 %v10167_v7, 16  ;;  %v2176_v10 = vshll.u32 %v11880_v57, 16  ;;  %v3385_v37 = vsel %vm269_vm1, %v3380_v11, %v3384_v18  ;;  %v10169_v24 = vld [vmem:[%s15056_s0 + $0xd0] sm:$0xff]   ;;  %v10171_v18 = vld [vmem:[%s15056_s0 + $0xd8] sm:$0xff]   ;;  %v10181_v47 = vld [vmem:[%s15056_s0 + $0xe0] sm:$0xff]  }
 0x14e   :  { %2567 = vrot.lane.b32.xlu1 %v10153_v15, %s10290_s11  ;;  %v1373_v13 = vpop.permute.xlu0 %1372  ;;  %1989 = vst.msk [vmem:[#allocation2 + $0xb8] sm:$0xff] %vm152_vm2, %v10223_v60  ;;  %v2164_v14 = vshrl.u32 %v11727_v55, 16  ;;  %v3616_v44 = vsel %vm545_vm0, %v3613_v39, %v3615_v41  ;;  %v10173_v55 = vld [vmem:[%s15056_s0 + $0xd8] sm:$0xff]   ;;  %v3614_v36 = vsel %vm545_vm0, %v3611_v62, %v3613_v39  ;;  %v2389_v27 = vrot.slane %v11919_v23, 1  ;;  %v11986_v50 = vld [vmem:[%s15056_s0 + $0xe8] sm:$0xff]   ;;  %v12139_v23 = vld [vmem:[%s15056_s0 + $0xf0] sm:$0xff]  }
 0x14f   :  { %1403 = vst.msk [vmem:[#allocation2 + $0x60] sm:$0xff] %vm1390_vm9, %v1373_v13  ;;  %2565 = vrot.lane.b32.xlu0 %v10154_v29, %s10290_s11  ;;  %v3393_v48 = vsel %vm269_vm1, %v3388_v5, %v11875_v6  ;;  %v2174_v15 = vor.u32 %v2172_v46, %v2170_v2  ;;  %v11914_v32 = vrot.slane %v2176_v10, 1  ;;  %v2387_v29 = vrot.slane %v10169_v24, 1  ;;  %v11940_v13 = vld [vmem:[%s15056_s0 + $0xe0] sm:$0xff]   ;;  %v10176_v43 = vld [vmem:[%s15056_s0 + $0xd8] sm:$0xff]  }
 0x150   :  { %v1650_v53 = vpop.permute.xlu1 %1649  ;;  %v2166_v20 = vor.u32 %v2164_v14, %v11769_v61  ;;  %v2779_v59 = vshrl.u32 %v11785_v0, 16  ;;  %v3402_v31 = vshrl.u32 %v10181_v47, 16  ;;  %v10185_v46 = vld [vmem:[%s15056_s0 + $0xe0] sm:$0xff]   ;;  %vm34_vm13 = vcmask 261120  }
 0x151   :  { %1679 = vst.msk [vmem:[#allocation2 + $0x68] sm:$0xff] %vm1665_vm10, %v1650_v53  ;;  %v2179_v30 = vsel %vm269_vm1, %v2174_v15, %v11914_v32  ;;  %v2390_v1 = vsel %vm545_vm0, %v2387_v29, %v2389_v27  ;;  %v2787_v53 = vshrl.u32 %v10173_v55, 16  ;;  %v12009_v60 = vld [vmem:[%s15058_s2] ss:$0 sm:$0xff]  ;;  %vm4387_vm14 = vcmask 523520  }
 0x152   :  { %2841 = vrot.lane.b32.xlu1 %v2778_v35, %s10293_s23  ;;  %v1648_v17 = vpop.permute.xlu0 %1647  ;;  %v2783_v35 = vshll.u32 %v10173_v55, 16  ;;  %v2171_v62 = vsel %vm269_vm1, %v2166_v20, %v2170_v2  ;;  %v2781_v8 = vor.u32 %v2779_v59, %v11815_v26  ;;  %vm4487_vm15 = vcmask 785920  }
 0x153   :  { %1678 = vst.msk [vmem:[#allocation2 + $0x60] sm:$0xff] %vm1665_vm10, %v1648_v17  ;;  %2839 = vrot.lane.b32.xlu0 %v2770_v63, %s10293_s23  ;;  %v2791_v63 = vshll.u32 %v11940_v13, 16  ;;  %vm36_vm3 = vcmask 523264  }
 0x154   :  { %v1838_v58 = vpop.permute.xlu1 %1837  ;;  %v2785_v51 = vrot.slane %v2783_v35, 1 }
 0x155   :  { %1867 = vst.msk [vmem:[#allocation2 + $0x68] sm:$0xff] %vm1853_vm11, %v1838_v58 }
 0x156   :  { %3028 = vrot.lane.b32.xlu1 %v3001_v38, %s10294_s30  ;;  %v1836_v12 = vpop.permute.xlu0 %1835  ;;  %v2388_v38 = vsel %vm545_vm0, %v2385_v56, %v2387_v29  ;;  %v2789_v58 = vor.u32 %v2787_v53, %v2785_v51  ;;  %v11973_v56 = vld [vmem:[%s15056_s0 + $0xe0] sm:$0xff]   ;;  %v2786_v26 = vsel %vm269_vm1, %v2781_v8, %v2785_v51 }
 0x157   :  { %1866 = vst.msk [vmem:[#allocation2 + $0x60] sm:$0xff] %vm1853_vm11, %v1836_v12  ;;  %3026 = vrot.lane.b32.xlu0 %v2999_v9, %s10294_s30  ;;  %v11965_v9 = vrot.slane %v2791_v63, 1  ;;  %v3398_v12 = vshll.u32 %v10181_v47, 16  ;;  %v2188_v63 = vshrl.u32 %v10185_v46, 16  ;;  %v10187_v8 = vld [vmem:[%s15056_s0 + $0xe0] sm:$0xff]  }
 0x158   :  { %v2215_v33 = vpop.permute.xlu1 %2214 }
 0x159   :  { %2255 = vst.msk [vmem:[#allocation2 + $0x78] sm:$0xff] %vm428_vm4, %v2215_v33  ;;  %v2794_v25 = vsel %vm269_vm1, %v2789_v58, %v11965_v9  ;;  %v3002_v33 = vrot.slane %v10176_v43, 1  ;;  %v3400_v39 = vrot.slane %v3398_v12, 1 }
 0x15a   :  { %3182 = vrot.lane.b32.xlu1 %v10161_v45, %s10295_s20  ;;  %v2213_v22 = vpop.permute.xlu0 %2212  ;;  %v10172_v45 = vld [vmem:[%s15056_s0 + $0xd0] sm:$0xff]  }
 0x15b   :  { %2254 = vst.msk [vmem:[#allocation2 + $0x70] sm:$0xff] %vm428_vm4, %v2213_v22  ;;  %3180 = vrot.lane.b32.xlu0 %v10162_v54, %s10295_s20  ;;  %v3004_v54 = vrot.slane %v11973_v56, 1  ;;  %v3406_v22 = vshll.u32 %v11986_v50, 16  ;;  %v3404_v14 = vor.u32 %v3402_v31, %v3400_v39 }
 0x15c   :  { %v2402_v34 = vpop.permute.xlu1 %2401  ;;  %v3698_v42 = vld [vmem:[#allocation2 + $0x68] sm:$0xff] }
 0x15d   :  { %2442 = vst.msk [vmem:[#allocation2 + $0x78] sm:$0xff] %vm617_vm5, %v2402_v34  ;;  %v3005_v2 = vsel %vm545_vm0, %v3002_v33, %v3004_v54  ;;  %v3394_v34 = vshrl.u32 %v11842_v52, 16  ;;  %v12019_v24 = vrot.slane %v3406_v22, 1  ;;  %v12029_v52 = vld [vmem:[%s15056_s0 + $0xe8] sm:$0xff]  }
 0x15e   :  { %3456 = vrot.lane.b32.xlu1 %v3393_v48, %s10296_s27  ;;  %v2400_v40 = vpop.permute.xlu0 %2399  ;;  %v3697_v3 = vld [vmem:[#allocation2 + $0x60] sm:$0xff] }
 0x15f   :  { %2441 = vst.msk [vmem:[#allocation2 + $0x70] sm:$0xff] %vm617_vm5, %v2400_v40  ;;  %9851 = vmatprep.mubr.msk.bf16.mxu1 %vm3756_vm12, %v3697_v3  ;;  %3454 = vrot.lane.b32.xlu0 %v3385_v37, %s10296_s27  ;;  %v3003_v37 = vsel %vm545_vm0, %v3000_v21, %v3002_v33  ;;  %v12024_v40 = vld [vmem:[%s15056_s0 + $0xe0] sm:$0xff]   ;;  %v12034_v21 = vld [vmem:[%s15056_s0 + $0xe8] sm:$0xff]  }
 0x160   :  { %v2556_v16 = vpop.permute.xlu1 %2555  ;;  %9852 = vmatmul.mubr.msk.bf16.gmra.mrb[16].mxu1 %vm3756_vm12, %v3698_v42  ;;  %v10179_v42 = vld [vmem:[%s15056_s0 + $0xe0] sm:$0xff]  }
 0x161   :  { %2596 = vst.msk [vmem:[#allocation2 + $0x78] sm:$0xff] %vm772_vm6, %v2556_v16 }
 0x162   :  { %3643 = vrot.lane.b32.xlu1 %v3616_v44, %s10297_s18  ;;  %v2554_v4 = vpop.permute.xlu0 %2553  ;;  %v2184_v44 = vshll.u32 %v10185_v46, 16 }
 0x163   :  { %2595 = vst.msk [vmem:[#allocation2 + $0x70] sm:$0xff] %vm772_vm6, %v2554_v4  ;;  %3641 = vrot.lane.b32.xlu0 %v3614_v36, %s10297_s18  ;;  %v10180_v4 = vld [vmem:[%s15056_s0 + $0xd8] sm:$0xff]  }
 0x164   :  { %v2830_v28 = vpop.permute.xlu1 %2829 }
 0x165   :  { %2870 = vst.msk [vmem:[#allocation2 + $0x78] sm:$0xff] %vm1047_vm7, %v2830_v28  ;;  %v3409_v28 = vsel %vm269_vm1, %v3404_v14, %v12019_v24 }
 0x166   :  { %2230 = vrot.lane.b32.xlu1 %v2179_v30, %s10292_s15  ;;  %v2828_v61 = vpop.permute.xlu0 %2827  ;;  %v3396_v30 = vor.u32 %v3394_v34, %v11875_v6  ;;  %v2186_v6 = vrot.slane %v2184_v44, 1  ;;  %v2391_v34 = vrot.slane %v10187_v8, 1 }
 0x167   :  { %2869 = vst.msk [vmem:[#allocation2 + $0x70] sm:$0xff] %vm1047_vm7, %v2828_v61  ;;  %2228 = vrot.lane.b32.xlu0 %v2171_v62, %s10292_s15  ;;  %v3617_v62 = vrot.slane %v12024_v40, 1  ;;  %v3619_v61 = vrot.slane %v12029_v52, 1 }
 0x168   :  { %v3017_v17 = vpop.permute.xlu1 %3016 }
 0x169   :  { %3057 = vst.msk [vmem:[#allocation2 + $0x78] sm:$0xff] %vm1235_vm8, %v3017_v17  ;;  %v2192_v17 = vshll.u32 %v12034_v21, 16  ;;  %v3620_v33 = vsel %vm545_vm0, %v3617_v62, %v3619_v61  ;;  %v3618_v22 = vsel %vm545_vm0, %v3615_v41, %v3617_v62  ;;  %v10193_v62 = vld [vmem:[%s15056_s0 + $0xe8] sm:$0xff]  }
 0x16a   :  { %2417 = vrot.lane.b32.xlu1 %v2390_v1, %s10291_s22  ;;  %v3015_v7 = vpop.permute.xlu0 %3014  ;;  %v10226_v1 = vld [vmem:[%s15056_s0 + $0xd8] sm:$0xff]  }
 0x16b   :  { %3056 = vst.msk [vmem:[#allocation2 + $0x70] sm:$0xff] %vm1235_vm8, %v3015_v7  ;;  %2415 = vrot.lane.b32.xlu0 %v2388_v38, %s10291_s22  ;;  %v10225_v38 = vld [vmem:[%s15056_s0 + $0xe0] sm:$0xff]  }
 0x16c   :  { %v3171_v0 = vpop.permute.xlu1 %3170  ;;  %1990 = vst.msk [vmem:[#allocation2 + $0xc0] sm:$0xff] %vm152_vm2, %v10226_v1  ;;  %1991 = vst.msk [vmem:[#allocation2 + $0xc8] sm:$0xff] %vm152_vm2, %v10225_v38  ;;  %v12150_v1 = vld [vmem:[%s15056_s0 + $0xf8] sm:$0xff]  }
 0x16d   :  { %3211 = vst.msk [vmem:[#allocation2 + $0x78] sm:$0xff] %vm1390_vm9, %v3171_v0  ;;  %v3401_v0 = vsel %vm269_vm1, %v3396_v30, %v3400_v39  ;;  %v12078_v39 = vld [vmem:[%s15056_s0 + $0xe8] sm:$0xff]   ;;  %v2795_v30 = vshrl.u32 %v11940_v13, 16  ;;  %v10190_v13 = vld [vmem:[%s15056_s0 + $0xe0] sm:$0xff]  }
 0x16e   :  { %2571 = vrot.lane.b32.xlu1 %v10171_v18, %s10290_s11  ;;  %v3169_v5 = vpop.permute.xlu0 %3168 }
 0x16f   :  { %3210 = vst.msk [vmem:[#allocation2 + $0x70] sm:$0xff] %vm1390_vm9, %v3169_v5  ;;  %2569 = vrot.lane.b32.xlu0 %v10172_v45, %s10290_s11  ;;  %v2180_v45 = vshrl.u32 %v11880_v57, 16  ;;  %v10191_v57 = vld [vmem:[%s15056_s0 + $0xe8] sm:$0xff]  }
 0x170   :  { %v3445_v11 = vpop.permute.xlu1 %3444  ;;  %v2799_v14 = vshll.u32 %v10191_v57, 16 }
 0x171   :  { %3485 = vst.msk [vmem:[#allocation2 + $0x78] sm:$0xff] %vm1665_vm10, %v3445_v11  ;;  %v2190_v11 = vor.u32 %v2188_v63, %v2186_v6  ;;  %v2797_v63 = vor.u32 %v2795_v30, %v11965_v9 }
 0x172   :  { %2845 = vrot.lane.b32.xlu1 %v2794_v25, %s10293_s23  ;;  %v3443_v48 = vpop.permute.xlu0 %3442 }
 0x173   :  { %3484 = vst.msk [vmem:[#allocation2 + $0x70] sm:$0xff] %vm1665_vm10, %v3443_v48  ;;  %2843 = vrot.lane.b32.xlu0 %v2786_v26, %s10293_s23  ;;  %v12073_v26 = vrot.slane %v2192_v17, 1  ;;  %v2182_v48 = vor.u32 %v2180_v45, %v11914_v32 }
 0x174   :  { %v2217_v10 = vpop.permute.xlu1 %2216 }
 0x175   :  { %2256 = vst.msk [vmem:[#allocation2 + $0x80] sm:$0xff] %vm428_vm4, %v2217_v10  ;;  %v9829_v3 = vpop.f32.mrb[0].mxu0  ;;  %v2195_v10 = vsel %vm269_vm1, %v2190_v11, %v12073_v26  ;;  %v2187_v41 = vsel %vm269_vm1, %v2182_v48, %v2186_v6  ;;  %v10227_v6 = vld [vmem:[%s15059_s3] sm:$0xff]   ;;  %v10229_v48 = vld [vmem:[%s15059_s3 + $0x10] sm:$0xff]  }
 0x176   :  { %3032 = vrot.lane.b32.xlu1 %v3005_v2, %s10294_s30  ;;  %v3630_v19 = vpop.permute.xlu0 %3629  ;;  %v3888_v15 = vadd.f32 %v9829_v3, %v12009_v60  ;;  %v3879_v55 = vpop.f32.mrb[1].mxu0  ;;  %v2803_v3 = vshrl.u32 %v10191_v57, 16 }
 0x177   :  { %3671 = vst.msk [vmem:[#allocation2 + $0x70] sm:$0xff] %vm1853_vm11, %v3630_v19  ;;  %v3880_v36 = vadd.f32 %v12009_v60, %v3879_v55  ;;  %3030 = vrot.lane.b32.xlu0 %v3003_v37, %s10294_s30  ;;  %v9830_v20 = vpop.f32.mrb[2].mxu0  ;;  %v2393_v37 = vrot.slane %v12078_v39, 1  ;;  %v2801_v19 = vrot.slane %v2799_v14, 1  ;;  %v12214_v14 = vld [vmem:[%s15056_s0 + $0xf8] sm:$0xff]  }
 0x178   :  { %v2219_v16 = vpop.permute.xlu1 %2218  ;;  %v3891_v29 = vadd.f32 %v9830_v20, %v12009_v60  ;;  %v3882_v35 = vpop.f32.mrb[3].mxu0  ;;  %v4104_v18 = vmax.f32 %v3888_v15, 0.0  ;;  %v2392_v20 = vsel %vm545_vm0, %v2389_v27, %v2391_v34  ;;  %v10212_v39 = vld [vmem:[%s15056_s0 + $0x100] ss:$0 sps:$4 sm:$0x11]  }
 0x179   :  { %2257 = vst.msk [vmem:[#allocation2 + $0x88] sm:$0xff] %vm428_vm4, %v2219_v16  ;;  %v3883_v51 = vadd.f32 %v12009_v60, %v3882_v35  ;;  %v4102_v7 = vmax.f32 %v3880_v36, 0.0  ;;  %v2394_v40 = vsel %vm545_vm0, %v2391_v34, %v2393_v37  ;;  %v10199_v16 = vld [vmem:[%s15056_s0 + $0xf0] sm:$0xff]   ;;  %v2805_v35 = vor.u32 %v2803_v3, %v2801_v19 }
 0x17a   :  { %3186 = vrot.lane.b32.xlu1 %v10179_v42, %s10295_s20  ;;  %v3632_v53 = vpop.permute.xlu0 %3631  ;;  %v4105_v59 = vmax.f32 %v3891_v29, 0.0  ;;  %v12100_v42 = vld [vmem:[%s15056_s0 + $0xf0] sm:$0xff]  }
 0x17b   :  { %3672 = vst.msk [vmem:[#allocation2 + $0x78] sm:$0xff] %vm1853_vm11, %v3632_v53  ;;  %v4103_v58 = vmax.f32 %v3883_v51, 0.0  ;;  %3184 = vrot.lane.b32.xlu0 %v10180_v4, %s10295_s20  ;;  %v2807_v44 = vshll.u32 %v12100_v42, 16  ;;  %v10189_v4 = vld [vmem:[%s15056_s0 + $0xe8] sm:$0xff]   ;;  %v3414_v51 = vshll.u32 %v10199_v16, 16  ;;  %v10298_v53 = vmov 0  }
 0x17c   :  { %v2406_v47 = vpop.permute.xlu1 %2405  ;;  %v4159_v43 = vpack.c.bf16 %v4105_v59, %v4104_v18  ;;  %6312 = vmatprep.subr.bf16.mxu1 %v10298_v53  ;;  %35 = vst.msk [vmem:[#allocation5 + $0x70] sm:$0xff] %vm34_vm13, %v10298_v53  ;;  %38 = vst.msk [vmem:[#allocation5 + $0xe8] sm:$0xff] %vm34_vm13, %v10298_v53  ;;  %7718 = vmatprep.subr.bf16.mxu0 %v10298_v53  ;;  %v3006_v18 = vrot.slane %v10193_v62, 1  ;;  %v3008_v59 = vrot.slane %v12139_v23, 1  ;;  %v10197_v34 = vld [vmem:[%s15056_s0 + $0xf0] sm:$0xff]   ;;  %v10232_v62 = vld [vmem:[%s15056_s0 + $0xe8] sm:$0xff]  }
 0x17d   :  { %2444 = vst.msk [vmem:[#allocation2 + $0x88] sm:$0xff] %vm617_vm5, %v2406_v47  ;;  %v4158_v12 = vpack.c.bf16 %v4103_v58, %v4102_v7  ;;  %6313 = vmatpush1.bf16.msra.mxu1 %v10227_v6  ;;  %v12170_v9 = vrot.slane %v3414_v51, 1  ;;  %v3418_v7 = vshrl.u32 %v10199_v16, 16  ;;  %v3422_v58 = vshll.u32 %v12150_v1, 16 }
 0x17e   :  { %3460 = vrot.lane.b32.xlu1 %v3409_v28, %s10296_s27  ;;  %v2404_v5 = vpop.permute.xlu0 %2403  ;;  %v3699_v25 = vld [vmem:[#allocation2 + $0x70] sm:$0xff]  ;;  %4187 = vst.msk [vmem:[#allocation5 + $0x8] sm:$0xff] %vm34_vm13, %v4159_v43  ;;  %v12131_v28 = vrot.slane %v2807_v44, 1  ;;  %6314 = vmatprep.subr.bf16.mxu1 %v10298_v53  ;;  %v10228_v43 = vld [vmem:[%s15059_s3 + $0x8] sm:$0xff]   ;;  %v3009_v8 = vsel %vm545_vm0, %v3006_v18, %v3008_v59 }
 0x17f   :  { %2443 = vst.msk [vmem:[#allocation2 + $0x80] sm:$0xff] %vm617_vm5, %v2404_v5  ;;  %9855 = vmatprep.mubr.msk.bf16.mxu1 %vm3756_vm12, %v3699_v25  ;;  %3458 = vrot.lane.b32.xlu0 %v3401_v0, %s10296_s27  ;;  %v2802_v0 = vsel %vm269_vm1, %v2797_v63, %v2801_v19  ;;  %v3420_v57 = vor.u32 %v3418_v7, %v12170_v9  ;;  %v10231_v63 = vld [vmem:[%s15056_s0 + $0xf0] sm:$0xff]   ;;  %v10233_v7 = vld [vmem:[%s15059_s3 + $0x20] sm:$0xff]   ;;  %v10220_v23 = vld [vmem:[%s15056_s0 + $0x108] ss:$0 sps:$4 sm:$0x11]  }
 0x180   :  { %v2560_v31 = vpop.permute.xlu1 %2559  ;;  %4186 = vst.msk [vmem:[#allocation5] sm:$0xff] %vm34_vm13, %v4158_v12  ;;  %v2810_v38 = vsel %vm269_vm1, %v2805_v35, %v12131_v28  ;;  %v12184_v12 = vld [vmem:[%s15056_s0 + $0xf0] sm:$0xff]   ;;  %v3623_v35 = vrot.slane %v12214_v14, 1 }
 0x181   :  { %2598 = vst.msk [vmem:[#allocation2 + $0x88] sm:$0xff] %vm772_vm6, %v2560_v31  ;;  %6315 = vmatpush1.bf16.msra.mxu1 %v10228_v43  ;;  %v12192_v31 = vrot.slane %v3422_v58, 1 }
 0x182   :  { %3647 = vrot.lane.b32.xlu1 %v3620_v33, %s10297_s18  ;;  %v2558_v2 = vpop.permute.xlu0 %2557  ;;  %v3700_v46 = vld [vmem:[#allocation2 + $0x78] sm:$0xff]  ;;  %6316 = vmatprep.subr.bf16.mxu1 %v10298_v53  ;;  %1992 = vst.msk [vmem:[#allocation2 + $0xd0] sm:$0xff] %vm152_vm2, %v10232_v62  ;;  %1993 = vst.msk [vmem:[#allocation2 + $0xd8] sm:$0xff] %vm152_vm2, %v10231_v63  ;;  %vm4560_vm2 = vcmask 1048320  }
 0x183   :  { %2597 = vst.msk [vmem:[#allocation2 + $0x80] sm:$0xff] %vm772_vm6, %v2558_v2  ;;  %9856 = vmatmul.mubr.msk.bf16.gmra.mrb[20].mxu1 %vm3756_vm12, %v3700_v46  ;;  %3645 = vrot.lane.b32.xlu0 %v3618_v22, %s10297_s18  ;;  %v3410_v22 = vshrl.u32 %v11986_v50, 16  ;;  %v12209_v50 = vld [vmem:[%s15056_s0 + $0xf0] sm:$0xff]   ;;  %v3425_v16 = vsel %vm269_vm1, %v3420_v57, %v12192_v31 }
 0x184   :  { %v2834_v49 = vpop.permute.xlu1 %2833  ;;  %37 = vst.msk [vmem:[#allocation6 + $0x60] sm:$0xff] %vm36_vm3, %v10298_v53  ;;  %39 = vst.msk [vmem:[#allocation6 + $0xc8] sm:$0xff] %vm36_vm3, %v10298_v53 }
 0x185   :  { %2872 = vst.msk [vmem:[#allocation2 + $0x88] sm:$0xff] %vm1047_vm7, %v2834_v49  ;;  %v12112_v15 = vld [vmem:[#allocation5 + $0x8] sm:$0xff]  ;;  %6317 = vmatpush1.bf16.msra.mxu1 %v10229_v48 }
 0x186   :  { %2234 = vrot.lane.b32.xlu1 %v2195_v10, %s10292_s15  ;;  %v2832_v32 = vpop.permute.xlu0 %2831  ;;  %4227 = vst.msk [vmem:[#allocation3 + $0x18] sm:$0xff] %vm34_vm13, %v12112_v15  ;;  %v3007_v10 = vsel %vm545_vm0, %v3004_v54, %v3006_v18  ;;  %v10204_v54 = vld [vmem:[%s15056_s0 + $0xf8] ss:$0 sps:$4 sm:$0x11]   ;;  %6318 = vmatprep.subr.bf16.mxu1 %v10298_v53  ;;  %v2196_v18 = vshrl.u32 %v12034_v21, 16  ;;  %v4589_v57 = vshll.u32 %v12112_v15, 16 }
 0x187   :  { %2871 = vst.msk [vmem:[#allocation2 + $0x80] sm:$0xff] %vm1047_vm7, %v2832_v32  ;;  %2232 = vrot.lane.b32.xlu0 %v2187_v41, %s10292_s15  ;;  %v4214_v36 = vld [vmem:[#allocation5] sm:$0xff]  ;;  %v2200_v32 = vshll.u32 %v12184_v12, 16  ;;  %v2208_v6 = vshll.u32 %v10204_v54, 16 }
 0x188   :  { %v3021_v55 = vpop.permute.xlu1 %3020  ;;  %4226 = vst.msk [vmem:[#allocation3] sm:$0xff] %vm34_vm13, %v4214_v36  ;;  %v3412_v36 = vor.u32 %v3410_v22, %v12019_v24  ;;  %v2204_v24 = vshrl.u32 %v12184_v12, 16  ;;  %v10206_v21 = vld [vmem:[%s15056_s0 + $0xf8] ss:$0 sps:$4 sm:$0x11]   ;;  %v4591_v54 = vrot.slane %v4589_v57, 1 }
 0x189   :  { %3059 = vst.msk [vmem:[#allocation2 + $0x88] sm:$0xff] %vm1235_vm8, %v3021_v55  ;;  %v10198_v55 = vld [vmem:[%s15056_s0 + $0xe8] sm:$0xff]   ;;  %v2202_v51 = vrot.slane %v2200_v32, 1 }
 0x18a   :  { %2421 = vrot.lane.b32.xlu1 %v2394_v40, %s10291_s22  ;;  %v3019_v29 = vpop.permute.xlu0 %3018  ;;  %v3417_v58 = vsel %vm269_vm1, %v3412_v36, %v12170_v9 }
 0x18b   :  { %3058 = vst.msk [vmem:[#allocation2 + $0x80] sm:$0xff] %vm1235_vm8, %v3019_v29  ;;  %2419 = vrot.lane.b32.xlu0 %v2392_v20, %s10291_s22  ;;  %v10230_v20 = vld [vmem:[%s15059_s3 + $0x18] sm:$0xff]   ;;  %v3621_v29 = vrot.slane %v12209_v50, 1 }
 0x18c   :  { %v3175_v27 = vpop.permute.xlu1 %3174  ;;  %6319 = vmatpush1.bf16.msra.mxu1 %v10230_v20 }
 0x18d   :  { %3213 = vst.msk [vmem:[#allocation2 + $0x88] sm:$0xff] %vm1390_vm9, %v3175_v27  ;;  %6320 = vmatprep.subr.bf16.mxu1 %v10298_v53  ;;  %v3624_v12 = vsel %vm545_vm0, %v3621_v29, %v3623_v35  ;;  %v3622_v22 = vsel %vm545_vm0, %v3619_v61, %v3621_v29 }
 0x18e   :  { %2575 = vrot.lane.b32.xlu1 %v10189_v4, %s10290_s11  ;;  %v3173_v17 = vpop.permute.xlu0 %3172 }
 0x18f   :  { %3212 = vst.msk [vmem:[#allocation2 + $0x80] sm:$0xff] %vm1390_vm9, %v3173_v17  ;;  %2573 = vrot.lane.b32.xlu0 %v10190_v13, %s10290_s11 }
 0x190   :  { %v3449_v47 = vpop.permute.xlu1 %3448  ;;  %6321 = vmatpush1.bf16.msra.mxu1 %v10233_v7 }
 0x191   :  { %3487 = vst.msk [vmem:[#allocation2 + $0x88] sm:$0xff] %vm1665_vm10, %v3449_v47  ;;  %v9833_v5 = vpop.f32.mrb[4].mxu0  ;;  %v12255_v47 = vld [vmem:[%s15056_s0 + $0xf0] sm:$0xff]   ;;  %6322 = vmatprep.subr.bf16.mxu1 %v10298_v53 }
 0x192   :  { %2849 = vrot.lane.b32.xlu1 %v2810_v38, %s10293_s23  ;;  %v3447_v45 = vpop.permute.xlu0 %3446  ;;  %v3904_v33 = vadd.f32 %v9833_v5, %v12009_v60  ;;  %v3895_v11 = vpop.f32.mrb[5].mxu0  ;;  %v2206_v5 = vor.u32 %v2204_v24, %v2202_v51  ;;  %v2395_v48 = vrot.slane %v12255_v47, 1  ;;  %v10211_v47 = vld [vmem:[%s15056_s0 + $0xf8] sm:$0xff]  }
 0x193   :  { %3486 = vst.msk [vmem:[#allocation2 + $0x80] sm:$0xff] %vm1665_vm10, %v3447_v45  ;;  %2847 = vrot.lane.b32.xlu0 %v2802_v0, %s10293_s23  ;;  %v3896_v2 = vadd.f32 %v12009_v60, %v3895_v11  ;;  %v9834_v46 = vpop.f32.mrb[6].mxu0  ;;  %v12271_v0 = vld [vmem:[%s15056_s0 + $0xf8] sm:$0xff]   ;;  %v10234_v11 = vld [vmem:[%s15059_s3 + $0x28] sm:$0xff]  }
 0x194   :  { %v3636_v25 = vpop.permute.xlu1 %3635  ;;  %v3907_v49 = vadd.f32 %v9834_v46, %v12009_v60  ;;  %v3898_v56 = vpop.f32.mrb[7].mxu0  ;;  %v4108_v3 = vmax.f32 %v3904_v33, 0.0  ;;  %v2198_v33 = vor.u32 %v2196_v18, %v12073_v26  ;;  %v10210_v46 = vld [vmem:[%s15056_s0 + $0x100] ss:$0 sps:$4 sm:$0x11]   ;;  %v2815_v26 = vshll.u32 %v12271_v0, 16  ;;  %6323 = vmatpush1.bf16.msra.mxu1 %v10234_v11 }
 0x195   :  { %3674 = vst.msk [vmem:[#allocation2 + $0x88] sm:$0xff] %vm1853_vm11, %v3636_v25  ;;  %v3899_v40 = vadd.f32 %v12009_v60, %v3898_v56  ;;  %v4106_v4 = vmax.f32 %v3896_v2, 0.0  ;;  %v2210_v25 = vrot.slane %v2208_v6, 1  ;;  %v2397_v2 = vrot.slane %v10206_v21, 1  ;;  %6324 = vmatprep.subr.bf16.mxu1 %v10298_v53  ;;  %v10207_v6 = vld [vmem:[%s15056_s0 + $0xf8] sm:$0xff]   ;;  %v10237_v21 = vld [vmem:[%s15059_s3 + $0x40] sm:$0xff]  }
 0x196   :  { %3036 = vrot.lane.b32.xlu1 %v3009_v8, %s10294_s30  ;;  %v3634_v41 = vpop.permute.xlu0 %3633  ;;  %v4109_v44 = vmax.f32 %v3907_v49, 0.0  ;;  %v2203_v56 = vsel %vm269_vm1, %v2198_v33, %v2202_v51  ;;  %v2819_v36 = vshrl.u32 %v12271_v0, 16  ;;  %v2396_v24 = vsel %vm545_vm0, %v2393_v37, %v2395_v48  ;;  %v10217_v37 = vld [vmem:[%s15056_s0 + $0x100] sm:$0xff]   ;;  %v10208_v0 = vld [vmem:[%s15056_s0 + $0xf0] sm:$0xff]  }
 0x197   :  { %3673 = vst.msk [vmem:[#allocation2 + $0x80] sm:$0xff] %vm1853_vm11, %v3634_v41  ;;  %3034 = vrot.lane.b32.xlu0 %v3007_v10, %s10294_s30  ;;  %v4107_v30 = vmax.f32 %v3899_v40, 0.0  ;;  %v2398_v40 = vsel %vm545_vm0, %v2395_v48, %v2397_v2  ;;  %v10218_v33 = vld [vmem:[%s15056_s0 + $0x108] ss:$0 sps:$4 sm:$0x11]   ;;  %v3430_v11 = vshll.u32 %v10217_v37, 16 }
 0x198   :  { %v2223_v19 = vpop.permute.xlu1 %2222  ;;  %v4161_v27 = vpack.c.bf16 %v4109_v44, %v4108_v3  ;;  %v2823_v3 = vshll.u32 %v10210_v46, 16  ;;  %v10235_v44 = vld [vmem:[%s15059_s3 + $0x30] sm:$0xff]  }
 0x199   :  { %2259 = vst.msk [vmem:[#allocation2 + $0x98] sm:$0xff] %vm428_vm4, %v2223_v19  ;;  %v4160_v17 = vpack.c.bf16 %v4107_v30, %v4106_v4  ;;  %v12313_v19 = vrot.slane %v2815_v26, 1  ;;  %v4587_v4 = vshrl.u32 %v12112_v15, 16  ;;  %6325 = vmatpush1.bf16.msra.mxu1 %v10235_v44  ;;  %v3432_v26 = vrot.slane %v3430_v11, 1  ;;  %v10215_v44 = vld [vmem:[%s15056_s0 + $0x100] sm:$0xff]  }
 0x19a   :  { %3190 = vrot.lane.b32.xlu1 %v10197_v34, %s10295_s20  ;;  %v2221_v13 = vpop.permute.xlu0 %2220  ;;  %4189 = vst.msk [vmem:[#allocation5 + $0x18] sm:$0xff] %vm34_vm13, %v4161_v27  ;;  %v2211_v34 = vsel %vm269_vm1, %v2206_v5, %v2210_v25  ;;  %v10236_v27 = vld [vmem:[%s15059_s3 + $0x38] sm:$0xff]   ;;  %6326 = vmatprep.subr.bf16.mxu1 %v10298_v53  ;;  %v2825_v63 = vrot.slane %v2823_v3, 1  ;;  %v3010_v25 = vrot.slane %v10211_v47, 1 }
 0x19b   :  { %2258 = vst.msk [vmem:[#allocation2 + $0x90] sm:$0xff] %vm428_vm4, %v2221_v13  ;;  %3188 = vrot.lane.b32.xlu0 %v10198_v55, %s10295_s20  ;;  %v4592_v13 = vor.u32 %v4591_v54, %v4587_v4  ;;  %v2821_v18 = vor.u32 %v2819_v36, %v12313_v19 }
 0x19c   :  { %v2410_v38 = vpop.permute.xlu1 %2409  ;;  %4188 = vst.msk [vmem:[#allocation5 + $0x10] sm:$0xff] %vm34_vm13, %v4160_v17  ;;  %v3702_v43 = vld [vmem:[#allocation2 + $0x88] sm:$0xff]  ;;  %v2811_v17 = vshrl.u32 %v12100_v42, 16  ;;  %v3011_v3 = vsel %vm545_vm0, %v3008_v59, %v3010_v25 }
 0x19d   :  { %2446 = vst.msk [vmem:[#allocation2 + $0x98] sm:$0xff] %vm617_vm5, %v2410_v38  ;;  %6327 = vmatpush1.bf16.msra.mxu1 %v10236_v27  ;;  %v2826_v5 = vsel %vm269_vm1, %v2821_v18, %v2825_v63 }
 0x19e   :  { %3464 = vrot.lane.b32.xlu1 %v3425_v16, %s10296_s27  ;;  %v2408_v45 = vpop.permute.xlu0 %2407  ;;  %v3701_v8 = vld [vmem:[#allocation2 + $0x80] sm:$0xff]  ;;  %6328 = vmatprep.subr.bf16.mxu1 %v10298_v53 }
 0x19f   :  { %2445 = vst.msk [vmem:[#allocation2 + $0x90] sm:$0xff] %vm617_vm5, %v2408_v45  ;;  %9859 = vmatprep.mubr.msk.bf16.mxu1 %vm3756_vm12, %v3701_v8  ;;  %3462 = vrot.lane.b32.xlu0 %v3417_v58, %s10296_s27  ;;  %v2813_v8 = vor.u32 %v2811_v17, %v12131_v28  ;;  %v10238_v28 = vld [vmem:[%s15059_s3 + $0x48] sm:$0xff]  }
 0x1a0   :  { %v2564_v9 = vpop.permute.xlu1 %2563  ;;  %9860 = vmatmul.mubr.msk.bf16.gmra.mrb[24].mxu1 %vm3756_vm12, %v3702_v43 }
 0x1a1   :  { %2600 = vst.msk [vmem:[#allocation2 + $0x98] sm:$0xff] %vm772_vm6, %v2564_v9  ;;  %v12297_v50 = vld [vmem:[#allocation5 + $0x18] sm:$0xff]  ;;  %v3012_v9 = vrot.slane %v10212_v39, 1  ;;  %6329 = vmatpush1.bf16.msra.mxu1 %v10237_v21  ;;  %v2818_v48 = vsel %vm269_vm1, %v2813_v8, %v12313_v19 }
 0x1a2   :  { %3651 = vrot.lane.b32.xlu1 %v3624_v12, %s10297_s18  ;;  %v2562_v10 = vpop.permute.xlu0 %2561  ;;  %v12301_v61 = vld [vmem:[#allocation5 + $0x18] sm:$0xff]  ;;  %v12304_v49 = vrot.slane %v12297_v50, 1  ;;  %6330 = vmatprep.subr.bf16.mxu1 %v10298_v53 }
 0x1a3   :  { %2599 = vst.msk [vmem:[#allocation2 + $0x90] sm:$0xff] %vm772_vm6, %v2562_v10  ;;  %v5042_v41 = vld [vmem:[#allocation5 + $0x10] sm:$0xfe]  ;;  %3649 = vrot.lane.b32.xlu0 %v3622_v22, %s10297_s18  ;;  %v4602_v30 = vshll.u32 %v12301_v61, 16  ;;  %v3013_v46 = vsel %vm545_vm0, %v3010_v25, %v3012_v9  ;;  %v3434_v10 = vshrl.u32 %v10217_v37, 16  ;;  %v3627_v37 = vrot.slane %v10220_v23, 1 }
 0x1a4   :  { %v2838_v52 = vpop.permute.xlu1 %2837  ;;  %4229 = vst.msk [vmem:[#allocation3 + $0x48] sm:$0xff] %vm34_vm13, %v12301_v61  ;;  %v5068_v32 = vrot.slane %v5042_v41, 1  ;;  %v4574_v55 = vld [vmem:[#allocation5 + $0x10] sm:$0xff] }
 0x1a5   :  { %2874 = vst.msk [vmem:[#allocation2 + $0x98] sm:$0xff] %vm1047_vm7, %v2838_v52  ;;  %v4594_v20 = vshll.u32 %v4574_v55, 16  ;;  %v4598_v51 = vshrl.u32 %v4574_v55, 16  ;;  %v12351_v43 = vrot.slane %v4602_v30, 1  ;;  %6331 = vmatpush1.bf16.msra.mxu1 %v10238_v28  ;;  %v3436_v30 = vor.u32 %v3434_v10, %v3432_v26  ;;  %v12440_v11 = vld [vmem:[#allocation5 + $0x10] sm:$0xff] }
 0x1a6   :  { %2238 = vrot.lane.b32.xlu1 %v2211_v34, %s10292_s15  ;;  %v2836_v16 = vpop.permute.xlu0 %2835  ;;  %4228 = vst.msk [vmem:[#allocation3 + $0x30] sm:$0xff] %vm34_vm13, %v4574_v55  ;;  %v5070_v62 = vsel %vm545_vm0, %v5068_v32, %v12304_v49  ;;  %v3438_v34 = vshll.u32 %v10218_v33, 16  ;;  %6332 = vmatprep.subr.bf16.mxu1 %v10298_v53  ;;  %v10239_v32 = vld [vmem:[%s15059_s3 + $0x50] sm:$0xff]   ;;  %v3426_v55 = vshrl.u32 %v12150_v1, 16 }
 0x1a7   :  { %2873 = vst.msk [vmem:[#allocation2 + $0x90] sm:$0xff] %vm1047_vm7, %v2836_v16  ;;  %2236 = vrot.lane.b32.xlu0 %v2203_v56, %s10292_s15  ;;  %v4596_v15 = vrot.slane %v4594_v20, 1  ;;  %v4238_v16 = vld [vmem:[#allocation5] sm:$0xff] }
 0x1a8   :  { %v3025_v29 = vpop.permute.xlu1 %3024  ;;  %5105 = vst.msk [vmem:[#allocation3 + $0x10] sm:$0xff] %vm34_vm13, %v5070_v62  ;;  %v10219_v62 = vld [vmem:[%s15056_s0 + $0x100] sm:$0xff]   ;;  %v3428_v17 = vor.u32 %v3426_v55, %v12192_v31  ;;  %v4252_v25 = vshrl.u32 %v4238_v16, 16  ;;  %v10243_v55 = vld [vmem:[%s15059_s3 + $0x70] sm:$0xff]  }
 0x1a9   :  { %3061 = vst.msk [vmem:[#allocation2 + $0x98] sm:$0xff] %vm1235_vm8, %v3025_v29  ;;  %v4597_v7 = vsel %vm269_vm1, %v4592_v13, %v4596_v15  ;;  %v4600_v58 = vor.u32 %v4598_v51, %v4596_v15  ;;  %v3440_v29 = vrot.slane %v3438_v34, 1  ;;  %6333 = vmatpush1.bf16.msra.mxu1 %v10239_v32  ;;  %v10216_v13 = vld [vmem:[%s15056_s0 + $0xf8] sm:$0xff]   ;;  %v4254_v51 = vshll.u32 %v4238_v16, 16 }
 0x1aa   :  { %2425 = vrot.lane.b32.xlu1 %v2398_v40, %s10291_s22  ;;  %v3023_v38 = vpop.permute.xlu0 %3022  ;;  %4698 = vst.msk [vmem:[#allocation3 + $0x8] sm:$0xff] %vm34_vm13, %v4597_v7  ;;  %6334 = vmatprep.subr.bf16.mxu1 %v10298_v53  ;;  %v3625_v39 = vrot.slane %v10219_v62, 1  ;;  %v3433_v21 = vsel %vm269_vm1, %v3428_v17, %v3432_v26  ;;  %v12454_v26 = vrot.slane %v12440_v11, 1  ;;  %v4897_v34 = vshll.u32 %v12440_v11, 16 }
 0x1ab   :  { %3060 = vst.msk [vmem:[#allocation2 + $0x90] sm:$0xff] %vm1235_vm8, %v3023_v38  ;;  %2423 = vrot.lane.b32.xlu0 %v2396_v24, %s10291_s22  ;;  %v4605_v45 = vsel %vm269_vm1, %v4600_v58, %v12351_v43  ;;  %v10240_v24 = vld [vmem:[%s15059_s3 + $0x58] sm:$0xff]   ;;  %v3441_v47 = vsel %vm269_vm1, %v3436_v30, %v3440_v29  ;;  %v4256_v31 = vrot.slane %v4254_v51, 1  ;;  %v4606_v16 = vshrl.u32 %v12301_v61, 16 }
 0x1ac   :  { %v3179_v42 = vpop.permute.xlu1 %3178  ;;  %4699 = vst.msk [vmem:[#allocation3 + $0x20] sm:$0xff] %vm34_vm13, %v4605_v45  ;;  %v10241_v45 = vld [vmem:[%s15059_s3 + $0x60] sm:$0xff]   ;;  %v3626_v28 = vsel %vm545_vm0, %v3623_v35, %v3625_v39  ;;  %v4899_v30 = vrot.slane %v4897_v34, 1  ;;  %v4902_v51 = vshll.u32 %v12297_v50, 16 }
 0x1ad   :  { %3215 = vst.msk [vmem:[#allocation2 + $0x98] sm:$0xff] %vm1390_vm9, %v3179_v42  ;;  %v12424_v42 = vld [vmem:[#allocation5 + $0x8] sm:$0xff]  ;;  %6335 = vmatpush1.bf16.msra.mxu1 %v10240_v24 }
 0x1ae   :  { %2579 = vrot.lane.b32.xlu1 %v10207_v6, %s10290_s11  ;;  %v3177_v12 = vpop.permute.xlu0 %3176  ;;  %6336 = vmatprep.subr.bf16.mxu1 %v10298_v53  ;;  %v4259_v9 = vshll.u32 %v12424_v42, 16 }
 0x1af   :  { %3214 = vst.msk [vmem:[#allocation2 + $0x90] sm:$0xff] %vm1390_vm9, %v3177_v12  ;;  %v6019_v57 = vld [vmem:[#allocation3 + $0x10] sm:$0xff]  ;;  %2577 = vrot.lane.b32.xlu0 %v10208_v0, %s10290_s11 }
 0x1b0   :  { %v3453_v22 = vpop.permute.xlu1 %3452  ;;  %9887 = vmatprep.mubr.msk.bf16.mxu0 %vm34_vm13, %v6019_v57  ;;  %v4710_v57 = vld [vmem:[#allocation5 + $0x8] sm:$0xfe]  ;;  %v12456_v10 = vrot.slane %v4259_v9, 1 }
 0x1b1   :  { %3489 = vst.msk [vmem:[#allocation2 + $0x98] sm:$0xff] %vm1665_vm10, %v3453_v22  ;;  %v9837_v52 = vpop.f32.mrb[0].mxu1  ;;  %6337 = vmatpush1.bf16.msra.mxu1 %v10241_v45  ;;  %v4257_v22 = vor.u32 %v4256_v31, %v4252_v25  ;;  %v4736_v35 = vrot.slane %v4710_v57, 1  ;;  %v4740_v25 = vsel %vm545_vm0, %v12454_v26, %v12304_v49 }
 0x1b2   :  { %2853 = vrot.lane.b32.xlu1 %v2826_v5, %s10293_s23  ;;  %v3451_v2 = vpop.permute.xlu0 %3450  ;;  %v3920_v56 = vadd.f32 %v9837_v52, %v12009_v60  ;;  %v3911_v54 = vpop.f32.mrb[1].mxu1  ;;  %v3628_v5 = vsel %vm545_vm0, %v3625_v39, %v3627_v37  ;;  %6338 = vmatprep.subr.bf16.mxu1 %v10298_v53  ;;  %v4904_v37 = vrot.slane %v4902_v51, 1 }
 0x1b3   :  { %3488 = vst.msk [vmem:[#allocation2 + $0x90] sm:$0xff] %vm1665_vm10, %v3451_v2  ;;  %2851 = vrot.lane.b32.xlu0 %v2818_v48, %s10293_s23  ;;  %v3912_v40 = vadd.f32 %v12009_v60, %v3911_v54  ;;  %v9838_v19 = vpop.f32.mrb[2].mxu1  ;;  %v4400_v48 = vld [vmem:[#allocation5] sm:$0xfe]  ;;  %v10242_v2 = vld [vmem:[%s15059_s3 + $0x68] sm:$0xff]   ;;  %v4262_v32 = vsel %vm269_vm1, %v4257_v22, %v12456_v10 }
 0x1b4   :  { %v3640_v41 = vpop.permute.xlu1 %3639  ;;  %v3923_v36 = vadd.f32 %v9838_v19, %v12009_v60  ;;  %v3914_v4 = vpop.f32.mrb[3].mxu1  ;;  %v4112_v27 = vmax.f32 %v3920_v56, 0.0  ;;  %v4427_v19 = vrot.slane %v12424_v42, 1 }
 0x1b5   :  { %3676 = vst.msk [vmem:[#allocation2 + $0x98] sm:$0xff] %vm1853_vm11, %v3640_v41  ;;  %v3915_v59 = vadd.f32 %v12009_v60, %v3914_v4  ;;  %v4110_v6 = vmax.f32 %v3912_v40, 0.0  ;;  %6339 = vmatpush1.bf16.msra.mxu1 %v10242_v2  ;;  %v4426_v40 = vrot.slane %v4400_v48, 1  ;;  %v4738_v4 = vsel %vm545_vm0, %v4736_v35, %v12454_v26 }
 0x1b6   :  { %3040 = vrot.lane.b32.xlu1 %v3013_v46, %s10294_s30  ;;  %v3638_v20 = vpop.permute.xlu0 %3637  ;;  %v4113_v15 = vmax.f32 %v3923_v36, 0.0  ;;  %6340 = vmatprep.subr.bf16.mxu1 %v10298_v53  ;;  %v4906_v35 = vshrl.u32 %v12297_v50, 16 }
 0x1b7   :  { %3675 = vst.msk [vmem:[#allocation2 + $0x90] sm:$0xff] %vm1853_vm11, %v3638_v20  ;;  %3038 = vrot.lane.b32.xlu0 %v3011_v3, %s10294_s30  ;;  %v4111_v63 = vmax.f32 %v3915_v59, 0.0  ;;  %v10244_v59 = vld [vmem:[%s15059_s3 + $0x78] sm:$0xff]   ;;  %s10299_s3 = smov 96  }
 0x1b8   :  { %v2227_v1 = vpop.permute.xlu1 %2226  ;;  %v4163_v38 = vpack.c.bf16 %v4113_v15, %v4112_v27  ;;  %v4428_v15 = vsel %vm545_vm0, %v4426_v40, %v4427_v19 }
 0x1b9   :  { %2261 = vst.msk [vmem:[#allocation2 + $0xa8] sm:$0xff] %vm428_vm4, %v2227_v1  ;;  %v4162_v7 = vpack.c.bf16 %v4111_v63, %v4110_v6  ;;  %6341 = vmatpush1.bf16.msra.mxu1 %v10243_v55  ;;  %v4608_v1 = vor.u32 %v4606_v16, %v12351_v43  ;;  %v4895_v43 = vshrl.u32 %v12440_v11, 16 }
 0x1ba   :  { %3194 = vrot.lane.b32.xlu1 %v10215_v44, %s10295_s20  ;;  %v2225_v18 = vpop.permute.xlu0 %2224  ;;  %4191 = vst.msk [vmem:[#allocation5 + $0x28] sm:$0xff] %vm34_vm13, %v4163_v38  ;;  %6342 = vmatprep.subr.bf16.mxu1 %v10298_v53 }
 0x1bb   :  { %2260 = vst.msk [vmem:[#allocation2 + $0xa0] sm:$0xff] %vm428_vm4, %v2225_v18  ;;  %3192 = vrot.lane.b32.xlu0 %v10216_v13, %s10295_s20  ;;  %v4900_v18 = vor.u32 %v4899_v30, %v4895_v43 }
 0x1bc   :  { %v2414_v58 = vpop.permute.xlu1 %2413  ;;  %4190 = vst.msk [vmem:[#allocation5 + $0x20] sm:$0xff] %vm34_vm13, %v4162_v7  ;;  %v3704_v0 = vld [vmem:[#allocation2 + $0x98] sm:$0xff] }
 0x1bd   :  { %2448 = vst.msk [vmem:[#allocation2 + $0xa8] sm:$0xff] %vm617_vm5, %v2414_v58  ;;  %6343 = vmatpush1.bf16.msra.mxu1 %v10244_v59 }
 0x1be   :  { %3468 = vrot.lane.b32.xlu1 %v3441_v47, %s10296_s27  ;;  %v2412_v8 = vpop.permute.xlu0 %2411  ;;  %v3703_v12 = vld [vmem:[#allocation2 + $0x90] sm:$0xff]  ;;  %v4263_v47 = vshrl.u32 %v12424_v42, 16 }
 0x1bf   :  { %2447 = vst.msk [vmem:[#allocation2 + $0xa0] sm:$0xff] %vm617_vm5, %v2412_v8  ;;  %9863 = vmatprep.mubr.msk.bf16.mxu1 %vm3756_vm12, %v3703_v12  ;;  %3466 = vrot.lane.b32.xlu0 %v3433_v21, %s10296_s27  ;;  %v4905_v21 = vsel %vm269_vm1, %v4900_v18, %v4904_v37 }
 0x1c0   :  { %v2568_v33 = vpop.permute.xlu1 %2567  ;;  %9864 = vmatmul.mubr.msk.bf16.gmra.mrb[28].mxu1 %vm3756_vm12, %v3704_v0  ;;  %v4265_v58 = vor.u32 %v4263_v47, %v12456_v10 }
 0x1c1   :  { %2602 = vst.msk [vmem:[#allocation2 + $0xa8] sm:$0xff] %vm772_vm6, %v2568_v33  ;;  %v12459_v52 = vld [vmem:[#allocation5 + $0x28] sm:$0xff] }
 0x1c2   :  { %3655 = vrot.lane.b32.xlu1 %v3628_v5, %s10297_s18  ;;  %v2566_v46 = vpop.permute.xlu0 %2565  ;;  %v12462_v41 = vld [vmem:[#allocation5 + $0x28] sm:$0xff]  ;;  %v5073_v56 = vrot.slane %v12459_v52, 1  ;;  %v4270_v8 = vsel %vm269_vm1, %v4265_v58, %v4899_v30 }
 0x1c3   :  { %2601 = vst.msk [vmem:[#allocation2 + $0xa0] sm:$0xff] %vm772_vm6, %v2566_v46  ;;  %v12465_v54 = vld [vmem:[#allocation5 + $0x20] sm:$0xff]  ;;  %3653 = vrot.lane.b32.xlu0 %v3626_v28, %s10297_s18  ;;  %v4618_v29 = vshll.u32 %v12462_v41, 16  ;;  %v4430_v28 = vsel %vm545_vm0, %v4427_v19, %v12454_v26 }
 0x1c4   :  { %v2842_v14 = vpop.permute.xlu1 %2841  ;;  %v4576_v3 = vld [vmem:[#allocation5 + $0x20] sm:$0xff]  ;;  %4231 = vst.msk [vmem:[#allocation3 + $0x78] sm:$0xff] %vm34_vm13, %v12462_v41  ;;  %v5071_v44 = vrot.slane %v12465_v54, 1  ;;  %v4910_v33 = vshll.u32 %v12465_v54, 16 }
 0x1c5   :  { %2876 = vst.msk [vmem:[#allocation2 + $0xa8] sm:$0xff] %vm1047_vm7, %v2842_v14  ;;  %v4610_v36 = vshll.u32 %v4576_v3, 16  ;;  %v4614_v13 = vshrl.u32 %v4576_v3, 16  ;;  %v12514_v17 = vrot.slane %v4618_v29, 1  ;;  %v4914_v29 = vshrl.u32 %v12465_v54, 16 }
 0x1c6   :  { %4351 = vrot.lane.b32.xlu1 %v4262_v32, %s10293_s23  ;;  %4230 = vst.msk [vmem:[#allocation3 + $0x60] sm:$0xff] %vm34_vm13, %v4576_v3  ;;  %v2840_v20 = vpop.permute.xlu0 %2839  ;;  %v12488_v23 = vsel %vm545_vm0, %v12304_v49, %v5071_v44  ;;  %v12493_v61 = vsel %vm545_vm0, %v5071_v44, %v5073_v56  ;;  %v4912_v32 = vrot.slane %v4910_v33, 1  ;;  %v4908_v3 = vor.u32 %v4906_v35, %v4904_v37 }
 0x1c7   :  { %2875 = vst.msk [vmem:[#allocation2 + $0xa0] sm:$0xff] %vm1047_vm7, %v2840_v20  ;;  %v4612_v27 = vrot.slane %v4610_v36, 1  ;;  %4761 = vrot.lane.b32.xlu0 %v4738_v4, %s10293_s23 }
 0x1c8   :  { %v3029_v62 = vpop.permute.xlu1 %3028  ;;  %5106 = vst.msk [vmem:[#allocation3 + $0x28] sm:$0xff] %vm34_vm13, %v12488_v23  ;;  %5107 = vst.msk [vmem:[#allocation3 + $0x40] sm:$0xff] %vm34_vm13, %v12493_v61  ;;  %v4913_v16 = vsel %vm269_vm1, %v4908_v3, %v4912_v32 }
 0x1c9   :  { %3063 = vst.msk [vmem:[#allocation2 + $0xa8] sm:$0xff] %vm1235_vm8, %v3029_v62  ;;  %v4613_v24 = vsel %vm269_vm1, %v4608_v1, %v4612_v27  ;;  %v4616_v63 = vor.u32 %v4614_v13, %v4612_v27  ;;  %v4918_v62 = vshll.u32 %v12459_v52, 16  ;;  %v4916_v1 = vor.u32 %v4914_v29, %v4912_v32 }
 0x1ca   :  { %4451 = vrot.lane.b32.xlu1 %v4428_v15, %s10297_s18  ;;  %v3027_v6 = vpop.permute.xlu0 %3026  ;;  %4700 = vst.msk [vmem:[#allocation3 + $0x38] sm:$0xff] %vm34_vm13, %v4613_v24 }
 0x1cb   :  { %3062 = vst.msk [vmem:[#allocation2 + $0xa0] sm:$0xff] %vm1235_vm8, %v3027_v6  ;;  %4833 = vrot.lane.b32.xlu0 %v12440_v11, %s10297_s18  ;;  %v4621_v39 = vsel %vm269_vm1, %v4616_v63, %v12514_v17  ;;  %v4920_v24 = vrot.slane %v4918_v62, 1  ;;  %v4622_v63 = vshrl.u32 %v12462_v41, 16 }
 0x1cc   :  { %v3183_v38 = vpop.permute.xlu1 %3182  ;;  %4701 = vst.msk [vmem:[#allocation3 + $0x50] sm:$0xff] %vm34_vm13, %v4621_v39 }
 0x1cd   :  { %3217 = vst.msk [vmem:[#allocation2 + $0xa8] sm:$0xff] %vm1390_vm9, %v3183_v38  ;;  %v4921_v37 = vsel %vm269_vm1, %v4916_v1, %v4920_v24 }
 0x1ce   :  { %4524 = vrot.lane.b32.xlu1 %v12424_v42, %s10299_s3  ;;  %v3181_v7 = vpop.permute.xlu0 %3180 }
 0x1cf   :  { %3216 = vst.msk [vmem:[#allocation2 + $0xa0] sm:$0xff] %vm1390_vm9, %v3181_v7  ;;  %v6022_v31 = vld [vmem:[#allocation3 + $0x28] sm:$0xff]  ;;  %v6025_v0 = vld [vmem:[#allocation3 + $0x40] sm:$0xff]  ;;  %4994 = vrot.lane.b32.xlu0 %v4905_v21, %s10299_s3  ;;  %v4624_v7 = vor.u32 %v4622_v63, %v12514_v17 }
 0x1d0   :  { %v3457_v45 = vpop.permute.xlu1 %3456  ;;  %9888 = vmatmul.mubr.msk.bf16.vlgmr.msra.gmra.mrb[8].mxu0 %vm34_vm13, %v6022_v31 }
 0x1d1   :  { %3491 = vst.msk [vmem:[#allocation2 + $0xa8] sm:$0xff] %vm1665_vm10, %v3457_v45  ;;  %9891 = vmatprep.mubr.msk.bf16.mxu0 %vm34_vm13, %v6025_v0  ;;  %v9841_v5 = vpop.f32.mrb[4].mxu1 }
 0x1d2   :  { %4353 = vrot.lane.b32.xlu1 %v4270_v8, %s10293_s23  ;;  %v3455_v12 = vpop.permute.xlu0 %3454  ;;  %v3936_v57 = vadd.f32 %v9841_v5, %v12009_v60  ;;  %v3927_v22 = vpop.f32.mrb[5].mxu1 }
 0x1d3   :  { %3490 = vst.msk [vmem:[#allocation2 + $0xa0] sm:$0xff] %vm1665_vm10, %v3455_v12  ;;  %4763 = vrot.lane.b32.xlu0 %v4740_v25, %s10293_s23  ;;  %v3928_v48 = vadd.f32 %v12009_v60, %v3927_v22  ;;  %v9842_v2 = vpop.f32.mrb[6].mxu1  ;;  %v4922_v22 = vshrl.u32 %v12459_v52, 16 }
 0x1d4   :  { %v3644_v9 = vpop.permute.xlu1 %3643  ;;  %v3939_v49 = vadd.f32 %v9842_v2, %v12009_v60  ;;  %v3930_v10 = vpop.f32.mrb[7].mxu1  ;;  %v4116_v42 = vmax.f32 %v3936_v57, 0.0 }
 0x1d5   :  { %3678 = vst.msk [vmem:[#allocation2 + $0xa8] sm:$0xff] %vm1853_vm11, %v3644_v9  ;;  %v3931_v34 = vadd.f32 %v12009_v60, %v3930_v10  ;;  %v4114_v26 = vmax.f32 %v3928_v48, 0.0  ;;  %v4924_v48 = vor.u32 %v4922_v22, %v4920_v24  ;;  %v12641_v10 = vld [vmem:[%s15058_s2] ss:$0 sm:$0xff] }
 0x1d6   :  { %4453 = vrot.lane.b32.xlu1 %v4430_v28, %s10297_s18  ;;  %v3642_v46 = vpop.permute.xlu0 %3641  ;;  %v4117_v40 = vmax.f32 %v3939_v49, 0.0 }
 0x1d7   :  { %3677 = vst.msk [vmem:[#allocation2 + $0xa0] sm:$0xff] %vm1853_vm11, %v3642_v46  ;;  %4835 = vrot.lane.b32.xlu0 %v12297_v50, %s10297_s18  ;;  %v4115_v19 = vmax.f32 %v3931_v34, 0.0 }
 0x1d8   :  { %v2231_v14 = vpop.permute.xlu1 %2230  ;;  %v4165_v44 = vpack.c.bf16 %v4117_v40, %v4116_v42 }
 0x1d9   :  { %2263 = vst.msk [vmem:[#allocation2 + $0xb8] sm:$0xff] %vm428_vm4, %v2231_v14  ;;  %v4164_v60 = vpack.c.bf16 %v4115_v19, %v4114_v26 }
 0x1da   :  { %4526 = vrot.lane.b32.xlu1 %v12440_v11, %s10299_s3  ;;  %v2229_v55 = vpop.permute.xlu0 %2228  ;;  %4193 = vst.msk [vmem:[#allocation5 + $0x38] sm:$0xff] %vm34_vm13, %v4165_v44 }
 0x1db   :  { %2262 = vst.msk [vmem:[#allocation2 + $0xb0] sm:$0xff] %vm428_vm4, %v2229_v55  ;;  %4996 = vrot.lane.b32.xlu0 %v4913_v16, %s10299_s3 }
 0x1dc   :  { %v2418_v36 = vpop.permute.xlu1 %2417  ;;  %4192 = vst.msk [vmem:[#allocation5 + $0x30] sm:$0xff] %vm34_vm13, %v4164_v60  ;;  %v3706_v20 = vld [vmem:[#allocation2 + $0xa8] sm:$0xff] }
 0x1dd   :  { %2450 = vst.msk [vmem:[#allocation2 + $0xb8] sm:$0xff] %vm617_vm5, %v2418_v36 }
 0x1de   :  { %4355 = vrot.lane.b32.xlu1 %v4905_v21, %s10293_s23  ;;  %v2416_v11 = vpop.permute.xlu0 %2415  ;;  %v3705_v4 = vld [vmem:[#allocation2 + $0xa0] sm:$0xff] }
 0x1df   :  { %2449 = vst.msk [vmem:[#allocation2 + $0xb0] sm:$0xff] %vm617_vm5, %v2416_v11  ;;  %9867 = vmatprep.mubr.msk.bf16.mxu1 %vm3756_vm12, %v3705_v4  ;;  %4765 = vrot.lane.b32.xlu0 %v12488_v23, %s10293_s23 }
 0x1e0   :  { %v2572_v30 = vpop.permute.xlu1 %2571  ;;  %9868 = vmatmul.mubr.msk.bf16.gmra.mrb[32].mxu1 %vm3756_vm12, %v3706_v20 }
 0x1e1   :  { %2604 = vst.msk [vmem:[#allocation2 + $0xb8] sm:$0xff] %vm772_vm6, %v2572_v30  ;;  %v12574_v27 = vld [vmem:[#allocation5 + $0x38] sm:$0xff] }
 0x1e2   :  { %4455 = vrot.lane.b32.xlu1 %v4740_v25, %s10297_s18  ;;  %v2570_v59 = vpop.permute.xlu0 %2569  ;;  %v12577_v13 = vld [vmem:[#allocation5 + $0x38] sm:$0xff]  ;;  %v5077_v43 = vrot.slane %v12574_v27, 1  ;;  %v4934_v36 = vshll.u32 %v12574_v27, 16 }
 0x1e3   :  { %2603 = vst.msk [vmem:[#allocation2 + $0xb0] sm:$0xff] %vm772_vm6, %v2570_v59  ;;  %v12580_v51 = vld [vmem:[#allocation5 + $0x30] sm:$0xff]  ;;  %4837 = vrot.lane.b32.xlu0 %v12465_v54, %s10297_s18  ;;  %v4634_v47 = vshll.u32 %v12577_v13, 16 }
 0x1e4   :  { %v2846_v15 = vpop.permute.xlu1 %2845  ;;  %v4578_v6 = vld [vmem:[#allocation5 + $0x30] sm:$0xff]  ;;  %4233 = vst.msk [vmem:[#allocation3 + $0xa8] sm:$0xff] %vm34_vm13, %v12577_v13  ;;  %v5075_v38 = vrot.slane %v12580_v51, 1  ;;  %v4926_v12 = vshll.u32 %v12580_v51, 16  ;;  %v4936_v62 = vrot.slane %v4934_v36, 1 }
 0x1e5   :  { %2878 = vst.msk [vmem:[#allocation2 + $0xb8] sm:$0xff] %vm1047_vm7, %v2846_v15  ;;  %v4626_v18 = vshll.u32 %v4578_v6, 16  ;;  %v4630_v21 = vshrl.u32 %v4578_v6, 16  ;;  %v12614_v0 = vrot.slane %v4634_v47, 1 }
 0x1e6   :  { %4528 = vrot.lane.b32.xlu1 %v12297_v50, %s10299_s3  ;;  %4232 = vst.msk [vmem:[#allocation3 + $0x90] sm:$0xff] %vm34_vm13, %v4578_v6  ;;  %v2844_v39 = vpop.permute.xlu0 %2843  ;;  %v12599_v58 = vsel %vm545_vm0, %v5073_v56, %v5075_v38  ;;  %v12604_v50 = vsel %vm545_vm0, %v5075_v38, %v5077_v43  ;;  %v4928_v28 = vrot.slane %v4926_v12, 1 }
 0x1e7   :  { %2877 = vst.msk [vmem:[#allocation2 + $0xb0] sm:$0xff] %vm1047_vm7, %v2844_v39  ;;  %v4628_v31 = vrot.slane %v4626_v18, 1  ;;  %4998 = vrot.lane.b32.xlu0 %v4921_v37, %s10299_s3 }
 0x1e8   :  { %v3033_v41 = vpop.permute.xlu1 %3032  ;;  %5108 = vst.msk [vmem:[#allocation3 + $0x58] sm:$0xff] %vm34_vm13, %v12599_v58  ;;  %5109 = vst.msk [vmem:[#allocation3 + $0x70] sm:$0xff] %vm34_vm13, %v12604_v50  ;;  %v4929_v49 = vsel %vm269_vm1, %v4924_v48, %v4928_v28 }
 0x1e9   :  { %3065 = vst.msk [vmem:[#allocation2 + $0xb8] sm:$0xff] %vm1235_vm8, %v3033_v41  ;;  %v4629_v56 = vsel %vm269_vm1, %v4624_v7, %v4628_v31  ;;  %v4632_v17 = vor.u32 %v4630_v21, %v4628_v31 }
 0x1ea   :  { %4357 = vrot.lane.b32.xlu1 %v4913_v16, %s10293_s23  ;;  %v3031_v45 = vpop.permute.xlu0 %3030  ;;  %4702 = vst.msk [vmem:[#allocation3 + $0x68] sm:$0xff] %vm34_vm13, %v4629_v56  ;;  %v4930_v16 = vshrl.u32 %v12580_v51, 16 }
 0x1eb   :  { %3064 = vst.msk [vmem:[#allocation2 + $0xb0] sm:$0xff] %vm1235_vm8, %v3031_v45  ;;  %v4637_v5 = vsel %vm269_vm1, %v4632_v17, %v12614_v0  ;;  %4767 = vrot.lane.b32.xlu0 %v12493_v61, %s10293_s23  ;;  %v4938_v17 = vshrl.u32 %v12574_v27, 16 }
 0x1ec   :  { %v3187_v8 = vpop.permute.xlu1 %3186  ;;  %4703 = vst.msk [vmem:[#allocation3 + $0x80] sm:$0xff] %vm34_vm13, %v4637_v5  ;;  %v4932_v29 = vor.u32 %v4930_v16, %v4928_v28 }
 0x1ed   :  { %3219 = vst.msk [vmem:[#allocation2 + $0xb8] sm:$0xff] %vm1390_vm9, %v3187_v8 }
 0x1ee   :  { %4457 = vrot.lane.b32.xlu1 %v12488_v23, %s10297_s18  ;;  %v3185_v25 = vpop.permute.xlu0 %3184  ;;  %v4937_v15 = vsel %vm269_vm1, %v4932_v29, %v4936_v62 }
 0x1ef   :  { %3218 = vst.msk [vmem:[#allocation2 + $0xb0] sm:$0xff] %vm1390_vm9, %v3185_v25  ;;  %v6028_v9 = vld [vmem:[#allocation3 + $0x58] sm:$0xff]  ;;  %v6031_v33 = vld [vmem:[#allocation3 + $0x70] sm:$0xff]  ;;  %4839 = vrot.lane.b32.xlu0 %v12459_v52, %s10297_s18 }
 0x1f0   :  { %v3461_v57 = vpop.permute.xlu1 %3460  ;;  %9892 = vmatmul.mubr.msk.bf16.gmra.mrb[12].mxu0 %vm34_vm13, %v6028_v9 }
 0x1f1   :  { %3493 = vst.msk [vmem:[#allocation2 + $0xb8] sm:$0xff] %vm1665_vm10, %v3461_v57  ;;  %9895 = vmatprep.mubr.msk.bf16.mxu0 %vm34_vm13, %v6031_v33 }
 0x1f2   :  { %4530 = vrot.lane.b32.xlu1 %v12465_v54, %s10299_s3  ;;  %v3459_v23 = vpop.permute.xlu0 %3458  ;;  %v9845_v2 = vpop.f32.mrb[8].mxu1 }
 0x1f3   :  { %3492 = vst.msk [vmem:[#allocation2 + $0xb0] sm:$0xff] %vm1665_vm10, %v3459_v23  ;;  %v3952_v34 = vadd.f32 %v12641_v10, %v9845_v2  ;;  %v3943_v14 = vpop.f32.mrb[9].mxu1  ;;  %5000 = vrot.lane.b32.xlu0 %v4929_v49, %s10299_s3 }
 0x1f4   :  { %v3648_v46 = vpop.permute.xlu1 %3647  ;;  %v3944_v54 = vadd.f32 %v12641_v10, %v3943_v14  ;;  %v9846_v35 = vpop.f32.mrb[10].mxu1 }
 0x1f5   :  { %3680 = vst.msk [vmem:[#allocation2 + $0xb8] sm:$0xff] %vm1853_vm11, %v3648_v46  ;;  %v3955_v32 = vadd.f32 %v12641_v10, %v9846_v35  ;;  %v3946_v40 = vpop.f32.mrb[11].mxu1  ;;  %v4120_v3 = vmax.f32 %v3952_v34, 0.0 }
 0x1f6   :  { %4359 = vrot.lane.b32.xlu1 %v4921_v37, %s10293_s23  ;;  %v3646_v42 = vpop.permute.xlu0 %3645  ;;  %v3947_v26 = vadd.f32 %v12641_v10, %v3946_v40  ;;  %v4118_v55 = vmax.f32 %v3944_v54, 0.0  ;;  %v4638_v37 = vshrl.u32 %v12577_v13, 16 }
 0x1f7   :  { %3679 = vst.msk [vmem:[#allocation2 + $0xb0] sm:$0xff] %vm1853_vm11, %v3646_v42  ;;  %v4121_v44 = vmax.f32 %v3955_v32, 0.0  ;;  %4769 = vrot.lane.b32.xlu0 %v12599_v58, %s10293_s23 }
 0x1f8   :  { %v2235_v19 = vpop.permute.xlu1 %2234  ;;  %v4119_v60 = vmax.f32 %v3947_v26, 0.0  ;;  %v4640_v13 = vor.u32 %v4638_v37, %v12614_v0  ;;  %v4940_v0 = vor.u32 %v4938_v17, %v4936_v62 }
 0x1f9   :  { %2265 = vst.msk [vmem:[#allocation2 + $0xc8] sm:$0xff] %vm428_vm4, %v2235_v19  ;;  %v4167_v20 = vpack.c.bf16 %v4121_v44, %v4120_v3 }
 0x1fa   :  { %4459 = vrot.lane.b32.xlu1 %v12493_v61, %s10297_s18  ;;  %v2233_v11 = vpop.permute.xlu0 %2232  ;;  %v4166_v4 = vpack.c.bf16 %v4119_v60, %v4118_v55 }
 0x1fb   :  { %2264 = vst.msk [vmem:[#allocation2 + $0xc0] sm:$0xff] %vm428_vm4, %v2233_v11  ;;  %4841 = vrot.lane.b32.xlu0 %v12580_v51, %s10297_s18 }
 0x1fc   :  { %v2422_v30 = vpop.permute.xlu1 %2421  ;;  %4195 = vst.msk [vmem:[#allocation5 + $0x48] sm:$0xff] %vm34_vm13, %v4167_v20  ;;  %4194 = vst.msk [vmem:[#allocation5 + $0x40] sm:$0xff] %vm34_vm13, %v4166_v4  ;;  %v3708_v61 = vld [vmem:[#allocation2 + $0xb8] sm:$0xff] }
 0x1fd   :  { %2452 = vst.msk [vmem:[#allocation2 + $0xc8] sm:$0xff] %vm617_vm5, %v2422_v30 }
 0x1fe   :  { %4532 = vrot.lane.b32.xlu1 %v12459_v52, %s10299_s3  ;;  %v2420_v59 = vpop.permute.xlu0 %2419  ;;  %v3707_v1 = vld [vmem:[#allocation2 + $0xb0] sm:$0xff] }
 0x1ff   :  { %2451 = vst.msk [vmem:[#allocation2 + $0xc0] sm:$0xff] %vm617_vm5, %v2420_v59  ;;  %9871 = vmatprep.mubr.msk.bf16.mxu1 %vm3756_vm12, %v3707_v1  ;;  %5002 = vrot.lane.b32.xlu0 %v4937_v15, %s10299_s3 }
 0x200   :  { %v2576_v24 = vpop.permute.xlu1 %2575  ;;  %9872 = vmatmul.mubr.msk.bf16.gmra.mrb[36].mxu1 %vm3756_vm12, %v3708_v61 }
 0x201   :  { %2606 = vst.msk [vmem:[#allocation2 + $0xc8] sm:$0xff] %vm772_vm6, %v2576_v24 }
 0x202   :  { %4361 = vrot.lane.b32.xlu1 %v4929_v49, %s10293_s23  ;;  %v2574_v6 = vpop.permute.xlu0 %2573 }
 0x203   :  { %v12673_v63 = vld [vmem:[#allocation5 + $0x48] sm:$0xff]  ;;  %2605 = vst.msk [vmem:[#allocation2 + $0xc0] sm:$0xff] %vm772_vm6, %v2574_v6  ;;  %v12679_v47 = vld [vmem:[#allocation5 + $0x40] sm:$0xff]  ;;  %4771 = vrot.lane.b32.xlu0 %v12604_v50, %s10293_s23 }
 0x204   :  { %v2850_v52 = vpop.permute.xlu1 %2849  ;;  %v12676_v38 = vld [vmem:[#allocation5 + $0x48] sm:$0xff]  ;;  %v5081_v18 = vrot.slane %v12673_v63, 1  ;;  %v4580_v39 = vld [vmem:[#allocation5 + $0x40] sm:$0xff]  ;;  %v5079_v7 = vrot.slane %v12679_v47, 1  ;;  %v4942_v41 = vshll.u32 %v12679_v47, 16  ;;  %v4946_v46 = vshrl.u32 %v12679_v47, 16 }
 0x205   :  { %2880 = vst.msk [vmem:[#allocation2 + $0xc8] sm:$0xff] %vm1047_vm7, %v2850_v52  ;;  %v4642_v31 = vshll.u32 %v4580_v39, 16  ;;  %v4650_v21 = vshll.u32 %v12676_v38, 16  ;;  %v4646_v45 = vshrl.u32 %v4580_v39, 16  ;;  %v4950_v34 = vshll.u32 %v12673_v63, 16 }
 0x206   :  { %4235 = vst.msk [vmem:[#allocation3 + $0xd8] sm:$0xff] %vm34_vm13, %v12676_v38  ;;  %4461 = vrot.lane.b32.xlu1 %v12599_v58, %s10297_s18  ;;  %4234 = vst.msk [vmem:[#allocation3 + $0xc0] sm:$0xff] %vm34_vm13, %v4580_v39  ;;  %v2848_v56 = vpop.permute.xlu0 %2847  ;;  %v4944_v12 = vrot.slane %v4942_v41, 1  ;;  %v12699_v58 = vsel %vm545_vm0, %v5077_v43, %v5079_v7  ;;  %v12704_v5 = vsel %vm545_vm0, %v5079_v7, %v5081_v18 }
 0x207   :  { %2879 = vst.msk [vmem:[#allocation2 + $0xc0] sm:$0xff] %vm1047_vm7, %v2848_v56  ;;  %v4644_v25 = vrot.slane %v4642_v31, 1  ;;  %4843 = vrot.lane.b32.xlu0 %v12574_v27, %s10297_s18  ;;  %v12716_v33 = vrot.slane %v4650_v21, 1  ;;  %v4952_v19 = vrot.slane %v4950_v34, 1  ;;  %v4954_v21 = vshrl.u32 %v12673_v63, 16 }
 0x208   :  { %v3037_v8 = vpop.permute.xlu1 %3036  ;;  %5110 = vst.msk [vmem:[#allocation3 + $0x88] sm:$0xff] %vm34_vm13, %v12699_v58  ;;  %5111 = vst.msk [vmem:[#allocation3 + $0xa0] sm:$0xff] %vm34_vm13, %v12704_v5  ;;  %v4945_v22 = vsel %vm269_vm1, %v4940_v0, %v4944_v12  ;;  %v4948_v32 = vor.u32 %v4946_v46, %v4944_v12 }
 0x209   :  { %3067 = vst.msk [vmem:[#allocation2 + $0xc8] sm:$0xff] %vm1235_vm8, %v3037_v8  ;;  %v4645_v43 = vsel %vm269_vm1, %v4640_v13, %v4644_v25  ;;  %v4648_v9 = vor.u32 %v4646_v45, %v4644_v25  ;;  %v4654_v45 = vshrl.u32 %v12676_v38, 16 }
 0x20a   :  { %4534 = vrot.lane.b32.xlu1 %v12580_v51, %s10299_s3  ;;  %v3035_v57 = vpop.permute.xlu0 %3034  ;;  %4704 = vst.msk [vmem:[#allocation3 + $0x98] sm:$0xff] %vm34_vm13, %v4645_v43  ;;  %v4953_v16 = vsel %vm269_vm1, %v4948_v32, %v4952_v19 }
 0x20b   :  { %3066 = vst.msk [vmem:[#allocation2 + $0xc0] sm:$0xff] %vm1235_vm8, %v3035_v57  ;;  %v4653_v48 = vsel %vm269_vm1, %v4648_v9, %v12716_v33  ;;  %5004 = vrot.lane.b32.xlu0 %v4945_v22, %s10299_s3  ;;  %v4656_v38 = vor.u32 %v4654_v45, %v12716_v33 }
 0x20c   :  { %v3191_v28 = vpop.permute.xlu1 %3190  ;;  %4705 = vst.msk [vmem:[#allocation3 + $0xb0] sm:$0xff] %vm34_vm13, %v4653_v48 }
 0x20d   :  { %3221 = vst.msk [vmem:[#allocation2 + $0xc8] sm:$0xff] %vm1390_vm9, %v3191_v28 }
 0x20e   :  { %4363 = vrot.lane.b32.xlu1 %v4937_v15, %s10293_s23  ;;  %v3189_v51 = vpop.permute.xlu0 %3188 }
 0x20f   :  { %3220 = vst.msk [vmem:[#allocation2 + $0xc0] sm:$0xff] %vm1390_vm9, %v3189_v51  ;;  %v6034_v23 = vld [vmem:[#allocation3 + $0x88] sm:$0xff]  ;;  %v6037_v2 = vld [vmem:[#allocation3 + $0xa0] sm:$0xff]  ;;  %4773 = vrot.lane.b32.xlu0 %v12699_v58, %s10293_s23 }
 0x210   :  { %v3465_v49 = vpop.permute.xlu1 %3464  ;;  %9896 = vmatmul.mubr.msk.bf16.gmra.mrb[16].mxu0 %vm34_vm13, %v6034_v23 }
 0x211   :  { %3495 = vst.msk [vmem:[#allocation2 + $0xc8] sm:$0xff] %vm1665_vm10, %v3465_v49  ;;  %9899 = vmatprep.mubr.msk.bf16.mxu0 %vm34_vm13, %v6037_v2 }
 0x212   :  { %4463 = vrot.lane.b32.xlu1 %v12604_v50, %s10297_s18  ;;  %v3463_v14 = vpop.permute.xlu0 %3462  ;;  %v9849_v54 = vpop.f32.mrb[12].mxu1 }
 0x213   :  { %3494 = vst.msk [vmem:[#allocation2 + $0xc0] sm:$0xff] %vm1665_vm10, %v3463_v14  ;;  %v3968_v42 = vadd.f32 %v12641_v10, %v9849_v54  ;;  %v3959_v40 = vpop.f32.mrb[13].mxu1  ;;  %4845 = vrot.lane.b32.xlu0 %v12679_v47, %s10297_s18 }
 0x214   :  { %v3652_v35 = vpop.permute.xlu1 %3651  ;;  %v3960_v50 = vadd.f32 %v12641_v10, %v3959_v40  ;;  %v9850_v26 = vpop.f32.mrb[14].mxu1 }
 0x215   :  { %3682 = vst.msk [vmem:[#allocation2 + $0xc8] sm:$0xff] %vm1853_vm11, %v3652_v35  ;;  %v3971_v3 = vadd.f32 %v12641_v10, %v9850_v26  ;;  %v3962_v55 = vpop.f32.mrb[15].mxu1  ;;  %v4124_v20 = vmax.f32 %v3968_v42, 0.0 }
 0x216   :  { %4536 = vrot.lane.b32.xlu1 %v12574_v27, %s10299_s3  ;;  %v3650_v44 = vpop.permute.xlu0 %3649  ;;  %v3963_v60 = vadd.f32 %v12641_v10, %v3962_v55  ;;  %v4122_v4 = vmax.f32 %v3960_v50, 0.0 }
 0x217   :  { %3681 = vst.msk [vmem:[#allocation2 + $0xc0] sm:$0xff] %vm1853_vm11, %v3650_v44  ;;  %v4125_v11 = vmax.f32 %v3971_v3, 0.0  ;;  %5006 = vrot.lane.b32.xlu0 %v4953_v16, %s10299_s3 }
 0x218   :  { %v2239_v36 = vpop.permute.xlu1 %2238  ;;  %v4123_v30 = vmax.f32 %v3963_v60, 0.0 }
 0x219   :  { %2267 = vst.msk [vmem:[#allocation2 + $0xd8] sm:$0xff] %vm428_vm4, %v2239_v36  ;;  %v4169_v27 = vpack.c.bf16 %v4125_v11, %v4124_v20 }
 0x21a   :  { %4365 = vrot.lane.b32.xlu1 %v4945_v22, %s10293_s23  ;;  %v2237_v29 = vpop.permute.xlu0 %2236  ;;  %v4168_v61 = vpack.c.bf16 %v4123_v30, %v4122_v4 }
 0x21b   :  { %2266 = vst.msk [vmem:[#allocation2 + $0xd0] sm:$0xff] %vm428_vm4, %v2237_v29  ;;  %4775 = vrot.lane.b32.xlu0 %v12704_v5, %s10293_s23  ;;  %vm8525_vm4 = vcmask 15360  }
 0x21c   :  { %v2426_v62 = vpop.permute.xlu1 %2425  ;;  %4197 = vst.msk [vmem:[#allocation5 + $0x58] sm:$0xff] %vm34_vm13, %v4169_v27  ;;  %4196 = vst.msk [vmem:[#allocation5 + $0x50] sm:$0xff] %vm34_vm13, %v4168_v61  ;;  %v3710_v59 = vld [vmem:[#allocation2 + $0xc8] sm:$0xff] }
 0x21d   :  { %2454 = vst.msk [vmem:[#allocation2 + $0xd8] sm:$0xff] %vm617_vm5, %v2426_v62 }
 0x21e   :  { %4465 = vrot.lane.b32.xlu1 %v12699_v58, %s10297_s18  ;;  %v2424_v1 = vpop.permute.xlu0 %2423  ;;  %v3709_v15 = vld [vmem:[#allocation2 + $0xc0] sm:$0xff]  ;;  %v4956_v58 = vor.u32 %v4954_v21, %v4952_v19 }
 0x21f   :  { %2453 = vst.msk [vmem:[#allocation2 + $0xd0] sm:$0xff] %vm617_vm5, %v2424_v1  ;;  %9875 = vmatprep.mubr.msk.bf16.mxu1 %vm3756_vm12, %v3709_v15  ;;  %4847 = vrot.lane.b32.xlu0 %v12673_v63, %s10297_s18  ;;  %vm8548_vm5 = vcmask 23552  }
 0x220   :  { %v2580_v24 = vpop.permute.xlu1 %2579  ;;  %9876 = vmatmul.mubr.msk.bf16.gmra.mrb[40].mxu1 %vm3756_vm12, %v3710_v59 }
 0x221   :  { %2608 = vst.msk [vmem:[#allocation2 + $0xd8] sm:$0xff] %vm772_vm6, %v2580_v24 }
 0x222   :  { %4538 = vrot.lane.b32.xlu1 %v12679_v47, %s10299_s3  ;;  %v2578_v6 = vpop.permute.xlu0 %2577 }
 0x223   :  { %v12768_v52 = vld [vmem:[#allocation5 + $0x58] sm:$0xff]  ;;  %2607 = vst.msk [vmem:[#allocation2 + $0xd0] sm:$0xff] %vm772_vm6, %v2578_v6  ;;  %v12776_v41 = vld [vmem:[#allocation5 + $0x50] sm:$0xff]  ;;  %vm8571_vm6 = vcmask 31744  }
 0x224   :  { %v2854_v39 = vpop.permute.xlu1 %2853  ;;  %v12771_v37 = vld [vmem:[#allocation5 + $0x58] sm:$0xff]  ;;  %v12774_v7 = vrot.slane %v12768_v52, 1  ;;  %v4582_v31 = vld [vmem:[#allocation5 + $0x50] sm:$0xff]  ;;  %v5083_v47 = vrot.slane %v12776_v41, 1  ;;  %v4958_v56 = vshll.u32 %v12776_v41, 16  ;;  %v4962_v34 = vshrl.u32 %v12776_v41, 16 }
 0x225   :  { %2882 = vst.msk [vmem:[#allocation2 + $0xd8] sm:$0xff] %vm1047_vm7, %v2854_v39  ;;  %v4658_v17 = vshll.u32 %v4582_v31, 16  ;;  %v4666_v8 = vshll.u32 %v12771_v37, 16  ;;  %v4662_v57 = vshrl.u32 %v4582_v31, 16  ;;  %v4966_v14 = vshll.u32 %v12768_v52, 16 }
 0x226   :  { %4237 = vst.msk [vmem:[#allocation3 + $0x108] sm:$0xff] %vm34_vm13, %v12771_v37  ;;  %4367 = vrot.lane.b32.xlu1 %v4953_v16, %s10293_s23  ;;  %4236 = vst.msk [vmem:[#allocation3 + $0xf0] sm:$0xff] %vm34_vm13, %v4582_v31  ;;  %v2852_v13 = vpop.permute.xlu0 %2851  ;;  %v4960_v25 = vrot.slane %v4958_v56, 1  ;;  %v5084_v0 = vsel %vm545_vm0, %v5081_v18, %v5083_v47  ;;  %v12794_v43 = vsel %vm545_vm0, %v5083_v47, %v12774_v7  ;;  %v5054_v6 = vld [vmem:[#allocation5 + $0x70] sm:$0x1]  ;;  %v4970_v45 = vshrl.u32 %v12768_v52, 16 }
 0x227   :  { %2881 = vst.msk [vmem:[#allocation2 + $0xd0] sm:$0xff] %vm1047_vm7, %v2852_v13  ;;  %v4660_v9 = vrot.slane %v4658_v17, 1  ;;  %v12806_v51 = vrot.slane %v4666_v8, 1  ;;  %v12827_v42 = vrot.slane %v4966_v14, 1  ;;  %vm9088_vm7 = vcmask 1040384  }
 0x228   :  { %v3041_v12 = vpop.permute.xlu1 %3040  ;;  %5112 = vst.msk [vmem:[#allocation3 + $0xb8] sm:$0xff] %vm34_vm13, %v5084_v0  ;;  %5113 = vst.msk [vmem:[#allocation3 + $0xd0] sm:$0xff] %vm34_vm13, %v12794_v43  ;;  %v4961_v22 = vsel %vm269_vm1, %v4956_v58, %v4960_v25 }
 0x229   :  { %3069 = vst.msk [vmem:[#allocation2 + $0xd8] sm:$0xff] %vm1235_vm8, %v3041_v12  ;;  %5008 = vrot.lane.b32.xlu0 %v4961_v22, %s10299_s3  ;;  %v4661_v28 = vsel %vm269_vm1, %v4656_v38, %v4660_v9  ;;  %v4664_v48 = vor.u32 %v4662_v57, %v4660_v9 }
 0x22a   :  { %4467 = vrot.lane.b32.xlu1 %v12704_v5, %s10297_s18  ;;  %v3039_v18 = vpop.permute.xlu0 %3038  ;;  %4706 = vst.msk [vmem:[#allocation3 + $0xc8] sm:$0xff] %vm34_vm13, %v4661_v28 }
 0x22b   :  { %3068 = vst.msk [vmem:[#allocation2 + $0xd0] sm:$0xff] %vm1235_vm8, %v3039_v18  ;;  %v4669_v33 = vsel %vm269_vm1, %v4664_v48, %v12806_v51  ;;  %vm9098_vm8 = vcmask 25600  }
 0x22c   :  { %v3195_v23 = vpop.permute.xlu1 %3194  ;;  %4707 = vst.msk [vmem:[#allocation3 + $0xe0] sm:$0xff] %vm34_vm13, %v4669_v33 }
 0x22d   :  { %3223 = vst.msk [vmem:[#allocation2 + $0xd8] sm:$0xff] %vm1390_vm9, %v3195_v23  ;;  %4777 = vrot.lane.b32.xlu0 %v5084_v0, %s10293_s23 }
 0x22e   :  { %4540 = vrot.lane.b32.xlu1 %v12673_v63, %s10299_s3  ;;  %v3193_v5 = vpop.permute.xlu0 %3192  ;;  %v4964_v63 = vor.u32 %v4962_v34, %v4960_v25 }
 0x22f   :  { %3222 = vst.msk [vmem:[#allocation2 + $0xd0] sm:$0xff] %vm1390_vm9, %v3193_v5  ;;  %v6040_v2 = vld [vmem:[#allocation3 + $0xb8] sm:$0xff]  ;;  %v6043_v49 = vld [vmem:[#allocation3 + $0xd0] sm:$0xff] }
 0x230   :  { %v3469_v46 = vpop.permute.xlu1 %3468  ;;  %9900 = vmatmul.mubr.msk.bf16.gmra.mrb[20].mxu0 %vm34_vm13, %v6040_v2  ;;  %v4969_v3 = vsel %vm269_vm1, %v4964_v63, %v12827_v42 }
 0x231   :  { %3497 = vst.msk [vmem:[#allocation2 + $0xd8] sm:$0xff] %vm1665_vm10, %v3469_v46  ;;  %9903 = vmatprep.mubr.msk.bf16.mxu0 %vm34_vm13, %v6043_v49  ;;  %4849 = vrot.lane.b32.xlu0 %v12776_v41, %s10297_s18  ;;  %v4670_v46 = vshrl.u32 %v12771_v37, 16 }
 0x232   :  { %4369 = vrot.lane.b32.xlu1 %v4961_v22, %s10293_s23  ;;  %v3467_v54 = vpop.permute.xlu0 %3466 }
 0x233   :  { %3496 = vst.msk [vmem:[#allocation2 + $0xd0] sm:$0xff] %vm1665_vm10, %v3467_v54  ;;  %v9853_v35 = vpop.f32.mrb[16].mxu1  ;;  %v4672_v54 = vor.u32 %v4670_v46, %v12806_v51 }
 0x234   :  { %v3656_v32 = vpop.permute.xlu1 %3655  ;;  %v3984_v40 = vadd.f32 %v12641_v10, %v9853_v35  ;;  %v3975_v50 = vpop.f32.mrb[17].mxu1 }
 0x235   :  { %3684 = vst.msk [vmem:[#allocation2 + $0xd8] sm:$0xff] %vm1853_vm11, %v3656_v32  ;;  %v3976_v26 = vadd.f32 %v12641_v10, %v3975_v50  ;;  %v9854_v19 = vpop.f32.mrb[18].mxu1  ;;  %5010 = vrot.lane.b32.xlu0 %v4969_v3, %s10299_s3 }
 0x236   :  { %4469 = vrot.lane.b32.xlu1 %v5084_v0, %s10297_s18  ;;  %v3987_v44 = vadd.f32 %v12641_v10, %v9854_v19  ;;  %v3654_v55 = vpop.permute.xlu0 %3653  ;;  %v3978_v60 = vpop.f32.mrb[19].mxu1  ;;  %v4128_v20 = vmax.f32 %v3984_v40, 0.0 }
 0x237   :  { %3683 = vst.msk [vmem:[#allocation2 + $0xd0] sm:$0xff] %vm1853_vm11, %v3654_v55  ;;  %v3979_v16 = vadd.f32 %v12641_v10, %v3978_v60  ;;  %v4126_v4 = vmax.f32 %v3976_v26, 0.0 }
 0x238   :  { %v4352_v36 = vpop.permute.xlu1 %4351  ;;  %v4129_v11 = vmax.f32 %v3987_v44, 0.0 }
 0x239   :  { %4388 = vst.msk [vmem:[#allocation3] sm:$0xff] %vm4387_vm14, %v4352_v36  ;;  %v4127_v30 = vmax.f32 %v3979_v16, 0.0  ;;  %4779 = vrot.lane.b32.xlu0 %v12794_v43, %s10293_s23 }
 0x23a   :  { %4542 = vrot.lane.b32.xlu1 %v12776_v41, %s10299_s3  ;;  %v4171_v27 = vpack.c.bf16 %v4129_v11, %v4128_v20  ;;  %v4762_v29 = vpop.permute.xlu0 %4761  ;;  %v5091_v41 = vrot.slane %v5054_v6, 1 }
 0x23b   :  { %v4170_v61 = vpack.c.bf16 %v4127_v30, %v4126_v4  ;;  %4797 = vst.msk [vmem:[#allocation3 + $0x8] sm:$0xff] %vm4387_vm14, %v4762_v29 }
 0x23c   :  { %v4452_v62 = vpop.permute.xlu1 %4451  ;;  %4199 = vst.msk [vmem:[#allocation5 + $0x68] sm:$0xff] %vm34_vm13, %v4171_v27  ;;  %v3712_v59 = vld [vmem:[#allocation2 + $0xd8] sm:$0xff] }
 0x23d   :  { %4488 = vst.msk [vmem:[#allocation3] sm:$0xff] %vm4487_vm15, %v4452_v62  ;;  %4851 = vrot.lane.b32.xlu0 %v12768_v52, %s10297_s18 }
 0x23e   :  { %4198 = vst.msk [vmem:[#allocation5 + $0x60] sm:$0xff] %vm34_vm13, %v4170_v61  ;;  %4371 = vrot.lane.b32.xlu1 %v4969_v3, %s10293_s23  ;;  %v4834_v1 = vpop.permute.xlu0 %4833  ;;  %v3711_v15 = vld [vmem:[#allocation2 + $0xd0] sm:$0xff] }
 0x23f   :  { %4869 = vst.msk [vmem:[#allocation3 + $0x8] sm:$0xff] %vm4487_vm15, %v4834_v1  ;;  %9879 = vmatprep.mubr.msk.bf16.mxu1 %vm3756_vm12, %v3711_v15 }
 0x240   :  { %v4525_v24 = vpop.permute.xlu1 %4524  ;;  %9880 = vmatmul.mubr.msk.bf16.gmra.mrb[44].mxu1 %vm3756_vm12, %v3712_v59  ;;  %v4893_v59 = vld [vmem:[#allocation5 + $0x70] sm:$0x1] }
 0x241   :  { %4561 = vst.msk [vmem:[#allocation3] sm:$0xff] %vm4560_vm2, %v4525_v24 }
 0x242   :  { %4471 = vrot.lane.b32.xlu1 %v12794_v43, %s10297_s18  ;;  %v4995_v39 = vpop.permute.xlu0 %4994  ;;  %v4972_v43 = vor.u32 %v4970_v45, %v12827_v42 }
 0x243   :  { %v12857_v31 = vld [vmem:[#allocation5 + $0x68] sm:$0xff]  ;;  %5030 = vst.msk [vmem:[#allocation3 + $0x8] sm:$0xff] %vm4560_vm2, %v4995_v39 }
 0x244   :  { %v4354_v47 = vpop.permute.xlu1 %4353  ;;  %v5089_v21 = vrot.slane %v12857_v31, 1  ;;  %v4585_v18 = vld [vmem:[#allocation5 + $0x68] sm:$0x1]  ;;  %v4982_v44 = vshll.u32 %v12857_v31, 16 }
 0x245   :  { %v12861_v56 = vld [vmem:[#allocation5 + $0x60] sm:$0xff]  ;;  %4389 = vst.msk [vmem:[#allocation3 + $0x18] sm:$0xff] %vm4387_vm14, %v4354_v47  ;;  %v4682_v14 = vshll.u32 %v4585_v18, 16  ;;  %v4722_v36 = vld [vmem:[#allocation5 + $0x68] sm:$0x1] }
 0x246   :  { %v4250_v17 = vld [vmem:[#allocation5 + $0x60] sm:$0x1]  ;;  %v12865_v13 = vrot.slane %v12861_v56, 1  ;;  %4544 = vrot.lane.b32.xlu1 %v12768_v52, %s10299_s3  ;;  %v4974_v8 = vshll.u32 %v12861_v56, 16  ;;  %v4764_v58 = vpop.permute.xlu0 %4763  ;;  %v5092_v0 = vsel %vm545_vm0, %v5089_v21, %v5091_v41  ;;  %v4978_v51 = vshrl.u32 %v12861_v56, 16 }
 0x247   :  { %v4347_v12 = vshll.u32 %v4250_v17, 16  ;;  %v4412_v25 = vld [vmem:[#allocation5 + $0x60] sm:$0x1]  ;;  %4798 = vst.msk [vmem:[#allocation3 + $0x20] sm:$0xff] %vm4387_vm14, %v4764_v58  ;;  %v4684_v26 = vrot.slane %v4682_v14, 1  ;;  %v4984_v20 = vrot.slane %v4982_v44, 1 }
 0x248   :  { %v4976_v38 = vrot.slane %v4974_v8, 1  ;;  %v4454_v9 = vpop.permute.xlu1 %4453  ;;  %v5088_v22 = vsel %vm545_vm0, %v12774_v7, %v12865_v13  ;;  %5116 = vst.msk [vmem:[#allocation3 + $0x118] sm:$0xff] %vm34_vm13, %v5092_v0  ;;  %v4584_v52 = vld [vmem:[#allocation5 + $0x60] sm:$0xff]  ;;  %v5090_v28 = vsel %vm545_vm0, %v12865_v13, %v5089_v21  ;;  %v4449_v5 = vrot.slane %v4412_v25, 1 }
 0x249   :  { %v4349_v57 = vrot.slane %v4347_v12, 1  ;;  %4489 = vst.msk [vmem:[#allocation3 + $0x18] sm:$0xff] %vm4487_vm15, %v4454_v9  ;;  %v6017_v33 = vld [vmem:[#allocation3] sm:$0xff]  ;;  %v4674_v34 = vshll.u32 %v4584_v52, 16  ;;  %v4678_v32 = vshrl.u32 %v4584_v52, 16  ;;  %v4759_v27 = vrot.slane %v4722_v36, 1 }
 0x24a   :  { %5114 = vst.msk [vmem:[#allocation3 + $0xe8] sm:$0xff] %vm34_vm13, %v5088_v22  ;;  %v4977_v48 = vsel %vm269_vm1, %v4972_v43, %v4976_v38  ;;  %5115 = vst.msk [vmem:[#allocation3 + $0x100] sm:$0xff] %vm34_vm13, %v5090_v28  ;;  %v4836_v2 = vpop.permute.xlu0 %4835  ;;  %v6018_v49 = vld [vmem:[#allocation3 + $0x8] sm:$0xff]  ;;  %v4450_v42 = vsel %vm545_vm0, %v12774_v7, %v4449_v5  ;;  %v4980_v60 = vor.u32 %v4978_v51, %v4976_v38  ;;  %v4990_v17 = vshll.u32 %v4893_v59, 16 }
 0x24b   :  { %v4350_v23 = vsel %vm269_vm1, %v4972_v43, %v4349_v57  ;;  %5012 = vrot.lane.b32.xlu0 %v4977_v48, %s10299_s3  ;;  %4870 = vst.msk [vmem:[#allocation3 + $0x20] sm:$0xff] %vm4487_vm15, %v4836_v2  ;;  %6344 = vmatprep.mubr.bf16.mxu1 %v6018_v49  ;;  %v4676_v35 = vrot.slane %v4674_v34, 1  ;;  %v4986_v0 = vshrl.u32 %v12857_v31, 16 }
 0x24c   :  { %4373 = vrot.lane.b32.xlu1 %v4350_v23, %s10293_s23  ;;  %v4527_v63 = vpop.permute.xlu1 %4526  ;;  %6345 = vmatmul.mubr.bf16.vlgmr.msra.gmra.mrb[48].mxu1 %v6017_v33  ;;  %v4985_v4 = vsel %vm269_vm1, %v4980_v60, %v4984_v20 }
 0x24d   :  { %4562 = vst.msk [vmem:[#allocation3 + $0x18] sm:$0xff] %vm4560_vm2, %v4527_v63  ;;  %v4677_v37 = vsel %vm269_vm1, %v4672_v54, %v4676_v35  ;;  %v4680_v50 = vor.u32 %v4678_v32, %v4676_v35  ;;  %v4988_v57 = vor.u32 %v4986_v0, %v4984_v20 }
 0x24e   :  { %v4997_v40 = vpop.permute.xlu0 %4996  ;;  %4708 = vst.msk [vmem:[#allocation3 + $0xf8] sm:$0xff] %vm34_vm13, %v4677_v37 }
 0x24f   :  { %4781 = vrot.lane.b32.xlu0 %v5088_v22, %s10293_s23  ;;  %5031 = vst.msk [vmem:[#allocation3 + $0x20] sm:$0xff] %vm4560_vm2, %v4997_v40  ;;  %v4685_v55 = vsel %vm269_vm1, %v4680_v50, %v4684_v26  ;;  %v6052_v24 = vld [vmem:[#allocation3 + $0x118] sm:$0xff] }
 0x250   :  { %4473 = vrot.lane.b32.xlu1 %v4450_v42, %s10297_s18  ;;  %v4356_v3 = vpop.permute.xlu1 %4355  ;;  %4709 = vst.msk [vmem:[#allocation3 + $0x110] sm:$0xff] %vm34_vm13, %v4685_v55 }
 0x251   :  { %v6046_v19 = vld [vmem:[#allocation3 + $0xe8] sm:$0xff]  ;;  %v6049_v7 = vld [vmem:[#allocation3 + $0x100] sm:$0xff]  ;;  %4390 = vst.msk [vmem:[#allocation3 + $0x30] sm:$0xff] %vm4387_vm14, %v4356_v3 }
 0x252   :  { %9904 = vmatmul.mubr.msk.bf16.gmra.mrb[24].mxu0 %vm34_vm13, %v6046_v19  ;;  %v4766_v16 = vpop.permute.xlu0 %4765 }
 0x253   :  { %9907 = vmatprep.mubr.msk.bf16.mxu0 %vm34_vm13, %v6049_v7  ;;  %4853 = vrot.lane.b32.xlu0 %v12861_v56, %s10297_s18  ;;  %4799 = vst.msk [vmem:[#allocation3 + $0x38] sm:$0xff] %vm4387_vm14, %v4766_v16 }
 0x254   :  { %4546 = vrot.lane.b32.xlu1 %v12861_v56, %s10299_s3  ;;  %v4456_v11 = vpop.permute.xlu1 %4455  ;;  %v6020_v30 = vld [vmem:[#allocation3 + $0x18] sm:$0xff]  ;;  %v4760_v56 = vsel %vm545_vm0, %v12865_v13, %v4759_v27  ;;  %v4992_v13 = vrot.slane %v4990_v17, 1 }
 0x255   :  { %4490 = vst.msk [vmem:[#allocation3 + $0x30] sm:$0xff] %vm4487_vm15, %v4456_v11 }
 0x256   :  { %v9857_v29 = vpop.f32.mrb[20].mxu1  ;;  %v4838_v61 = vpop.permute.xlu0 %4837  ;;  %v6021_v62 = vld [vmem:[#allocation3 + $0x20] sm:$0xff]  ;;  %v4993_v28 = vsel %vm269_vm1, %v4988_v57, %v4992_v13 }
 0x257   :  { %5014 = vrot.lane.b32.xlu0 %v4985_v4, %s10299_s3  ;;  %v4000_v1 = vadd.f32 %v12641_v10, %v9857_v29  ;;  %4871 = vst.msk [vmem:[#allocation3 + $0x38] sm:$0xff] %vm4487_vm15, %v4838_v61  ;;  %v3991_v15 = vpop.f32.mrb[21].mxu1  ;;  %6352 = vmatprep.mubr.bf16.mxu1 %v6021_v62 }
 0x258   :  { %v4529_v6 = vpop.permute.xlu1 %4528  ;;  %v3992_v39 = vadd.f32 %v12641_v10, %v3991_v15  ;;  %v9858_v41 = vpop.f32.mrb[22].mxu1  ;;  %6353 = vmatmul.mubr.bf16.gmra.mrb[52].mxu1 %v6020_v30 }
 0x259   :  { %4563 = vst.msk [vmem:[#allocation3 + $0x30] sm:$0xff] %vm4560_vm2, %v4529_v6  ;;  %v4003_v47 = vadd.f32 %v12641_v10, %v9858_v41  ;;  %v3994_v21 = vpop.f32.mrb[23].mxu1  ;;  %v4132_v12 = vmax.f32 %v4000_v1, 0.0 }
 0x25a   :  { %9908 = vmatmul.mubr.msk.bf16.gmra.mrb[28].mxu0 %vm34_vm13, %v6052_v24  ;;  %v3995_v45 = vadd.f32 %v12641_v10, %v3994_v21  ;;  %v4999_v8 = vpop.permute.xlu0 %4998  ;;  %v4130_v43 = vmax.f32 %v3992_v39, 0.0 }
 0x25b   :  { %4783 = vrot.lane.b32.xlu0 %v4760_v56, %s10293_s23  ;;  %v4133_v58 = vmax.f32 %v4003_v47, 0.0  ;;  %5032 = vst.msk [vmem:[#allocation3 + $0x38] sm:$0xff] %vm4560_vm2, %v4999_v8 }
 0x25c   :  { %v4358_v25 = vpop.permute.xlu1 %4357  ;;  %v4131_v38 = vmax.f32 %v3995_v45, 0.0 }
 0x25d   :  { %4391 = vst.msk [vmem:[#allocation3 + $0x48] sm:$0xff] %vm4387_vm14, %v4358_v25  ;;  %v4173_v9 = vpack.c.bf16 %v4133_v58, %v4132_v12 }
 0x25e   :  { %v4172_v22 = vpack.c.bf16 %v4131_v38, %v4130_v43  ;;  %v4768_v52 = vpop.permute.xlu0 %4767 }
 0x25f   :  { %4855 = vrot.lane.b32.xlu0 %v12857_v31, %s10297_s18  ;;  %4201 = vst.msk [vmem:[#allocation5 + $0x80] sm:$0xff] %vm34_vm13, %v4173_v9 }
 0x260   :  { %4800 = vst.msk [vmem:[#allocation3 + $0x50] sm:$0xff] %vm4387_vm14, %v4768_v52  ;;  %v4458_v18 = vpop.permute.xlu1 %4457  ;;  %v6023_v48 = vld [vmem:[#allocation3 + $0x30] sm:$0xff] }
 0x261   :  { %4200 = vst.msk [vmem:[#allocation5 + $0x78] sm:$0xff] %vm34_vm13, %v4172_v22 }
 0x262   :  { %4491 = vst.msk [vmem:[#allocation3 + $0x48] sm:$0xff] %vm4487_vm15, %v4458_v18  ;;  %v4840_v23 = vpop.permute.xlu0 %4839  ;;  %v6024_v33 = vld [vmem:[#allocation3 + $0x38] sm:$0xff] }
 0x263   :  { %5016 = vrot.lane.b32.xlu0 %v4993_v28, %s10299_s3  ;;  %4872 = vst.msk [vmem:[#allocation3 + $0x50] sm:$0xff] %vm4487_vm15, %v4840_v23  ;;  %6360 = vmatprep.mubr.bf16.mxu1 %v6024_v33 }
 0x264   :  { %v4531_v31 = vpop.permute.xlu1 %4530  ;;  %6361 = vmatmul.mubr.bf16.gmra.mrb[56].mxu1 %v6023_v48 }
 0x265   :  { %4564 = vst.msk [vmem:[#allocation3 + $0x48] sm:$0xff] %vm4560_vm2, %v4531_v31 }
 0x266   :  { %v5001_v5 = vpop.permute.xlu0 %5000  ;;  %v12936_v2 = vld [vmem:[#allocation5 + $0x80] sm:$0xff] }
 0x267   :  { %v12938_v49 = vld [vmem:[#allocation5 + $0x80] sm:$0xff]  ;;  %5033 = vst.msk [vmem:[#allocation3 + $0x50] sm:$0xff] %vm4560_vm2, %v5001_v5  ;;  %v5162_v63 = vshll.u32 %v12936_v2, 16  ;;  %v5329_v7 = vrot.slane %v12936_v2, 1  ;;  %v5166_v52 = vshrl.u32 %v12936_v2, 16 }
 0x268   :  { %v4360_v46 = vpop.permute.xlu1 %4359  ;;  %v5141_v34 = vld [vmem:[#allocation5 + $0x78] sm:$0xff]  ;;  %5130 = vst.msk [vmem:[#allocation3 + $0x138] sm:$0xff] %vm34_vm13, %v12938_v49  ;;  %v5489_v8 = vshll.u32 %v12938_v49, 16  ;;  %v5610_v25 = vld [vmem:[#allocation5 + $0x80] sm:$0xfe]  ;;  %v5487_v18 = vshrl.u32 %v12938_v49, 16 }
 0x269   :  { %4392 = vst.msk [vmem:[#allocation3 + $0x60] sm:$0xff] %vm4387_vm14, %v4360_v46  ;;  %v5157_v14 = vshll.u32 %v5141_v34, 16  ;;  %v5155_v35 = vshrl.u32 %v5141_v34, 16  ;;  %v5302_v40 = vld [vmem:[#allocation5 + $0x78] sm:$0xfe]  ;;  %v12948_v50 = vrot.slane %v5162_v63, 1 }
 0x26a   :  { %5129 = vst.msk [vmem:[#allocation3 + $0x120] sm:$0xff] %vm34_vm13, %v5141_v34  ;;  %v4770_v54 = vpop.permute.xlu0 %4769  ;;  %v5328_v44 = vrot.slane %v5302_v40, 1  ;;  %v5491_v0 = vrot.slane %v5489_v8, 1  ;;  %v5636_v23 = vrot.slane %v5610_v25, 1 }
 0x26b   :  { %v5159_v32 = vrot.slane %v5157_v14, 1  ;;  %4801 = vst.msk [vmem:[#allocation3 + $0x68] sm:$0xff] %vm4387_vm14, %v4770_v54  ;;  %v5168_v34 = vor.u32 %v5166_v52, %v12948_v50 }
 0x26c   :  { %v4460_v42 = vpop.permute.xlu1 %4459  ;;  %v6026_v26 = vld [vmem:[#allocation3 + $0x48] sm:$0xff]  ;;  %v5330_v16 = vsel %vm545_vm0, %v5328_v44, %v5329_v7  ;;  %v5492_v14 = vor.u32 %v5491_v0, %v5487_v18 }
 0x26d   :  { %4492 = vst.msk [vmem:[#allocation3 + $0x60] sm:$0xff] %vm4487_vm15, %v4460_v42  ;;  %v5160_v37 = vor.u32 %v5159_v32, %v5155_v35 }
 0x26e   :  { %v4842_v19 = vpop.permute.xlu0 %4841  ;;  %v6027_v51 = vld [vmem:[#allocation3 + $0x50] sm:$0xff] }
 0x26f   :  { %v5165_v3 = vsel %vm269_vm1, %v5160_v37, %v12948_v50  ;;  %4873 = vst.msk [vmem:[#allocation3 + $0x68] sm:$0xff] %vm4487_vm15, %v4842_v19  ;;  %6368 = vmatprep.mubr.bf16.mxu1 %v6027_v51 }
 0x270   :  { %5254 = vrot.lane.b32.xlu1 %v5165_v3, %s10293_s23  ;;  %v4533_v55 = vpop.permute.xlu1 %4532  ;;  %6369 = vmatmul.mubr.bf16.gmra.mrb[60].mxu1 %v6026_v26 }
 0x271   :  { %4565 = vst.msk [vmem:[#allocation3 + $0x60] sm:$0xff] %vm4560_vm2, %v4533_v55 }
 0x272   :  { %v5003_v60 = vpop.permute.xlu0 %5002 }
 0x273   :  { %5034 = vst.msk [vmem:[#allocation3 + $0x68] sm:$0xff] %vm4560_vm2, %v5003_v60  ;;  %v9861_v36 = vpop.f32.mrb[24].mxu1 }
 0x274   :  { %5353 = vrot.lane.b32.xlu1 %v5330_v16, %s10297_s18  ;;  %v4362_v20 = vpop.permute.xlu1 %4361  ;;  %v4016_v11 = vadd.f32 %v12641_v10, %v9861_v36  ;;  %v4007_v4 = vpop.f32.mrb[25].mxu1 }
 0x275   :  { %4393 = vst.msk [vmem:[#allocation3 + $0x78] sm:$0xff] %vm4387_vm14, %v4362_v20  ;;  %v4008_v30 = vadd.f32 %v12641_v10, %v4007_v4  ;;  %v9862_v27 = vpop.f32.mrb[26].mxu1 }
 0x276   :  { %v4019_v29 = vadd.f32 %v12641_v10, %v9862_v27  ;;  %v4010_v61 = vpop.f32.mrb[27].mxu1  ;;  %v4772_v62 = vpop.permute.xlu0 %4771  ;;  %v4136_v15 = vmax.f32 %v4016_v11, 0.0 }
 0x277   :  { %v4011_v59 = vadd.f32 %v12641_v10, %v4010_v61  ;;  %4802 = vst.msk [vmem:[#allocation3 + $0x80] sm:$0xff] %vm4387_vm14, %v4772_v62  ;;  %v4134_v6 = vmax.f32 %v4008_v30, 0.0  ;;  %v13032_v61 = vld [vmem:[%s15058_s2] ss:$0 sm:$0xff]  ;;  %s10300_s2 = smov [#allocation7]  }
 0x278   :  { %5425 = vrot.lane.b32.xlu1 %v12936_v2, %s10299_s3  ;;  %v4462_v1 = vpop.permute.xlu1 %4461  ;;  %v4137_v24 = vmax.f32 %v4019_v29, 0.0  ;;  %v6029_v41 = vld [vmem:[#allocation3 + $0x60] sm:$0xff]  ;;  %s9106_s15 = sshll.u32 %s10300_s2, 4  ;;  %s9107_s15 = int_to_ptr.vmem [resolvable:$true] %s9106_s15 }
 0x279   :  { %4493 = vst.msk [vmem:[#allocation3 + $0x78] sm:$0xff] %vm4487_vm15, %v4462_v1  ;;  %v4135_v39 = vmax.f32 %v4011_v59, 0.0  ;;  %s10266_s24 = scalar_lea.vmem %s9107_s15, 32  ;;  %p10271_p1 = scmp.lt.s32.totalorder %s9107_s15, %s9107_s15 }
 0x27a   :  { %v4175_v47 = vpack.c.bf16 %v4137_v24, %v4136_v15  ;;  %v4844_v21 = vpop.permute.xlu0 %4843  ;;  %v6030_v56 = vld [vmem:[#allocation3 + $0x68] sm:$0xff]  ;;  %p10267_p0 = scmp.ne.s32.totalorder %s9107_s15, %s10266_s24  ;;  %p10272_p2 = scmp.lt.s32.totalorder %s10266_s24, %s10266_s24 }
 0x27b   :  { %v4174_v17 = vpack.c.bf16 %v4135_v39, %v4134_v6  ;;  %4874 = vst.msk [vmem:[#allocation3 + $0x80] sm:$0xff] %vm4487_vm15, %v4844_v21  ;;  %6376 = vmatprep.mubr.bf16.mxu1 %v6030_v56 }
 0x27c   :  { %v4535_v10 = vpop.permute.xlu1 %4534  ;;  %4203 = vst.msk [vmem:[#allocation5 + $0x90] sm:$0xff] %vm34_vm13, %v4175_v47  ;;  %6377 = vmatmul.mubr.bf16.gmra.mrb[64].mxu1 %v6029_v41  ;;  %p10273_p3 = por %p10272_p2, %p10271_p1 }
 0x27d   :  { %4566 = vst.msk [vmem:[#allocation3 + $0x78] sm:$0xff] %vm4560_vm2, %v4535_v10 }
 0x27e   :  { %4202 = vst.msk [vmem:[#allocation5 + $0x88] sm:$0xff] %vm34_vm13, %v4174_v17  ;;  %v5005_v45 = vpop.permute.xlu0 %5004  ;;  %p10274_p4 = pnand %p10273_p3, %p10267_p0 }
 0x27f   :  { %5035 = vst.msk [vmem:[#allocation3 + $0x80] sm:$0xff] %vm4560_vm2, %v5005_v45 }
 0x280   :  { %v4364_v12 = vpop.permute.xlu1 %4363 }
 0x281   :  { %4394 = vst.msk [vmem:[#allocation3 + $0x90] sm:$0xff] %vm4387_vm14, %v4364_v12 }
 0x282   :  { %v4774_v58 = vpop.permute.xlu0 %4773 }
 0x283   :  { %v12977_v43 = vld [vmem:[#allocation5 + $0x90] sm:$0xff]  ;;  %4803 = vst.msk [vmem:[#allocation3 + $0x98] sm:$0xff] %vm4387_vm14, %v4774_v58 }
 0x284   :  { %v4464_v38 = vpop.permute.xlu1 %4463  ;;  %v12980_v9 = vld [vmem:[#allocation5 + $0x90] sm:$0xff]  ;;  %v12983_v57 = vrot.slane %v12977_v43, 1  ;;  %v6032_v48 = vld [vmem:[#allocation3 + $0x78] sm:$0xff]  ;;  %v5802_v40 = vshll.u32 %v12977_v43, 16 }
 0x285   :  { %v5942_v13 = vld [vmem:[#allocation5 + $0x88] sm:$0xfe]  ;;  %4494 = vst.msk [vmem:[#allocation3 + $0x90] sm:$0xff] %vm4487_vm15, %v4464_v38  ;;  %v5502_v63 = vshll.u32 %v12980_v9, 16 }
 0x286   :  { %v5611_v22 = vld [vmem:[#allocation5 + $0x88] sm:$0xff]  ;;  %5132 = vst.msk [vmem:[#allocation3 + $0x168] sm:$0xff] %vm34_vm13, %v12980_v9  ;;  %v5968_v28 = vrot.slane %v5942_v13, 1  ;;  %v4846_v5 = vpop.permute.xlu0 %4845  ;;  %v6033_v46 = vld [vmem:[#allocation3 + $0x80] sm:$0xff]  ;;  %v13016_v60 = vrot.slane %v5802_v40, 1 }
 0x287   :  { %v5637_v33 = vrot.slane %v5611_v22, 1  ;;  %v5170_v31 = vshll.u32 %v5611_v22, 16  ;;  %5131 = vst.msk [vmem:[#allocation3 + $0x150] sm:$0xff] %vm34_vm13, %v5611_v22  ;;  %6384 = vmatprep.mubr.bf16.mxu1 %v6033_v46  ;;  %v5795_v42 = vshrl.u32 %v5611_v22, 16  ;;  %v13003_v19 = vrot.slane %v5502_v63, 1 }
 0x288   :  { %4875 = vst.msk [vmem:[#allocation3 + $0x98] sm:$0xff] %vm4487_vm15, %v4846_v5  ;;  %v4537_v35 = vpop.permute.xlu1 %4536  ;;  %v5970_v32 = vsel %vm545_vm0, %v5968_v28, %v12983_v57  ;;  %6385 = vmatmul.mubr.bf16.gmra.mrb[68].mxu1 %v6032_v48  ;;  %v5182_v46 = vshrl.u32 %v12977_v43, 16 }
 0x289   :  { %v5638_v49 = vsel %vm545_vm0, %v5636_v23, %v5637_v33  ;;  %v5172_v54 = vrot.slane %v5170_v31, 1  ;;  %4567 = vst.msk [vmem:[#allocation3 + $0x90] sm:$0xff] %vm4560_vm2, %v4537_v35  ;;  %v5332_v55 = vsel %vm545_vm0, %v5329_v7, %v5637_v33  ;;  %v5640_v27 = vsel %vm545_vm0, %v5637_v33, %v12983_v57 }
 0x28a   :  { %5661 = vrot.lane.b32.xlu0 %v5638_v49, %s10293_s23  ;;  %6005 = vst.msk [vmem:[#allocation3 + $0x130] sm:$0xff] %vm34_vm13, %v5970_v32  ;;  %v5007_v3 = vpop.permute.xlu0 %5006  ;;  %v5184_v49 = vor.u32 %v13016_v60, %v5182_v46 }
 0x28b   :  { %v5173_v37 = vsel %vm269_vm1, %v5168_v34, %v5172_v54  ;;  %v5176_v50 = vor.u32 %v5795_v42, %v5172_v54  ;;  %v5497_v26 = vsel %vm269_vm1, %v5492_v14, %v5172_v54  ;;  %5036 = vst.msk [vmem:[#allocation3 + $0x98] sm:$0xff] %vm4560_vm2, %v5007_v3 }
 0x28c   :  { %5256 = vrot.lane.b32.xlu1 %v5173_v37, %s10293_s23  ;;  %5598 = vst.msk [vmem:[#allocation3 + $0x128] sm:$0xff] %vm34_vm13, %v5497_v26  ;;  %v4366_v51 = vpop.permute.xlu1 %4365 }
 0x28d   :  { %v5505_v44 = vsel %vm269_vm1, %v5176_v50, %v13003_v19  ;;  %4395 = vst.msk [vmem:[#allocation3 + $0xa8] sm:$0xff] %vm4387_vm14, %v4366_v51  ;;  %v5805_v20 = vsel %vm269_vm1, %v5176_v50, %v13016_v60 }
 0x28e   :  { %5733 = vrot.lane.b32.xlu0 %v5611_v22, %s10297_s18  ;;  %5599 = vst.msk [vmem:[#allocation3 + $0x140] sm:$0xff] %vm34_vm13, %v5505_v44  ;;  %v4776_v16 = vpop.permute.xlu0 %4775 }
 0x28f   :  { %4804 = vst.msk [vmem:[#allocation3 + $0xb0] sm:$0xff] %vm4387_vm14, %v4776_v16 }
 0x290   :  { %5355 = vrot.lane.b32.xlu1 %v5332_v55, %s10297_s18  ;;  %v4466_v11 = vpop.permute.xlu1 %4465  ;;  %v6035_v2 = vld [vmem:[#allocation3 + $0x90] sm:$0xff] }
 0x291   :  { %v6055_v36 = vld [vmem:[#allocation3 + $0x130] sm:$0xff]  ;;  %4495 = vst.msk [vmem:[#allocation3 + $0xa8] sm:$0xff] %vm4487_vm15, %v4466_v11 }
 0x292   :  { %9911 = vmatprep.mubr.msk.bf16.mxu0 %vm34_vm13, %v6055_v36  ;;  %5894 = vrot.lane.b32.xlu0 %v5805_v20, %s10299_s3  ;;  %v4848_v7 = vpop.permute.xlu0 %4847  ;;  %v6036_v4 = vld [vmem:[#allocation3 + $0x98] sm:$0xff] }
 0x293   :  { %4876 = vst.msk [vmem:[#allocation3 + $0xb0] sm:$0xff] %vm4487_vm15, %v4848_v7  ;;  %v9865_v30 = vpop.f32.mrb[28].mxu1  ;;  %6392 = vmatprep.mubr.bf16.mxu1 %v6036_v4 }
 0x294   :  { %5427 = vrot.lane.b32.xlu1 %v5611_v22, %s10299_s3  ;;  %v4539_v29 = vpop.permute.xlu1 %4538  ;;  %v4032_v62 = vadd.f32 %v13032_v61, %v9865_v30  ;;  %v4023_v59 = vpop.f32.mrb[29].mxu1  ;;  %6393 = vmatmul.mubr.bf16.gmra.mrb[72].mxu1 %v6035_v2 }
 0x295   :  { %4568 = vst.msk [vmem:[#allocation3 + $0xa8] sm:$0xff] %vm4560_vm2, %v4539_v29  ;;  %v4024_v1 = vadd.f32 %v13032_v61, %v4023_v59  ;;  %v9866_v15 = vpop.f32.mrb[30].mxu1 }
 0x296   :  { %5663 = vrot.lane.b32.xlu0 %v5640_v27, %s10293_s23  ;;  %v4035_v24 = vadd.f32 %v13032_v61, %v9866_v15  ;;  %v4026_v6 = vpop.f32.mrb[31].mxu1  ;;  %v4140_v47 = vmax.f32 %v4032_v62, 0.0 }
 0x297   :  { %v4027_v39 = vadd.f32 %v13032_v61, %v4026_v6  ;;  %v4138_v56 = vmax.f32 %v4024_v1, 0.0 }
 0x298   :  { %5258 = vrot.lane.b32.xlu1 %v5805_v20, %s10293_s23  ;;  %v4368_v41 = vpop.permute.xlu1 %4367  ;;  %v4141_v21 = vmax.f32 %v4035_v24, 0.0 }
 0x299   :  { %4396 = vst.msk [vmem:[#allocation3 + $0xc0] sm:$0xff] %vm4387_vm14, %v4368_v41  ;;  %v4139_v17 = vmax.f32 %v4027_v39, 0.0 }
 0x29a   :  { %5735 = vrot.lane.b32.xlu0 %v12977_v43, %s10297_s18  ;;  %v4177_v10 = vpack.c.bf16 %v4141_v21, %v4140_v47 }
 0x29b   :  { %v4176_v45 = vpack.c.bf16 %v4139_v17, %v4138_v56  ;;  %v5009_v12 = vpop.permute.xlu0 %5008 }
 0x29c   :  { %5357 = vrot.lane.b32.xlu1 %v5640_v27, %s10297_s18  ;;  %v4468_v8 = vpop.permute.xlu1 %4467  ;;  %4205 = vst.msk [vmem:[#allocation5 + $0xa0] sm:$0xff] %vm34_vm13, %v4177_v10  ;;  %v6038_v5 = vld [vmem:[#allocation3 + $0xa8] sm:$0xff] }
 0x29d   :  { %4496 = vst.msk [vmem:[#allocation3 + $0xc0] sm:$0xff] %vm4487_vm15, %v4468_v8 }
 0x29e   :  { %4204 = vst.msk [vmem:[#allocation5 + $0x98] sm:$0xff] %vm34_vm13, %v4176_v45 }
 0x29f   :  { %5037 = vst.msk [vmem:[#allocation3 + $0xb0] sm:$0xff] %vm4560_vm2, %v5009_v12  ;;  %v4778_v25 = vpop.permute.xlu0 %4777 }
 0x2a0   :  { %5429 = vrot.lane.b32.xlu1 %v12977_v43, %s10299_s3  ;;  %v4541_v58 = vpop.permute.xlu1 %4540  ;;  %4805 = vst.msk [vmem:[#allocation3 + $0xc8] sm:$0xff] %vm4387_vm14, %v4778_v25 }
 0x2a1   :  { %4569 = vst.msk [vmem:[#allocation3 + $0xc0] sm:$0xff] %vm4560_vm2, %v4541_v58 }
 0x2a3   :  { %v13053_v0 = vld [vmem:[#allocation5 + $0xa0] sm:$0xff]  ;;  %v13055_v38 = vpop.f32.mrb[8].mxu0  ;;  %v4850_v48 = vpop.permute.xlu0 %4849 }
 0x2a4   :  { %v4370_v13 = vpop.permute.xlu1 %4369  ;;  %v13057_v22 = vld [vmem:[#allocation5 + $0xa0] sm:$0xff]  ;;  %v5973_v52 = vrot.slane %v13053_v0, 1  ;;  %v13062_v28 = vpop.f32.mrb[9].mxu0  ;;  %4877 = vst.msk [vmem:[#allocation3 + $0xc8] sm:$0xff] %vm4487_vm15, %v4850_v48  ;;  %v5194_v2 = vshll.u32 %v13053_v0, 16 }
 0x2a5   :  { %v13060_v18 = vld [vmem:[#allocation5 + $0x98] sm:$0xff]  ;;  %4397 = vst.msk [vmem:[#allocation3 + $0xd8] sm:$0xff] %vm4387_vm14, %v4370_v13  ;;  %v13069_v31 = vpop.f32.mrb[10].mxu0  ;;  %v5518_v37 = vshll.u32 %v13057_v22, 16 }
 0x2a6   :  { %v6039_v23 = vld [vmem:[#allocation3 + $0xb0] sm:$0xff]  ;;  %5134 = vst.msk [vmem:[#allocation3 + $0x198] sm:$0xff] %vm34_vm13, %v13057_v22  ;;  %v5971_v33 = vrot.slane %v13060_v18, 1  ;;  %v5186_v34 = vshll.u32 %v13060_v18, 16  ;;  %v13073_v14 = vpop.f32.mrb[11].mxu0  ;;  %v5476_v63 = vld [vmem:[#allocation5 + $0x98] sm:$0xff] }
 0x2a7   :  { %6400 = vmatprep.mubr.bf16.mxu1 %v6039_v23  ;;  %5133 = vst.msk [vmem:[#allocation3 + $0x180] sm:$0xff] %vm34_vm13, %v5476_v63  ;;  %v5011_v43 = vpop.permute.xlu0 %5010  ;;  %v5510_v40 = vshll.u32 %v5476_v63, 16  ;;  %v5514_v51 = vshrl.u32 %v5476_v63, 16  ;;  %v13101_v16 = vrot.slane %v5518_v37, 1  ;;  %v5190_v11 = vshrl.u32 %v13060_v18, 16 }
 0x2a8   :  { %6401 = vmatmul.mubr.bf16.gmra.mrb[76].mxu1 %v6038_v5  ;;  %v5188_v54 = vrot.slane %v5186_v34, 1  ;;  %v4470_v35 = vpop.permute.xlu1 %4469  ;;  %v5972_v32 = vsel %vm545_vm0, %v12983_v57, %v5971_v33  ;;  %v13088_v42 = vsel %vm545_vm0, %v5971_v33, %v5973_v52  ;;  %v5506_v57 = vshrl.u32 %v12980_v9, 16  ;;  %5038 = vst.msk [vmem:[#allocation3 + $0xc8] sm:$0xff] %vm4560_vm2, %v5011_v43  ;;  %v6041_v27 = vld [vmem:[#allocation3 + $0xc0] sm:$0xff] }
 0x2a9   :  { %4497 = vst.msk [vmem:[#allocation3 + $0xd8] sm:$0xff] %vm4487_vm15, %v4470_v35  ;;  %v5512_v3 = vrot.slane %v5510_v40, 1  ;;  %v5196_v59 = vrot.slane %v5194_v2, 1  ;;  %v5198_v40 = vshrl.u32 %v13053_v0, 16 }
 0x2aa   :  { %6006 = vst.msk [vmem:[#allocation3 + $0x148] sm:$0xff] %vm34_vm13, %v5972_v32  ;;  %v5189_v50 = vsel %vm269_vm1, %v5184_v49, %v5188_v54  ;;  %6007 = vst.msk [vmem:[#allocation3 + $0x160] sm:$0xff] %vm34_vm13, %v13088_v42  ;;  %v5508_v26 = vor.u32 %v5506_v57, %v13003_v19  ;;  %v5192_v29 = vor.u32 %v5190_v11, %v5188_v54 }
 0x2ab   :  { %5260 = vrot.lane.b32.xlu1 %v5189_v50, %s10293_s23  ;;  %5896 = vrot.lane.b32.xlu0 %v5189_v50, %s10299_s3  ;;  %v4780_v9 = vpop.permute.xlu0 %4779  ;;  %v5516_v60 = vor.u32 %v5514_v51, %v5512_v3 }
 0x2ac   :  { %v4543_v44 = vpop.permute.xlu1 %4542  ;;  %v5513_v55 = vsel %vm269_vm1, %v5508_v26, %v5512_v3  ;;  %4806 = vst.msk [vmem:[#allocation3 + $0xe0] sm:$0xff] %vm4387_vm14, %v4780_v9  ;;  %v5197_v41 = vsel %vm269_vm1, %v5192_v29, %v5196_v59  ;;  %v5522_v3 = vshrl.u32 %v13057_v22, 16  ;;  %v5200_v9 = vor.u32 %v5198_v40, %v5196_v59 }
 0x2ad   :  { %4570 = vst.msk [vmem:[#allocation3 + $0xd8] sm:$0xff] %vm4560_vm2, %v4543_v44  ;;  %v5521_v19 = vsel %vm269_vm1, %v5516_v60, %v13101_v16 }
 0x2ae   :  { %5600 = vst.msk [vmem:[#allocation3 + $0x158] sm:$0xff] %vm34_vm13, %v5513_v55  ;;  %5601 = vst.msk [vmem:[#allocation3 + $0x170] sm:$0xff] %vm34_vm13, %v5521_v19  ;;  %v5524_v22 = vor.u32 %v5522_v3, %v13101_v16 }
 0x2af   :  { %5359 = vrot.lane.b32.xlu1 %v5972_v32, %s10297_s18  ;;  %5665 = vrot.lane.b32.xlu0 %v5972_v32, %s10293_s23  ;;  %v4852_v7 = vpop.permute.xlu0 %4851  ;;  %v6042_v4 = vld [vmem:[#allocation3 + $0xc8] sm:$0xff] }
 0x2b0   :  { %v4372_v20 = vpop.permute.xlu1 %4371  ;;  %4878 = vst.msk [vmem:[#allocation3 + $0xe0] sm:$0xff] %vm4487_vm15, %v4852_v7  ;;  %6408 = vmatprep.mubr.bf16.mxu1 %v6042_v4 }
 0x2b1   :  { %v6058_v36 = vld [vmem:[#allocation3 + $0x148] sm:$0xff]  ;;  %v6061_v30 = vld [vmem:[#allocation3 + $0x160] sm:$0xff]  ;;  %4398 = vst.msk [vmem:[#allocation3 + $0xf0] sm:$0xff] %vm4387_vm14, %v4372_v20  ;;  %6409 = vmatmul.mubr.bf16.gmra.mrb[80].mxu1 %v6041_v27 }
 0x2b2   :  { %9912 = vmatmul.mubr.msk.bf16.gmra.mrb[32].mxu0 %vm34_vm13, %v6058_v36 }
 0x2b3   :  { %9915 = vmatprep.mubr.msk.bf16.mxu0 %vm34_vm13, %v6061_v30  ;;  %5431 = vrot.lane.b32.xlu1 %v13060_v18, %s10299_s3  ;;  %v9869_v62 = vpop.f32.mrb[32].mxu1 }
 0x2b4   :  { %5737 = vrot.lane.b32.xlu0 %v13060_v18, %s10297_s18  ;;  %v4472_v1 = vpop.permute.xlu1 %4471  ;;  %v4048_v15 = vadd.f32 %v13032_v61, %v9869_v62  ;;  %v4039_v24 = vpop.f32.mrb[33].mxu1  ;;  %v6044_v57 = vld [vmem:[#allocation3 + $0xd8] sm:$0xff] }
 0x2b5   :  { %4498 = vst.msk [vmem:[#allocation3 + $0xf0] sm:$0xff] %vm4487_vm15, %v4472_v1  ;;  %v4040_v6 = vadd.f32 %v13032_v61, %v4039_v24  ;;  %v9870_v39 = vpop.f32.mrb[34].mxu1 }
 0x2b6   :  { %v4051_v47 = vadd.f32 %v13032_v61, %v9870_v39  ;;  %v4042_v21 = vpop.f32.mrb[35].mxu1  ;;  %v4144_v10 = vmax.f32 %v4048_v15, 0.0 }
 0x2b7   :  { %5262 = vrot.lane.b32.xlu1 %v5197_v41, %s10293_s23  ;;  %v4043_v56 = vadd.f32 %v13032_v61, %v4042_v21  ;;  %v4142_v8 = vmax.f32 %v4040_v6, 0.0 }
 0x2b8   :  { %5898 = vrot.lane.b32.xlu0 %v5197_v41, %s10299_s3  ;;  %v4545_v17 = vpop.permute.xlu1 %4544  ;;  %v4145_v45 = vmax.f32 %v4051_v47, 0.0 }
 0x2b9   :  { %4571 = vst.msk [vmem:[#allocation3 + $0xf0] sm:$0xff] %vm4560_vm2, %v4545_v17  ;;  %v4143_v12 = vmax.f32 %v4043_v56, 0.0 }
 0x2ba   :  { %v4179_v58 = vpack.c.bf16 %v4145_v45, %v4144_v10 }
 0x2bb   :  { %5361 = vrot.lane.b32.xlu1 %v13088_v42, %s10297_s18  ;;  %v4178_v25 = vpack.c.bf16 %v4143_v12, %v4142_v8 }
 0x2bc   :  { %5667 = vrot.lane.b32.xlu0 %v13088_v42, %s10293_s23  ;;  %4207 = vst.msk [vmem:[#allocation5 + $0xb0] sm:$0xff] %vm34_vm13, %v4179_v58 }
 0x2bd   :  { %v5013_v13 = vpop.permute.xlu0 %5012  ;;  %4206 = vst.msk [vmem:[#allocation5 + $0xa8] sm:$0xff] %vm34_vm13, %v4178_v25 }
 0x2be   :  { %v4374_v18 = vpop.permute.xlu1 %4373  ;;  %5039 = vst.msk [vmem:[#allocation3 + $0xe0] sm:$0xff] %vm4560_vm2, %v5013_v13 }
 0x2bf   :  { %4399 = vst.msk [vmem:[#allocation3 + $0x108] sm:$0xff] %vm4387_vm14, %v4374_v18  ;;  %5433 = vrot.lane.b32.xlu1 %v13053_v0, %s10299_s3 }
 0x2c0   :  { %5739 = vrot.lane.b32.xlu0 %v13053_v0, %s10297_s18  ;;  %v6047_v15 = vld [vmem:[#allocation3 + $0xf0] sm:$0xff] }
 0x2c1   :  { %v4782_v48 = vpop.permute.xlu0 %4781 }
 0x2c2   :  { %v4474_v23 = vpop.permute.xlu1 %4473  ;;  %4807 = vst.msk [vmem:[#allocation3 + $0xf8] sm:$0xff] %vm4387_vm14, %v4782_v48 }
 0x2c3   :  { %4499 = vst.msk [vmem:[#allocation3 + $0x108] sm:$0xff] %vm4487_vm15, %v4474_v23  ;;  %v13143_v33 = vld [vmem:[#allocation5 + $0xb0] sm:$0xff]  ;;  %v13145_v5 = vpop.f32.mrb[12].mxu0 }
 0x2c4   :  { %v13147_v46 = vld [vmem:[#allocation5 + $0xb0] sm:$0xff]  ;;  %v5977_v34 = vrot.slane %v13143_v33, 1  ;;  %v5946_v63 = vld [vmem:[#allocation5 + $0xa8] sm:$0xff]  ;;  %v13150_v49 = vpop.f32.mrb[13].mxu0  ;;  %v5210_v29 = vshll.u32 %v13143_v33, 16 }
 0x2c5   :  { %v4854_v54 = vpop.permute.xlu0 %4853  ;;  %v6045_v35 = vld [vmem:[#allocation3 + $0xe0] sm:$0xff]  ;;  %5136 = vst.msk [vmem:[#allocation3 + $0x1c8] sm:$0xff] %vm34_vm13, %v13147_v46  ;;  %v5975_v32 = vrot.slane %v5946_v63, 1  ;;  %v13155_v43 = vpop.f32.mrb[14].mxu0  ;;  %v5202_v37 = vshll.u32 %v5946_v63, 16  ;;  %v5478_v50 = vld [vmem:[#allocation5 + $0xa8] sm:$0xff] }
 0x2c6   :  { %4879 = vst.msk [vmem:[#allocation3 + $0xf8] sm:$0xff] %vm4487_vm15, %v4854_v54  ;;  %6416 = vmatprep.mubr.bf16.mxu1 %v6045_v35  ;;  %v4547_v42 = vpop.permute.xlu1 %4546  ;;  %v13158_v26 = vpop.f32.mrb[15].mxu0  ;;  %v5526_v51 = vshll.u32 %v5478_v50, 16  ;;  %v5534_v44 = vshll.u32 %v13147_v46, 16  ;;  %v5530_v11 = vshrl.u32 %v5478_v50, 16  ;;  %v5206_v27 = vshrl.u32 %v5946_v63, 16 }
 0x2c7   :  { %4572 = vst.msk [vmem:[#allocation3 + $0x108] sm:$0xff] %vm4560_vm2, %v4547_v42  ;;  %6417 = vmatmul.mubr.bf16.gmra.mrb[84].mxu1 %v6044_v57  ;;  %v5204_v55 = vrot.slane %v5202_v37, 1  ;;  %v5976_v60 = vsel %vm545_vm0, %v5973_v52, %v5975_v32  ;;  %v5978_v36 = vsel %vm545_vm0, %v5975_v32, %v5977_v34  ;;  %v5212_v39 = vrot.slane %v5210_v29, 1 }
 0x2c8   :  { %5135 = vst.msk [vmem:[#allocation3 + $0x1b0] sm:$0xff] %vm34_vm13, %v5478_v50  ;;  %6008 = vst.msk [vmem:[#allocation3 + $0x178] sm:$0xff] %vm34_vm13, %v5976_v60  ;;  %v5528_v20 = vrot.slane %v5526_v51, 1  ;;  %v13178_v7 = vrot.slane %v5534_v44, 1 }
 0x2c9   :  { %v5015_v19 = vpop.permute.xlu0 %5014  ;;  %v5205_v2 = vsel %vm269_vm1, %v5200_v9, %v5204_v55  ;;  %6009 = vst.msk [vmem:[#allocation3 + $0x190] sm:$0xff] %vm34_vm13, %v5978_v36  ;;  %v5208_v24 = vor.u32 %v5206_v27, %v5204_v55  ;;  %v5214_v55 = vshrl.u32 %v13143_v33, 16 }
 0x2ca   :  { %5040 = vst.msk [vmem:[#allocation3 + $0xf8] sm:$0xff] %vm4560_vm2, %v5015_v19  ;;  %5264 = vrot.lane.b32.xlu1 %v5205_v2, %s10293_s23  ;;  %5900 = vrot.lane.b32.xlu0 %v5205_v2, %s10299_s3  ;;  %v5529_v0 = vsel %vm269_vm1, %v5524_v22, %v5528_v20  ;;  %v5532_v52 = vor.u32 %v5530_v11, %v5528_v20  ;;  %v5538_v22 = vshrl.u32 %v13147_v46, 16 }
 0x2cb   :  { %5602 = vst.msk [vmem:[#allocation3 + $0x188] sm:$0xff] %vm34_vm13, %v5529_v0  ;;  %v5213_v10 = vsel %vm269_vm1, %v5208_v24, %v5212_v39  ;;  %v5216_v11 = vor.u32 %v5214_v55, %v5212_v39 }
 0x2cc   :  { %v5537_v4 = vsel %vm269_vm1, %v5532_v52, %v13178_v7 }
 0x2cd   :  { %v4784_v16 = vpop.permute.xlu0 %4783  ;;  %5603 = vst.msk [vmem:[#allocation3 + $0x1a0] sm:$0xff] %vm34_vm13, %v5537_v4 }
 0x2ce   :  { %4808 = vst.msk [vmem:[#allocation3 + $0x110] sm:$0xff] %vm4387_vm14, %v4784_v16  ;;  %5363 = vrot.lane.b32.xlu1 %v5976_v60, %s10297_s18  ;;  %5669 = vrot.lane.b32.xlu0 %v5976_v60, %s10293_s23  ;;  %v6050_v54 = vld [vmem:[#allocation3 + $0x108] sm:$0xff]  ;;  %v5540_v16 = vor.u32 %v5538_v22, %v13178_v7 }
 0x2cf   :  { %v6064_v30 = vld [vmem:[#allocation3 + $0x178] sm:$0xff] }
 0x2d0   :  { %9916 = vmatmul.mubr.msk.bf16.gmra.mrb[36].mxu0 %vm34_vm13, %v6064_v30  ;;  %v6067_v1 = vld [vmem:[#allocation3 + $0x190] sm:$0xff] }
 0x2d1   :  { %v4856_v62 = vpop.permute.xlu0 %4855  ;;  %v6048_v59 = vld [vmem:[#allocation3 + $0xf8] sm:$0xff]  ;;  %9919 = vmatprep.mubr.msk.bf16.mxu0 %vm34_vm13, %v6067_v1 }
 0x2d2   :  { %4880 = vst.msk [vmem:[#allocation3 + $0x110] sm:$0xff] %vm4487_vm15, %v4856_v62  ;;  %6424 = vmatprep.mubr.bf16.mxu1 %v6048_v59  ;;  %5435 = vrot.lane.b32.xlu1 %v5946_v63, %s10299_s3 }
 0x2d3   :  { %6425 = vmatmul.mubr.bf16.gmra.mrb[88].mxu1 %v6047_v15  ;;  %5741 = vrot.lane.b32.xlu0 %v5946_v63, %s10297_s18  ;;  %v9873_v6 = vpop.f32.mrb[36].mxu1 }
 0x2d4   :  { %v4064_v41 = vadd.f32 %v13032_v61, %v9873_v6  ;;  %v4055_v47 = vpop.f32.mrb[37].mxu1 }
 0x2d5   :  { %v5017_v21 = vpop.permute.xlu0 %5016  ;;  %v4056_v56 = vadd.f32 %v13032_v61, %v4055_v47  ;;  %v9874_v17 = vpop.f32.mrb[38].mxu1 }
 0x2d6   :  { %5041 = vst.msk [vmem:[#allocation3 + $0x110] sm:$0xff] %vm4560_vm2, %v5017_v21  ;;  %v4067_v45 = vadd.f32 %v13032_v61, %v9874_v17  ;;  %v4058_v8 = vpop.f32.mrb[39].mxu1  ;;  %5266 = vrot.lane.b32.xlu1 %v5213_v10, %s10293_s23  ;;  %v4148_v58 = vmax.f32 %v4064_v41, 0.0 }
 0x2d7   :  { %v4059_v12 = vadd.f32 %v13032_v61, %v4058_v8  ;;  %5902 = vrot.lane.b32.xlu0 %v5213_v10, %s10299_s3  ;;  %v4146_v13 = vmax.f32 %v4056_v56, 0.0 }
 0x2d8   :  { %v4149_v25 = vmax.f32 %v4067_v45, 0.0 }
 0x2d9   :  { %v4147_v18 = vmax.f32 %v4059_v12, 0.0 }
 0x2da   :  { %v4181_v48 = vpack.c.bf16 %v4149_v25, %v4148_v58  ;;  %5365 = vrot.lane.b32.xlu1 %v5978_v36, %s10297_s18 }
 0x2db   :  { %v4180_v23 = vpack.c.bf16 %v4147_v18, %v4146_v13  ;;  %5671 = vrot.lane.b32.xlu0 %v5978_v36, %s10293_s23 }
 0x2dc   :  { %4209 = vst.msk [vmem:[#allocation5 + $0xc0] sm:$0xff] %vm34_vm13, %v4181_v48 }
 0x2dd   :  { %v6051_v63 = vld [vmem:[#allocation3 + $0x110] sm:$0xff]  ;;  %4208 = vst.msk [vmem:[#allocation5 + $0xb8] sm:$0xff] %vm34_vm13, %v4180_v23 }
 0x2de   :  { %6432 = vmatprep.mubr.bf16.mxu1 %v6051_v63  ;;  %5437 = vrot.lane.b32.xlu1 %v13143_v33, %s10299_s3 }
 0x2df   :  { %6433 = vmatmul.mubr.bf16.gmra.mrb[92].mxu1 %v6050_v54  ;;  %5743 = vrot.lane.b32.xlu0 %v13143_v33, %s10297_s18 }
 0x2e2   :  { %v5255_v35 = vpop.permute.xlu1 %5254 }
 0x2e3   :  { %5290 = vst.msk [vmem:[#allocation3 + $0x120] sm:$0xff] %vm4387_vm14, %v5255_v35  ;;  %v13210_v32 = vld [vmem:[#allocation5 + $0xc0] sm:$0xff]  ;;  %v13212_v42 = vpop.f32.mrb[16].mxu0 }
 0x2e4   :  { %v13214_v57 = vld [vmem:[#allocation5 + $0xc0] sm:$0xff]  ;;  %v5981_v40 = vrot.slane %v13210_v32, 1  ;;  %v5948_v37 = vld [vmem:[#allocation5 + $0xb8] sm:$0xff]  ;;  %v13217_v50 = vpop.f32.mrb[17].mxu0  ;;  %v5226_v1 = vshll.u32 %v13210_v32, 16 }
 0x2e5   :  { %v5480_v3 = vld [vmem:[#allocation5 + $0xb8] sm:$0xff]  ;;  %5138 = vst.msk [vmem:[#allocation3 + $0x1f8] sm:$0xff] %vm34_vm13, %v13214_v57  ;;  %v5979_v51 = vrot.slane %v5948_v37, 1  ;;  %v13221_v44 = vpop.f32.mrb[18].mxu0  ;;  %v5218_v60 = vshll.u32 %v5948_v37, 16  ;;  %v5550_v20 = vshll.u32 %v13214_v57, 16 }
 0x2e6   :  { %v5354_v9 = vpop.permute.xlu1 %5353  ;;  %v5542_v19 = vshll.u32 %v5480_v3, 16  ;;  %5137 = vst.msk [vmem:[#allocation3 + $0x1e0] sm:$0xff] %vm34_vm13, %v5480_v3  ;;  %v13226_v36 = vpop.f32.mrb[19].mxu0  ;;  %v5546_v30 = vshrl.u32 %v5480_v3, 16  ;;  %v5222_v59 = vshrl.u32 %v5948_v37, 16  ;;  %v5228_v39 = vrot.slane %v5226_v1, 1 }
 0x2e7   :  { %5389 = vst.msk [vmem:[#allocation3 + $0x120] sm:$0xff] %vm4487_vm15, %v5354_v9  ;;  %v5220_v2 = vrot.slane %v5218_v60, 1  ;;  %v5980_v0 = vsel %vm545_vm0, %v5977_v34, %v5979_v51  ;;  %v5982_v52 = vsel %vm545_vm0, %v5979_v51, %v5981_v40  ;;  %v13244_v29 = vrot.slane %v5550_v20, 1 }
 0x2e8   :  { %6010 = vst.msk [vmem:[#allocation3 + $0x1a8] sm:$0xff] %vm34_vm13, %v5980_v0  ;;  %v5544_v4 = vrot.slane %v5542_v19, 1  ;;  %6011 = vst.msk [vmem:[#allocation3 + $0x1c0] sm:$0xff] %vm34_vm13, %v5982_v52 }
 0x2e9   :  { %v5221_v46 = vsel %vm269_vm1, %v5216_v11, %v5220_v2  ;;  %v5224_v24 = vor.u32 %v5222_v59, %v5220_v2 }
 0x2ea   :  { %v5426_v27 = vpop.permute.xlu1 %5425  ;;  %5268 = vrot.lane.b32.xlu1 %v5221_v46, %s10293_s23  ;;  %5904 = vrot.lane.b32.xlu0 %v5221_v46, %s10299_s3  ;;  %v5545_v33 = vsel %vm269_vm1, %v5540_v16, %v5544_v4  ;;  %v5548_v34 = vor.u32 %v5546_v30, %v5544_v4 }
 0x2eb   :  { %5461 = vst.msk [vmem:[#allocation3 + $0x120] sm:$0xff] %vm4560_vm2, %v5426_v27  ;;  %v5229_v17 = vsel %vm269_vm1, %v5224_v24, %v5228_v39  ;;  %v5554_v27 = vshrl.u32 %v13214_v57, 16 }
 0x2ec   :  { %5604 = vst.msk [vmem:[#allocation3 + $0x1b8] sm:$0xff] %vm34_vm13, %v5545_v33  ;;  %v5553_v7 = vsel %vm269_vm1, %v5548_v34, %v13244_v29 }
 0x2ed   :  { %5605 = vst.msk [vmem:[#allocation3 + $0x1d0] sm:$0xff] %vm34_vm13, %v5553_v7  ;;  %v5556_v1 = vor.u32 %v5554_v27, %v13244_v29 }
 0x2ee   :  { %5367 = vrot.lane.b32.xlu1 %v5980_v0, %s10297_s18  ;;  %5673 = vrot.lane.b32.xlu0 %v5980_v0, %s10293_s23  ;;  %v5230_v0 = vshrl.u32 %v13210_v32, 16 }
 0x2ef   :  { %v6070_v62 = vld [vmem:[#allocation3 + $0x1a8] sm:$0xff]  ;;  %v6073_v15 = vld [vmem:[#allocation3 + $0x1c0] sm:$0xff] }
 0x2f0   :  { %9920 = vmatmul.mubr.msk.bf16.gmra.mrb[40].mxu0 %vm34_vm13, %v6070_v62  ;;  %v5232_v33 = vor.u32 %v5230_v0, %v5228_v39 }
 0x2f1   :  { %9923 = vmatprep.mubr.msk.bf16.mxu0 %vm34_vm13, %v6073_v15 }
 0x2f2   :  { %5439 = vrot.lane.b32.xlu1 %v5948_v37, %s10299_s3  ;;  %5745 = vrot.lane.b32.xlu0 %v5948_v37, %s10297_s18  ;;  %v6053_v29 = vld [vmem:[#allocation3 + $0x120] sm:$0xff] }
 0x2f3   :  { %v9877_v6 = vpop.f32.mrb[40].mxu1 }
 0x2f4   :  { %v4080_v41 = vadd.f32 %v13032_v61, %v9877_v6  ;;  %v4071_v47 = vpop.f32.mrb[41].mxu1 }
 0x2f5   :  { %v4072_v21 = vadd.f32 %v13032_v61, %v4071_v47  ;;  %v9878_v56 = vpop.f32.mrb[42].mxu1 }
 0x2f6   :  { %v4083_v10 = vadd.f32 %v13032_v61, %v9878_v56  ;;  %v4074_v45 = vpop.f32.mrb[43].mxu1  ;;  %5270 = vrot.lane.b32.xlu1 %v5229_v17, %s10293_s23  ;;  %5906 = vrot.lane.b32.xlu0 %v5229_v17, %s10299_s3  ;;  %v4152_v12 = vmax.f32 %v4080_v41, 0.0 }
 0x2f7   :  { %v4075_v8 = vadd.f32 %v13032_v61, %v4074_v45  ;;  %v4150_v25 = vmax.f32 %v4072_v21, 0.0 }
 0x2f8   :  { %v4153_v58 = vmax.f32 %v4083_v10, 0.0 }
 0x2f9   :  { %v4151_v13 = vmax.f32 %v4075_v8, 0.0 }
 0x2fa   :  { %v4183_v18 = vpack.c.bf16 %v4153_v58, %v4152_v12  ;;  %5369 = vrot.lane.b32.xlu1 %v5982_v52, %s10297_s18  ;;  %5675 = vrot.lane.b32.xlu0 %v5982_v52, %s10293_s23  ;;  %v10245_v12 = vld [vmem:[%s15061_s5] sm:$0xff]  }
 0x2fb   :  { %v4182_v23 = vpack.c.bf16 %v4151_v13, %v4150_v25  ;;  %7719 = vmatpush1.bf16.msra.mxu0 %v10245_v12 }
 0x2fc   :  { %v5662_v48 = vpop.permute.xlu0 %5661  ;;  %4211 = vst.msk [vmem:[#allocation5 + $0xd0] sm:$0xff] %vm34_vm13, %v4183_v18  ;;  %v10246_v18 = vld [vmem:[%s15061_s5 + $0x8] sm:$0xff]   ;;  %7720 = vmatprep.subr.bf16.mxu0 %v10298_v53 }
 0x2fd   :  { %5697 = vst.msk [vmem:[#allocation3 + $0x128] sm:$0xff] %vm4387_vm14, %v5662_v48 }
 0x2fe   :  { %v5257_v63 = vpop.permute.xlu1 %5256  ;;  %4210 = vst.msk [vmem:[#allocation5 + $0xc8] sm:$0xff] %vm34_vm13, %v4182_v23  ;;  %5441 = vrot.lane.b32.xlu1 %v13210_v32, %s10299_s3  ;;  %5747 = vrot.lane.b32.xlu0 %v13210_v32, %s10297_s18 }
 0x2ff   :  { %5291 = vst.msk [vmem:[#allocation3 + $0x138] sm:$0xff] %vm4387_vm14, %v5257_v63  ;;  %7721 = vmatpush1.bf16.msra.mxu0 %v10246_v18 }
 0x300   :  { %v5734_v54 = vpop.permute.xlu0 %5733  ;;  %7722 = vmatprep.subr.bf16.mxu0 %v10298_v53 }
 0x301   :  { %5769 = vst.msk [vmem:[#allocation3 + $0x128] sm:$0xff] %vm4487_vm15, %v5734_v54 }
 0x302   :  { %v5356_v35 = vpop.permute.xlu1 %5355 }
 0x303   :  { %5390 = vst.msk [vmem:[#allocation3 + $0x138] sm:$0xff] %vm4487_vm15, %v5356_v35  ;;  %v13276_v3 = vld [vmem:[#allocation5 + $0xd0] sm:$0xff]  ;;  %v13279_v51 = vpop.f32.mrb[20].mxu0 }
 0x304   :  { %v5895_v37 = vpop.permute.xlu0 %5894  ;;  %v13281_v9 = vld [vmem:[#allocation5 + $0xd0] sm:$0xff]  ;;  %v13284_v55 = vrot.slane %v13276_v3, 1  ;;  %v13286_v19 = vpop.f32.mrb[21].mxu0  ;;  %v5242_v10 = vshll.u32 %v13276_v3, 16  ;;  %v5246_v12 = vshrl.u32 %v13276_v3, 16 }
 0x305   :  { %5930 = vst.msk [vmem:[#allocation3 + $0x128] sm:$0xff] %vm4560_vm2, %v5895_v37  ;;  %v5950_v60 = vld [vmem:[#allocation5 + $0xc8] sm:$0xff]  ;;  %v13291_v2 = vpop.f32.mrb[22].mxu0  ;;  %v5566_v46 = vshll.u32 %v13281_v9, 16 }
 0x306   :  { %v5428_v22 = vpop.permute.xlu1 %5427  ;;  %v5482_v20 = vld [vmem:[#allocation5 + $0xc8] sm:$0xff]  ;;  %5140 = vst.msk [vmem:[#allocation3 + $0x228] sm:$0xff] %vm34_vm13, %v13281_v9  ;;  %v5983_v11 = vrot.slane %v5950_v60, 1  ;;  %v5234_v52 = vshll.u32 %v5950_v60, 16  ;;  %v13295_v4 = vpop.f32.mrb[23].mxu0  ;;  %v5238_v17 = vshrl.u32 %v5950_v60, 16 }
 0x307   :  { %5462 = vst.msk [vmem:[#allocation3 + $0x138] sm:$0xff] %vm4560_vm2, %v5428_v22  ;;  %v5558_v16 = vshll.u32 %v5482_v20, 16  ;;  %v5562_v57 = vshrl.u32 %v5482_v20, 16  ;;  %v13313_v41 = vrot.slane %v5566_v46, 1  ;;  %v13332_v13 = vrot.slane %v5242_v10, 1 }
 0x308   :  { %5139 = vst.msk [vmem:[#allocation3 + $0x210] sm:$0xff] %vm34_vm13, %v5482_v20  ;;  %v5664_v30 = vpop.permute.xlu0 %5663  ;;  %v5236_v34 = vrot.slane %v5234_v52, 1  ;;  %v5984_v7 = vsel %vm545_vm0, %v5981_v40, %v5983_v11  ;;  %v5986_v59 = vsel %vm545_vm0, %v5983_v11, %v13284_v55  ;;  %v10247_v20 = vld [vmem:[%s15061_s5 + $0x10] sm:$0xff]  }
 0x309   :  { %5698 = vst.msk [vmem:[#allocation3 + $0x140] sm:$0xff] %vm4387_vm14, %v5664_v30  ;;  %v5560_v15 = vrot.slane %v5558_v16, 1  ;;  %7723 = vmatpush1.bf16.msra.mxu0 %v10247_v20 }
 0x30a   :  { %v5259_v62 = vpop.permute.xlu1 %5258  ;;  %6012 = vst.msk [vmem:[#allocation3 + $0x1d8] sm:$0xff] %vm34_vm13, %v5984_v7  ;;  %v5237_v24 = vsel %vm269_vm1, %v5232_v33, %v5236_v34  ;;  %6013 = vst.msk [vmem:[#allocation3 + $0x1f0] sm:$0xff] %vm34_vm13, %v5986_v59  ;;  %v5240_v58 = vor.u32 %v5238_v17, %v5236_v34  ;;  %7724 = vmatprep.subr.bf16.mxu0 %v10298_v53  ;;  %v13363_v34 = vld [vmem:[%s15060_s4] ss:$0 sm:$0xff] }
 0x30b   :  { %5292 = vst.msk [vmem:[#allocation3 + $0x150] sm:$0xff] %vm4387_vm14, %v5259_v62  ;;  %5272 = vrot.lane.b32.xlu1 %v5237_v24, %s10293_s23  ;;  %5908 = vrot.lane.b32.xlu0 %v5237_v24, %s10299_s3  ;;  %v5561_v6 = vsel %vm269_vm1, %v5556_v1, %v5560_v15  ;;  %v5564_v39 = vor.u32 %v5562_v57, %v5560_v15  ;;  %v5954_v62 = vld [vmem:[#allocation5 + $0xe8] sm:$0x1]  ;;  %v10249_v57 = vld [vmem:[%s15061_s5 + $0x20] sm:$0xff]  }
 0x30c   :  { %v5736_v32 = vpop.permute.xlu0 %5735  ;;  %v6054_v40 = vld [vmem:[#allocation3 + $0x128] sm:$0xff]  ;;  %5606 = vst.msk [vmem:[#allocation3 + $0x1e8] sm:$0xff] %vm34_vm13, %v5561_v6  ;;  %v5245_v35 = vsel %vm269_vm1, %v5240_v58, %v13332_v13 }
 0x30d   :  { %5770 = vst.msk [vmem:[#allocation3 + $0x140] sm:$0xff] %vm4487_vm15, %v5736_v32  ;;  %6440 = vmatprep.mubr.bf16.mxu1 %v6054_v40  ;;  %v5569_v21 = vsel %vm269_vm1, %v5564_v39, %v13313_v41 }
 0x30e   :  { %v5358_v47 = vpop.permute.xlu1 %5357  ;;  %6441 = vmatmul.mubr.bf16.gmra.mrb[96].mxu1 %v6053_v29  ;;  %5607 = vst.msk [vmem:[#allocation3 + $0x200] sm:$0xff] %vm34_vm13, %v5569_v21  ;;  %v5991_v29 = vrot.slane %v5954_v62, 1  ;;  %v10251_v62 = vld [vmem:[%s15061_s5 + $0x30] sm:$0xff]  }
 0x30f   :  { %5391 = vst.msk [vmem:[#allocation3 + $0x150] sm:$0xff] %vm4487_vm15, %v5358_v47  ;;  %5371 = vrot.lane.b32.xlu1 %v5984_v7, %s10297_s18  ;;  %5677 = vrot.lane.b32.xlu0 %v5984_v7, %s10293_s23 }
 0x311   :  { %v6076_v56 = vld [vmem:[#allocation3 + $0x1d8] sm:$0xff]  ;;  %v6079_v8 = vld [vmem:[#allocation3 + $0x1f0] sm:$0xff] }
 0x312   :  { %v5430_v45 = vpop.permute.xlu1 %5429  ;;  %9924 = vmatmul.mubr.msk.bf16.gmra.mrb[44].mxu0 %vm34_vm13, %v6076_v56 }
 0x313   :  { %5463 = vst.msk [vmem:[#allocation3 + $0x150] sm:$0xff] %vm4560_vm2, %v5430_v45  ;;  %9927 = vmatprep.mubr.msk.bf16.mxu0 %vm34_vm13, %v6079_v8  ;;  %5443 = vrot.lane.b32.xlu1 %v5950_v60, %s10299_s3  ;;  %v9881_v25 = vpop.f32.mrb[44].mxu1 }
 0x314   :  { %5749 = vrot.lane.b32.xlu0 %v5950_v60, %s10297_s18  ;;  %v4096_v48 = vadd.f32 %v13032_v61, %v9881_v25  ;;  %v4087_v23 = vpop.f32.mrb[45].mxu1 }
 0x315   :  { %v4088_v63 = vadd.f32 %v13032_v61, %v4087_v23  ;;  %v9882_v54 = vpop.f32.mrb[46].mxu1 }
 0x316   :  { %v4099_v37 = vadd.f32 %v13032_v61, %v9882_v54  ;;  %v4090_v60 = vpop.f32.mrb[47].mxu1  ;;  %v4156_v11 = vmax.f32 %v4096_v48, 0.0  ;;  %v6056_v48 = vld [vmem:[#allocation3 + $0x138] sm:$0xff] }
 0x317   :  { %5274 = vrot.lane.b32.xlu1 %v5245_v35, %s10293_s23  ;;  %v4091_v22 = vadd.f32 %v13032_v61, %v4090_v60  ;;  %v4154_v52 = vmax.f32 %v4088_v63, 0.0  ;;  %v10248_v61 = vld [vmem:[%s15061_s5 + $0x18] sm:$0xff]  }
 0x318   :  { %5910 = vrot.lane.b32.xlu0 %v5245_v35, %s10299_s3  ;;  %v4157_v0 = vmax.f32 %v4099_v37, 0.0  ;;  %7725 = vmatpush1.bf16.msra.mxu0 %v10248_v61 }
 0x319   :  { %v4155_v16 = vmax.f32 %v4091_v22, 0.0  ;;  %7726 = vmatprep.subr.bf16.mxu0 %v10298_v53  ;;  %v5248_v22 = vor.u32 %v5246_v12, %v13332_v13  ;;  %v10252_v12 = vld [vmem:[%s15061_s5 + $0x38] sm:$0xff]  }
 0x31a   :  { %v4185_v30 = vpack.c.bf16 %v4157_v0, %v4156_v11  ;;  %v10250_v0 = vld [vmem:[%s15061_s5 + $0x28] sm:$0xff]  }
 0x31b   :  { %5373 = vrot.lane.b32.xlu1 %v5986_v59, %s10297_s18  ;;  %v4184_v27 = vpack.c.bf16 %v4155_v16, %v4154_v52 }
 0x31c   :  { %5679 = vrot.lane.b32.xlu0 %v5986_v59, %s10293_s23  ;;  %4213 = vst.msk [vmem:[#allocation5 + $0xe0] sm:$0xff] %vm34_vm13, %v4185_v30  ;;  %7727 = vmatpush1.bf16.msra.mxu0 %v10249_v57 }
 0x31d   :  { %v5261_v46 = vpop.permute.xlu1 %5260  ;;  %v5897_v33 = vpop.permute.xlu0 %5896  ;;  %4212 = vst.msk [vmem:[#allocation5 + $0xd8] sm:$0xff] %vm34_vm13, %v4184_v27  ;;  %7728 = vmatprep.subr.bf16.mxu0 %v10298_v53 }
 0x31e   :  { %5293 = vst.msk [vmem:[#allocation3 + $0x168] sm:$0xff] %vm4387_vm14, %v5261_v46 }
 0x31f   :  { %5931 = vst.msk [vmem:[#allocation3 + $0x140] sm:$0xff] %vm4560_vm2, %v5897_v33  ;;  %5445 = vrot.lane.b32.xlu1 %v13276_v3, %s10299_s3  ;;  %v6346_v7 = vpop.f32.mrb[48].mxu1 }
 0x320   :  { %5751 = vrot.lane.b32.xlu0 %v13276_v3, %s10297_s18  ;;  %v6347_v59 = vadd.f32 %v13363_v34, %v6346_v7  ;;  %v6348_v15 = vpop.f32.mrb[49].mxu1  ;;  %7729 = vmatpush1.bf16.msra.mxu0 %v10250_v0 }
 0x321   :  { %v5360_v1 = vpop.permute.xlu1 %5359  ;;  %v5666_v24 = vpop.permute.xlu0 %5665  ;;  %7730 = vmatprep.subr.bf16.mxu0 %v10298_v53 }
 0x322   :  { %5392 = vst.msk [vmem:[#allocation3 + $0x168] sm:$0xff] %vm4487_vm15, %v5360_v1  ;;  %v6349_v32 = vpop.f32.mrb[50].mxu1  ;;  %v6572_v40 = vadd.f32 %v13062_v28, %v6347_v59  ;;  %v5570_v1 = vshrl.u32 %v13281_v9, 16 }
 0x323   :  { %5699 = vst.msk [vmem:[#allocation3 + $0x158] sm:$0xff] %vm4387_vm14, %v5666_v24  ;;  %v6350_v6 = vadd.f32 %v13363_v34, %v6349_v32  ;;  %v6351_v39 = vpop.f32.mrb[51].mxu1  ;;  %v13378_v47 = vld [vmem:[#allocation5 + $0xe0] sm:$0xff] }
 0x324   :  { %v5989_v56 = vrot.slane %v13378_v47, 1  ;;  %v13383_v17 = vld [vmem:[#allocation5 + $0xd8] sm:$0xff]  ;;  %v6762_v63 = vmax.f32 %v6572_v40, 0.0  ;;  %v5485_v61 = vld [vmem:[#allocation5 + $0xe0] sm:$0x1]  ;;  %7731 = vmatpush1.bf16.msra.mxu0 %v10251_v62 }
 0x325   :  { %v13380_v21 = vpop.f32.mrb[24].mxu0  ;;  %v6575_v10 = vadd.f32 %v13073_v14, %v6350_v6  ;;  %v5432_v28 = vpop.permute.xlu1 %5431  ;;  %v13391_v58 = vrot.slane %v13383_v17, 1  ;;  %v5153_v23 = vld [vmem:[#allocation5 + $0xd8] sm:$0x1]  ;;  %v5874_v14 = vshll.u32 %v13383_v17, 16  ;;  %v5582_v32 = vshll.u32 %v5485_v61, 16  ;;  %7732 = vmatprep.subr.bf16.mxu0 %v10298_v53 }
 0x326   :  { %v13386_v45 = vpop.f32.mrb[25].mxu0  ;;  %v6057_v8 = vld [vmem:[#allocation3 + $0x140] sm:$0xff]  ;;  %5464 = vst.msk [vmem:[#allocation3 + $0x168] sm:$0xff] %vm4560_vm2, %v5432_v28  ;;  %v5738_v25 = vpop.permute.xlu0 %5737  ;;  %v5250_v35 = vshll.u32 %v5153_v23, 16  ;;  %v5314_v37 = vld [vmem:[#allocation5 + $0xd8] sm:$0x1]  ;;  %v5992_v60 = vsel %vm545_vm0, %v5989_v56, %v5991_v29  ;;  %v5572_v29 = vor.u32 %v5570_v1, %v13313_v41 }
 0x327   :  { %6448 = vmatprep.mubr.bf16.mxu1 %v6057_v8  ;;  %v13394_v18 = vpop.f32.mrb[26].mxu0  ;;  %v6763_v54 = vmax.f32 %v6575_v10, 0.0  ;;  %5771 = vst.msk [vmem:[#allocation3 + $0x158] sm:$0xff] %vm4487_vm15, %v5738_v25  ;;  %v13402_v20 = vrot.slane %v5874_v14, 1  ;;  %v5988_v11 = vsel %vm545_vm0, %v13284_v55, %v13391_v58  ;;  %v5484_v52 = vld [vmem:[#allocation5 + $0xd8] sm:$0xff]  ;;  %v5990_v13 = vsel %vm545_vm0, %v13391_v58, %v5989_v56  ;;  %v10253_v61 = vld [vmem:[%s15061_s5 + $0x40] sm:$0xff]  }
 0x328   :  { %6449 = vmatmul.mubr.bf16.gmra.mrb[100].mxu1 %v6056_v48  ;;  %v13398_v3 = vpop.f32.mrb[27].mxu0  ;;  %6016 = vst.msk [vmem:[#allocation3 + $0x238] sm:$0xff] %vm34_vm13, %v5992_v60  ;;  %v5252_v27 = vrot.slane %v5250_v35, 1  ;;  %6014 = vst.msk [vmem:[#allocation3 + $0x208] sm:$0xff] %vm34_vm13, %v5988_v11  ;;  %v5351_v7 = vrot.slane %v5314_v37, 1  ;;  %v5574_v15 = vshll.u32 %v5484_v52, 16  ;;  %7733 = vmatpush1.bf16.msra.mxu0 %v10252_v12 }
 0x329   :  { %v6810_v16 = vpack.c.bf16 %v6763_v54, %v6762_v63  ;;  %v5263_v30 = vpop.permute.xlu1 %5262  ;;  %v5877_v33 = vsel %vm269_vm1, %v5248_v22, %v13402_v20  ;;  %6015 = vst.msk [vmem:[#allocation3 + $0x220] sm:$0xff] %vm34_vm13, %v5990_v13  ;;  %v5578_v10 = vshrl.u32 %v5484_v52, 16  ;;  %v5878_v37 = vshrl.u32 %v13383_v17, 16  ;;  %7734 = vmatprep.subr.bf16.mxu0 %v10298_v53 }
 0x32a   :  { %5294 = vst.msk [vmem:[#allocation3 + $0x180] sm:$0xff] %vm4387_vm14, %v5263_v30  ;;  %v5899_v46 = vpop.permute.xlu0 %5898  ;;  %v5253_v59 = vsel %vm269_vm1, %v5248_v22, %v5252_v27  ;;  %5912 = vrot.lane.b32.xlu0 %v5877_v33, %s10299_s3  ;;  %v5576_v56 = vrot.slane %v5574_v15, 1  ;;  %v5352_v8 = vsel %vm545_vm0, %v13284_v55, %v5351_v7  ;;  %v5584_v55 = vrot.slane %v5582_v32, 1  ;;  %v10254_v15 = vld [vmem:[%s15061_s5 + $0x48] sm:$0xff]  }
 0x32b   :  { %6834 = vst.msk [vmem:[#allocation6] sm:$0xff] %vm36_vm3, %v6810_v16  ;;  %5276 = vrot.lane.b32.xlu1 %v5253_v59, %s10293_s23  ;;  %v6354_v57 = vpop.f32.mrb[52].mxu1  ;;  %v5882_v60 = vshll.u32 %v13378_v47, 16  ;;  %v5880_v27 = vor.u32 %v5878_v37, %v13402_v20 }
 0x32c   :  { %5932 = vst.msk [vmem:[#allocation3 + $0x158] sm:$0xff] %vm4560_vm2, %v5899_v46  ;;  %v6355_v40 = vadd.f32 %v13363_v34, %v6354_v57  ;;  %v6356_v39 = vpop.f32.mrb[53].mxu1  ;;  %v5577_v23 = vsel %vm269_vm1, %v5572_v29, %v5576_v56  ;;  %v5580_v14 = vor.u32 %v5578_v10, %v5576_v56  ;;  %v5622_v46 = vld [vmem:[#allocation5 + $0xe0] sm:$0x1]  ;;  %7735 = vmatpush1.bf16.msra.mxu0 %v10253_v61  ;;  %v5793_v57 = vld [vmem:[#allocation5 + $0xe8] sm:$0x1] }
 0x32d   :  { %v13428_v24 = vpop.f32.mrb[28].mxu0  ;;  %v5362_v6 = vpop.permute.xlu1 %5361  ;;  %5608 = vst.msk [vmem:[#allocation3 + $0x218] sm:$0xff] %vm34_vm13, %v5577_v23  ;;  %v5884_v7 = vrot.slane %v5882_v60, 1  ;;  %v5659_v1 = vrot.slane %v5622_v46, 1  ;;  %7736 = vmatprep.subr.bf16.mxu0 %v10298_v53  ;;  %v5890_v56 = vshll.u32 %v5793_v57, 16 }
 0x32e   :  { %5393 = vst.msk [vmem:[#allocation3 + $0x180] sm:$0xff] %vm4487_vm15, %v5362_v6  ;;  %v13433_v9 = vpop.f32.mrb[29].mxu0  ;;  %v5668_v28 = vpop.permute.xlu0 %5667  ;;  %v6580_v25 = vadd.f32 %v13055_v38, %v6355_v40  ;;  %5681 = vrot.lane.b32.xlu0 %v5988_v11, %s10293_s23  ;;  %v5585_v0 = vsel %vm269_vm1, %v5580_v14, %v5584_v55 }
 0x32f   :  { %5700 = vst.msk [vmem:[#allocation3 + $0x170] sm:$0xff] %vm4387_vm14, %v5668_v28  ;;  %v6357_v41 = vpop.f32.mrb[54].mxu1  ;;  %v13442_v48 = vpop.f32.mrb[30].mxu0  ;;  %5375 = vrot.lane.b32.xlu1 %v5352_v8, %s10297_s18  ;;  %v6082_v38 = vld [vmem:[#allocation3 + $0x208] sm:$0xff]  ;;  %v5885_v59 = vsel %vm269_vm1, %v5880_v27, %v5884_v7  ;;  %v6088_v32 = vld [vmem:[#allocation3 + $0x238] sm:$0xff]  ;;  %v5660_v29 = vsel %vm545_vm0, %v13391_v58, %v5659_v1  ;;  %v10255_v28 = vld [vmem:[%s15061_s5 + $0x50] sm:$0xff]  }
 0x330   :  { %v6358_v63 = vadd.f32 %v13363_v34, %v6357_v41  ;;  %v6359_v54 = vpop.f32.mrb[55].mxu1  ;;  %v13449_v35 = vpop.f32.mrb[31].mxu0  ;;  %9928 = vmatmul.mubr.msk.bf16.gmra.mrb[48].mxu0 %vm34_vm13, %v6082_v38  ;;  %v6085_v11 = vld [vmem:[#allocation3 + $0x220] sm:$0xff]  ;;  %5609 = vst.msk [vmem:[#allocation3 + $0x230] sm:$0xff] %vm34_vm13, %v5585_v0  ;;  %v6764_v20 = vmax.f32 %v6580_v25, 0.0  ;;  %v5886_v41 = vshrl.u32 %v13378_v47, 16 }
 0x331   :  { %v5434_v22 = vpop.permute.xlu1 %5433  ;;  %9931 = vmatprep.mubr.msk.bf16.mxu0 %vm34_vm13, %v6085_v11  ;;  %7737 = vmatpush1.bf16.msra.mxu0 %v10254_v15  ;;  %v10256_v54 = vld [vmem:[%s15061_s5 + $0x58] sm:$0xff]   ;;  %v10257_v27 = vld [vmem:[%s15061_s5 + $0x60] sm:$0xff]   ;;  %v10258_v1 = vld [vmem:[%s15061_s5 + $0x68] sm:$0xff]   ;;  %vm7017_vm0 = vcmask 1048064  }
 0x332   :  { %v6583_v52 = vadd.f32 %v13069_v31, %v6358_v63  ;;  %5465 = vst.msk [vmem:[#allocation3 + $0x180] sm:$0xff] %vm4560_vm2, %v5434_v22  ;;  %v5740_v16 = vpop.permute.xlu0 %5739  ;;  %v13460_v13 = vld [vmem:[#allocation6] sm:$0xff]  ;;  %5753 = vrot.lane.b32.xlu0 %v13383_v17, %s10297_s18  ;;  %7738 = vmatprep.subr.bf16.mxu0 %v10298_v53  ;;  %v5888_v55 = vor.u32 %v5886_v41, %v5884_v7  ;;  %v5892_v63 = vrot.slane %v5890_v56, 1 }
 0x333   :  { %v6060_v30 = vld [vmem:[#allocation3 + $0x158] sm:$0xff]  ;;  %5772 = vst.msk [vmem:[#allocation3 + $0x170] sm:$0xff] %vm4487_vm15, %v5740_v16  ;;  %v6059_v31 = vld [vmem:[#allocation3 + $0x150] sm:$0xff]  ;;  %5447 = vrot.lane.b32.xlu1 %v13383_v17, %s10299_s3  ;;  %v6895_v10 = vshll.u32 %v13460_v13, 16  ;;  %v6893_v60 = vshrl.u32 %v13460_v13, 16 }
 0x334   :  { %6456 = vmatprep.mubr.bf16.mxu1 %v6060_v30  ;;  %6869 = vst.msk [vmem:[#allocation4] sm:$0xff] %vm36_vm3, %v13460_v13  ;;  %v6765_v33 = vmax.f32 %v6583_v52, 0.0  ;;  %v5893_v16 = vsel %vm269_vm1, %v5888_v55, %v5892_v63 }
 0x335   :  { %6457 = vmatmul.mubr.bf16.gmra.mrb[104].mxu1 %v6059_v31  ;;  %7739 = vmatpush1.bf16.msra.mxu0 %v10255_v28 }
 0x336   :  { %v6811_v62 = vpack.c.bf16 %v6765_v33, %v6764_v20  ;;  %5914 = vrot.lane.b32.xlu0 %v5885_v59, %s10299_s3  ;;  %7740 = vmatprep.subr.bf16.mxu0 %v10298_v53  ;;  %v6062_v59 = vld [vmem:[#allocation3 + $0x168] sm:$0xff] }
 0x337   :  { %v6362_v17 = vpop.f32.mrb[56].mxu1 }
 0x338   :  { %6835 = vst.msk [vmem:[#allocation6 + $0x8] sm:$0xff] %vm36_vm3, %v6811_v62  ;;  %v6363_v40 = vadd.f32 %v13363_v34, %v6362_v17  ;;  %v6364_v6 = vpop.f32.mrb[57].mxu1  ;;  %9932 = vmatmul.mubr.msk.bf16.gmra.mrb[52].mxu0 %vm34_vm13, %v6088_v32 }
 0x339   :  { %v6365_v39 = vpop.f32.mrb[58].mxu1  ;;  %7741 = vmatpush1.bf16.msra.mxu0 %v10256_v54 }
 0x33a   :  { %v6588_v8 = vadd.f32 %v13150_v49, %v6363_v40  ;;  %v6366_v12 = vadd.f32 %v13363_v34, %v6365_v39  ;;  %v6367_v25 = vpop.f32.mrb[59].mxu1  ;;  %5683 = vrot.lane.b32.xlu0 %v5660_v29, %s10293_s23  ;;  %v6897_v49 = vrot.slane %v6895_v10, 1  ;;  %7742 = vmatprep.subr.bf16.mxu0 %v10298_v53 }
 0x33c   :  { %v6591_v58 = vadd.f32 %v13158_v26, %v6366_v12  ;;  %v5265_v23 = vpop.permute.xlu1 %5264  ;;  %v5901_v14 = vpop.permute.xlu0 %5900  ;;  %v6766_v38 = vmax.f32 %v6588_v8, 0.0 }
 0x33d   :  { %5295 = vst.msk [vmem:[#allocation3 + $0x198] sm:$0xff] %vm4387_vm14, %v5265_v23  ;;  %7743 = vmatpush1.bf16.msra.mxu0 %v10257_v27 }
 0x33e   :  { %5933 = vst.msk [vmem:[#allocation3 + $0x170] sm:$0xff] %vm4560_vm2, %v5901_v14  ;;  %v6767_v37 = vmax.f32 %v6591_v58, 0.0  ;;  %5755 = vrot.lane.b32.xlu0 %v13378_v47, %s10297_s18  ;;  %v6898_v47 = vor.u32 %v6897_v49, %v6893_v60  ;;  %7744 = vmatprep.subr.bf16.mxu0 %v10298_v53  ;;  %v10260_v58 = vld [vmem:[%s15061_s5 + $0x78] sm:$0xff]  }
 0x33f   :  { %v6881_v26 = vld [vmem:[#allocation6 + $0x8] sm:$0xff] }
 0x340   :  { %v6900_v22 = vshll.u32 %v6881_v26, 16  ;;  %6870 = vst.msk [vmem:[#allocation4 + $0x10] sm:$0xff] %vm36_vm3, %v6881_v26  ;;  %7040 = vst.msk [vmem:[#allocation4 + $0x8] sm:$0xff] %vm36_vm3, %v6881_v26  ;;  %v6812_v11 = vpack.c.bf16 %v6767_v37, %v6766_v38  ;;  %v5364_v0 = vpop.permute.xlu1 %5363  ;;  %v5670_v52 = vpop.permute.xlu0 %5669  ;;  %v6904_v10 = vshrl.u32 %v6881_v26, 16 }
 0x341   :  { %5394 = vst.msk [vmem:[#allocation3 + $0x198] sm:$0xff] %vm4487_vm15, %v5364_v0  ;;  %7745 = vmatpush1.bf16.msra.mxu0 %v10258_v1 }
 0x342   :  { %5701 = vst.msk [vmem:[#allocation3 + $0x188] sm:$0xff] %vm4387_vm14, %v5670_v52  ;;  %v6902_v30 = vrot.slane %v6900_v22, 1  ;;  %5916 = vrot.lane.b32.xlu0 %v5893_v16, %s10299_s3  ;;  %7746 = vmatprep.subr.bf16.mxu0 %v10298_v53  ;;  %v6065_v22 = vld [vmem:[#allocation3 + $0x180] sm:$0xff] }
 0x343   :  { %6836 = vst.msk [vmem:[#allocation6 + $0x10] sm:$0xff] %vm36_vm3, %v6812_v11  ;;  %v6370_v13 = vpop.f32.mrb[60].mxu1 }
 0x344   :  { %v6903_v61 = vsel %vm269_vm1, %v6898_v47, %v6902_v30  ;;  %v6371_v31 = vadd.f32 %v13363_v34, %v6370_v13  ;;  %v5436_v46 = vpop.permute.xlu1 %5435  ;;  %v6372_v20 = vpop.f32.mrb[61].mxu1  ;;  %v6906_v12 = vor.u32 %v6904_v10, %v6902_v30 }
 0x345   :  { %6984 = vrot.lane.b32.xlu1 %v6903_v61, %s10297_s18  ;;  %v6063_v33 = vld [vmem:[#allocation3 + $0x170] sm:$0xff]  ;;  %5466 = vst.msk [vmem:[#allocation3 + $0x198] sm:$0xff] %vm4560_vm2, %v5436_v46  ;;  %v5742_v7 = vpop.permute.xlu0 %5741  ;;  %v6373_v62 = vpop.f32.mrb[62].mxu1 }
 0x346   :  { %6464 = vmatprep.mubr.bf16.mxu1 %v6063_v33  ;;  %v6596_v15 = vadd.f32 %v13145_v5, %v6371_v31  ;;  %5773 = vst.msk [vmem:[#allocation3 + $0x188] sm:$0xff] %vm4487_vm15, %v5742_v7  ;;  %v6374_v57 = vadd.f32 %v13363_v34, %v6373_v62  ;;  %v6375_v17 = vpop.f32.mrb[63].mxu1  ;;  %v10259_v5 = vld [vmem:[%s15061_s5 + $0x70] sm:$0xff]  }
 0x347   :  { %6465 = vmatmul.mubr.bf16.gmra.mrb[108].mxu1 %v6062_v59  ;;  %7747 = vmatpush1.bf16.msra.mxu0 %v10259_v5 }
 0x348   :  { %v6599_v32 = vadd.f32 %v13155_v43, %v6374_v57  ;;  %v5267_v40 = vpop.permute.xlu1 %5266  ;;  %v6768_v29 = vmax.f32 %v6596_v15, 0.0  ;;  %7748 = vmatprep.subr.bf16.mxu0 %v10298_v53 }
 0x349   :  { %5296 = vst.msk [vmem:[#allocation3 + $0x1b0] sm:$0xff] %vm4387_vm14, %v5267_v40  ;;  %v5903_v6 = vpop.permute.xlu0 %5902 }
 0x34a   :  { %v6882_v39 = vld [vmem:[#allocation6 + $0x10] sm:$0xff]  ;;  %v6769_v56 = vmax.f32 %v6599_v32, 0.0  ;;  %5934 = vst.msk [vmem:[#allocation3 + $0x188] sm:$0xff] %vm4560_vm2, %v5903_v6 }
 0x34b   :  { %v6908_v28 = vshll.u32 %v6882_v39, 16  ;;  %6871 = vst.msk [vmem:[#allocation4 + $0x20] sm:$0xff] %vm36_vm3, %v6882_v39  ;;  %7041 = vst.msk [vmem:[#allocation4 + $0x18] sm:$0xff] %vm36_vm3, %v6882_v39  ;;  %7749 = vmatpush1.bf16.msra.mxu0 %v10260_v58  ;;  %v6912_v47 = vshrl.u32 %v6882_v39, 16 }
 0x34c   :  { %v6813_v43 = vpack.c.bf16 %v6769_v56, %v6768_v29  ;;  %v5366_v8 = vpop.permute.xlu1 %5365 }
 0x34d   :  { %v6910_v25 = vrot.slane %v6908_v28, 1  ;;  %5395 = vst.msk [vmem:[#allocation3 + $0x1b0] sm:$0xff] %vm4487_vm15, %v5366_v8  ;;  %v5672_v41 = vpop.permute.xlu0 %5671 }
 0x34e   :  { %6837 = vst.msk [vmem:[#allocation6 + $0x18] sm:$0xff] %vm36_vm3, %v6813_v43  ;;  %v6068_v43 = vld [vmem:[#allocation3 + $0x198] sm:$0xff] }
 0x34f   :  { %5702 = vst.msk [vmem:[#allocation3 + $0x1a0] sm:$0xff] %vm4387_vm14, %v5672_v41  ;;  %v6911_v23 = vsel %vm269_vm1, %v6906_v12, %v6910_v25  ;;  %v6378_v14 = vpop.f32.mrb[64].mxu1  ;;  %v6914_v27 = vor.u32 %v6912_v47, %v6910_v25 }
 0x350   :  { %6986 = vrot.lane.b32.xlu1 %v6911_v23, %s10297_s18  ;;  %7155 = vrot.lane.b32.xlu0 %v6911_v23, %s10297_s18  ;;  %v6379_v55 = vadd.f32 %v13363_v34, %v6378_v14  ;;  %v5438_v63 = vpop.permute.xlu1 %5437  ;;  %v6380_v49 = vpop.f32.mrb[65].mxu1 }
 0x351   :  { %5467 = vst.msk [vmem:[#allocation3 + $0x1b0] sm:$0xff] %vm4560_vm2, %v5438_v63  ;;  %v5744_v54 = vpop.permute.xlu0 %5743  ;;  %v6381_v38 = vpop.f32.mrb[66].mxu1  ;;  %v6066_v37 = vld [vmem:[#allocation3 + $0x188] sm:$0xff] }
 0x352   :  { %v6604_v26 = vadd.f32 %v13217_v50, %v6379_v55  ;;  %5774 = vst.msk [vmem:[#allocation3 + $0x1a0] sm:$0xff] %vm4487_vm15, %v5744_v54  ;;  %v6382_v53 = vadd.f32 %v13363_v34, %v6381_v38  ;;  %6472 = vmatprep.mubr.bf16.mxu1 %v6066_v37  ;;  %v6383_v60 = vpop.f32.mrb[67].mxu1 }
 0x353   :  { %6473 = vmatmul.mubr.bf16.gmra.mrb[112].mxu1 %v6065_v22 }
 0x354   :  { %v6607_v11 = vadd.f32 %v13226_v36, %v6382_v53  ;;  %v6770_v52 = vmax.f32 %v6604_v26, 0.0 }
 0x355   :  { %v6883_v0 = vld [vmem:[#allocation6 + $0x18] sm:$0xff] }
 0x356   :  { %v6771_v16 = vmax.f32 %v6607_v11, 0.0  ;;  %v6916_v30 = vshll.u32 %v6883_v0, 16  ;;  %6872 = vst.msk [vmem:[#allocation4 + $0x30] sm:$0xff] %vm36_vm3, %v6883_v0  ;;  %7042 = vst.msk [vmem:[#allocation4 + $0x28] sm:$0xff] %vm36_vm3, %v6883_v0  ;;  %v6920_v39 = vshrl.u32 %v6883_v0, 16 }
 0x358   :  { %v6814_v50 = vpack.c.bf16 %v6771_v16, %v6770_v52  ;;  %v6918_v13 = vrot.slane %v6916_v30, 1  ;;  %v6071_v30 = vld [vmem:[#allocation3 + $0x1b0] sm:$0xff] }
 0x35a   :  { %6838 = vst.msk [vmem:[#allocation6 + $0x20] sm:$0xff] %vm36_vm3, %v6814_v50  ;;  %v6919_v61 = vsel %vm269_vm1, %v6914_v27, %v6918_v13  ;;  %v6922_v56 = vor.u32 %v6920_v39, %v6918_v13 }
 0x35b   :  { %v6386_v31 = vpop.f32.mrb[68].mxu1  ;;  %6988 = vrot.lane.b32.xlu1 %v6919_v61, %s10297_s18  ;;  %7157 = vrot.lane.b32.xlu0 %v6919_v61, %s10297_s18 }
 0x35c   :  { %v6387_v36 = vadd.f32 %v13363_v34, %v6386_v31  ;;  %v5269_v46 = vpop.permute.xlu1 %5268  ;;  %v6388_v20 = vpop.f32.mrb[69].mxu1 }
 0x35d   :  { %5297 = vst.msk [vmem:[#allocation3 + $0x1c8] sm:$0xff] %vm4387_vm14, %v5269_v46  ;;  %v5905_v33 = vpop.permute.xlu0 %5904  ;;  %v6389_v7 = vpop.f32.mrb[70].mxu1 }
 0x35e   :  { %v6612_v62 = vadd.f32 %v13212_v42, %v6387_v36  ;;  %5935 = vst.msk [vmem:[#allocation3 + $0x1a0] sm:$0xff] %vm4560_vm2, %v5905_v33  ;;  %v6390_v59 = vadd.f32 %v13363_v34, %v6389_v7  ;;  %v6391_v1 = vpop.f32.mrb[71].mxu1 }
 0x360   :  { %v6615_v15 = vadd.f32 %v13221_v44, %v6390_v59  ;;  %v5368_v57 = vpop.permute.xlu1 %5367  ;;  %v6772_v40 = vmax.f32 %v6612_v62, 0.0 }
 0x361   :  { %5396 = vst.msk [vmem:[#allocation3 + $0x1c8] sm:$0xff] %vm4487_vm15, %v5368_v57  ;;  %v5674_v17 = vpop.permute.xlu0 %5673  ;;  %v6884_v32 = vld [vmem:[#allocation6 + $0x20] sm:$0xff] }
 0x362   :  { %v6773_v6 = vmax.f32 %v6615_v15, 0.0  ;;  %5703 = vst.msk [vmem:[#allocation3 + $0x1b8] sm:$0xff] %vm4387_vm14, %v5674_v17  ;;  %v6924_v5 = vshll.u32 %v6884_v32, 16  ;;  %v6928_v22 = vshrl.u32 %v6884_v32, 16 }
 0x363   :  { %6873 = vst.msk [vmem:[#allocation4 + $0x40] sm:$0xff] %vm36_vm3, %v6884_v32  ;;  %7043 = vst.msk [vmem:[#allocation4 + $0x38] sm:$0xff] %vm36_vm3, %v6884_v32 }
 0x364   :  { %v6815_v42 = vpack.c.bf16 %v6773_v6, %v6772_v40  ;;  %v5440_v29 = vpop.permute.xlu1 %5439  ;;  %v6926_v10 = vrot.slane %v6924_v5, 1 }
 0x365   :  { %5468 = vst.msk [vmem:[#allocation3 + $0x1c8] sm:$0xff] %vm4560_vm2, %v5440_v29  ;;  %v5746_v44 = vpop.permute.xlu0 %5745  ;;  %v6069_v28 = vld [vmem:[#allocation3 + $0x1a0] sm:$0xff] }
 0x366   :  { %6839 = vst.msk [vmem:[#allocation6 + $0x28] sm:$0xff] %vm36_vm3, %v6815_v42  ;;  %6480 = vmatprep.mubr.bf16.mxu1 %v6069_v28  ;;  %v6927_v8 = vsel %vm269_vm1, %v6922_v56, %v6926_v10  ;;  %v6930_v52 = vor.u32 %v6928_v22, %v6926_v10 }
 0x367   :  { %5775 = vst.msk [vmem:[#allocation3 + $0x1b8] sm:$0xff] %vm4487_vm15, %v5746_v44  ;;  %6481 = vmatmul.mubr.bf16.gmra.mrb[116].mxu1 %v6068_v43  ;;  %v6394_v12 = vpop.f32.mrb[72].mxu1  ;;  %6990 = vrot.lane.b32.xlu1 %v6927_v8, %s10297_s18 }
 0x368   :  { %v6395_v25 = vadd.f32 %v13363_v34, %v6394_v12  ;;  %7159 = vrot.lane.b32.xlu0 %v6927_v8, %s10297_s18  ;;  %v5271_v41 = vpop.permute.xlu1 %5270  ;;  %v6396_v58 = vpop.f32.mrb[73].mxu1 }
 0x369   :  { %5298 = vst.msk [vmem:[#allocation3 + $0x1e0] sm:$0xff] %vm4387_vm14, %v5271_v41  ;;  %v5907_v23 = vpop.permute.xlu0 %5906  ;;  %v6397_v14 = vpop.f32.mrb[74].mxu1 }
 0x36a   :  { %v6620_v55 = vadd.f32 %v13286_v19, %v6395_v25  ;;  %5936 = vst.msk [vmem:[#allocation3 + $0x1b8] sm:$0xff] %vm4560_vm2, %v5907_v23  ;;  %v6398_v63 = vadd.f32 %v13363_v34, %v6397_v14  ;;  %v6399_v49 = vpop.f32.mrb[75].mxu1 }
 0x36c   :  { %v6623_v54 = vadd.f32 %v13295_v4, %v6398_v63  ;;  %v5370_v38 = vpop.permute.xlu1 %5369  ;;  %v6774_v53 = vmax.f32 %v6620_v55, 0.0  ;;  %v6074_v12 = vld [vmem:[#allocation3 + $0x1c8] sm:$0xff] }
 0x36d   :  { %5397 = vst.msk [vmem:[#allocation3 + $0x1e0] sm:$0xff] %vm4487_vm15, %v5370_v38  ;;  %v5676_v37 = vpop.permute.xlu0 %5675  ;;  %v6885_v26 = vld [vmem:[#allocation6 + $0x28] sm:$0xff] }
 0x36e   :  { %v6775_v60 = vmax.f32 %v6623_v54, 0.0  ;;  %5704 = vst.msk [vmem:[#allocation3 + $0x1d0] sm:$0xff] %vm4387_vm14, %v5676_v37  ;;  %v6932_v11 = vshll.u32 %v6885_v26, 16  ;;  %v6936_v36 = vshrl.u32 %v6885_v26, 16 }
 0x36f   :  { %6874 = vst.msk [vmem:[#allocation4 + $0x50] sm:$0xff] %vm36_vm3, %v6885_v26  ;;  %7044 = vst.msk [vmem:[#allocation4 + $0x48] sm:$0xff] %vm36_vm3, %v6885_v26 }
 0x370   :  { %v6816_v19 = vpack.c.bf16 %v6775_v60, %v6774_v53  ;;  %v5442_v0 = vpop.permute.xlu1 %5441  ;;  %v6934_v16 = vrot.slane %v6932_v11, 1 }
 0x371   :  { %5469 = vst.msk [vmem:[#allocation3 + $0x1e0] sm:$0xff] %vm4560_vm2, %v5442_v0  ;;  %v5748_v4 = vpop.permute.xlu0 %5747  ;;  %v6072_v47 = vld [vmem:[#allocation3 + $0x1b8] sm:$0xff] }
 0x372   :  { %6840 = vst.msk [vmem:[#allocation6 + $0x30] sm:$0xff] %vm36_vm3, %v6816_v19  ;;  %6488 = vmatprep.mubr.bf16.mxu1 %v6072_v47  ;;  %v6935_v50 = vsel %vm269_vm1, %v6930_v52, %v6934_v16  ;;  %v6938_v1 = vor.u32 %v6936_v36, %v6934_v16 }
 0x373   :  { %5776 = vst.msk [vmem:[#allocation3 + $0x1d0] sm:$0xff] %vm4487_vm15, %v5748_v4  ;;  %6489 = vmatmul.mubr.bf16.gmra.mrb[120].mxu1 %v6071_v30  ;;  %6992 = vrot.lane.b32.xlu1 %v6935_v50, %s10297_s18 }
 0x374   :  { %7161 = vrot.lane.b32.xlu0 %v6935_v50, %s10297_s18 }
 0x378   :  { %v6077_v4 = vld [vmem:[#allocation3 + $0x1e0] sm:$0xff] }
 0x379   :  { %v13589_v13 = vld [vmem:[#allocation6 + $0x30] sm:$0xff] }
 0x37a   :  { %v6940_v46 = vshll.u32 %v13589_v13, 16  ;;  %6875 = vst.msk [vmem:[#allocation4 + $0x60] sm:$0xff] %vm36_vm3, %v13589_v13  ;;  %7045 = vst.msk [vmem:[#allocation4 + $0x58] sm:$0xff] %vm36_vm3, %v13589_v13  ;;  %v6944_v53 = vshrl.u32 %v13589_v13, 16 }
 0x37b   :  { %v6402_v27 = vpop.f32.mrb[76].mxu1 }
 0x37c   :  { %v6403_v61 = vadd.f32 %v13363_v34, %v6402_v27  ;;  %v6404_v31 = vpop.f32.mrb[77].mxu1  ;;  %v6942_v15 = vrot.slane %v6940_v46, 1 }
 0x37d   :  { %v6405_v20 = vpop.f32.mrb[78].mxu1  ;;  %v5273_v62 = vpop.permute.xlu1 %5272 }
 0x37e   :  { %v6628_v33 = vadd.f32 %v13279_v51, %v6403_v61  ;;  %v6406_v7 = vadd.f32 %v13363_v34, %v6405_v20  ;;  %v6407_v59 = vpop.f32.mrb[79].mxu1  ;;  %5299 = vst.msk [vmem:[#allocation3 + $0x1f8] sm:$0xff] %vm4387_vm14, %v5273_v62  ;;  %v5909_v57 = vpop.permute.xlu0 %5908  ;;  %v6943_v32 = vsel %vm269_vm1, %v6938_v1, %v6942_v15 }
 0x37f   :  { %5937 = vst.msk [vmem:[#allocation3 + $0x1d0] sm:$0xff] %vm4560_vm2, %v5909_v57  ;;  %6994 = vrot.lane.b32.xlu1 %v6943_v32, %s10297_s18  ;;  %7163 = vrot.lane.b32.xlu0 %v6943_v32, %s10297_s18 }
 0x380   :  { %v6631_v17 = vadd.f32 %v13291_v2, %v6406_v7  ;;  %v6776_v51 = vmax.f32 %v6628_v33, 0.0 }
 0x381   :  { %v5372_v6 = vpop.permute.xlu1 %5371 }
 0x382   :  { %v6777_v40 = vmax.f32 %v6631_v17, 0.0  ;;  %5398 = vst.msk [vmem:[#allocation3 + $0x1f8] sm:$0xff] %vm4487_vm15, %v5372_v6  ;;  %v5678_v39 = vpop.permute.xlu0 %5677 }
 0x383   :  { %5705 = vst.msk [vmem:[#allocation3 + $0x1e8] sm:$0xff] %vm4387_vm14, %v5678_v39 }
 0x384   :  { %v6817_v5 = vpack.c.bf16 %v6777_v40, %v6776_v51  ;;  %v6410_v10 = vpop.f32.mrb[80].mxu1 }
 0x385   :  { %v13607_v42 = vpop.f32.mrb[32].mxu0  ;;  %v5444_v2 = vpop.permute.xlu1 %5443  ;;  %v6411_v28 = vadd.f32 %v13363_v34, %v6410_v10 }
 0x386   :  { %6841 = vst.msk [vmem:[#allocation6 + $0x38] sm:$0xff] %vm36_vm3, %v6817_v5  ;;  %v13610_v29 = vpop.f32.mrb[33].mxu0  ;;  %v5750_v56 = vpop.permute.xlu0 %5749  ;;  %v6075_v44 = vld [vmem:[#allocation3 + $0x1d0] sm:$0xff] }
 0x387   :  { %5470 = vst.msk [vmem:[#allocation3 + $0x1f8] sm:$0xff] %vm4560_vm2, %v5444_v2  ;;  %6496 = vmatprep.mubr.bf16.mxu1 %v6075_v44  ;;  %v13615_v43 = vpop.f32.mrb[34].mxu0  ;;  %v6412_v8 = vpop.f32.mrb[81].mxu1  ;;  %v6636_v58 = vadd.f32 %v13386_v45, %v6411_v28 }
 0x388   :  { %5777 = vst.msk [vmem:[#allocation3 + $0x1e8] sm:$0xff] %vm4487_vm15, %v5750_v56  ;;  %6497 = vmatmul.mubr.bf16.gmra.mrb[124].mxu1 %v6074_v12  ;;  %v13617_v25 = vpop.f32.mrb[35].mxu0  ;;  %v6413_v41 = vpop.f32.mrb[82].mxu1 }
 0x389   :  { %v6414_v23 = vadd.f32 %v13363_v34, %v6413_v41  ;;  %v5275_v14 = vpop.permute.xlu1 %5274  ;;  %v6415_v55 = vpop.f32.mrb[83].mxu1  ;;  %v6778_v38 = vmax.f32 %v6636_v58, 0.0 }
 0x38a   :  { %5300 = vst.msk [vmem:[#allocation3 + $0x210] sm:$0xff] %vm4387_vm14, %v5275_v14  ;;  %v5911_v63 = vpop.permute.xlu0 %5910 }
 0x38b   :  { %v6639_v49 = vadd.f32 %v13398_v3, %v6414_v23  ;;  %5938 = vst.msk [vmem:[#allocation3 + $0x1e8] sm:$0xff] %vm4560_vm2, %v5911_v63  ;;  %v6946_v3 = vor.u32 %v6944_v53, %v6942_v15 }
 0x38d   :  { %v6887_v54 = vld [vmem:[#allocation6 + $0x38] sm:$0xff]  ;;  %v6779_v37 = vmax.f32 %v6639_v49, 0.0  ;;  %v5374_v26 = vpop.permute.xlu1 %5373 }
 0x38e   :  { %v6948_v60 = vshll.u32 %v6887_v54, 16  ;;  %6876 = vst.msk [vmem:[#allocation4 + $0x70] sm:$0xff] %vm36_vm3, %v6887_v54  ;;  %7046 = vst.msk [vmem:[#allocation4 + $0x68] sm:$0xff] %vm36_vm3, %v6887_v54  ;;  %v5680_v45 = vpop.permute.xlu0 %5679  ;;  %v6952_v30 = vshrl.u32 %v6887_v54, 16  ;;  %v6080_v56 = vld [vmem:[#allocation3 + $0x1f8] sm:$0xff] }
 0x38f   :  { %5399 = vst.msk [vmem:[#allocation3 + $0x210] sm:$0xff] %vm4487_vm15, %v5374_v26  ;;  %v6818_v22 = vpack.c.bf16 %v6779_v37, %v6778_v38 }
 0x390   :  { %5706 = vst.msk [vmem:[#allocation3 + $0x200] sm:$0xff] %vm4387_vm14, %v5680_v45  ;;  %v6950_v11 = vrot.slane %v6948_v60, 1 }
 0x391   :  { %6842 = vst.msk [vmem:[#allocation6 + $0x40] sm:$0xff] %vm36_vm3, %v6818_v22  ;;  %v5446_v19 = vpop.permute.xlu1 %5445 }
 0x392   :  { %v6951_v0 = vsel %vm269_vm1, %v6946_v3, %v6950_v11  ;;  %5471 = vst.msk [vmem:[#allocation3 + $0x210] sm:$0xff] %vm4560_vm2, %v5446_v19  ;;  %v5752_v52 = vpop.permute.xlu0 %5751  ;;  %v6078_v16 = vld [vmem:[#allocation3 + $0x1e8] sm:$0xff]  ;;  %v6954_v31 = vor.u32 %v6952_v30, %v6950_v11 }
 0x393   :  { %6996 = vrot.lane.b32.xlu1 %v6951_v0, %s10297_s18  ;;  %7165 = vrot.lane.b32.xlu0 %v6951_v0, %s10297_s18  ;;  %5778 = vst.msk [vmem:[#allocation3 + $0x200] sm:$0xff] %vm4487_vm15, %v5752_v52 }
 0x394   :  { %6504 = vmatprep.mubr.bf16.mxu1 %v6078_v16 }
 0x395   :  { %6505 = vmatmul.mubr.bf16.gmra.mrb[128].mxu1 %v6077_v4 }
 0x398   :  { %v13635_v47 = vld [vmem:[#allocation6 + $0x40] sm:$0xff] }
 0x399   :  { %v6956_v50 = vshll.u32 %v13635_v47, 16  ;;  %6877 = vst.msk [vmem:[#allocation4 + $0x80] sm:$0xff] %vm36_vm3, %v13635_v47  ;;  %7047 = vst.msk [vmem:[#allocation4 + $0x78] sm:$0xff] %vm36_vm3, %v13635_v47  ;;  %v6960_v37 = vshrl.u32 %v13635_v47, 16  ;;  %v6083_v0 = vld [vmem:[#allocation3 + $0x210] sm:$0xff] }
 0x39a   :  { %v6418_v27 = vpop.f32.mrb[84].mxu1 }
 0x39b   :  { %v6419_v13 = vadd.f32 %v13363_v34, %v6418_v27  ;;  %v6420_v61 = vpop.f32.mrb[85].mxu1  ;;  %v6958_v36 = vrot.slane %v6956_v50, 1 }
 0x39c   :  { %v6421_v46 = vpop.f32.mrb[86].mxu1  ;;  %v5913_v62 = vpop.permute.xlu0 %5912 }
 0x39d   :  { %v6644_v20 = vadd.f32 %v13380_v21, %v6419_v13  ;;  %v6422_v33 = vadd.f32 %v13363_v34, %v6421_v46  ;;  %v6423_v7 = vpop.f32.mrb[87].mxu1  ;;  %v6959_v59 = vsel %vm269_vm1, %v6954_v31, %v6958_v36  ;;  %v5277_v1 = vpop.permute.xlu1 %5276  ;;  %5939 = vst.msk [vmem:[#allocation3 + $0x200] sm:$0xff] %vm4560_vm2, %v5913_v62  ;;  %v6962_v53 = vor.u32 %v6960_v37, %v6958_v36 }
 0x39e   :  { %6998 = vrot.lane.b32.xlu1 %v6959_v59, %s10297_s18  ;;  %7167 = vrot.lane.b32.xlu0 %v6959_v59, %s10297_s18  ;;  %5301 = vst.msk [vmem:[#allocation3 + $0x228] sm:$0xff] %vm4387_vm14, %v5277_v1  ;;  %v7062_v1 = vld [vmem:[#allocation6 + $0x60] sm:$0x1] }
 0x39f   :  { %v6647_v15 = vadd.f32 %v13394_v18, %v6422_v33  ;;  %v6780_v57 = vmax.f32 %v6644_v20, 0.0 }
 0x3a0   :  { %v5682_v21 = vpop.permute.xlu0 %5681 }
 0x3a1   :  { %v6781_v17 = vmax.f32 %v6647_v15, 0.0  ;;  %v5376_v32 = vpop.permute.xlu1 %5375  ;;  %5707 = vst.msk [vmem:[#allocation3 + $0x218] sm:$0xff] %vm4387_vm14, %v5682_v21 }
 0x3a2   :  { %5400 = vst.msk [vmem:[#allocation3 + $0x228] sm:$0xff] %vm4487_vm15, %v5376_v32 }
 0x3a3   :  { %v6819_v51 = vpack.c.bf16 %v6781_v17, %v6780_v57  ;;  %v13653_v40 = vpop.f32.mrb[36].mxu0 }
 0x3a4   :  { %v13656_v6 = vpop.f32.mrb[37].mxu0  ;;  %v5754_v39 = vpop.permute.xlu0 %5753  ;;  %v6081_v5 = vld [vmem:[#allocation3 + $0x200] sm:$0xff] }
 0x3a5   :  { %6843 = vst.msk [vmem:[#allocation6 + $0x48] sm:$0xff] %vm36_vm3, %v6819_v51  ;;  %v5448_v18 = vpop.permute.xlu1 %5447  ;;  %6512 = vmatprep.mubr.bf16.mxu1 %v6081_v5  ;;  %v13661_v44 = vpop.f32.mrb[38].mxu0  ;;  %v7151_v5 = vshll.u32 %v7062_v1, 16 }
 0x3a6   :  { %5779 = vst.msk [vmem:[#allocation3 + $0x218] sm:$0xff] %vm4487_vm15, %v5754_v39  ;;  %v6426_v2 = vpop.f32.mrb[88].mxu1  ;;  %6513 = vmatmul.mubr.bf16.gmra.mrb[132].mxu1 %v6080_v56  ;;  %v13663_v8 = vpop.f32.mrb[39].mxu0 }
 0x3a7   :  { %5472 = vst.msk [vmem:[#allocation3 + $0x228] sm:$0xff] %vm4560_vm2, %v5448_v18  ;;  %v6427_v10 = vadd.f32 %v13363_v34, %v6426_v2  ;;  %v6428_v28 = vpop.f32.mrb[89].mxu1 }
 0x3a8   :  { %v6429_v12 = vpop.f32.mrb[90].mxu1  ;;  %v5915_v14 = vpop.permute.xlu0 %5914 }
 0x3a9   :  { %v6652_v41 = vadd.f32 %v13433_v9, %v6427_v10  ;;  %v6430_v58 = vadd.f32 %v13363_v34, %v6429_v12  ;;  %v6431_v23 = vpop.f32.mrb[91].mxu1  ;;  %5940 = vst.msk [vmem:[#allocation3 + $0x218] sm:$0xff] %vm4560_vm2, %v5915_v14  ;;  %v7153_v14 = vrot.slane %v7151_v5, 1 }
 0x3ab   :  { %v6655_v55 = vadd.f32 %v13449_v35, %v6430_v58  ;;  %v6782_v49 = vmax.f32 %v6652_v41, 0.0 }
 0x3ac   :  { %v6889_v63 = vld [vmem:[#allocation6 + $0x48] sm:$0xff]  ;;  %v5684_v38 = vpop.permute.xlu0 %5683 }
 0x3ad   :  { %v6783_v54 = vmax.f32 %v6655_v55, 0.0  ;;  %v6964_v26 = vshll.u32 %v6889_v63, 16  ;;  %6878 = vst.msk [vmem:[#allocation4 + $0x90] sm:$0xff] %vm36_vm3, %v6889_v63  ;;  %7048 = vst.msk [vmem:[#allocation4 + $0x88] sm:$0xff] %vm36_vm3, %v6889_v63  ;;  %v6968_v36 = vshrl.u32 %v6889_v63, 16 }
 0x3ae   :  { %5708 = vst.msk [vmem:[#allocation3 + $0x230] sm:$0xff] %vm4387_vm14, %v5684_v38  ;;  %v6086_v7 = vld [vmem:[#allocation3 + $0x228] sm:$0xff] }
 0x3af   :  { %v6820_v9 = vpack.c.bf16 %v6783_v54, %v6782_v49  ;;  %v6966_v60 = vrot.slane %v6964_v26, 1 }
 0x3b0   :  { %v5756_v45 = vpop.permute.xlu0 %5755  ;;  %v6084_v22 = vld [vmem:[#allocation3 + $0x218] sm:$0xff] }
 0x3b1   :  { %6844 = vst.msk [vmem:[#allocation6 + $0x50] sm:$0xff] %vm36_vm3, %v6820_v9  ;;  %v6967_v35 = vsel %vm269_vm1, %v6962_v53, %v6966_v60  ;;  %6520 = vmatprep.mubr.bf16.mxu1 %v6084_v22 }
 0x3b2   :  { %5780 = vst.msk [vmem:[#allocation3 + $0x230] sm:$0xff] %vm4487_vm15, %v5756_v45  ;;  %7000 = vrot.lane.b32.xlu1 %v6967_v35, %s10297_s18  ;;  %7169 = vrot.lane.b32.xlu0 %v6967_v35, %s10297_s18  ;;  %v6434_v3 = vpop.f32.mrb[92].mxu1  ;;  %v13714_v45 = vld [vmem:[%s15060_s4] ss:$0 sm:$0xff] }
 0x3b3   :  { %v6435_v11 = vadd.f32 %v13363_v34, %v6434_v3  ;;  %v6436_v19 = vpop.f32.mrb[93].mxu1  ;;  %6521 = vmatmul.mubr.bf16.gmra.mrb[136].mxu1 %v6083_v0 }
 0x3b4   :  { %v6437_v52 = vpop.f32.mrb[94].mxu1  ;;  %v5917_v30 = vpop.permute.xlu0 %5916 }
 0x3b5   :  { %v6660_v16 = vadd.f32 %v13428_v24, %v6435_v11  ;;  %v6438_v4 = vadd.f32 %v13363_v34, %v6437_v52  ;;  %v6439_v47 = vpop.f32.mrb[95].mxu1  ;;  %5941 = vst.msk [vmem:[#allocation3 + $0x230] sm:$0xff] %vm4560_vm2, %v5917_v30  ;;  %v6970_v24 = vor.u32 %v6968_v36, %v6966_v60 }
 0x3b7   :  { %v6663_v50 = vadd.f32 %v13442_v48, %v6438_v4  ;;  %v6985_v27 = vpop.permute.xlu1 %6984  ;;  %v6784_v61 = vmax.f32 %v6660_v16, 0.0 }
 0x3b8   :  { %7018 = vst.msk [vmem:[#allocation4] sm:$0xff] %vm7017_vm0, %v6985_v27  ;;  %v6890_v13 = vld [vmem:[#allocation6 + $0x50] sm:$0xff] }
 0x3b9   :  { %v6785_v31 = vmax.f32 %v6663_v50, 0.0  ;;  %v6972_v46 = vshll.u32 %v6890_v13, 16  ;;  %6879 = vst.msk [vmem:[#allocation4 + $0xa0] sm:$0xff] %vm36_vm3, %v6890_v13  ;;  %7049 = vst.msk [vmem:[#allocation4 + $0x98] sm:$0xff] %vm36_vm3, %v6890_v13  ;;  %v7139_v32 = vshrl.u32 %v6890_v13, 16 }
 0x3bb   :  { %v6821_v34 = vpack.c.bf16 %v6785_v31, %v6784_v61  ;;  %v6974_v20 = vrot.slane %v6972_v46, 1 }
 0x3bc   :  { %v6087_v48 = vld [vmem:[#allocation3 + $0x230] sm:$0xff] }
 0x3bd   :  { %6845 = vst.msk [vmem:[#allocation6 + $0x58] sm:$0xff] %vm36_vm3, %v6821_v34  ;;  %v6975_v33 = vsel %vm269_vm1, %v6970_v24, %v6974_v20  ;;  %6528 = vmatprep.mubr.bf16.mxu1 %v6087_v48  ;;  %v7141_v56 = vor.u32 %v7139_v32, %v6974_v20 }
 0x3be   :  { %7002 = vrot.lane.b32.xlu1 %v6975_v33, %s10297_s18  ;;  %7171 = vrot.lane.b32.xlu0 %v6975_v33, %s10297_s18 }
 0x3bf   :  { %6529 = vmatmul.mubr.bf16.gmra.mrb[140].mxu1 %v6086_v7  ;;  %v7539_v63 = vld [vmem:[#allocation4] sm:$0xff] }
 0x3c2   :  { %v6987_v62 = vpop.permute.xlu1 %6986  ;;  %v7156_v59 = vpop.permute.xlu0 %7155 }
 0x3c3   :  { %7019 = vst.msk [vmem:[#allocation4 + $0x10] sm:$0xff] %vm7017_vm0, %v6987_v62  ;;  %7188 = vst.msk [vmem:[#allocation4 + $0x8] sm:$0xff] %vm7017_vm0, %v7156_v59  ;;  %v13692_v15 = vpop.f32.mrb[40].mxu0 }
 0x3c4   :  { %v7061_v57 = vld [vmem:[#allocation6 + $0x58] sm:$0xff]  ;;  %v13694_v21 = vpop.f32.mrb[41].mxu0 }
 0x3c5   :  { %v6891_v17 = vld [vmem:[#allocation6 + $0x58] sm:$0x1]  ;;  %v7143_v51 = vshll.u32 %v7061_v57, 16  ;;  %7050 = vst.msk [vmem:[#allocation4 + $0xa8] sm:$0xff] %vm36_vm3, %v7061_v57  ;;  %v13697_v18 = vpop.f32.mrb[42].mxu0  ;;  %v7147_v12 = vshrl.u32 %v7061_v57, 16 }
 0x3c6   :  { %v6980_v39 = vshll.u32 %v6891_v17, 16  ;;  %v13699_v2 = vpop.f32.mrb[43].mxu0 }
 0x3c7   :  { %v7145_v10 = vrot.slane %v7143_v51, 1 }
 0x3c8   :  { %v6982_v28 = vrot.slane %v6980_v39, 1 }
 0x3c9   :  { %v7146_v41 = vsel %vm269_vm1, %v7141_v56, %v7145_v10  ;;  %v7149_v23 = vor.u32 %v7147_v12, %v7145_v10 }
 0x3ca   :  { %v6983_v58 = vsel %vm269_vm1, %v7141_v56, %v6982_v28  ;;  %7173 = vrot.lane.b32.xlu0 %v7146_v41, %s10297_s18  ;;  %v7540_v55 = vld [vmem:[#allocation4 + $0x8] sm:$0xff]  ;;  %v7541_v26 = vld [vmem:[#allocation4 + $0x10] sm:$0xff] }
 0x3cb   :  { %7004 = vrot.lane.b32.xlu1 %v6983_v58, %s10297_s18  ;;  %7750 = vmatprep.mubr.bf16.mxu0 %v7540_v55  ;;  %v7154_v49 = vsel %vm269_vm1, %v7149_v23, %v7153_v14 }
 0x3cc   :  { %7751 = vmatmul.mubr.bf16.vlgmr.msra.gmra.mrb[56].mxu0 %v7539_v63 }
 0x3cd   :  { %v6989_v54 = vpop.permute.xlu1 %6988  ;;  %v7158_v38 = vpop.permute.xlu0 %7157 }
 0x3ce   :  { %7175 = vrot.lane.b32.xlu0 %v7154_v49, %s10297_s18  ;;  %7020 = vst.msk [vmem:[#allocation4 + $0x20] sm:$0xff] %vm7017_vm0, %v6989_v54  ;;  %7189 = vst.msk [vmem:[#allocation4 + $0x18] sm:$0xff] %vm7017_vm0, %v7158_v38 }
 0x3d5   :  { %v7542_v37 = vld [vmem:[#allocation4 + $0x18] sm:$0xff]  ;;  %v7543_v4 = vld [vmem:[#allocation4 + $0x20] sm:$0xff] }
 0x3d6   :  { %7758 = vmatprep.mubr.bf16.mxu0 %v7542_v37 }
 0x3d7   :  { %7759 = vmatmul.mubr.bf16.gmra.mrb[60].mxu0 %v7541_v26 }
 0x3d9   :  { %v6991_v9 = vpop.permute.xlu1 %6990 }
 0x3da   :  { %7021 = vst.msk [vmem:[#allocation4 + $0x30] sm:$0xff] %vm7017_vm0, %v6991_v9  ;;  %v7160_v53 = vpop.permute.xlu0 %7159 }
 0x3db   :  { %7190 = vst.msk [vmem:[#allocation4 + $0x28] sm:$0xff] %vm7017_vm0, %v7160_v53 }
 0x3e1   :  { %v6442_v60 = vpop.f32.mrb[96].mxu1 }
 0x3e2   :  { %v6443_v35 = vadd.f32 %v13714_v45, %v6442_v60  ;;  %v6444_v22 = vpop.f32.mrb[97].mxu1  ;;  %v7544_v52 = vld [vmem:[#allocation4 + $0x28] sm:$0xff] }
 0x3e3   :  { %v6445_v3 = vpop.f32.mrb[98].mxu1  ;;  %7766 = vmatprep.mubr.bf16.mxu0 %v7544_v52 }
 0x3e4   :  { %v6668_v11 = vadd.f32 %v13610_v29, %v6443_v35  ;;  %v6446_v19 = vadd.f32 %v13714_v45, %v6445_v3  ;;  %v6447_v0 = vpop.f32.mrb[99].mxu1  ;;  %7767 = vmatmul.mubr.bf16.gmra.mrb[64].mxu0 %v7543_v4 }
 0x3e5   :  { %v13719_v16 = vpop.f32.mrb[44].mxu0  ;;  %v6993_v50 = vpop.permute.xlu1 %6992 }
 0x3e6   :  { %v6671_v47 = vadd.f32 %v13617_v25, %v6446_v19  ;;  %v13722_v30 = vpop.f32.mrb[45].mxu0  ;;  %v6786_v13 = vmax.f32 %v6668_v11, 0.0  ;;  %7022 = vst.msk [vmem:[#allocation4 + $0x40] sm:$0xff] %vm7017_vm0, %v6993_v50  ;;  %v7162_v29 = vpop.permute.xlu0 %7161  ;;  %v7545_v25 = vld [vmem:[#allocation4 + $0x30] sm:$0xff] }
 0x3e7   :  { %v13724_v27 = vpop.f32.mrb[46].mxu0  ;;  %7191 = vst.msk [vmem:[#allocation4 + $0x38] sm:$0xff] %vm7017_vm0, %v7162_v29 }
 0x3e8   :  { %v6787_v61 = vmax.f32 %v6671_v47, 0.0  ;;  %v13727_v31 = vpop.f32.mrb[47].mxu0 }
 0x3ea   :  { %v6822_v36 = vpack.c.bf16 %v6787_v61, %v6786_v13 }
 0x3ec   :  { %6846 = vst.msk [vmem:[#allocation6 + $0x68] sm:$0xff] %vm36_vm3, %v6822_v36 }
 0x3ed   :  { %v7547_v59 = vld [vmem:[#allocation4 + $0x40] sm:$0xff] }
 0x3ee   :  { %v7546_v46 = vld [vmem:[#allocation4 + $0x38] sm:$0xff] }
 0x3ef   :  { %7774 = vmatprep.mubr.bf16.mxu0 %v7546_v46 }
 0x3f0   :  { %7775 = vmatmul.mubr.bf16.gmra.mrb[68].mxu0 %v7545_v25 }
 0x3f1   :  { %v6995_v34 = vpop.permute.xlu1 %6994  ;;  %v7164_v24 = vpop.permute.xlu0 %7163 }
 0x3f2   :  { %7023 = vst.msk [vmem:[#allocation4 + $0x50] sm:$0xff] %vm7017_vm0, %v6995_v34  ;;  %7192 = vst.msk [vmem:[#allocation4 + $0x48] sm:$0xff] %vm7017_vm0, %v7164_v24 }
 0x3f3   :  { %v7221_v20 = vld [vmem:[#allocation6 + $0x68] sm:$0xff] }
 0x3f4   :  { %7210 = vst.msk [vmem:[#allocation4 + $0xb0] sm:$0xff] %vm36_vm3, %v7221_v20  ;;  %v7234_v22 = vshrl.u32 %v7221_v20, 16 }
 0x3f9   :  { %v7548_v48 = vld [vmem:[#allocation4 + $0x48] sm:$0xff]  ;;  %v7549_v0 = vld [vmem:[#allocation4 + $0x50] sm:$0xff] }
 0x3fa   :  { %7782 = vmatprep.mubr.bf16.mxu0 %v7548_v48 }
 0x3fb   :  { %v6450_v33 = vpop.f32.mrb[100].mxu1  ;;  %7783 = vmatmul.mubr.bf16.gmra.mrb[72].mxu0 %v7547_v59 }
 0x3fc   :  { %v6451_v7 = vadd.f32 %v13714_v45, %v6450_v33  ;;  %v6452_v62 = vpop.f32.mrb[101].mxu1 }
 0x3fd   :  { %v6453_v1 = vpop.f32.mrb[102].mxu1 }
 0x3fe   :  { %v6676_v57 = vadd.f32 %v13607_v42, %v6451_v7  ;;  %v6454_v17 = vadd.f32 %v13714_v45, %v6453_v1  ;;  %v6455_v32 = vpop.f32.mrb[103].mxu1 }
 0x400   :  { %v6679_v51 = vadd.f32 %v13615_v43, %v6454_v17  ;;  %v6788_v39 = vmax.f32 %v6676_v57, 0.0  ;;  %v7236_v43 = vshll.u32 %v7221_v20, 16 }
 0x402   :  { %v6789_v5 = vmax.f32 %v6679_v51, 0.0  ;;  %v7238_v37 = vrot.slane %v7236_v43, 1 }
 0x403   :  { %v13738_v28 = vpop.f32.mrb[48].mxu0 }
 0x404   :  { %v6823_v56 = vpack.c.bf16 %v6789_v5, %v6788_v39  ;;  %v13742_v41 = vpop.f32.mrb[49].mxu0  ;;  %v7239_v52 = vor.u32 %v7238_v37, %v7234_v22 }
 0x405   :  { %v6997_v10 = vpop.permute.xlu1 %6996  ;;  %v7166_v12 = vpop.permute.xlu0 %7165 }
 0x406   :  { %6847 = vst.msk [vmem:[#allocation6 + $0x70] sm:$0xff] %vm36_vm3, %v6823_v56  ;;  %v13745_v42 = vpop.f32.mrb[50].mxu0 }
 0x407   :  { %7024 = vst.msk [vmem:[#allocation4 + $0x60] sm:$0xff] %vm7017_vm0, %v6997_v10  ;;  %7193 = vst.msk [vmem:[#allocation4 + $0x58] sm:$0xff] %vm7017_vm0, %v7166_v12  ;;  %v13747_v23 = vpop.f32.mrb[51].mxu0 }
 0x408   :  { %v6458_v58 = vpop.f32.mrb[104].mxu1 }
 0x409   :  { %v6459_v14 = vadd.f32 %v13714_v45, %v6458_v58  ;;  %v6460_v55 = vpop.f32.mrb[105].mxu1 }
 0x40a   :  { %v6461_v63 = vpop.f32.mrb[106].mxu1 }
 0x40b   :  { %v6684_v49 = vadd.f32 %v13656_v6, %v6459_v14  ;;  %v6462_v54 = vadd.f32 %v13714_v45, %v6461_v63  ;;  %v6463_v38 = vpop.f32.mrb[107].mxu1  ;;  %v13753_v9 = vpop.f32.mrb[52].mxu0 }
 0x40c   :  { %v13755_v60 = vpop.f32.mrb[53].mxu0 }
 0x40d   :  { %v6687_v26 = vadd.f32 %v13663_v8, %v6462_v54  ;;  %v7222_v53 = vld [vmem:[#allocation6 + $0x70] sm:$0xff]  ;;  %v6790_v11 = vmax.f32 %v6684_v49, 0.0  ;;  %v13759_v19 = vpop.f32.mrb[54].mxu0 }
 0x40e   :  { %v7550_v35 = vld [vmem:[#allocation4 + $0x58] sm:$0xff]  ;;  %v7241_v3 = vshll.u32 %v7222_v53, 16  ;;  %7211 = vst.msk [vmem:[#allocation4 + $0xc0] sm:$0xff] %vm36_vm3, %v7222_v53  ;;  %7380 = vst.msk [vmem:[#allocation4 + $0xb8] sm:$0xff] %vm36_vm3, %v7222_v53  ;;  %v13761_v8 = vpop.f32.mrb[55].mxu0  ;;  %v7551_v36 = vld [vmem:[#allocation4 + $0x60] sm:$0xff] }
 0x40f   :  { %v6791_v6 = vmax.f32 %v6687_v26, 0.0  ;;  %7790 = vmatprep.mubr.bf16.mxu0 %v7550_v35  ;;  %v7404_v34 = vshrl.u32 %v7222_v53, 16 }
 0x410   :  { %7791 = vmatmul.mubr.bf16.gmra.mrb[76].mxu0 %v7549_v0  ;;  %v7243_v4 = vrot.slane %v7241_v3, 1  ;;  %v6999_v50 = vpop.permute.xlu1 %6998  ;;  %v7168_v13 = vpop.permute.xlu0 %7167 }
 0x411   :  { %v6824_v47 = vpack.c.bf16 %v6791_v6, %v6790_v11  ;;  %7025 = vst.msk [vmem:[#allocation4 + $0x70] sm:$0xff] %vm7017_vm0, %v6999_v50  ;;  %7194 = vst.msk [vmem:[#allocation4 + $0x68] sm:$0xff] %vm7017_vm0, %v7168_v13 }
 0x412   :  { %v7244_v61 = vsel %vm269_vm1, %v7239_v52, %v7243_v4  ;;  %v7409_v7 = vor.u32 %v7404_v34, %v7243_v4 }
 0x413   :  { %6848 = vst.msk [vmem:[#allocation6 + $0x78] sm:$0xff] %vm36_vm3, %v6824_v47  ;;  %7325 = vrot.lane.b32.xlu1 %v7244_v61, %s10297_s18 }
 0x418   :  { %v7552_v29 = vld [vmem:[#allocation4 + $0x68] sm:$0xff]  ;;  %v7553_v38 = vld [vmem:[#allocation4 + $0x70] sm:$0xff] }
 0x419   :  { %7798 = vmatprep.mubr.bf16.mxu0 %v7552_v29 }
 0x41a   :  { %v7392_v46 = vld [vmem:[#allocation6 + $0x78] sm:$0xff]  ;;  %v6466_v25 = vpop.f32.mrb[108].mxu1  ;;  %7799 = vmatmul.mubr.bf16.gmra.mrb[80].mxu0 %v7551_v36 }
 0x41b   :  { %v7411_v24 = vshll.u32 %v7392_v46, 16  ;;  %7212 = vst.msk [vmem:[#allocation4 + $0xd0] sm:$0xff] %vm36_vm3, %v7392_v46  ;;  %7381 = vst.msk [vmem:[#allocation4 + $0xc8] sm:$0xff] %vm36_vm3, %v7392_v46  ;;  %v6467_v20 = vadd.f32 %v13714_v45, %v6466_v25  ;;  %v6468_v33 = vpop.f32.mrb[109].mxu1  ;;  %v7415_v37 = vshrl.u32 %v7392_v46, 16 }
 0x41c   :  { %v6469_v48 = vpop.f32.mrb[110].mxu1 }
 0x41d   :  { %v7413_v62 = vrot.slane %v7411_v24, 1  ;;  %v6692_v59 = vadd.f32 %v13653_v40, %v6467_v20  ;;  %v6470_v1 = vadd.f32 %v13714_v45, %v6469_v48  ;;  %v6471_v57 = vpop.f32.mrb[111].mxu1 }
 0x41f   :  { %v7414_v17 = vsel %vm269_vm1, %v7409_v7, %v7413_v62  ;;  %v6695_v32 = vadd.f32 %v13661_v44, %v6470_v1  ;;  %v6792_v51 = vmax.f32 %v6692_v59, 0.0  ;;  %v7417_v22 = vor.u32 %v7415_v37, %v7413_v62 }
 0x420   :  { %7495 = vrot.lane.b32.xlu0 %v7414_v17, %s10297_s18  ;;  %7327 = vrot.lane.b32.xlu1 %v7414_v17, %s10297_s18 }
 0x421   :  { %v6793_v39 = vmax.f32 %v6695_v32, 0.0 }
 0x423   :  { %v6825_v5 = vpack.c.bf16 %v6793_v39, %v6792_v51 }
 0x424   :  { %v7001_v56 = vpop.permute.xlu1 %7000  ;;  %v7170_v10 = vpop.permute.xlu0 %7169 }
 0x425   :  { %6849 = vst.msk [vmem:[#allocation6 + $0x80] sm:$0xff] %vm36_vm3, %v6825_v5 }
 0x426   :  { %7026 = vst.msk [vmem:[#allocation4 + $0x80] sm:$0xff] %vm7017_vm0, %v7001_v56  ;;  %7195 = vst.msk [vmem:[#allocation4 + $0x78] sm:$0xff] %vm7017_vm0, %v7170_v10  ;;  %v6474_v40 = vpop.f32.mrb[112].mxu1 }
 0x427   :  { %v6475_v12 = vadd.f32 %v13714_v45, %v6474_v40  ;;  %v6476_v58 = vpop.f32.mrb[113].mxu1 }
 0x428   :  { %v6477_v44 = vpop.f32.mrb[114].mxu1 }
 0x429   :  { %v6700_v43 = vadd.f32 %v13694_v21, %v6475_v12  ;;  %v6478_v14 = vadd.f32 %v13714_v45, %v6477_v44  ;;  %v6479_v55 = vpop.f32.mrb[115].mxu1 }
 0x42b   :  { %v6703_v63 = vadd.f32 %v13699_v2, %v6478_v14  ;;  %v6794_v53 = vmax.f32 %v6700_v43, 0.0 }
 0x42c   :  { %v7393_v54 = vld [vmem:[#allocation6 + $0x80] sm:$0xff] }
 0x42d   :  { %v7554_v49 = vld [vmem:[#allocation4 + $0x78] sm:$0xff]  ;;  %v7419_v26 = vshll.u32 %v7393_v54, 16  ;;  %7213 = vst.msk [vmem:[#allocation4 + $0xe0] sm:$0xff] %vm36_vm3, %v7393_v54  ;;  %7382 = vst.msk [vmem:[#allocation4 + $0xd8] sm:$0xff] %vm36_vm3, %v7393_v54  ;;  %v6795_v35 = vmax.f32 %v6703_v63, 0.0  ;;  %v7555_v52 = vld [vmem:[#allocation4 + $0x80] sm:$0xff] }
 0x42e   :  { %7806 = vmatprep.mubr.bf16.mxu0 %v7554_v49  ;;  %v7423_v47 = vshrl.u32 %v7393_v54, 16 }
 0x42f   :  { %7807 = vmatmul.mubr.bf16.gmra.mrb[84].mxu0 %v7553_v38  ;;  %v7421_v21 = vrot.slane %v7419_v26, 1  ;;  %v6826_v3 = vpack.c.bf16 %v6795_v35, %v6794_v53 }
 0x430   :  { %v7003_v11 = vpop.permute.xlu1 %7002  ;;  %v7172_v6 = vpop.permute.xlu0 %7171 }
 0x431   :  { %7027 = vst.msk [vmem:[#allocation4 + $0x90] sm:$0xff] %vm7017_vm0, %v7003_v11  ;;  %7196 = vst.msk [vmem:[#allocation4 + $0x88] sm:$0xff] %vm7017_vm0, %v7172_v6  ;;  %v7422_v2 = vsel %vm269_vm1, %v7417_v22, %v7421_v21  ;;  %v7425_v46 = vor.u32 %v7423_v47, %v7421_v21 }
 0x432   :  { %6850 = vst.msk [vmem:[#allocation6 + $0x88] sm:$0xff] %vm36_vm3, %v6826_v3  ;;  %7497 = vrot.lane.b32.xlu0 %v7422_v2, %s10297_s18  ;;  %7329 = vrot.lane.b32.xlu1 %v7422_v2, %s10297_s18 }
 0x438   :  { %v7556_v0 = vld [vmem:[#allocation4 + $0x88] sm:$0xff]  ;;  %v7557_v32 = vld [vmem:[#allocation4 + $0x90] sm:$0xff] }
 0x439   :  { %7814 = vmatprep.mubr.bf16.mxu0 %v7556_v0  ;;  %v7394_v4 = vld [vmem:[#allocation6 + $0x88] sm:$0xff] }
 0x43a   :  { %7815 = vmatmul.mubr.bf16.gmra.mrb[88].mxu0 %v7555_v52  ;;  %v7427_v50 = vshll.u32 %v7394_v4, 16  ;;  %7214 = vst.msk [vmem:[#allocation4 + $0xf0] sm:$0xff] %vm36_vm3, %v7394_v4  ;;  %7383 = vst.msk [vmem:[#allocation4 + $0xe8] sm:$0xff] %vm36_vm3, %v7394_v4  ;;  %v6482_v13 = vpop.f32.mrb[116].mxu1  ;;  %v7431_v63 = vshrl.u32 %v7394_v4, 16 }
 0x43b   :  { %v6483_v61 = vadd.f32 %v13714_v45, %v6482_v13  ;;  %v6484_v29 = vpop.f32.mrb[117].mxu1 }
 0x43c   :  { %v7429_v25 = vrot.slane %v7427_v50, 1  ;;  %v6485_v34 = vpop.f32.mrb[118].mxu1  ;;  %v7174_v24 = vpop.permute.xlu0 %7173 }
 0x43d   :  { %v7005_v36 = vpop.permute.xlu1 %7004  ;;  %v6708_v20 = vadd.f32 %v13692_v15, %v6483_v61  ;;  %v6486_v33 = vadd.f32 %v13714_v45, %v6485_v34  ;;  %7197 = vst.msk [vmem:[#allocation4 + $0x98] sm:$0xff] %vm7017_vm0, %v7174_v24  ;;  %v6487_v48 = vpop.f32.mrb[119].mxu1 }
 0x43e   :  { %7028 = vst.msk [vmem:[#allocation4 + $0xa0] sm:$0xff] %vm7017_vm0, %v7005_v36  ;;  %v7430_v7 = vsel %vm269_vm1, %v7425_v46, %v7429_v25  ;;  %v7433_v38 = vor.u32 %v7431_v63, %v7429_v25 }
 0x43f   :  { %7499 = vrot.lane.b32.xlu0 %v7430_v7, %s10297_s18  ;;  %7331 = vrot.lane.b32.xlu1 %v7430_v7, %s10297_s18  ;;  %v6711_v62 = vadd.f32 %v13697_v18, %v6486_v33  ;;  %v6796_v1 = vmax.f32 %v6708_v20, 0.0 }
 0x440   :  { %v7176_v59 = vpop.permute.xlu0 %7175 }
 0x441   :  { %v6797_v57 = vmax.f32 %v6711_v62, 0.0  ;;  %7198 = vst.msk [vmem:[#allocation4 + $0xa8] sm:$0xff] %vm7017_vm0, %v7176_v59 }
 0x443   :  { %v6827_v17 = vpack.c.bf16 %v6797_v57, %v6796_v1 }
 0x444   :  { %v7558_v15 = vld [vmem:[#allocation4 + $0x98] sm:$0xff] }
 0x445   :  { %6851 = vst.msk [vmem:[#allocation6 + $0x90] sm:$0xff] %vm36_vm3, %v6827_v17  ;;  %7822 = vmatprep.mubr.bf16.mxu0 %v7558_v15  ;;  %v7559_v55 = vld [vmem:[#allocation4 + $0xa0] sm:$0xff] }
 0x446   :  { %v6490_v51 = vpop.f32.mrb[120].mxu1  ;;  %7823 = vmatmul.mubr.bf16.gmra.mrb[92].mxu0 %v7557_v32 }
 0x447   :  { %v6491_v39 = vadd.f32 %v13714_v45, %v6490_v51  ;;  %v6492_v5 = vpop.f32.mrb[121].mxu1 }
 0x448   :  { %v6493_v56 = vpop.f32.mrb[122].mxu1  ;;  %v7560_v10 = vld [vmem:[#allocation4 + $0xa8] sm:$0xff] }
 0x449   :  { %v6716_v18 = vadd.f32 %v13722_v30, %v6491_v39  ;;  %v6494_v40 = vadd.f32 %v13714_v45, %v6493_v56  ;;  %v6495_v12 = vpop.f32.mrb[123].mxu1  ;;  %7830 = vmatprep.mubr.bf16.mxu0 %v7560_v10 }
 0x44b   :  { %v6719_v58 = vadd.f32 %v13727_v31, %v6494_v40  ;;  %v6798_v43 = vmax.f32 %v6716_v18, 0.0 }
 0x44c   :  { %v7395_v44 = vld [vmem:[#allocation6 + $0x90] sm:$0xff] }
 0x44d   :  { %v6799_v14 = vmax.f32 %v6719_v58, 0.0  ;;  %v7435_v49 = vshll.u32 %v7395_v44, 16  ;;  %7215 = vst.msk [vmem:[#allocation4 + $0x100] sm:$0xff] %vm36_vm3, %v7395_v44  ;;  %7384 = vst.msk [vmem:[#allocation4 + $0xf8] sm:$0xff] %vm36_vm3, %v7395_v44  ;;  %v7439_v26 = vshrl.u32 %v7395_v44, 16 }
 0x44e   :  { %7831 = vmatmul.mubr.bf16.gmra.mrb[96].mxu0 %v7559_v55 }
 0x44f   :  { %v6828_v54 = vpack.c.bf16 %v6799_v14, %v6798_v43  ;;  %v7437_v30 = vrot.slane %v7435_v49, 1 }
 0x451   :  { %6852 = vst.msk [vmem:[#allocation6 + $0x98] sm:$0xff] %vm36_vm3, %v6828_v54  ;;  %v7438_v37 = vsel %vm269_vm1, %v7433_v38, %v7437_v30  ;;  %v7441_v3 = vor.u32 %v7439_v26, %v7437_v30 }
 0x452   :  { %7501 = vrot.lane.b32.xlu0 %v7438_v37, %s10297_s18  ;;  %7333 = vrot.lane.b32.xlu1 %v7438_v37, %s10297_s18 }
 0x458   :  { %v7396_v31 = vld [vmem:[#allocation6 + $0x98] sm:$0xff] }
 0x459   :  { %v7443_v53 = vshll.u32 %v7396_v31, 16  ;;  %7216 = vst.msk [vmem:[#allocation4 + $0x110] sm:$0xff] %vm36_vm3, %v7396_v31  ;;  %7385 = vst.msk [vmem:[#allocation4 + $0x108] sm:$0xff] %vm36_vm3, %v7396_v31  ;;  %v7447_v7 = vshrl.u32 %v7396_v31, 16 }
 0x45b   :  { %v6498_v35 = vpop.f32.mrb[124].mxu1  ;;  %v7445_v11 = vrot.slane %v7443_v53, 1 }
 0x45c   :  { %v6499_v22 = vadd.f32 %v13714_v45, %v6498_v35  ;;  %v6500_v21 = vpop.f32.mrb[125].mxu1 }
 0x45d   :  { %v6501_v6 = vpop.f32.mrb[126].mxu1  ;;  %v7446_v4 = vsel %vm269_vm1, %v7441_v3, %v7445_v11  ;;  %v7449_v1 = vor.u32 %v7447_v7, %v7445_v11 }
 0x45e   :  { %v6724_v2 = vadd.f32 %v13719_v16, %v6499_v22  ;;  %v6502_v0 = vadd.f32 %v13714_v45, %v6501_v6  ;;  %v6503_v52 = vpop.f32.mrb[127].mxu1  ;;  %7503 = vrot.lane.b32.xlu0 %v7446_v4, %s10297_s18  ;;  %7335 = vrot.lane.b32.xlu1 %v7446_v4, %s10297_s18 }
 0x460   :  { %v6727_v47 = vadd.f32 %v13724_v27, %v6502_v0  ;;  %v6800_v50 = vmax.f32 %v6724_v2, 0.0 }
 0x462   :  { %v6801_v13 = vmax.f32 %v6727_v47, 0.0 }
 0x464   :  { %v6829_v61 = vpack.c.bf16 %v6801_v13, %v6800_v50 }
 0x466   :  { %6853 = vst.msk [vmem:[#allocation6 + $0xa0] sm:$0xff] %vm36_vm3, %v6829_v61 }
 0x468   :  { %v6506_v29 = vpop.f32.mrb[128].mxu1 }
 0x469   :  { %v6507_v36 = vadd.f32 %v13714_v45, %v6506_v29  ;;  %v6508_v16 = vpop.f32.mrb[129].mxu1 }
 0x46a   :  { %v6509_v46 = vpop.f32.mrb[130].mxu1 }
 0x46b   :  { %v6732_v25 = vadd.f32 %v13742_v41, %v6507_v36  ;;  %v6510_v34 = vadd.f32 %v13714_v45, %v6509_v46  ;;  %v6511_v24 = vpop.f32.mrb[131].mxu1 }
 0x46d   :  { %v6735_v20 = vadd.f32 %v13747_v23, %v6510_v34  ;;  %v7397_v33 = vld [vmem:[#allocation6 + $0xa0] sm:$0xff]  ;;  %v6802_v48 = vmax.f32 %v6732_v25, 0.0 }
 0x46e   :  { %v7451_v62 = vshll.u32 %v7397_v33, 16  ;;  %7217 = vst.msk [vmem:[#allocation4 + $0x120] sm:$0xff] %vm36_vm3, %v7397_v33  ;;  %7386 = vst.msk [vmem:[#allocation4 + $0x118] sm:$0xff] %vm36_vm3, %v7397_v33  ;;  %v7455_v15 = vshrl.u32 %v7397_v33, 16 }
 0x46f   :  { %v6803_v27 = vmax.f32 %v6735_v20, 0.0 }
 0x470   :  { %v7453_v57 = vrot.slane %v7451_v62, 1 }
 0x471   :  { %v6830_v59 = vpack.c.bf16 %v6803_v27, %v6802_v48 }
 0x472   :  { %v7454_v41 = vsel %vm269_vm1, %v7449_v1, %v7453_v57  ;;  %v7457_v56 = vor.u32 %v7455_v15, %v7453_v57 }
 0x473   :  { %6854 = vst.msk [vmem:[#allocation6 + $0xa8] sm:$0xff] %vm36_vm3, %v6830_v59  ;;  %7505 = vrot.lane.b32.xlu0 %v7454_v41, %s10297_s18  ;;  %7337 = vrot.lane.b32.xlu1 %v7454_v41, %s10297_s18  ;;  %v7402_v59 = vld [vmem:[#allocation6 + $0xc8] sm:$0x1] }
 0x479   :  { %v6514_v17 = vpop.f32.mrb[132].mxu1 }
 0x47a   :  { %v7398_v23 = vld [vmem:[#allocation6 + $0xa8] sm:$0xff]  ;;  %v6515_v51 = vadd.f32 %v13714_v45, %v6514_v17  ;;  %v6516_v39 = vpop.f32.mrb[133].mxu1 }
 0x47b   :  { %v7459_v32 = vshll.u32 %v7398_v23, 16  ;;  %7218 = vst.msk [vmem:[#allocation4 + $0x130] sm:$0xff] %vm36_vm3, %v7398_v23  ;;  %7387 = vst.msk [vmem:[#allocation4 + $0x128] sm:$0xff] %vm36_vm3, %v7398_v23  ;;  %v6517_v5 = vpop.f32.mrb[134].mxu1  ;;  %v7463_v53 = vshrl.u32 %v7398_v23, 16 }
 0x47c   :  { %v6740_v18 = vadd.f32 %v13738_v28, %v6515_v51  ;;  %v6518_v40 = vadd.f32 %v13714_v45, %v6517_v5  ;;  %v6519_v12 = vpop.f32.mrb[135].mxu1  ;;  %v7491_v51 = vshll.u32 %v7402_v59, 16 }
 0x47d   :  { %v7461_v10 = vrot.slane %v7459_v32, 1 }
 0x47e   :  { %v6743_v44 = vadd.f32 %v13745_v42, %v6518_v40  ;;  %v6804_v43 = vmax.f32 %v6740_v18, 0.0 }
 0x47f   :  { %v7462_v58 = vsel %vm269_vm1, %v7457_v56, %v7461_v10  ;;  %v7465_v3 = vor.u32 %v7463_v53, %v7461_v10 }
 0x480   :  { %7507 = vrot.lane.b32.xlu0 %v7462_v58, %s10297_s18  ;;  %7339 = vrot.lane.b32.xlu1 %v7462_v58, %s10297_s18  ;;  %v6805_v14 = vmax.f32 %v6743_v44, 0.0  ;;  %v7493_v58 = vrot.slane %v7491_v51, 1 }
 0x482   :  { %v6831_v55 = vpack.c.bf16 %v6805_v14, %v6804_v43 }
 0x484   :  { %6855 = vst.msk [vmem:[#allocation6 + $0xb0] sm:$0xff] %vm36_vm3, %v6831_v55 }
 0x485   :  { %v7326_v63 = vpop.permute.xlu1 %7325 }
 0x486   :  { %7358 = vst.msk [vmem:[#allocation4 + $0xb0] sm:$0xff] %vm7017_vm0, %v7326_v63  ;;  %v6522_v28 = vpop.f32.mrb[136].mxu1 }
 0x487   :  { %v6523_v49 = vadd.f32 %v13714_v45, %v6522_v28  ;;  %v6524_v54 = vpop.f32.mrb[137].mxu1 }
 0x488   :  { %v6525_v38 = vpop.f32.mrb[138].mxu1 }
 0x489   :  { %v6748_v30 = vadd.f32 %v13755_v60, %v6523_v49  ;;  %v6526_v42 = vadd.f32 %v13714_v45, %v6525_v38  ;;  %v6527_v37 = vpop.f32.mrb[139].mxu1 }
 0x48b   :  { %v6751_v31 = vadd.f32 %v13761_v8, %v6526_v42  ;;  %v7399_v26 = vld [vmem:[#allocation6 + $0xb0] sm:$0xff]  ;;  %v6806_v22 = vmax.f32 %v6748_v30, 0.0 }
 0x48c   :  { %v7467_v35 = vshll.u32 %v7399_v26, 16  ;;  %7219 = vst.msk [vmem:[#allocation4 + $0x140] sm:$0xff] %vm36_vm3, %v7399_v26  ;;  %7388 = vst.msk [vmem:[#allocation4 + $0x138] sm:$0xff] %vm36_vm3, %v7399_v26  ;;  %v7471_v24 = vshrl.u32 %v7399_v26, 16 }
 0x48d   :  { %v6807_v21 = vmax.f32 %v6751_v31, 0.0  ;;  %v7561_v34 = vld [vmem:[#allocation4 + $0xb0] sm:$0xff] }
 0x48e   :  { %v7469_v11 = vrot.slane %v7467_v35, 1  ;;  %v13888_v35 = vld [vmem:[%s15062_s6] ss:$0 sm:$0xff] }
 0x48f   :  { %v6832_v6 = vpack.c.bf16 %v6807_v21, %v6806_v22  ;;  %v13894_v21 = vld [vmem:[%s15063_s7] sm:$0xff]  }
 0x490   :  { %v7470_v60 = vsel %vm269_vm1, %v7465_v3, %v7469_v11  ;;  %v13899_v3 = vld [vmem:[%s15063_s7 + $0x58] sm:$0xff]  }
 0x491   :  { %6856 = vst.msk [vmem:[#allocation6 + $0xb8] sm:$0xff] %vm36_vm3, %v6832_v6  ;;  %7509 = vrot.lane.b32.xlu0 %v7470_v60, %s10297_s18  ;;  %7341 = vrot.lane.b32.xlu1 %v7470_v60, %s10297_s18 }
 0x492   :  { %v7328_v2 = vpop.permute.xlu1 %7327  ;;  %v7496_v0 = vpop.permute.xlu0 %7495 }
 0x493   :  { %7359 = vst.msk [vmem:[#allocation4 + $0xc0] sm:$0xff] %vm7017_vm0, %v7328_v2  ;;  %7528 = vst.msk [vmem:[#allocation4 + $0xb8] sm:$0xff] %vm7017_vm0, %v7496_v0  ;;  %v6530_v8 = vpop.f32.mrb[140].mxu1 }
 0x494   :  { %v6531_v52 = vadd.f32 %v13714_v45, %v6530_v8  ;;  %v6532_v4 = vpop.f32.mrb[141].mxu1  ;;  %v15145_v8 = vunpack.c.l.bf16 %v13894_v21 }
 0x495   :  { %v6533_v47 = vpop.f32.mrb[142].mxu1 }
 0x496   :  { %v6756_v50 = vadd.f32 %v13753_v9, %v6531_v52  ;;  %v6534_v13 = vadd.f32 %v13714_v45, %v6533_v47  ;;  %v6535_v61 = vpop.f32.mrb[143].mxu1  ;;  %v7473_v9 = vor.u32 %v7471_v24, %v7469_v11  ;;  %v15139_v47 = vunpack.c.l.bf16 %v13899_v3 }
 0x498   :  { %v6759_v29 = vadd.f32 %v13759_v19, %v6534_v13  ;;  %v7400_v16 = vld [vmem:[#allocation6 + $0xb8] sm:$0xff]  ;;  %v6808_v46 = vmax.f32 %v6756_v50, 0.0  ;;  %v13913_v13 = vld [vmem:[%s15063_s7 + $0xb0] sm:$0xff]  }
 0x499   :  { %v7475_v20 = vshll.u32 %v7400_v16, 16  ;;  %7220 = vst.msk [vmem:[#allocation4 + $0x150] sm:$0xff] %vm36_vm3, %v7400_v16  ;;  %7389 = vst.msk [vmem:[#allocation4 + $0x148] sm:$0xff] %vm36_vm3, %v7400_v16  ;;  %v7479_v17 = vshrl.u32 %v7400_v16, 16 }
 0x49a   :  { %v7562_v36 = vld [vmem:[#allocation4 + $0xb8] sm:$0xff]  ;;  %v6809_v25 = vmax.f32 %v6759_v29, 0.0  ;;  %v7563_v63 = vld [vmem:[#allocation4 + $0xc0] sm:$0xff] }
 0x49b   :  { %7838 = vmatprep.mubr.bf16.mxu0 %v7562_v36  ;;  %v7477_v48 = vrot.slane %v7475_v20, 1  ;;  %v15138_v36 = vunpack.c.h.bf16 %v13899_v3  ;;  %v15134_v20 = vunpack.c.h.bf16 %v13913_v13 }
 0x49c   :  { %7839 = vmatmul.mubr.bf16.gmra.mrb[100].mxu0 %v7561_v34  ;;  %v6833_v33 = vpack.c.bf16 %v6809_v25, %v6808_v46  ;;  %v15136_v46 = vunpack.c.l.bf16 %v13913_v13  ;;  %v13924_v25 = vld [vmem:[%s15063_s7 + $0x108] sm:$0xff]  }
 0x49d   :  { %v7478_v45 = vsel %vm269_vm1, %v7473_v9, %v7477_v48  ;;  %v7481_v39 = vor.u32 %v7479_v17, %v7477_v48  ;;  %v13944_v17 = vld [vmem:[%s15063_s7 + $0x8] sm:$0xff]  }
 0x49e   :  { %6857 = vst.msk [vmem:[#allocation6 + $0xc0] sm:$0xff] %vm36_vm3, %v6833_v33  ;;  %7511 = vrot.lane.b32.xlu0 %v7478_v45, %s10297_s18  ;;  %7343 = vrot.lane.b32.xlu1 %v7478_v45, %s10297_s18  ;;  %v15142_v45 = vunpack.c.l.bf16 %v13924_v25 }
 0x49f   :  { %v7752_v19 = vpop.f32.mrb[56].mxu0 }
 0x4a0   :  { %v7754_v27 = vpop.f32.mrb[57].mxu0  ;;  %v7753_v22 = vadd.f32 %v13888_v35, %v7752_v19 }
 0x4a1   :  { %v7755_v7 = vpop.f32.mrb[58].mxu0 }
 0x4a2   :  { %v7757_v62 = vpop.f32.mrb[59].mxu0  ;;  %v7927_v6 = vmax.f32 %v7753_v22, 0.0  ;;  %v7756_v2 = vadd.f32 %v13888_v35, %v7755_v7  ;;  %v13985_v22 = vld [vmem:[%s15063_s7 + $0x110] sm:$0xff]  }
 0x4a4   :  { %v7330_v1 = vpop.permute.xlu1 %7329  ;;  %v7498_v57 = vpop.permute.xlu0 %7497  ;;  %v7928_v61 = vmax.f32 %v7756_v2, 0.0  ;;  %v8015_v29 = vmul.f32 %v15145_v8, %v7927_v6  ;;  %v8148_v16 = vmul.f32 %v15139_v47, %v7927_v6  ;;  %v8281_v48 = vmul.f32 %v15136_v46, %v7927_v6 }
 0x4a5   :  { %7360 = vst.msk [vmem:[#allocation4 + $0xd0] sm:$0xff] %vm7017_vm0, %v7330_v1  ;;  %7529 = vst.msk [vmem:[#allocation4 + $0xc8] sm:$0xff] %vm7017_vm0, %v7498_v57  ;;  %v7401_v41 = vld [vmem:[#allocation6 + $0xc0] sm:$0xff]  ;;  %v8414_v51 = vmul.f32 %v15142_v45, %v7927_v6 }
 0x4a6   :  { %v7232_v23 = vld [vmem:[#allocation6 + $0xc0] sm:$0x1]  ;;  %v7483_v15 = vshll.u32 %v7401_v41, 16  ;;  %7390 = vst.msk [vmem:[#allocation4 + $0x158] sm:$0xff] %vm36_vm3, %v7401_v41  ;;  %v7487_v10 = vshrl.u32 %v7401_v41, 16  ;;  %v8037_v34 = vsel %vm36_vm3, %v8015_v29, 0.0  ;;  %v8149_v24 = vmul.f32 %v15138_v36, %v7928_v61 }
 0x4a7   :  { %v7321_v32 = vshll.u32 %v7232_v23, 16  ;;  %v8170_v9 = vsel %vm36_vm3, %v8148_v16, 0.0  ;;  %v8282_v41 = vmul.f32 %v15134_v20, %v7928_v61  ;;  %v15125_v23 = vunpack.c.h.bf16 %v13924_v25  ;;  %v14000_v29 = vld [vmem:[%s15063_s7 + $0x10] sm:$0xff]  }
 0x4a8   :  { %v7485_v5 = vrot.slane %v7483_v15, 1  ;;  %v8173_v57 = vsel %vm36_vm3, %v8149_v24, 0.0 }
 0x4a9   :  { %v7323_v56 = vrot.slane %v7321_v32, 1  ;;  %v8303_v32 = vsel %vm36_vm3, %v8281_v48, 0.0 }
 0x4aa   :  { %v7486_v18 = vsel %vm269_vm1, %v7481_v39, %v7485_v5  ;;  %v7489_v12 = vor.u32 %v7487_v10, %v7485_v5  ;;  %v7760_v44 = vpop.f32.mrb[60].mxu0  ;;  %v15130_v10 = vunpack.c.l.bf16 %v13944_v17 }
 0x4ab   :  { %v7324_v40 = vsel %vm269_vm1, %v7481_v39, %v7323_v56  ;;  %7513 = vrot.lane.b32.xlu0 %v7486_v18, %s10297_s18  ;;  %v7762_v43 = vpop.f32.mrb[61].mxu0  ;;  %v7761_v62 = vadd.f32 %v13888_v35, %v7760_v44  ;;  %v15133_v39 = vunpack.c.h.bf16 %v13894_v21  ;;  %v13957_v56 = vld [vmem:[%s15063_s7 + $0x60] sm:$0xff]   ;;  %v8436_v44 = vsel %vm36_vm3, %v8414_v51, 0.0 }
 0x4ac   :  { %7345 = vrot.lane.b32.xlu1 %v7324_v40, %s10297_s18  ;;  %v7564_v14 = vld [vmem:[#allocation4 + $0xc8] sm:$0xff]  ;;  %v13875_v55 = vpop.f32.mrb[62].mxu0  ;;  %v7494_v28 = vsel %vm269_vm1, %v7489_v12, %v7493_v58  ;;  %v7565_v26 = vld [vmem:[#allocation4 + $0xd0] sm:$0xff]  ;;  %v8306_v12 = vsel %vm36_vm3, %v8282_v41, 0.0  ;;  %v8415_v58 = vmul.f32 %v15125_v23, %v7928_v61  ;;  %v14452_v23 = vld [vmem:[%s15063_s7 + $0xa0] sm:$0xff]   ;;  %vm8502_vm1 = vcmask 7168  }
 0x4ad   :  { %7846 = vmatprep.mubr.bf16.mxu0 %v7564_v14  ;;  %v7765_v49 = vpop.f32.mrb[63].mxu0  ;;  %v7929_v18 = vmax.f32 %v7761_v62, 0.0  ;;  %v7764_v40 = vadd.f32 %v13888_v35, %v13875_v55  ;;  %v8016_v43 = vmul.f32 %v15133_v39, %v7928_v61  ;;  %v15115_v14 = vunpack.c.l.bf16 %v13957_v56  ;;  %v14017_v62 = vld [vmem:[%s15063_s7 + $0x68] sm:$0xff]  }
 0x4ae   :  { %7847 = vmatmul.mubr.bf16.gmra.mrb[104].mxu0 %v7563_v63  ;;  %v13972_v63 = vld [vmem:[%s15063_s7 + $0xb8] sm:$0xff]   ;;  %v15113_v61 = vunpack.c.l.bf16 %v13985_v22 }
 0x4af   :  { %7515 = vrot.lane.b32.xlu0 %v7494_v28, %s10297_s18  ;;  %v7930_v55 = vmax.f32 %v7764_v40, 0.0  ;;  %v8439_v28 = vsel %vm36_vm3, %v8415_v58, 0.0  ;;  %v14037_v58 = vld [vmem:[%s15063_s7 + $0xc0] sm:$0xff]  }
 0x4b0   :  { %v8416_v48 = vmul.f32 %v15113_v61, %v7929_v18 }
 0x4b1   :  { %v7332_v54 = vpop.permute.xlu1 %7331  ;;  %v7500_v38 = vpop.permute.xlu0 %7499 }
 0x4b2   :  { %7361 = vst.msk [vmem:[#allocation4 + $0xe0] sm:$0xff] %vm7017_vm0, %v7332_v54  ;;  %7530 = vst.msk [vmem:[#allocation4 + $0xd8] sm:$0xff] %vm7017_vm0, %v7500_v38  ;;  %v8017_v54 = vmul.f32 %v15130_v10, %v7929_v18  ;;  %v15101_v38 = vunpack.c.h.bf16 %v13944_v17  ;;  %v8442_v40 = vsel %vm36_vm3, %v8416_v48, 0.0 }
 0x4b4   :  { %v8043_v6 = vsel %vm36_vm3, %v8017_v54, 0.0  ;;  %v8018_v2 = vmul.f32 %v15101_v38, %v7930_v55 }
 0x4b6   :  { %v8046_v16 = vsel %vm36_vm3, %v8018_v2, 0.0 }
 0x4b7   :  { %v13881_v30 = vpop.f32.mrb[64].mxu0 }
 0x4b8   :  { %v7770_v42 = vpop.f32.mrb[65].mxu0 }
 0x4b9   :  { %v7566_v37 = vld [vmem:[#allocation4 + $0xd8] sm:$0xff]  ;;  %v13883_v31 = vpop.f32.mrb[66].mxu0  ;;  %v7567_v19 = vld [vmem:[#allocation4 + $0xe0] sm:$0xff]  ;;  %v8040_v42 = vsel %vm36_vm3, %v8016_v43, 0.0 }
 0x4ba   :  { %7854 = vmatprep.mubr.bf16.mxu0 %v7566_v37  ;;  %v7773_v53 = vpop.f32.mrb[67].mxu0 }
 0x4bb   :  { %7855 = vmatmul.mubr.bf16.gmra.mrb[108].mxu0 %v7565_v26  ;;  %v8150_v26 = vmul.f32 %v15115_v14, %v7929_v18  ;;  %v15123_v53 = vunpack.c.l.bf16 %v13972_v63  ;;  %v14396_v14 = vld [vmem:[%s15063_s7 + $0x98] sm:$0xff]  }
 0x4c3   :  { %v13901_v11 = vpop.f32.mrb[68].mxu0 }
 0x4c4   :  { %v7334_v0 = vpop.permute.xlu1 %7333  ;;  %v7778_v60 = vpop.f32.mrb[69].mxu0 }
 0x4c5   :  { %7362 = vst.msk [vmem:[#allocation4 + $0xf0] sm:$0xff] %vm7017_vm0, %v7334_v0  ;;  %v7502_v52 = vpop.permute.xlu0 %7501  ;;  %v13906_v4 = vpop.f32.mrb[70].mxu0  ;;  %v15096_v0 = vunpack.c.h.bf16 %v13957_v56  ;;  %v7769_v60 = vadd.f32 %v13888_v35, %v13881_v30  ;;  %v15093_v30 = vunpack.c.h.bf16 %v13972_v63 }
 0x4c6   :  { %7531 = vst.msk [vmem:[#allocation4 + $0xe8] sm:$0xff] %vm7017_vm0, %v7502_v52  ;;  %v7781_v50 = vpop.f32.mrb[71].mxu0  ;;  %v8176_v52 = vsel %vm36_vm3, %v8150_v26, 0.0  ;;  %v14051_v26 = vld [vmem:[%s15063_s7 + $0x118] sm:$0xff]  }
 0x4c7   :  { %v8283_v50 = vmul.f32 %v15123_v53, %v7929_v18  ;;  %v14006_v24 = vmax.f32 %v7769_v60, 0.0  ;;  %v8284_v51 = vmul.f32 %v15093_v30, %v7930_v55  ;;  %v15078_v60 = vunpack.c.h.bf16 %v14017_v62 }
 0x4c8   :  { %v15082_v48 = vunpack.c.l.bf16 %v14051_v26 }
 0x4c9   :  { %v8312_v43 = vsel %vm36_vm3, %v8284_v51, 0.0 }
 0x4cc   :  { %v7569_v37 = vld [vmem:[#allocation4 + $0xf0] sm:$0xff] }
 0x4cd   :  { %v7568_v33 = vld [vmem:[#allocation4 + $0xe8] sm:$0xff] }
 0x4ce   :  { %8038 = vadd.xlane.f32.xlu0 %v8037_v34  ;;  %7862 = vmatprep.mubr.bf16.mxu0 %v7568_v33  ;;  %v13934_v27 = vpop.f32.mrb[72].mxu0  ;;  %v8151_v34 = vmul.f32 %v15096_v0, %v7930_v55 }
 0x4cf   :  { %7863 = vmatmul.mubr.bf16.gmra.mrb[112].mxu0 %v7567_v19  ;;  %v7786_v7 = vpop.f32.mrb[73].mxu0  ;;  %v15098_v19 = vunpack.c.l.bf16 %v14000_v29 }
 0x4d0   :  { %8171 = vadd.xlane.f32.xlu1 %v8170_v9  ;;  %v7336_v59 = vpop.permute.xlu1 %7335  ;;  %v7504_v1 = vpop.permute.xlu0 %7503  ;;  %v8309_v9 = vsel %vm36_vm3, %v8283_v50, 0.0 }
 0x4d1   :  { %7363 = vst.msk [vmem:[#allocation4 + $0x100] sm:$0xff] %vm7017_vm0, %v7336_v59  ;;  %7532 = vst.msk [vmem:[#allocation4 + $0xf8] sm:$0xff] %vm7017_vm0, %v7504_v1  ;;  %v13948_v15 = vpop.f32.mrb[74].mxu0  ;;  %v7772_v1 = vadd.f32 %v13888_v35, %v13883_v31  ;;  %v15094_v31 = vunpack.c.l.bf16 %v14017_v62 }
 0x4d2   :  { %8174 = vadd.xlane.f32.xlu0 %v8173_v57  ;;  %v7789_v5 = vpop.f32.mrb[75].mxu0 }
 0x4d3   :  { %v15087_v5 = vunpack.c.h.bf16 %v13985_v22 }
 0x4d4   :  { %8304 = vadd.xlane.f32.xlu1 %v8303_v32  ;;  %v8179_v32 = vsel %vm36_vm3, %v8151_v34, 0.0 }
 0x4d6   :  { %8307 = vadd.xlane.f32.xlu0 %v8306_v12  ;;  %v8019_v12 = vmul.f32 %v15098_v19, %v14006_v24 }
 0x4d8   :  { %8437 = vadd.xlane.f32.xlu1 %v8436_v44  ;;  %v7570_v49 = vld [vmem:[#allocation4 + $0xf8] sm:$0xff]  ;;  %v7932_v44 = vmax.f32 %v7772_v1, 0.0  ;;  %v8049_v54 = vsel %vm36_vm3, %v8019_v12, 0.0 }
 0x4d9   :  { %7870 = vmatprep.mubr.bf16.mxu0 %v7570_v49  ;;  %v15079_v49 = vunpack.c.h.bf16 %v14000_v29 }
 0x4da   :  { %8440 = vadd.xlane.f32.xlu0 %v8439_v28  ;;  %7871 = vmatmul.mubr.bf16.gmra.mrb[116].mxu0 %v7569_v37  ;;  %v8417_v28 = vmul.f32 %v15087_v5, %v7930_v55  ;;  %v15090_v37 = vunpack.c.l.bf16 %v14037_v58 }
 0x4db   :  { %v8020_v2 = vmul.f32 %v15079_v49, %v7932_v44 }
 0x4dc   :  { %8041 = vadd.xlane.f32.xlu1 %v8040_v42  ;;  %v8152_v42 = vmul.f32 %v15094_v31, %v14006_v24 }
 0x4dd   :  { %v8052_v51 = vsel %vm36_vm3, %v8020_v2, 0.0 }
 0x4de   :  { %8044 = vadd.xlane.f32.xlu0 %v8043_v6  ;;  %v8445_v6 = vsel %vm36_vm3, %v8417_v28, 0.0  ;;  %v8418_v28 = vmul.f32 %v15082_v48, %v14006_v24 }
 0x4e0   :  { %8177 = vadd.xlane.f32.xlu1 %v8176_v52  ;;  %v7777_v52 = vadd.f32 %v13888_v35, %v13901_v11  ;;  %v14071_v11 = vld [vmem:[%s15063_s7 + $0x18] sm:$0xff]  }
 0x4e2   :  { %8047 = vadd.xlane.f32.xlu0 %v8046_v16  ;;  %v8182_v16 = vsel %vm36_vm3, %v8152_v42, 0.0  ;;  %v7933_v12 = vmax.f32 %v7777_v52, 0.0  ;;  %v14087_v42 = vld [vmem:[%s15063_s7 + $0x70] sm:$0xff]  }
 0x4e3   :  { %v14008_v33 = vpop.f32.mrb[76].mxu0 }
 0x4e4   :  { %8310 = vadd.xlane.f32.xlu1 %v8309_v9  ;;  %v7794_v7 = vpop.f32.mrb[77].mxu0  ;;  %v8285_v9 = vmul.f32 %v15090_v37, %v14006_v24  ;;  %v8448_v24 = vsel %vm36_vm3, %v8418_v28, 0.0 }
 0x4e5   :  { %v14019_v59 = vpop.f32.mrb[78].mxu0  ;;  %v7338_v57 = vpop.permute.xlu1 %7337  ;;  %v7571_v7 = vld [vmem:[#allocation4 + $0x100] sm:$0xff] }
 0x4e6   :  { %v7797_v41 = vpop.f32.mrb[79].mxu0  ;;  %7364 = vst.msk [vmem:[#allocation4 + $0x110] sm:$0xff] %vm7017_vm0, %v7338_v57  ;;  %v7506_v18 = vpop.permute.xlu0 %7505  ;;  %8180 = vadd.xlane.f32.xlu0 %v8179_v32 }
 0x4e7   :  { %7533 = vst.msk [vmem:[#allocation4 + $0x108] sm:$0xff] %vm7017_vm0, %v7506_v18  ;;  %v8153_v18 = vmul.f32 %v15078_v60, %v7932_v44 }
 0x4e8   :  { %8443 = vadd.xlane.f32.xlu1 %v8442_v40  ;;  %v15071_v40 = vunpack.c.h.bf16 %v14037_v58 }
 0x4e9   :  { %v8185_v2 = vsel %vm36_vm3, %v8153_v18, 0.0 }
 0x4ea   :  { %8313 = vadd.xlane.f32.xlu0 %v8312_v43  ;;  %v8315_v43 = vsel %vm36_vm3, %v8285_v9, 0.0  ;;  %v8286_v52 = vmul.f32 %v15071_v40, %v7932_v44 }
 0x4ec   :  { %8050 = vadd.xlane.f32.xlu1 %v8049_v54  ;;  %v15077_v54 = vunpack.c.l.bf16 %v14071_v11 }
 0x4ed   :  { %v14054_v55 = vpop.f32.mrb[80].mxu0  ;;  %v7573_v18 = vld [vmem:[#allocation4 + $0x110] sm:$0xff] }
 0x4ee   :  { %8446 = vadd.xlane.f32.xlu0 %v8445_v6  ;;  %v7572_v50 = vld [vmem:[#allocation4 + $0x108] sm:$0xff]  ;;  %v7802_v34 = vpop.f32.mrb[81].mxu0  ;;  %v7780_v6 = vadd.f32 %v13888_v35, %v13906_v4 }
 0x4ef   :  { %7878 = vmatprep.mubr.bf16.mxu0 %v7572_v50  ;;  %v14066_v1 = vpop.f32.mrb[82].mxu0  ;;  %v15068_v50 = vunpack.c.h.bf16 %v14051_v26  ;;  %v15069_v34 = vunpack.c.l.bf16 %v14087_v42  ;;  %v14102_v4 = vld [vmem:[%s15063_s7 + $0xc8] sm:$0xff]  }
 0x4f0   :  { %8183 = vadd.xlane.f32.xlu1 %v8182_v16  ;;  %7879 = vmatmul.mubr.bf16.gmra.mrb[120].mxu0 %v7571_v7  ;;  %v7805_v57 = vpop.f32.mrb[83].mxu0  ;;  %v8021_v16 = vmul.f32 %v15077_v54, %v7933_v12  ;;  %v7934_v9 = vmax.f32 %v7780_v6, 0.0  ;;  %v8318_v7 = vsel %vm36_vm3, %v8286_v52, 0.0  ;;  %v15067_v28 = vunpack.c.l.bf16 %v14102_v4  ;;  %v14115_v6 = vld [vmem:[%s15063_s7 + $0x120] sm:$0xff]  }
 0x4f1   :  { %v15070_v52 = vunpack.c.h.bf16 %v14087_v42 }
 0x4f2   :  { %v7340_v41 = vpop.permute.xlu1 %7339  ;;  %v7508_v32 = vpop.permute.xlu0 %7507  ;;  %8053 = vadd.xlane.f32.xlu0 %v8052_v51  ;;  %v8055_v51 = vsel %vm36_vm3, %v8021_v16, 0.0 }
 0x4f3   :  { %7365 = vst.msk [vmem:[#allocation4 + $0x120] sm:$0xff] %vm7017_vm0, %v7340_v41  ;;  %7534 = vst.msk [vmem:[#allocation4 + $0x118] sm:$0xff] %vm7017_vm0, %v7508_v32  ;;  %v8419_v41 = vmul.f32 %v15068_v50, %v7932_v44  ;;  %v15066_v32 = vunpack.c.h.bf16 %v14071_v11 }
 0x4f4   :  { %8316 = vadd.xlane.f32.xlu1 %v8315_v43  ;;  %v8154_v43 = vmul.f32 %v15069_v34, %v7933_v12 }
 0x4f5   :  { %v8451_v44 = vsel %vm36_vm3, %v8419_v41, 0.0  ;;  %v14130_v41 = vld [vmem:[%s15063_s7 + $0x20] sm:$0xff]  }
 0x4f6   :  { %8186 = vadd.xlane.f32.xlu0 %v8185_v2  ;;  %v8022_v2 = vmul.f32 %v15066_v32, %v7934_v9  ;;  %v8188_v16 = vsel %vm36_vm3, %v8154_v43, 0.0  ;;  %v15072_v43 = vunpack.c.h.bf16 %v14102_v4  ;;  %v15073_v50 = vunpack.c.l.bf16 %v14130_v41 }
 0x4f8   :  { %8449 = vadd.xlane.f32.xlu1 %v8448_v24  ;;  %v7785_v24 = vadd.f32 %v13888_v35, %v13934_v27  ;;  %v8155_v27 = vmul.f32 %v15070_v52, %v7934_v9 }
 0x4fa   :  { %v7574_v57 = vld [vmem:[#allocation4 + $0x118] sm:$0xff]  ;;  %8319 = vadd.xlane.f32.xlu0 %v8318_v7  ;;  %v8287_v7 = vmul.f32 %v15067_v28, %v7933_v12  ;;  %v7575_v54 = vld [vmem:[#allocation4 + $0x120] sm:$0xff] }
 0x4fb   :  { %7886 = vmatprep.mubr.bf16.mxu0 %v7574_v57  ;;  %v15074_v57 = vunpack.c.l.bf16 %v14115_v6 }
 0x4fc   :  { %8056 = vadd.xlane.f32.xlu1 %v8055_v51  ;;  %7887 = vmatmul.mubr.bf16.gmra.mrb[124].mxu0 %v7573_v18  ;;  %v8058_v51 = vsel %vm36_vm3, %v8022_v2, 0.0  ;;  %v8321_v32 = vsel %vm36_vm3, %v8287_v7, 0.0  ;;  %v14147_v2 = vld [vmem:[%s15063_s7 + $0x78] sm:$0xff]   ;;  %v15075_v7 = vunpack.c.h.bf16 %v14115_v6 }
 0x4fe   :  { %8452 = vadd.xlane.f32.xlu0 %v8451_v44  ;;  %v7935_v44 = vmax.f32 %v7785_v24, 0.0  ;;  %v7788_v24 = vadd.f32 %v13888_v35, %v13948_v15  ;;  %v15076_v15 = vunpack.c.l.bf16 %v14147_v2 }
 0x500   :  { %8189 = vadd.xlane.f32.xlu1 %v8188_v16  ;;  %v8420_v16 = vmul.f32 %v15074_v57, %v7933_v12  ;;  %v8191_v12 = vsel %vm36_vm3, %v8155_v27, 0.0  ;;  %v7936_v27 = vmax.f32 %v7788_v24, 0.0  ;;  %v14177_v24 = vld [vmem:[%s15063_s7 + $0x128] sm:$0xff]  }
 0x501   :  { %v15086_v60 = vunpack.c.l.bf16 %v14177_v24 }
 0x502   :  { %v14133_v18 = vpop.f32.mrb[84].mxu0  ;;  %8059 = vadd.xlane.f32.xlu0 %v8058_v51  ;;  %v8454_v51 = vsel %vm36_vm3, %v8420_v16, 0.0 }
 0x503   :  { %v7810_v28 = vpop.f32.mrb[85].mxu0  ;;  %v7342_v52 = vpop.permute.xlu1 %7341 }
 0x504   :  { %8322 = vadd.xlane.f32.xlu1 %v8321_v32  ;;  %v14142_v34 = vpop.f32.mrb[86].mxu0  ;;  %7366 = vst.msk [vmem:[#allocation4 + $0x130] sm:$0xff] %vm7017_vm0, %v7342_v52  ;;  %v7510_v28 = vpop.permute.xlu0 %7509  ;;  %v8288_v32 = vmul.f32 %v15072_v43, %v7934_v9  ;;  %v14164_v52 = vld [vmem:[%s15063_s7 + $0xd0] sm:$0xff]  }
 0x505   :  { %v7813_v40 = vpop.f32.mrb[87].mxu0  ;;  %7535 = vst.msk [vmem:[#allocation4 + $0x128] sm:$0xff] %vm7017_vm0, %v7510_v28  ;;  %v8421_v28 = vmul.f32 %v15075_v7, %v7934_v9  ;;  %v7793_v7 = vadd.f32 %v13888_v35, %v14008_v33 }
 0x506   :  { %8192 = vadd.xlane.f32.xlu0 %v8191_v12  ;;  %v8023_v40 = vmul.f32 %v15073_v50, %v7935_v44  ;;  %v8324_v43 = vsel %vm36_vm3, %v8288_v32, 0.0  ;;  %v15080_v12 = vunpack.c.h.bf16 %v14130_v41  ;;  %v8156_v50 = vmul.f32 %v15076_v15, %v7935_v44 }
 0x507   :  { %v8457_v32 = vsel %vm36_vm3, %v8421_v28, 0.0  ;;  %v7937_v48 = vmax.f32 %v7793_v7, 0.0  ;;  %v7796_v7 = vadd.f32 %v13888_v35, %v14019_v59  ;;  %v14226_v59 = vld [vmem:[%s15063_s7 + $0xd8] sm:$0xff]  }
 0x508   :  { %8455 = vadd.xlane.f32.xlu1 %v8454_v51  ;;  %v8061_v16 = vsel %vm36_vm3, %v8023_v40, 0.0  ;;  %v15081_v51 = vunpack.c.l.bf16 %v14164_v52  ;;  %v15084_v40 = vunpack.c.h.bf16 %v14147_v2 }
 0x50a   :  { %8325 = vadd.xlane.f32.xlu0 %v8324_v43  ;;  %v8024_v43 = vmul.f32 %v15080_v12, %v7936_v27  ;;  %v8289_v28 = vmul.f32 %v15081_v51, %v7935_v44  ;;  %v14196_v12 = vld [vmem:[%s15063_s7 + $0x28] sm:$0xff]   ;;  %v15083_v51 = vunpack.c.h.bf16 %v14164_v52 }
 0x50c   :  { %8062 = vadd.xlane.f32.xlu1 %v8061_v16  ;;  %v7576_v9 = vld [vmem:[#allocation4 + $0x128] sm:$0xff]  ;;  %v8194_v16 = vsel %vm36_vm3, %v8156_v50, 0.0  ;;  %v8064_v50 = vsel %vm36_vm3, %v8024_v43, 0.0  ;;  %v14211_v43 = vld [vmem:[%s15063_s7 + $0x80] sm:$0xff]  }
 0x50d   :  { %v14180_v57 = vpop.f32.mrb[88].mxu0  ;;  %7894 = vmatprep.mubr.bf16.mxu0 %v7576_v9  ;;  %v15095_v37 = vunpack.c.h.bf16 %v14211_v43 }
 0x50e   :  { %8458 = vadd.xlane.f32.xlu0 %v8457_v32  ;;  %v7818_v15 = vpop.f32.mrb[89].mxu0  ;;  %7895 = vmatmul.mubr.bf16.gmra.mrb[128].mxu0 %v7575_v54  ;;  %v8327_v54 = vsel %vm36_vm3, %v8289_v28, 0.0  ;;  %v15088_v28 = vunpack.c.h.bf16 %v14177_v24 }
 0x50f   :  { %v14191_v49 = vpop.f32.mrb[90].mxu0  ;;  %v8157_v15 = vmul.f32 %v15084_v40, %v7936_v27 }
 0x510   :  { %8195 = vadd.xlane.f32.xlu1 %v8194_v16  ;;  %v7821_v33 = vpop.f32.mrb[91].mxu0  ;;  %v7344_v32 = vpop.permute.xlu1 %7343  ;;  %v8422_v16 = vmul.f32 %v15086_v60, %v7935_v44  ;;  %v7577_v60 = vld [vmem:[#allocation4 + $0x130] sm:$0xff] }
 0x511   :  { %v7512_v9 = vpop.permute.xlu0 %7511  ;;  %7367 = vst.msk [vmem:[#allocation4 + $0x140] sm:$0xff] %vm7017_vm0, %v7344_v32  ;;  %v15085_v33 = vunpack.c.l.bf16 %v14196_v12  ;;  %v8197_v32 = vsel %vm36_vm3, %v8157_v15, 0.0  ;;  %v14228_v15 = vmax.f32 %v7796_v7, 0.0  ;;  %v15092_v7 = vunpack.c.l.bf16 %v14226_v59 }
 0x512   :  { %7536 = vst.msk [vmem:[#allocation4 + $0x138] sm:$0xff] %vm7017_vm0, %v7512_v9  ;;  %8065 = vadd.xlane.f32.xlu0 %v8064_v50  ;;  %v8290_v9 = vmul.f32 %v15083_v51, %v7936_v27  ;;  %v8460_v44 = vsel %vm36_vm3, %v8422_v16, 0.0  ;;  %v15091_v16 = vunpack.c.h.bf16 %v14196_v12 }
 0x513   :  { %v8025_v50 = vmul.f32 %v15085_v33, %v7937_v48 }
 0x514   :  { %8328 = vadd.xlane.f32.xlu1 %v8327_v54  ;;  %v15089_v54 = vunpack.c.l.bf16 %v14211_v43  ;;  %v8330_v51 = vsel %vm36_vm3, %v8290_v9, 0.0 }
 0x516   :  { %8198 = vadd.xlane.f32.xlu0 %v8197_v32  ;;  %v8423_v32 = vmul.f32 %v15088_v28, %v7936_v27  ;;  %v8158_v5 = vmul.f32 %v15089_v54, %v7937_v48  ;;  %v14243_v27 = vld [vmem:[%s15063_s7 + $0x130] sm:$0xff]   ;;  %v8026_v54 = vmul.f32 %v15091_v16, %v14228_v15 }
 0x517   :  { %v14263_v16 = vld [vmem:[%s15063_s7 + $0x30] sm:$0xff]  }
 0x518   :  { %8461 = vadd.xlane.f32.xlu1 %v8460_v44  ;;  %v8067_v44 = vsel %vm36_vm3, %v8025_v50, 0.0  ;;  %v8463_v50 = vsel %vm36_vm3, %v8423_v32, 0.0  ;;  %v15097_v32 = vunpack.c.l.bf16 %v14243_v27  ;;  %v15100_v31 = vunpack.c.l.bf16 %v14263_v16 }
 0x519   :  { %v7578_v40 = vld [vmem:[#allocation4 + $0x138] sm:$0xff]  ;;  %v14234_v33 = vpop.f32.mrb[92].mxu0 }
 0x51a   :  { %8331 = vadd.xlane.f32.xlu0 %v8330_v51  ;;  %7902 = vmatprep.mubr.bf16.mxu0 %v7578_v40  ;;  %v7826_v9 = vpop.f32.mrb[93].mxu0 }
 0x51b   :  { %7903 = vmatmul.mubr.bf16.gmra.mrb[132].mxu0 %v7577_v60  ;;  %v14245_v51 = vpop.f32.mrb[94].mxu0  ;;  %v7801_v60 = vadd.f32 %v13888_v35, %v14054_v55  ;;  %v8200_v9 = vsel %vm36_vm3, %v8158_v5, 0.0  ;;  %v8070_v55 = vsel %vm36_vm3, %v8026_v54, 0.0  ;;  %v15099_v5 = vunpack.c.h.bf16 %v14226_v59 }
 0x51c   :  { %8068 = vadd.xlane.f32.xlu1 %v8067_v44  ;;  %v7829_v40 = vpop.f32.mrb[95].mxu0 }
 0x51d   :  { %v7514_v44 = vpop.permute.xlu0 %7513  ;;  %v8291_v40 = vmul.f32 %v15092_v7, %v7937_v48 }
 0x51e   :  { %v7346_v28 = vpop.permute.xlu1 %7345  ;;  %8464 = vadd.xlane.f32.xlu0 %v8463_v50  ;;  %7537 = vst.msk [vmem:[#allocation4 + $0x148] sm:$0xff] %vm7017_vm0, %v7514_v44  ;;  %v7939_v50 = vmax.f32 %v7801_v60, 0.0 }
 0x51f   :  { %7368 = vst.msk [vmem:[#allocation4 + $0x150] sm:$0xff] %vm7017_vm0, %v7346_v28  ;;  %v8159_v28 = vmul.f32 %v15095_v37, %v14228_v15  ;;  %v8333_v44 = vsel %vm36_vm3, %v8291_v40, 0.0  ;;  %v14280_v37 = vld [vmem:[%s15063_s7 + $0x88] sm:$0xff]  }
 0x520   :  { %8201 = vadd.xlane.f32.xlu1 %v8200_v9  ;;  %v8424_v9 = vmul.f32 %v15097_v32, %v7937_v48  ;;  %v8292_v48 = vmul.f32 %v15099_v5, %v14228_v15  ;;  %v8027_v32 = vmul.f32 %v15100_v31, %v7939_v50  ;;  %v15105_v19 = vunpack.c.l.bf16 %v14280_v37 }
 0x521   :  { %v7516_v7 = vpop.permute.xlu0 %7515  ;;  %v14270_v30 = vpop.f32.mrb[96].mxu0  ;;  %v8203_v0 = vsel %vm36_vm3, %v8159_v28, 0.0  ;;  %v14298_v28 = vld [vmem:[%s15063_s7 + $0xe0] sm:$0xff]   ;;  %v15103_v5 = vunpack.c.h.bf16 %v14263_v16 }
 0x522   :  { %8071 = vadd.xlane.f32.xlu0 %v8070_v55  ;;  %7538 = vst.msk [vmem:[#allocation4 + $0x158] sm:$0xff] %vm7017_vm0, %v7516_v7  ;;  %v7834_v54 = vpop.f32.mrb[97].mxu0  ;;  %v7804_v55 = vadd.f32 %v13888_v35, %v14066_v1  ;;  %v15102_v7 = vunpack.c.h.bf16 %v14243_v27  ;;  %v7579_v1 = vld [vmem:[#allocation4 + $0x140] sm:$0xff]  ;;  %v15104_v38 = vunpack.c.l.bf16 %v14298_v28  ;;  %v7833_v39 = vadd.f32 %v13888_v35, %v14270_v30 }
 0x523   :  { %v14282_v60 = vpop.f32.mrb[98].mxu0  ;;  %v8466_v54 = vsel %vm36_vm3, %v8424_v9, 0.0 }
 0x524   :  { %8334 = vadd.xlane.f32.xlu1 %v8333_v44  ;;  %v7837_v40 = vpop.f32.mrb[99].mxu0  ;;  %v8425_v9 = vmul.f32 %v15102_v7, %v14228_v15 }
 0x525   :  { %v7580_v44 = vld [vmem:[#allocation4 + $0x148] sm:$0xff]  ;;  %v7940_v40 = vmax.f32 %v7804_v55, 0.0  ;;  %v14312_v55 = vld [vmem:[%s15063_s7 + $0x138] sm:$0xff]  }
 0x526   :  { %8204 = vadd.xlane.f32.xlu0 %v8203_v0  ;;  %7910 = vmatprep.mubr.bf16.mxu0 %v7580_v44  ;;  %v8336_v0 = vsel %vm36_vm3, %v8292_v48, 0.0  ;;  %v8073_v44 = vsel %vm36_vm3, %v8027_v32, 0.0  ;;  %v8469_v15 = vsel %vm36_vm3, %v8425_v9, 0.0  ;;  %v7809_v32 = vadd.f32 %v13888_v35, %v14133_v18  ;;  %v7581_v7 = vld [vmem:[#allocation4 + $0x150] sm:$0xff]  ;;  %v14327_v9 = vld [vmem:[%s15063_s7 + $0x38] sm:$0xff]  }
 0x527   :  { %7911 = vmatmul.mubr.bf16.gmra.mrb[136].mxu0 %v7579_v1  ;;  %v8028_v48 = vmul.f32 %v15103_v5, %v7940_v40  ;;  %v15106_v1 = vunpack.c.h.bf16 %v14280_v37 }
 0x528   :  { %8467 = vadd.xlane.f32.xlu1 %v8466_v54  ;;  %v8160_v54 = vmul.f32 %v15105_v19, %v7939_v50  ;;  %v15109_v19 = vunpack.c.l.bf16 %v14327_v9 }
 0x529   :  { %v7582_v31 = vld [vmem:[#allocation4 + $0x158] sm:$0xff]  ;;  %v8076_v5 = vsel %vm36_vm3, %v8028_v48, 0.0  ;;  %v8161_v18 = vmul.f32 %v15106_v1, %v7940_v40  ;;  %v7812_v48 = vadd.f32 %v13888_v35, %v14142_v34  ;;  %v14355_v34 = vld [vmem:[%s15063_s7 + $0xe8] sm:$0xff]  }
 0x52a   :  { %8337 = vadd.xlane.f32.xlu0 %v8336_v0  ;;  %7918 = vmatprep.mubr.bf16.mxu0 %v7582_v31  ;;  %v8206_v0 = vsel %vm36_vm3, %v8160_v54, 0.0  ;;  %v8293_v31 = vmul.f32 %v15104_v38, %v7939_v50  ;;  %v15108_v54 = vunpack.c.h.bf16 %v14298_v28 }
 0x52b   :  { %v8209_v1 = vsel %vm36_vm3, %v8161_v18, 0.0  ;;  %v7942_v18 = vmax.f32 %v7812_v48, 0.0  ;;  %v14368_v48 = vld [vmem:[%s15063_s7 + $0x140] sm:$0xff]  }
 0x52c   :  { %8074 = vadd.xlane.f32.xlu1 %v8073_v44  ;;  %v15107_v44 = vunpack.c.l.bf16 %v14312_v55  ;;  %v8339_v38 = vsel %vm36_vm3, %v8293_v31, 0.0 }
 0x52e   :  { %8470 = vadd.xlane.f32.xlu0 %v8469_v15  ;;  %v7941_v15 = vmax.f32 %v7809_v32, 0.0  ;;  %v15110_v32 = vunpack.c.h.bf16 %v14312_v55 }
 0x52f   :  { %7919 = vmatmul.mubr.bf16.gmra.mrb[140].mxu0 %v7581_v7  ;;  %v14340_v7 = vld [vmem:[%s15063_s7 + $0x90] sm:$0xff]  }
 0x530   :  { %8207 = vadd.xlane.f32.xlu1 %v8206_v0  ;;  %v8426_v0 = vmul.f32 %v15107_v44, %v7939_v50  ;;  %v15111_v31 = vunpack.c.l.bf16 %v14340_v7 }
 0x532   :  { %8077 = vadd.xlane.f32.xlu0 %v8076_v5  ;;  %v8294_v5 = vmul.f32 %v15108_v54, %v7940_v40  ;;  %v8472_v50 = vsel %vm36_vm3, %v8426_v0, 0.0  ;;  %v8427_v54 = vmul.f32 %v15110_v32, %v7940_v40 }
 0x534   :  { %8340 = vadd.xlane.f32.xlu1 %v8339_v38  ;;  %v8029_v38 = vmul.f32 %v15109_v19, %v7941_v15  ;;  %v8342_v44 = vsel %vm36_vm3, %v8294_v5, 0.0  ;;  %v8162_v19 = vmul.f32 %v15111_v31, %v7941_v15  ;;  %v8475_v5 = vsel %vm36_vm3, %v8427_v54, 0.0  ;;  %v14383_v54 = vld [vmem:[%s15063_s7 + $0x40] sm:$0xff]  }
 0x535   :  { %v15117_v31 = vunpack.c.l.bf16 %v14368_v48 }
 0x536   :  { %8210 = vadd.xlane.f32.xlu0 %v8209_v1  ;;  %v15112_v1 = vunpack.c.h.bf16 %v14327_v9  ;;  %v8079_v0 = vsel %vm36_vm3, %v8029_v38, 0.0  ;;  %v7817_v38 = vadd.f32 %v13888_v35, %v14180_v57  ;;  %v8212_v32 = vsel %vm36_vm3, %v8162_v19, 0.0 }
 0x537   :  { %v15118_v57 = vunpack.c.h.bf16 %v14355_v34 }
 0x538   :  { %8473 = vadd.xlane.f32.xlu1 %v8472_v50  ;;  %v15114_v50 = vunpack.c.l.bf16 %v14355_v34  ;;  %v8030_v40 = vmul.f32 %v15112_v1, %v7942_v18 }
 0x53a   :  { %8343 = vadd.xlane.f32.xlu0 %v8342_v44  ;;  %v15116_v44 = vunpack.c.h.bf16 %v14340_v7  ;;  %v8082_v1 = vsel %vm36_vm3, %v8030_v40, 0.0  ;;  %v7820_v40 = vadd.f32 %v13888_v35, %v14191_v49  ;;  %v14411_v49 = vld [vmem:[%s15063_s7 + $0xf0] sm:$0xff]  }
 0x53c   :  { %8080 = vadd.xlane.f32.xlu1 %v8079_v0  ;;  %v8295_v0 = vmul.f32 %v15114_v50, %v7941_v15  ;;  %v8163_v61 = vmul.f32 %v15116_v44, %v7942_v18  ;;  %v8428_v50 = vmul.f32 %v15117_v31, %v7941_v15 }
 0x53e   :  { %8476 = vadd.xlane.f32.xlu0 %v8475_v5  ;;  %v7943_v5 = vmax.f32 %v7817_v38, 0.0  ;;  %v8345_v19 = vsel %vm36_vm3, %v8295_v0, 0.0  ;;  %v8215_v44 = vsel %vm36_vm3, %v8163_v61, 0.0  ;;  %v15120_v38 = vunpack.c.h.bf16 %v14368_v48 }
 0x53f   :  { %v8478_v15 = vsel %vm36_vm3, %v8428_v50, 0.0  ;;  %v7944_v61 = vmax.f32 %v7820_v40, 0.0  ;;  %v14424_v40 = vld [vmem:[%s15063_s7 + $0x148] sm:$0xff]  }
 0x540   :  { %8213 = vadd.xlane.f32.xlu1 %v8212_v32  ;;  %v15119_v32 = vunpack.c.l.bf16 %v14383_v54 }
 0x542   :  { %8083 = vadd.xlane.f32.xlu0 %v8082_v1  ;;  %v8296_v1 = vmul.f32 %v15118_v57, %v7942_v18  ;;  %v8031_v0 = vmul.f32 %v15119_v32, %v7943_v5  ;;  %v8429_v57 = vmul.f32 %v15120_v38, %v7942_v18 }
 0x544   :  { %8346 = vadd.xlane.f32.xlu1 %v8345_v19  ;;  %v15121_v19 = vunpack.c.l.bf16 %v14396_v14  ;;  %v8348_v31 = vsel %vm36_vm3, %v8296_v1, 0.0  ;;  %v8085_v50 = vsel %vm36_vm3, %v8031_v0, 0.0  ;;  %v8481_v1 = vsel %vm36_vm3, %v8429_v57, 0.0  ;;  %v14439_v57 = vld [vmem:[%s15063_s7 + $0x48] sm:$0xff]  }
 0x545   :  { %v7825_v0 = vadd.f32 %v13888_v35, %v14234_v33  ;;  %v15128_v33 = vunpack.c.h.bf16 %v14411_v49 }
 0x546   :  { %8216 = vadd.xlane.f32.xlu0 %v8215_v44  ;;  %v15122_v44 = vunpack.c.h.bf16 %v14383_v54  ;;  %v8164_v32 = vmul.f32 %v15121_v19, %v7943_v5  ;;  %v15127_v19 = vunpack.c.l.bf16 %v14424_v40 }
 0x548   :  { %8479 = vadd.xlane.f32.xlu1 %v8478_v15  ;;  %v15124_v15 = vunpack.c.l.bf16 %v14411_v49  ;;  %v8032_v18 = vmul.f32 %v15122_v44, %v7944_v61  ;;  %v8218_v38 = vsel %vm36_vm3, %v8164_v32, 0.0 }
 0x54a   :  { %8349 = vadd.xlane.f32.xlu0 %v8348_v31  ;;  %v15126_v31 = vunpack.c.h.bf16 %v14396_v14  ;;  %v8088_v44 = vsel %vm36_vm3, %v8032_v18, 0.0  ;;  %v7828_v18 = vadd.f32 %v13888_v35, %v14245_v51  ;;  %v14467_v51 = vld [vmem:[%s15063_s7 + $0xf8] sm:$0xff]  }
 0x54c   :  { %8086 = vadd.xlane.f32.xlu1 %v8085_v50  ;;  %v8297_v50 = vmul.f32 %v15124_v15, %v7943_v5  ;;  %v8165_v53 = vmul.f32 %v15126_v31, %v7944_v61  ;;  %v8430_v15 = vmul.f32 %v15127_v19, %v7943_v5 }
 0x54e   :  { %8482 = vadd.xlane.f32.xlu0 %v8481_v1  ;;  %v7945_v1 = vmax.f32 %v7825_v0, 0.0  ;;  %v8351_v32 = vsel %vm36_vm3, %v8297_v50, 0.0  ;;  %v8221_v31 = vsel %vm36_vm3, %v8165_v53, 0.0  ;;  %v15131_v0 = vunpack.c.h.bf16 %v14424_v40 }
 0x54f   :  { %v8484_v5 = vsel %vm36_vm3, %v8430_v15, 0.0  ;;  %v7946_v53 = vmax.f32 %v7828_v18, 0.0  ;;  %v14480_v18 = vld [vmem:[%s15063_s7 + $0x150] sm:$0xff]  }
 0x550   :  { %8219 = vadd.xlane.f32.xlu1 %v8218_v38  ;;  %v15129_v38 = vunpack.c.l.bf16 %v14439_v57  ;;  %15157 = vst [vmem:[#allocation10_spill] sm:$0xff] %v14480_v18 }
 0x552   :  { %8089 = vadd.xlane.f32.xlu0 %v8088_v44  ;;  %v8298_v44 = vmul.f32 %v15128_v33, %v7944_v61  ;;  %v8033_v50 = vmul.f32 %v15129_v38, %v7945_v1  ;;  %v8431_v33 = vmul.f32 %v15131_v0, %v7944_v61  ;;  %v15137_v38 = vunpack.c.l.bf16 %v14467_v51 }
 0x553   :  { %v15140_v61 = vunpack.c.h.bf16 %v14452_v23 }
 0x554   :  { %8352 = vadd.xlane.f32.xlu1 %v8351_v32  ;;  %v15132_v32 = vunpack.c.l.bf16 %v14452_v23  ;;  %v8354_v19 = vsel %vm36_vm3, %v8298_v44, 0.0  ;;  %v8091_v15 = vsel %vm36_vm3, %v8033_v50, 0.0  ;;  %v8487_v50 = vsel %vm36_vm3, %v8431_v33, 0.0 }
 0x556   :  { %8222 = vadd.xlane.f32.xlu0 %v8221_v31  ;;  %v15135_v31 = vunpack.c.h.bf16 %v14439_v57 }
 0x558   :  { %8485 = vadd.xlane.f32.xlu1 %v8484_v5  ;;  %v8166_v5 = vmul.f32 %v15132_v32, %v7945_v1  ;;  %v8034_v0 = vmul.f32 %v15135_v31, %v7946_v53  ;;  %v15141_v32 = vunpack.c.l.bf16 %v14480_v18  ;;  %v15143_v31 = vunpack.c.h.bf16 %v14467_v51 }
 0x55a   :  { %8355 = vadd.xlane.f32.xlu0 %v8354_v19  ;;  %v8224_v20 = vsel %vm36_vm3, %v8166_v5, 0.0  ;;  %v8094_v30 = vsel %vm36_vm3, %v8034_v0, 0.0  ;;  %v8167_v5 = vmul.f32 %v15140_v61, %v7946_v53  ;;  %v14512_v0 = vld [vmem:[%s15063_s7 + $0xa8] sm:$0xff]  }
 0x55b   :  { %v8039_v44 = vpop.xlane.xlu0 %8038 }
 0x55c   :  { %8092 = vadd.xlane.f32.xlu1 %v8091_v15  ;;  %v8299_v15 = vmul.f32 %v15137_v38, %v7945_v1  ;;  %v14504_v38 = vmax.f32 %v7833_v39, 0.0  ;;  %v7836_v39 = vadd.f32 %v13888_v35, %v14282_v60  ;;  %v14529_v35 = vld [vmem:[%s15063_s7 + $0x100] sm:$0xff]  }
 0x55d   :  { %v8172_v10 = vpop.xlane.xlu1 %8171  ;;  %v15149_v8 = vunpack.c.l.bf16 %v14529_v35 }
 0x55e   :  { %v8503_v19 = vsel %vm8502_vm1, %v8039_v44, %v8172_v10  ;;  %8488 = vadd.xlane.f32.xlu0 %v8487_v50  ;;  %v14496_v10 = vld [vmem:[%s15063_s7 + $0x50] sm:$0xff]   ;;  %v8357_v36 = vsel %vm36_vm3, %v8299_v15, 0.0  ;;  %v8227_v15 = vsel %vm36_vm3, %v8167_v5, 0.0  ;;  %v7948_v5 = vmax.f32 %v7836_v39, 0.0 }
 0x55f   :  { %15158 = vst [vmem:[#allocation11_spill] sm:$0xff] %v14496_v10  ;;  %v8175_v33 = vpop.xlane.xlu0 %8174  ;;  %v15144_v50 = vunpack.c.l.bf16 %v14496_v10  ;;  %v15147_v60 = vunpack.c.h.bf16 %v14496_v10 }
 0x560   :  { %8225 = vadd.xlane.f32.xlu1 %v8224_v20  ;;  %v8432_v20 = vmul.f32 %v15141_v32, %v7945_v1  ;;  %v8300_v1 = vmul.f32 %v15143_v31, %v7946_v53  ;;  %v15148_v32 = vunpack.c.l.bf16 %v14512_v0 }
 0x561   :  { %v8305_v44 = vpop.xlane.xlu1 %8304  ;;  %v8035_v61 = vmul.f32 %v15144_v50, %v14504_v38 }
 0x562   :  { %v8526_v46 = vsel %vm8525_vm4, %v8503_v19, %v8305_v44  ;;  %8095 = vadd.xlane.f32.xlu0 %v8094_v30  ;;  %v15146_v44 = vunpack.c.h.bf16 %v14480_v18  ;;  %v8168_v50 = vmul.f32 %v15148_v32, %v14504_v38 }
 0x563   :  { %v8308_v47 = vpop.xlane.xlu0 %8307  ;;  %v8097_v31 = vsel %vm36_vm3, %v8035_v61, 0.0 }
 0x564   :  { %8358 = vadd.xlane.f32.xlu1 %v8357_v36  ;;  %v8490_v36 = vsel %vm36_vm3, %v8432_v20, 0.0 }
 0x565   :  { %v8438_v19 = vpop.xlane.xlu1 %8437 }
 0x566   :  { %v8549_v30 = vsel %vm8548_vm5, %v8526_v46, %v8438_v19  ;;  %8228 = vadd.xlane.f32.xlu0 %v8227_v15  ;;  %v8360_v19 = vsel %vm36_vm3, %v8300_v1, 0.0  ;;  %v8433_v15 = vmul.f32 %v15146_v44, %v7946_v53  ;;  %v14546_v1 = vld [vmem:[%s15063_s7 + $0x158] sm:$0xff]   ;;  %v8230_v44 = vsel %vm36_vm3, %v8168_v50, 0.0 }
 0x567   :  { %v8441_v45 = vpop.xlane.xlu0 %8440 }
 0x568   :  { %8491 = vadd.xlane.f32.xlu1 %v8490_v36 }
 0x569   :  { %v8042_v46 = vpop.xlane.xlu1 %8041 }
 0x56a   :  { %v8504_v20 = vsel %vm8502_vm1, %v8042_v46, %v8175_v33  ;;  %8361 = vadd.xlane.f32.xlu0 %v8360_v19  ;;  %v15154_v46 = vunpack.c.h.bf16 %v14512_v0  ;;  %v8493_v19 = vsel %vm36_vm3, %v8433_v15, 0.0 }
 0x56b   :  { %v8527_v36 = vsel %vm8525_vm4, %v8504_v20, %v8308_v47  ;;  %v8045_v33 = vpop.xlane.xlu0 %8044  ;;  %v8572_v47 = vsel %vm8571_vm6, %v8549_v30, 0.0  ;;  %v8301_v30 = vmul.f32 %v15149_v8, %v14504_v38 }
 0x56c   :  { %v8550_v39 = vsel %vm8548_vm5, %v8527_v36, %v8441_v45  ;;  %8098 = vadd.xlane.f32.xlu1 %v8097_v31  ;;  %v8036_v45 = vmul.f32 %v15147_v60, %v7948_v5  ;;  %v8169_v8 = vmul.f32 %v15154_v46, %v7948_v5 }
 0x56d   :  { %v8178_v53 = vpop.xlane.xlu1 %8177  ;;  %v8573_v61 = vsel %vm8571_vm6, %v8550_v39, 0.0  ;;  %v15155_v39 = vunpack.c.h.bf16 %v14529_v35  ;;  %v8363_v18 = vsel %vm36_vm3, %v8301_v30, 0.0 }
 0x56e   :  { %v8505_v20 = vsel %vm8502_vm1, %v8045_v33, %v8178_v53  ;;  %v8574_v31 = vadd.f32 %v8573_v61, %v8572_v47  ;;  %8494 = vadd.xlane.f32.xlu0 %v8493_v19  ;;  %v14563_v33 = vld [vmem:[%s15062_s6] ss:$0 sm:$0xff]  ;;  %v8100_v32 = vsel %vm36_vm3, %v8036_v45, 0.0 }
 0x56f   :  { %v7840_v36 = vpop.f32.mrb[100].mxu0  ;;  %v8048_v47 = vpop.xlane.xlu0 %8047  ;;  %v8302_v46 = vmul.f32 %v15155_v39, %v7948_v5 }
 0x570   :  { %v7841_v15 = vadd.f32 %v14563_v33, %v7840_v36  ;;  %8231 = vadd.xlane.f32.xlu1 %v8230_v44  ;;  %v7842_v53 = vpop.f32.mrb[101].mxu0  ;;  %v15159_v44 = vunpack.c.l.bf16 %v14546_v1 }
 0x571   :  { %v8311_v61 = vpop.xlane.xlu1 %8310  ;;  %v7843_v19 = vpop.f32.mrb[102].mxu0 }
 0x572   :  { %v8528_v50 = vsel %vm8525_vm4, %v8505_v20, %v8311_v61  ;;  %v7845_v60 = vpop.f32.mrb[103].mxu0  ;;  %v7949_v10 = vmax.f32 %v7841_v15, 0.0  ;;  %8101 = vadd.xlane.f32.xlu0 %v8100_v32  ;;  %v8434_v36 = vmul.f32 %v15159_v44, %v14504_v38  ;;  %v8233_v61 = vsel %vm36_vm3, %v8169_v8, 0.0 }
 0x573   :  { %v8181_v53 = vpop.xlane.xlu0 %8180  ;;  %v15156_v32 = vunpack.c.h.bf16 %v14546_v1  ;;  %v7844_v30 = vadd.f32 %v14563_v33, %v7843_v19 }
 0x574   :  { %8364 = vadd.xlane.f32.xlu1 %v8363_v18  ;;  %v8506_v20 = vsel %vm8502_vm1, %v8048_v47, %v8181_v53  ;;  %v8496_v38 = vsel %vm36_vm3, %v8434_v36, 0.0  ;;  %v15160_v18 = vunpack.c.l.bf16 %v13894_v21  ;;  %v15161_v36 = vunpack.c.l.bf16 %v13924_v25 }
 0x575   :  { %v8444_v60 = vpop.xlane.xlu1 %8443  ;;  %v8435_v39 = vmul.f32 %v15156_v32, %v7948_v5  ;;  %v7950_v19 = vmax.f32 %v7844_v30, 0.0  ;;  %v15162_v5 = vunpack.c.l.bf16 %v13899_v3 }
 0x576   :  { %v8551_v45 = vsel %vm8548_vm5, %v8528_v50, %v8444_v60  ;;  %8234 = vadd.xlane.f32.xlu0 %v8233_v61  ;;  %v8621_v47 = vmul.f32 %v15160_v18, %v7949_v10  ;;  %v8366_v60 = vsel %vm36_vm3, %v8302_v46, 0.0  ;;  %v8885_v61 = vmul.f32 %v15161_v36, %v7949_v10 }
 0x577   :  { %v8575_v15 = vsel %vm8571_vm6, %v8551_v45, 0.0  ;;  %v8314_v50 = vpop.xlane.xlu0 %8313  ;;  %v8499_v46 = vsel %vm36_vm3, %v8435_v39, 0.0  ;;  %v8709_v30 = vmul.f32 %v15162_v5, %v7949_v10  ;;  %v15164_v39 = vunpack.c.l.bf16 %v13913_v13 }
 0x578   :  { %v8576_v44 = vadd.f32 %v8575_v15, %v8574_v31  ;;  %8497 = vadd.xlane.f32.xlu1 %v8496_v38  ;;  %v8529_v8 = vsel %vm8525_vm4, %v8506_v20, %v8314_v50  ;;  %v8643_v45 = vsel %vm36_vm3, %v8621_v47, 0.0  ;;  %v8907_v47 = vsel %vm36_vm3, %v8885_v61, 0.0 }
 0x579   :  { %v8051_v53 = vpop.xlane.xlu1 %8050 }
 0x57a   :  { %8367 = vadd.xlane.f32.xlu0 %v8366_v60  ;;  %v15163_v60 = vunpack.c.h.bf16 %v13899_v3  ;;  %v15165_v3 = vunpack.c.h.bf16 %v13913_v13 }
 0x57b   :  { %v8447_v18 = vpop.xlane.xlu0 %8446 }
 0x57c   :  { %8644 = vadd.xlane.f32.xlu1 %v8643_v45  ;;  %v8552_v31 = vsel %vm8548_vm5, %v8529_v8, %v8447_v18  ;;  %v8710_v45 = vmul.f32 %v15163_v60, %v7950_v19 }
 0x57d   :  { %v8184_v15 = vpop.xlane.xlu1 %8183  ;;  %v8577_v20 = vsel %vm8571_vm6, %v8552_v31, 0.0 }
 0x57e   :  { %v8507_v38 = vsel %vm8502_vm1, %v8051_v53, %v8184_v15  ;;  %v8578_v50 = vadd.f32 %v8577_v20, %v8576_v44  ;;  %8500 = vadd.xlane.f32.xlu0 %v8499_v46  ;;  %v8731_v53 = vsel %vm36_vm3, %v8709_v30, 0.0  ;;  %v8797_v15 = vmul.f32 %v15164_v39, %v7949_v10 }
 0x57f   :  { %v8054_v36 = vpop.xlane.xlu0 %8053  ;;  %v8734_v44 = vsel %vm36_vm3, %v8710_v45, 0.0  ;;  %v8798_v20 = vmul.f32 %v15165_v3, %v7950_v19  ;;  %v15167_v39 = vunpack.c.l.bf16 %v13944_v17 }
 0x580   :  { %8908 = vadd.xlane.f32.xlu1 %v8907_v47  ;;  %v8819_v10 = vsel %vm36_vm3, %v8797_v15, 0.0  ;;  %v15168_v15 = vunpack.c.h.bf16 %v13924_v25 }
 0x581   :  { %v8317_v8 = vpop.xlane.xlu1 %8316  ;;  %v7848_v31 = vpop.f32.mrb[104].mxu0  ;;  %v8822_v13 = vsel %vm36_vm3, %v8798_v20, 0.0  ;;  %v15169_v20 = vunpack.c.l.bf16 %v13972_v63 }
 0x582   :  { %v8530_v18 = vsel %vm8525_vm4, %v8507_v38, %v8317_v8  ;;  %v7849_v5 = vadd.f32 %v14563_v33, %v7848_v31  ;;  %8732 = vadd.xlane.f32.xlu0 %v8731_v53  ;;  %v7850_v61 = vpop.f32.mrb[105].mxu0  ;;  %v15166_v31 = vunpack.c.h.bf16 %v13894_v21  ;;  %v8886_v21 = vmul.f32 %v15168_v15, %v7950_v19 }
 0x583   :  { %v8187_v46 = vpop.xlane.xlu0 %8186  ;;  %v7851_v47 = vpop.f32.mrb[106].mxu0 }
 0x584   :  { %8735 = vadd.xlane.f32.xlu1 %v8734_v44  ;;  %v7951_v60 = vmax.f32 %v7849_v5, 0.0  ;;  %v8508_v38 = vsel %vm8502_vm1, %v8054_v36, %v8187_v46  ;;  %v7853_v30 = vpop.f32.mrb[107].mxu0  ;;  %v8622_v53 = vmul.f32 %v15166_v31, %v7950_v19  ;;  %v7852_v46 = vadd.f32 %v14563_v33, %v7851_v47 }
 0x585   :  { %v8450_v8 = vpop.xlane.xlu1 %8449  ;;  %v15170_v19 = vunpack.c.l.bf16 %v13957_v56 }
 0x586   :  { %v8553_v32 = vsel %vm8548_vm5, %v8530_v18, %v8450_v8  ;;  %8820 = vadd.xlane.f32.xlu0 %v8819_v10  ;;  %v8623_v44 = vmul.f32 %v15167_v39, %v7951_v60  ;;  %v8799_v8 = vmul.f32 %v15169_v20, %v7951_v60  ;;  %v7952_v31 = vmax.f32 %v7852_v46, 0.0 }
 0x587   :  { %v8579_v45 = vsel %vm8571_vm6, %v8553_v32, 0.0  ;;  %v8320_v36 = vpop.xlane.xlu0 %8319  ;;  %v8646_v32 = vsel %vm36_vm3, %v8622_v53, 0.0  ;;  %v8711_v47 = vmul.f32 %v15170_v19, %v7951_v60 }
 0x588   :  { %v8580_v5 = vadd.f32 %v8579_v45, %v8578_v50  ;;  %8823 = vadd.xlane.f32.xlu1 %v8822_v13  ;;  %v8531_v61 = vsel %vm8525_vm4, %v8508_v38, %v8320_v36  ;;  %v8649_v18 = vsel %vm36_vm3, %v8623_v44, 0.0  ;;  %v8910_v38 = vsel %vm36_vm3, %v8886_v21, 0.0 }
 0x589   :  { %v8057_v3 = vpop.xlane.xlu1 %8056  ;;  %v8825_v39 = vsel %vm36_vm3, %v8799_v8, 0.0  ;;  %v15171_v44 = vunpack.c.l.bf16 %v13985_v22 }
 0x58a   :  { %8647 = vadd.xlane.f32.xlu0 %v8646_v32 }
 0x58b   :  { %v8453_v50 = vpop.xlane.xlu0 %8452  ;;  %v8887_v36 = vmul.f32 %v15171_v44, %v7951_v60 }
 0x58c   :  { %8650 = vadd.xlane.f32.xlu1 %v8649_v18  ;;  %v8554_v30 = vsel %vm8548_vm5, %v8531_v61, %v8453_v50  ;;  %v15172_v50 = vunpack.c.h.bf16 %v13944_v17  ;;  %v15174_v17 = vunpack.c.h.bf16 %v13957_v56 }
 0x58d   :  { %v8190_v10 = vpop.xlane.xlu1 %8189  ;;  %v8581_v45 = vsel %vm8571_vm6, %v8554_v30, 0.0  ;;  %v8913_v8 = vsel %vm36_vm3, %v8887_v36, 0.0  ;;  %v15175_v36 = vunpack.c.l.bf16 %v14017_v62 }
 0x58e   :  { %v8509_v25 = vsel %vm8502_vm1, %v8057_v3, %v8190_v10  ;;  %v8582_v53 = vadd.f32 %v8581_v45, %v8580_v5  ;;  %v7856_v13 = vpop.f32.mrb[108].mxu0  ;;  %8911 = vadd.xlane.f32.xlu0 %v8910_v38  ;;  %v8737_v5 = vsel %vm36_vm3, %v8711_v47, 0.0  ;;  %v8624_v30 = vmul.f32 %v15172_v50, %v7952_v31 }
 0x58f   :  { %v7857_v61 = vadd.f32 %v14563_v33, %v7856_v13  ;;  %v7858_v18 = vpop.f32.mrb[109].mxu0  ;;  %v8060_v15 = vpop.xlane.xlu0 %8059  ;;  %v15173_v10 = vunpack.c.l.bf16 %v14000_v29  ;;  %v15176_v50 = vunpack.c.h.bf16 %v13972_v63 }
 0x590   :  { %8826 = vadd.xlane.f32.xlu1 %v8825_v39  ;;  %v7859_v46 = vpop.f32.mrb[110].mxu0  ;;  %v8712_v39 = vmul.f32 %v15174_v17, %v7952_v31 }
 0x591   :  { %v8323_v21 = vpop.xlane.xlu1 %8322  ;;  %v7953_v32 = vmax.f32 %v7857_v61, 0.0  ;;  %v7861_v20 = vpop.f32.mrb[111].mxu0  ;;  %v8800_v56 = vmul.f32 %v15176_v50, %v7952_v31 }
 0x592   :  { %v8532_v3 = vsel %vm8525_vm4, %v8509_v25, %v8323_v21  ;;  %8738 = vadd.xlane.f32.xlu0 %v8737_v5  ;;  %v8652_v25 = vsel %vm36_vm3, %v8624_v30, 0.0  ;;  %v8740_v5 = vsel %vm36_vm3, %v8712_v39, 0.0  ;;  %v15179_v39 = vunpack.c.l.bf16 %v14051_v26 }
 0x593   :  { %v8193_v60 = vpop.xlane.xlu0 %8192  ;;  %v8625_v38 = vmul.f32 %v15173_v10, %v7953_v32  ;;  %v8713_v61 = vmul.f32 %v15175_v36, %v7953_v32 }
 0x594   :  { %8914 = vadd.xlane.f32.xlu1 %v8913_v8  ;;  %v8510_v45 = vsel %vm8502_vm1, %v8060_v15, %v8193_v60  ;;  %v15177_v8 = vunpack.c.l.bf16 %v14037_v58 }
 0x595   :  { %v8456_v19 = vpop.xlane.xlu1 %8455  ;;  %v8655_v47 = vsel %vm36_vm3, %v8625_v38, 0.0  ;;  %v8743_v30 = vsel %vm36_vm3, %v8713_v61, 0.0 }
 0x596   :  { %v8555_v13 = vsel %vm8548_vm5, %v8532_v3, %v8456_v19  ;;  %8653 = vadd.xlane.f32.xlu0 %v8652_v25  ;;  %v7860_v3 = vadd.f32 %v14563_v33, %v7859_v46  ;;  %v8801_v60 = vmul.f32 %v15177_v8, %v7953_v32  ;;  %v8828_v25 = vsel %vm36_vm3, %v8800_v56, 0.0 }
 0x597   :  { %v8583_v44 = vsel %vm8571_vm6, %v8555_v13, 0.0  ;;  %v8326_v21 = vpop.xlane.xlu0 %8325 }
 0x598   :  { %v8584_v18 = vadd.f32 %v8583_v44, %v8582_v53  ;;  %8656 = vadd.xlane.f32.xlu1 %v8655_v47  ;;  %v8533_v15 = vsel %vm8525_vm4, %v8510_v45, %v8326_v21  ;;  %v15178_v45 = vunpack.c.h.bf16 %v13985_v22  ;;  %v7954_v46 = vmax.f32 %v7860_v3, 0.0 }
 0x599   :  { %v8063_v20 = vpop.xlane.xlu1 %8062  ;;  %v8831_v17 = vsel %vm36_vm3, %v8801_v60, 0.0  ;;  %v8889_v44 = vmul.f32 %v15179_v39, %v7953_v32  ;;  %v15180_v21 = vunpack.c.h.bf16 %v14000_v29  ;;  %v15181_v29 = vunpack.c.h.bf16 %v14017_v62 }
 0x59a   :  { %8741 = vadd.xlane.f32.xlu0 %v8740_v5  ;;  %v8888_v19 = vmul.f32 %v15178_v45, %v7952_v31  ;;  %v15183_v62 = vunpack.c.h.bf16 %v14037_v58 }
 0x59b   :  { %v8459_v53 = vpop.xlane.xlu0 %8458 }
 0x59c   :  { %8744 = vadd.xlane.f32.xlu1 %v8743_v30  ;;  %v8556_v10 = vsel %vm8548_vm5, %v8533_v15, %v8459_v53  ;;  %v8916_v31 = vsel %vm36_vm3, %v8888_v19, 0.0  ;;  %v8626_v15 = vmul.f32 %v15180_v21, %v7954_v46  ;;  %v8714_v53 = vmul.f32 %v15181_v29, %v7954_v46 }
 0x59d   :  { %v8196_v38 = vpop.xlane.xlu1 %8195  ;;  %v8585_v13 = vsel %vm8571_vm6, %v8556_v10, 0.0 }
 0x59e   :  { %v8511_v63 = vsel %vm8502_vm1, %v8063_v20, %v8196_v38  ;;  %v8586_v47 = vadd.f32 %v8585_v13, %v8584_v18  ;;  %8829 = vadd.xlane.f32.xlu0 %v8828_v25  ;;  %v8919_v20 = vsel %vm36_vm3, %v8889_v44, 0.0  ;;  %v8658_v60 = vsel %vm36_vm3, %v8626_v15, 0.0 }
 0x59f   :  { %v8066_v36 = vpop.xlane.xlu0 %8065 }
 0x5a0   :  { %8832 = vadd.xlane.f32.xlu1 %v8831_v17  ;;  %v15182_v17 = vunpack.c.l.bf16 %v14071_v11 }
 0x5a1   :  { %v8329_v61 = vpop.xlane.xlu1 %8328 }
 0x5a2   :  { %v8534_v22 = vsel %vm8525_vm4, %v8511_v63, %v8329_v61  ;;  %8917 = vadd.xlane.f32.xlu0 %v8916_v31  ;;  %v7864_v18 = vpop.f32.mrb[112].mxu0  ;;  %v8802_v61 = vmul.f32 %v15183_v62, %v7954_v46  ;;  %v15184_v31 = vunpack.c.l.bf16 %v14087_v42 }
 0x5a3   :  { %v8199_v3 = vpop.xlane.xlu0 %8198  ;;  %v7865_v5 = vadd.f32 %v14563_v33, %v7864_v18  ;;  %v7866_v50 = vpop.f32.mrb[113].mxu0  ;;  %v15185_v18 = vunpack.c.h.bf16 %v14051_v26 }
 0x5a4   :  { %8920 = vadd.xlane.f32.xlu1 %v8919_v20  ;;  %v8512_v32 = vsel %vm8502_vm1, %v8066_v36, %v8199_v3  ;;  %v7867_v8 = vpop.f32.mrb[114].mxu0  ;;  %v8746_v36 = vsel %vm36_vm3, %v8714_v53, 0.0 }
 0x5a5   :  { %v8462_v56 = vpop.xlane.xlu1 %8461  ;;  %v7955_v10 = vmax.f32 %v7865_v5, 0.0  ;;  %v7869_v45 = vpop.f32.mrb[115].mxu0  ;;  %v7868_v44 = vadd.f32 %v14563_v33, %v7867_v8  ;;  %v8890_v3 = vmul.f32 %v15185_v18, %v7954_v46 }
 0x5a6   :  { %v8557_v30 = vsel %vm8548_vm5, %v8534_v22, %v8462_v56  ;;  %8659 = vadd.xlane.f32.xlu0 %v8658_v60  ;;  %v15186_v60 = vunpack.c.l.bf16 %v14102_v4 }
 0x5a7   :  { %v8587_v38 = vsel %vm8571_vm6, %v8557_v30, 0.0  ;;  %v8332_v13 = vpop.xlane.xlu0 %8331  ;;  %v8627_v39 = vmul.f32 %v15182_v17, %v7955_v10  ;;  %v7956_v5 = vmax.f32 %v7868_v44, 0.0 }
 0x5a8   :  { %v8588_v19 = vadd.f32 %v8587_v38, %v8586_v47  ;;  %v8535_v63 = vsel %vm8525_vm4, %v8512_v32, %v8332_v13  ;;  %v8715_v47 = vmul.f32 %v15184_v31, %v7955_v10  ;;  %v8834_v32 = vsel %vm36_vm3, %v8802_v61, 0.0 }
 0x5a9   :  { %v8069_v25 = vpop.xlane.xlu1 %8068  ;;  %v8661_v22 = vsel %vm36_vm3, %v8627_v39, 0.0  ;;  %v8803_v29 = vmul.f32 %v15186_v60, %v7955_v10 }
 0x5aa   :  { %8747 = vadd.xlane.f32.xlu0 %v8746_v36  ;;  %8662 = vadd.xlane.f32.xlu1 %v8661_v22  ;;  %v8749_v30 = vsel %vm36_vm3, %v8715_v47, 0.0  ;;  %v15188_v36 = vunpack.c.l.bf16 %v14115_v6 }
 0x5ab   :  { %v8465_v21 = vpop.xlane.xlu0 %8464  ;;  %v8837_v44 = vsel %vm36_vm3, %v8803_v29, 0.0 }
 0x5ac   :  { %v8558_v15 = vsel %vm8548_vm5, %v8535_v63, %v8465_v21  ;;  %v8891_v62 = vmul.f32 %v15188_v36, %v7955_v10 }
 0x5ad   :  { %v8202_v20 = vpop.xlane.xlu1 %8201  ;;  %v8589_v50 = vsel %vm8571_vm6, %v8558_v15, 0.0  ;;  %v7872_v8 = vpop.f32.mrb[116].mxu0  ;;  %v15189_v15 = vunpack.c.h.bf16 %v14087_v42  ;;  %v15191_v42 = vunpack.c.h.bf16 %v14102_v4 }
 0x5ae   :  { %v8513_v58 = vsel %vm8502_vm1, %v8069_v25, %v8202_v20  ;;  %v8590_v56 = vadd.f32 %v8589_v50, %v8588_v19  ;;  %8835 = vadd.xlane.f32.xlu0 %v8834_v32  ;;  %8750 = vadd.xlane.f32.xlu1 %v8749_v30  ;;  %v7873_v53 = vadd.f32 %v14563_v33, %v7872_v8  ;;  %v7874_v26 = vpop.f32.mrb[117].mxu0  ;;  %v8922_v25 = vsel %vm36_vm3, %v8890_v3, 0.0 }
 0x5af   :  { %v8072_v46 = vpop.xlane.xlu0 %8071  ;;  %v7875_v45 = vpop.f32.mrb[118].mxu0  ;;  %v15187_v19 = vunpack.c.h.bf16 %v14071_v11  ;;  %v8716_v11 = vmul.f32 %v15189_v15, %v7956_v5  ;;  %v8925_v18 = vsel %vm36_vm3, %v8891_v62, 0.0  ;;  %v15190_v3 = vunpack.c.l.bf16 %v14130_v41 }
 0x5b0   :  { %v7877_v63 = vpop.f32.mrb[119].mxu0  ;;  %v7957_v39 = vmax.f32 %v7873_v53, 0.0  ;;  %v7876_v8 = vadd.f32 %v14563_v33, %v7875_v45  ;;  %v8804_v29 = vmul.f32 %v15191_v42, %v7956_v5  ;;  %v15192_v26 = vunpack.c.l.bf16 %v14147_v2 }
 0x5b1   :  { %v8335_v38 = vpop.xlane.xlu1 %8334  ;;  %v8628_v17 = vmul.f32 %v15187_v19, %v7956_v5  ;;  %v8752_v60 = vsel %vm36_vm3, %v8716_v11, 0.0  ;;  %v15193_v63 = vunpack.c.h.bf16 %v14115_v6  ;;  %v15194_v62 = vunpack.c.l.bf16 %v14164_v52 }
 0x5b2   :  { %v8536_v13 = vsel %vm8525_vm4, %v8513_v58, %v8335_v38  ;;  %8923 = vadd.xlane.f32.xlu0 %v8922_v25  ;;  %8838 = vadd.xlane.f32.xlu1 %v8837_v44  ;;  %v8629_v10 = vmul.f32 %v15190_v3, %v7957_v39  ;;  %v7958_v45 = vmax.f32 %v7876_v8, 0.0  ;;  %v15196_v11 = vunpack.c.l.bf16 %v14177_v24 }
 0x5b3   :  { %v8205_v61 = vpop.xlane.xlu0 %8204  ;;  %v8664_v21 = vsel %vm36_vm3, %v8628_v17, 0.0  ;;  %v8892_v25 = vmul.f32 %v15193_v63, %v7956_v5  ;;  %v8840_v17 = vsel %vm36_vm3, %v8804_v29, 0.0  ;;  %v15198_v63 = vunpack.c.l.bf16 %v14196_v12 }
 0x5b4   :  { %v8514_v22 = vsel %vm8502_vm1, %v8072_v46, %v8205_v61  ;;  %v8667_v53 = vsel %vm36_vm3, %v8629_v10, 0.0  ;;  %v8717_v46 = vmul.f32 %v15192_v26, %v7957_v39  ;;  %v8805_v61 = vmul.f32 %v15194_v62, %v7957_v39 }
 0x5b5   :  { %v8468_v31 = vpop.xlane.xlu1 %8467  ;;  %v8928_v5 = vsel %vm36_vm3, %v8892_v25, 0.0 }
 0x5b6   :  { %v8559_v47 = vsel %vm8548_vm5, %v8536_v13, %v8468_v31  ;;  %8665 = vadd.xlane.f32.xlu0 %v8664_v21  ;;  %8926 = vadd.xlane.f32.xlu1 %v8925_v18  ;;  %v8755_v36 = vsel %vm36_vm3, %v8717_v46, 0.0  ;;  %v8843_v15 = vsel %vm36_vm3, %v8805_v61, 0.0 }
 0x5b7   :  { %v8591_v20 = vsel %vm8571_vm6, %v8559_v47, 0.0  ;;  %v8338_v58 = vpop.xlane.xlu0 %8337  ;;  %v15195_v47 = vunpack.c.h.bf16 %v14130_v41 }
 0x5b8   :  { %v8592_v50 = vadd.f32 %v8591_v20, %v8590_v56  ;;  %v8537_v32 = vsel %vm8525_vm4, %v8514_v22, %v8338_v58  ;;  %v8893_v20 = vmul.f32 %v15196_v11, %v7957_v39 }
 0x5b9   :  { %v8075_v30 = vpop.xlane.xlu1 %8074  ;;  %v8630_v21 = vmul.f32 %v15195_v47, %v7958_v45 }
 0x5ba   :  { %8753 = vadd.xlane.f32.xlu0 %v8752_v60  ;;  %8668 = vadd.xlane.f32.xlu1 %v8667_v53  ;;  %v15197_v60 = vunpack.c.h.bf16 %v14147_v2  ;;  %v8931_v26 = vsel %vm36_vm3, %v8893_v20, 0.0 }
 0x5bb   :  { %v8471_v56 = vpop.xlane.xlu0 %8470  ;;  %v8670_v41 = vsel %vm36_vm3, %v8630_v21, 0.0 }
 0x5bc   :  { %v8560_v38 = vsel %vm8548_vm5, %v8537_v32, %v8471_v56  ;;  %v8718_v42 = vmul.f32 %v15197_v60, %v7958_v45  ;;  %v15203_v60 = vunpack.c.h.bf16 %v14196_v12 }
 0x5bd   :  { %v8208_v13 = vpop.xlane.xlu1 %8207  ;;  %v8593_v19 = vsel %vm8571_vm6, %v8560_v38, 0.0 }
 0x5be   :  { %v8515_v4 = vsel %vm8502_vm1, %v8075_v30, %v8208_v13  ;;  %v8594_v44 = vadd.f32 %v8593_v19, %v8592_v50  ;;  %8841 = vadd.xlane.f32.xlu0 %v8840_v17  ;;  %8756 = vadd.xlane.f32.xlu1 %v8755_v36  ;;  %v8758_v2 = vsel %vm36_vm3, %v8718_v42, 0.0 }
 0x5bf   :  { %v8078_v22 = vpop.xlane.xlu0 %8077 }
 0x5c1   :  { %v8341_v31 = vpop.xlane.xlu1 %8340 }
 0x5c2   :  { %v8538_v6 = vsel %vm8525_vm4, %v8515_v4, %v8341_v31  ;;  %8929 = vadd.xlane.f32.xlu0 %v8928_v5  ;;  %8844 = vadd.xlane.f32.xlu1 %v8843_v15  ;;  %v15199_v4 = vunpack.c.h.bf16 %v14164_v52 }
 0x5c3   :  { %v7880_v18 = vpop.f32.mrb[120].mxu0  ;;  %v8211_v3 = vpop.xlane.xlu0 %8210 }
 0x5c4   :  { %v7881_v10 = vadd.f32 %v14563_v33, %v7880_v18  ;;  %v7882_v50 = vpop.f32.mrb[121].mxu0  ;;  %v8516_v58 = vsel %vm8502_vm1, %v8078_v22, %v8211_v3  ;;  %v8806_v17 = vmul.f32 %v15199_v4, %v7958_v45  ;;  %v15202_v3 = vunpack.c.l.bf16 %v14226_v59 }
 0x5c5   :  { %v8474_v32 = vpop.xlane.xlu1 %8473  ;;  %v7883_v8 = vpop.f32.mrb[122].mxu0 }
 0x5c6   :  { %v8561_v30 = vsel %vm8548_vm5, %v8538_v6, %v8474_v32  ;;  %v7959_v29 = vmax.f32 %v7881_v10, 0.0  ;;  %v7885_v53 = vpop.f32.mrb[123].mxu0  ;;  %8671 = vadd.xlane.f32.xlu0 %v8670_v41  ;;  %8932 = vadd.xlane.f32.xlu1 %v8931_v26  ;;  %v7884_v19 = vadd.f32 %v14563_v33, %v7883_v8  ;;  %v15201_v6 = vunpack.c.h.bf16 %v14177_v24 }
 0x5c7   :  { %v8595_v39 = vsel %vm8571_vm6, %v8561_v30, 0.0  ;;  %v8344_v56 = vpop.xlane.xlu0 %8343  ;;  %v8846_v15 = vsel %vm36_vm3, %v8806_v17, 0.0  ;;  %v15204_v26 = vunpack.c.l.bf16 %v14243_v27  ;;  %v15206_v17 = vunpack.c.l.bf16 %v14263_v16 }
 0x5c8   :  { %v8596_v46 = vadd.f32 %v8595_v39, %v8594_v44  ;;  %v8539_v38 = vsel %vm8525_vm4, %v8516_v58, %v8344_v56  ;;  %v8631_v25 = vmul.f32 %v15198_v63, %v7959_v29  ;;  %v15200_v44 = vunpack.c.l.bf16 %v14211_v43 }
 0x5c9   :  { %v8081_v13 = vpop.xlane.xlu1 %8080  ;;  %v8894_v5 = vmul.f32 %v15201_v6, %v7958_v45  ;;  %v7960_v47 = vmax.f32 %v7884_v19, 0.0  ;;  %v8807_v10 = vmul.f32 %v15202_v3, %v7959_v29  ;;  %v15205_v19 = vunpack.c.h.bf16 %v14211_v43 }
 0x5ca   :  { %v8673_v36 = vsel %vm36_vm3, %v8631_v25, 0.0  ;;  %8759 = vadd.xlane.f32.xlu0 %v8758_v2  ;;  %v8719_v62 = vmul.f32 %v15200_v44, %v7959_v29  ;;  %v15207_v43 = vunpack.c.h.bf16 %v14226_v59 }
 0x5cb   :  { %8674 = vadd.xlane.f32.xlu1 %v8673_v36  ;;  %v8477_v61 = vpop.xlane.xlu0 %8476  ;;  %v8934_v41 = vsel %vm36_vm3, %v8894_v5, 0.0  ;;  %v8632_v42 = vmul.f32 %v15203_v60, %v7960_v47  ;;  %v8849_v53 = vsel %vm36_vm3, %v8807_v10, 0.0  ;;  %v8720_v12 = vmul.f32 %v15205_v19, %v7960_v47 }
 0x5cc   :  { %v8562_v22 = vsel %vm8548_vm5, %v8539_v38, %v8477_v61  ;;  %v8761_v20 = vsel %vm36_vm3, %v8719_v62, 0.0  ;;  %v8808_v6 = vmul.f32 %v15207_v43, %v7960_v47  ;;  %v15211_v60 = vunpack.c.h.bf16 %v14263_v16 }
 0x5cd   :  { %v8214_v31 = vpop.xlane.xlu1 %8213  ;;  %v8597_v21 = vsel %vm8571_vm6, %v8562_v22, 0.0  ;;  %v8676_v25 = vsel %vm36_vm3, %v8632_v42, 0.0 }
 0x5ce   :  { %v8517_v52 = vsel %vm8502_vm1, %v8081_v13, %v8214_v31  ;;  %v8598_v11 = vadd.f32 %v8597_v21, %v8596_v46  ;;  %8847 = vadd.xlane.f32.xlu0 %v8846_v15  ;;  %v8895_v46 = vmul.f32 %v15204_v26, %v7959_v29  ;;  %v8764_v31 = vsel %vm36_vm3, %v8720_v12, 0.0 }
 0x5cf   :  { %v7888_v18 = vpop.f32.mrb[124].mxu0  ;;  %8762 = vadd.xlane.f32.xlu1 %v8761_v20  ;;  %v8084_v45 = vpop.xlane.xlu0 %8083  ;;  %v15208_v21 = vunpack.c.l.bf16 %v14280_v37 }
 0x5d0   :  { %v7889_v50 = vadd.f32 %v14563_v33, %v7888_v18  ;;  %v7890_v24 = vpop.f32.mrb[125].mxu0  ;;  %v8937_v4 = vsel %vm36_vm3, %v8895_v46, 0.0  ;;  %v15209_v18 = vunpack.c.h.bf16 %v14243_v27  ;;  %v15212_v46 = vunpack.c.l.bf16 %v14312_v55 }
 0x5d1   :  { %v8347_v58 = vpop.xlane.xlu1 %8346  ;;  %v7891_v32 = vpop.f32.mrb[126].mxu0  ;;  %v8852_v24 = vsel %vm36_vm3, %v8808_v6, 0.0 }
 0x5d2   :  { %v8540_v30 = vsel %vm8525_vm4, %v8517_v52, %v8347_v58  ;;  %v7893_v8 = vpop.f32.mrb[127].mxu0  ;;  %v7961_v39 = vmax.f32 %v7889_v50, 0.0  ;;  %8935 = vadd.xlane.f32.xlu0 %v8934_v41  ;;  %v7892_v22 = vadd.f32 %v14563_v33, %v7891_v32  ;;  %v8896_v3 = vmul.f32 %v15209_v18, %v7960_v47 }
 0x5d3   :  { %8850 = vadd.xlane.f32.xlu1 %v8849_v53  ;;  %v8217_v56 = vpop.xlane.xlu0 %8216  ;;  %v15210_v32 = vunpack.c.l.bf16 %v14298_v28 }
 0x5d4   :  { %v8518_v38 = vsel %vm8502_vm1, %v8084_v45, %v8217_v56  ;;  %v8633_v29 = vmul.f32 %v15206_v17, %v7961_v39  ;;  %v8721_v52 = vmul.f32 %v15208_v21, %v7961_v39  ;;  %v7962_v10 = vmax.f32 %v7892_v22, 0.0 }
 0x5d5   :  { %v8480_v13 = vpop.xlane.xlu1 %8479  ;;  %v8940_v47 = vsel %vm36_vm3, %v8896_v3, 0.0  ;;  %v8897_v56 = vmul.f32 %v15212_v46, %v7961_v39  ;;  %v15214_v22 = vunpack.c.l.bf16 %v14327_v9 }
 0x5d6   :  { %v8563_v63 = vsel %vm8548_vm5, %v8540_v30, %v8480_v13  ;;  %8677 = vadd.xlane.f32.xlu0 %v8676_v25  ;;  %v8679_v5 = vsel %vm36_vm3, %v8633_v29, 0.0  ;;  %v8767_v58 = vsel %vm36_vm3, %v8721_v52, 0.0  ;;  %v8809_v30 = vmul.f32 %v15210_v32, %v7961_v39 }
 0x5d7   :  { %v8599_v2 = vsel %vm8571_vm6, %v8563_v63, 0.0  ;;  %8938 = vadd.xlane.f32.xlu1 %v8937_v4  ;;  %v8350_v44 = vpop.xlane.xlu0 %8349  ;;  %v8634_v42 = vmul.f32 %v15211_v60, %v7962_v10  ;;  %v15213_v29 = vunpack.c.h.bf16 %v14280_v37  ;;  %v15215_v52 = vunpack.c.h.bf16 %v14298_v28 }
 0x5d8   :  { %v8600_v36 = vadd.f32 %v8599_v2, %v8598_v11  ;;  %v8541_v62 = vsel %vm8525_vm4, %v8518_v38, %v8350_v44  ;;  %v8855_v53 = vsel %vm36_vm3, %v8809_v30, 0.0  ;;  %v8943_v44 = vsel %vm36_vm3, %v8897_v56, 0.0 }
 0x5d9   :  { %v8087_v61 = vpop.xlane.xlu1 %8086  ;;  %v8682_v17 = vsel %vm36_vm3, %v8634_v42, 0.0 }
 0x5da   :  { %8765 = vadd.xlane.f32.xlu0 %v8764_v31 }
 0x5db   :  { %8680 = vadd.xlane.f32.xlu1 %v8679_v5  ;;  %v8483_v15 = vpop.xlane.xlu0 %8482 }
 0x5dc   :  { %v8564_v11 = vsel %vm8548_vm5, %v8541_v62, %v8483_v15  ;;  %v8810_v15 = vmul.f32 %v15215_v52, %v7962_v10 }
 0x5dd   :  { %v8220_v20 = vpop.xlane.xlu1 %8219  ;;  %v8601_v50 = vsel %vm8571_vm6, %v8564_v11, 0.0  ;;  %v15216_v11 = vunpack.c.l.bf16 %v14340_v7 }
 0x5de   :  { %v8519_v59 = vsel %vm8502_vm1, %v8087_v61, %v8220_v20  ;;  %v8602_v45 = vadd.f32 %v8601_v50, %v8600_v36  ;;  %8853 = vadd.xlane.f32.xlu0 %v8852_v24  ;;  %v8722_v36 = vmul.f32 %v15213_v29, %v7962_v10  ;;  %v8858_v28 = vsel %vm36_vm3, %v8810_v15, 0.0 }
 0x5df   :  { %8768 = vadd.xlane.f32.xlu1 %v8767_v58  ;;  %v8090_v8 = vpop.xlane.xlu0 %8089  ;;  %v15224_v15 = vunpack.c.l.bf16 %v14396_v14 }
 0x5e0   :  { %v8770_v37 = vsel %vm36_vm3, %v8722_v36, 0.0 }
 0x5e1   :  { %v8353_v41 = vpop.xlane.xlu1 %8352  ;;  %v7896_v26 = vpop.f32.mrb[128].mxu0 }
 0x5e2   :  { %v8542_v27 = vsel %vm8525_vm4, %v8519_v59, %v8353_v41  ;;  %8941 = vadd.xlane.f32.xlu0 %v8940_v47  ;;  %v7897_v38 = vadd.f32 %v14563_v33, %v7896_v26  ;;  %v7898_v13 = vpop.f32.mrb[129].mxu0  ;;  %v15217_v59 = vunpack.c.h.bf16 %v14312_v55 }
 0x5e3   :  { %8856 = vadd.xlane.f32.xlu1 %v8855_v53  ;;  %v8223_v63 = vpop.xlane.xlu0 %8222  ;;  %v7899_v12 = vpop.f32.mrb[130].mxu0 }
 0x5e4   :  { %v8520_v25 = vsel %vm8502_vm1, %v8090_v8, %v8223_v63  ;;  %v7963_v2 = vmax.f32 %v7897_v38, 0.0  ;;  %v7901_v4 = vpop.f32.mrb[131].mxu0  ;;  %v7900_v5 = vadd.f32 %v14563_v33, %v7899_v12  ;;  %v8898_v24 = vmul.f32 %v15217_v59, %v7962_v10 }
 0x5e5   :  { %v8486_v19 = vpop.xlane.xlu1 %8485  ;;  %v15219_v38 = vunpack.c.h.bf16 %v14327_v9 }
 0x5e6   :  { %v8565_v16 = vsel %vm8548_vm5, %v8542_v27, %v8486_v19  ;;  %8683 = vadd.xlane.f32.xlu0 %v8682_v17  ;;  %v8635_v31 = vmul.f32 %v15214_v22, %v7963_v2  ;;  %v8723_v20 = vmul.f32 %v15216_v11, %v7963_v2  ;;  %v15218_v27 = vunpack.c.l.bf16 %v14355_v34 }
 0x5e7   :  { %v8603_v39 = vsel %vm8571_vm6, %v8565_v16, 0.0  ;;  %8944 = vadd.xlane.f32.xlu1 %v8943_v44  ;;  %v8356_v61 = vpop.xlane.xlu0 %8355  ;;  %v8946_v56 = vsel %vm36_vm3, %v8898_v24, 0.0  ;;  %v15220_v19 = vunpack.c.l.bf16 %v14368_v48  ;;  %v15225_v24 = vunpack.c.h.bf16 %v14368_v48 }
 0x5e8   :  { %v8604_v62 = vadd.f32 %v8603_v39, %v8602_v45  ;;  %v8543_v43 = vsel %vm8525_vm4, %v8520_v25, %v8356_v61  ;;  %v8685_v21 = vsel %vm36_vm3, %v8635_v31, 0.0  ;;  %v7964_v45 = vmax.f32 %v7900_v5, 0.0 }
 0x5e9   :  { %v8093_v6 = vpop.xlane.xlu1 %8092  ;;  %v8773_v8 = vsel %vm36_vm3, %v8723_v20, 0.0  ;;  %v8811_v47 = vmul.f32 %v15218_v27, %v7963_v2  ;;  %v8899_v12 = vmul.f32 %v15220_v19, %v7963_v2  ;;  %v15221_v39 = vunpack.c.h.bf16 %v14340_v7 }
 0x5ea   :  { %8771 = vadd.xlane.f32.xlu0 %v8770_v37  ;;  %v8636_v13 = vmul.f32 %v15219_v38, %v7964_v45  ;;  %v15222_v61 = vunpack.c.l.bf16 %v14383_v54  ;;  %v15223_v7 = vunpack.c.h.bf16 %v14355_v34 }
 0x5eb   :  { %8686 = vadd.xlane.f32.xlu1 %v8685_v21  ;;  %v8489_v18 = vpop.xlane.xlu0 %8488  ;;  %v8861_v25 = vsel %vm36_vm3, %v8811_v47, 0.0  ;;  %v8724_v9 = vmul.f32 %v15221_v39, %v7964_v45  ;;  %v15229_v39 = vunpack.c.h.bf16 %v14396_v14 }
 0x5ec   :  { %v8566_v3 = vsel %vm8548_vm5, %v8543_v43, %v8489_v18  ;;  %v8688_v36 = vsel %vm36_vm3, %v8636_v13, 0.0  ;;  %v8812_v37 = vmul.f32 %v15223_v7, %v7964_v45  ;;  %v15228_v13 = vunpack.c.l.bf16 %v14424_v40 }
 0x5ed   :  { %v8226_v50 = vpop.xlane.xlu1 %8225  ;;  %v8605_v58 = vsel %vm8571_vm6, %v8566_v3, 0.0  ;;  %v8776_v21 = vsel %vm36_vm3, %v8724_v9, 0.0 }
 0x5ee   :  { %v8521_v32 = vsel %vm8502_vm1, %v8093_v6, %v8226_v50  ;;  %v8606_v30 = vadd.f32 %v8605_v58, %v8604_v62  ;;  %v7904_v41 = vpop.f32.mrb[132].mxu0  ;;  %8859 = vadd.xlane.f32.xlu0 %v8858_v28  ;;  %v8949_v62 = vsel %vm36_vm3, %v8899_v12, 0.0  ;;  %v8900_v58 = vmul.f32 %v15225_v24, %v7964_v45 }
 0x5ef   :  { %8774 = vadd.xlane.f32.xlu1 %v8773_v8  ;;  %v7905_v60 = vadd.f32 %v14563_v33, %v7904_v41  ;;  %v7906_v55 = vpop.f32.mrb[133].mxu0  ;;  %v8096_v10 = vpop.xlane.xlu0 %8095  ;;  %v8864_v8 = vsel %vm36_vm3, %v8812_v37, 0.0  ;;  %v15233_v24 = vunpack.c.h.bf16 %v14424_v40  ;;  %v15235_v40 = vunpack.c.h.bf16 %v14439_v57 }
 0x5f0   :  { %v7907_v53 = vpop.f32.mrb[134].mxu0  ;;  %v15226_v55 = vunpack.c.l.bf16 %v14411_v49 }
 0x5f1   :  { %v8359_v42 = vpop.xlane.xlu1 %8358  ;;  %v7909_v46 = vpop.f32.mrb[135].mxu0  ;;  %v7965_v63 = vmax.f32 %v7905_v60, 0.0  ;;  %v7908_v5 = vadd.f32 %v14563_v33, %v7907_v53  ;;  %v8952_v53 = vsel %vm36_vm3, %v8900_v58, 0.0 }
 0x5f2   :  { %v8544_v26 = vsel %vm8525_vm4, %v8521_v32, %v8359_v42  ;;  %8947 = vadd.xlane.f32.xlu0 %v8946_v56 }
 0x5f3   :  { %8862 = vadd.xlane.f32.xlu1 %v8861_v25  ;;  %v8229_v16 = vpop.xlane.xlu0 %8228  ;;  %v8637_v2 = vmul.f32 %v15222_v61, %v7965_v63  ;;  %v8725_v11 = vmul.f32 %v15224_v15, %v7965_v63  ;;  %v7966_v32 = vmax.f32 %v7908_v5, 0.0  ;;  %v8901_v25 = vmul.f32 %v15228_v13, %v7965_v63 }
 0x5f4   :  { %v8522_v4 = vsel %vm8502_vm1, %v8096_v10, %v8229_v16  ;;  %v8813_v10 = vmul.f32 %v15226_v55, %v7965_v63  ;;  %v15230_v61 = vunpack.c.l.bf16 %v14439_v57  ;;  %v15238_v13 = vunpack.c.h.bf16 %v14452_v23 }
 0x5f5   :  { %v8492_v17 = vpop.xlane.xlu1 %8491  ;;  %v8691_v52 = vsel %vm36_vm3, %v8637_v2, 0.0  ;;  %v8779_v60 = vsel %vm36_vm3, %v8725_v11, 0.0  ;;  %v8726_v9 = vmul.f32 %v15229_v39, %v7966_v32  ;;  %v8955_v63 = vsel %vm36_vm3, %v8901_v25, 0.0 }
 0x5f6   :  { %v8567_v29 = vsel %vm8548_vm5, %v8544_v26, %v8492_v17  ;;  %8689 = vadd.xlane.f32.xlu0 %v8688_v36  ;;  %v15227_v26 = vunpack.c.h.bf16 %v14383_v54  ;;  %v8867_v38 = vsel %vm36_vm3, %v8813_v10, 0.0  ;;  %v15236_v10 = vld [vmem:[#allocation10_spill] sm:$0xff]  ;;  %v15241_v39 = vunpack.c.h.bf16 %v14467_v51 }
 0x5f7   :  { %v8607_v44 = vsel %vm8571_vm6, %v8567_v29, 0.0  ;;  %8950 = vadd.xlane.f32.xlu1 %v8949_v62  ;;  %v8362_v31 = vpop.xlane.xlu0 %8361  ;;  %v8782_v14 = vsel %vm36_vm3, %v8726_v9, 0.0 }
 0x5f8   :  { %v8608_v22 = vadd.f32 %v8607_v44, %v8606_v30  ;;  %v8545_v43 = vsel %vm8525_vm4, %v8522_v4, %v8362_v31  ;;  %v8638_v46 = vmul.f32 %v15227_v26, %v7966_v32 }
 0x5f9   :  { %v8099_v6 = vpop.xlane.xlu1 %8098 }
 0x5fa   :  { %8777 = vadd.xlane.f32.xlu0 %v8776_v21  ;;  %v7912_v20 = vpop.f32.mrb[136].mxu0  ;;  %v8694_v54 = vsel %vm36_vm3, %v8638_v46, 0.0  ;;  %v15231_v21 = vunpack.c.h.bf16 %v14411_v49  ;;  %v8902_v49 = vmul.f32 %v15233_v24, %v7966_v32 }
 0x5fb   :  { %8692 = vadd.xlane.f32.xlu1 %v8691_v52  ;;  %v8495_v18 = vpop.xlane.xlu0 %8494  ;;  %v7914_v3 = vpop.f32.mrb[137].mxu0  ;;  %v7913_v41 = vadd.f32 %v14563_v33, %v7912_v20  ;;  %v15232_v52 = vunpack.c.l.bf16 %v14452_v23  ;;  %v10265_v23 = vld [vmem:[%s15062_s6] ss:$0 sm:$0xff] }
 0x5fc   :  { %v8568_v50 = vsel %vm8548_vm5, %v8545_v43, %v8495_v18  ;;  %v7915_v30 = vpop.f32.mrb[138].mxu0  ;;  %v8814_v7 = vmul.f32 %v15231_v21, %v7966_v32 }
 0x5fd   :  { %v8232_v59 = vpop.xlane.xlu1 %8231  ;;  %v8609_v34 = vsel %vm8571_vm6, %v8568_v50, 0.0  ;;  %v7917_v47 = vpop.f32.mrb[139].mxu0  ;;  %v7967_v56 = vmax.f32 %v7913_v41, 0.0  ;;  %v7916_v5 = vadd.f32 %v14563_v33, %v7915_v30  ;;  %v15234_v30 = vunpack.c.l.bf16 %v14467_v51 }
 0x5fe   :  { %v8523_v28 = vsel %vm8502_vm1, %v8099_v6, %v8232_v59  ;;  %v8610_v27 = vadd.f32 %v8609_v34, %v8608_v22  ;;  %8865 = vadd.xlane.f32.xlu0 %v8864_v8  ;;  %v8870_v59 = vsel %vm36_vm3, %v8814_v7, 0.0 }
 0x5ff   :  { %8780 = vadd.xlane.f32.xlu1 %v8779_v60  ;;  %v8102_v48 = vpop.xlane.xlu0 %8101  ;;  %v8639_v2 = vmul.f32 %v15230_v61, %v7967_v56  ;;  %v8727_v15 = vmul.f32 %v15232_v52, %v7967_v56  ;;  %v7968_v3 = vmax.f32 %v7916_v5, 0.0  ;;  %v8815_v8 = vmul.f32 %v15234_v30, %v7967_v56 }
 0x600   :  { %v8958_v60 = vsel %vm36_vm3, %v8902_v49, 0.0  ;;  %v15243_v5 = vunpack.c.h.bf16 %v15236_v10 }
 0x601   :  { %v8365_v45 = vpop.xlane.xlu1 %8364  ;;  %v8697_v37 = vsel %vm36_vm3, %v8639_v2, 0.0  ;;  %v8640_v32 = vmul.f32 %v15235_v40, %v7968_v3  ;;  %v8728_v57 = vmul.f32 %v15238_v13, %v7968_v3  ;;  %v8816_v9 = vmul.f32 %v15241_v39, %v7968_v3 }
 0x602   :  { %v8546_v42 = vsel %vm8525_vm4, %v8523_v28, %v8365_v45  ;;  %8953 = vadd.xlane.f32.xlu0 %v8952_v53  ;;  %v7920_v19 = vpop.f32.mrb[140].mxu0  ;;  %v8785_v28 = vsel %vm36_vm3, %v8727_v15, 0.0 }
 0x603   :  { %8868 = vadd.xlane.f32.xlu1 %v8867_v38  ;;  %v8235_v12 = vpop.xlane.xlu0 %8234  ;;  %v7922_v16 = vpop.f32.mrb[141].mxu0  ;;  %v7921_v58 = vadd.f32 %v14563_v33, %v7920_v19  ;;  %v8873_v33 = vsel %vm36_vm3, %v8815_v8, 0.0  ;;  %v8700_v38 = vsel %vm36_vm3, %v8640_v32, 0.0  ;;  %v15239_v19 = vld [vmem:[#allocation11_spill] sm:$0xff] }
 0x604   :  { %v8524_v4 = vsel %vm8502_vm1, %v8102_v48, %v8235_v12  ;;  %v7923_v36 = vpop.f32.mrb[142].mxu0  ;;  %v15237_v48 = vunpack.c.l.bf16 %v15236_v10  ;;  %v15240_v12 = vunpack.c.l.bf16 %v15239_v19 }
 0x605   :  { %v8498_v17 = vpop.xlane.xlu1 %8497  ;;  %v7925_v62 = vpop.f32.mrb[143].mxu0  ;;  %v7969_v55 = vmax.f32 %v7921_v58, 0.0  ;;  %v15246_v58 = vunpack.c.h.bf16 %v14512_v0 }
 0x606   :  { %v8569_v29 = vsel %vm8548_vm5, %v8546_v42, %v8498_v17  ;;  %8695 = vadd.xlane.f32.xlu0 %v8694_v54  ;;  %v8903_v45 = vmul.f32 %v15237_v48, %v7967_v56 }
 0x607   :  { %v8611_v44 = vsel %vm8571_vm6, %v8569_v29, 0.0  ;;  %8956 = vadd.xlane.f32.xlu1 %v8955_v63  ;;  %v8368_v31 = vpop.xlane.xlu0 %8367  ;;  %v8641_v16 = vmul.f32 %v15240_v12, %v7969_v55  ;;  %v8788_v29 = vsel %vm36_vm3, %v8728_v57, 0.0  ;;  %v15242_v63 = vunpack.c.l.bf16 %v14512_v0 }
 0x608   :  { %v8612_v22 = vadd.f32 %v8611_v44, %v8610_v27  ;;  %v8547_v43 = vsel %vm8525_vm4, %v8524_v4, %v8368_v31  ;;  %v8961_v25 = vsel %vm36_vm3, %v8903_v45, 0.0  ;;  %v7924_v44 = vadd.f32 %v10265_v23, %v7923_v36 }
 0x609   :  { %v8645_v6 = vpop.xlane.xlu1 %8644  ;;  %v8703_v62 = vsel %vm36_vm3, %v8641_v16, 0.0  ;;  %v8729_v61 = vmul.f32 %v15242_v63, %v7969_v55  ;;  %v8904_v36 = vmul.f32 %v15243_v5, %v7968_v3 }
 0x60a   :  { %8783 = vadd.xlane.f32.xlu0 %v8782_v14  ;;  %v7970_v14 = vmax.f32 %v7924_v44, 0.0 }
 0x60b   :  { %8698 = vadd.xlane.f32.xlu1 %v8697_v37  ;;  %v8501_v11 = vpop.xlane.xlu0 %8500  ;;  %v8791_v7 = vsel %vm36_vm3, %v8729_v61, 0.0  ;;  %v15244_v37 = vunpack.c.l.bf16 %v14529_v35 }
 0x60c   :  { %v8570_v20 = vsel %vm8548_vm5, %v8547_v43, %v8501_v11 }
 0x60d   :  { %v8909_v18 = vpop.xlane.xlu1 %8908  ;;  %v8613_v50 = vsel %vm8571_vm6, %v8570_v20, 0.0  ;;  %v8817_v52 = vmul.f32 %v15244_v37, %v7969_v55 }
 0x60e   :  { %v14902_v34 = vadd.f32 %v8613_v50, %v8612_v22  ;;  %8871 = vadd.xlane.f32.xlu0 %v8870_v59  ;;  %v8964_v50 = vsel %vm36_vm3, %v8904_v36, 0.0  ;;  %v15245_v59 = vunpack.c.l.bf16 %v14546_v1 }
 0x60f   :  { %8786 = vadd.xlane.f32.xlu1 %v8785_v28  ;;  %v8733_v41 = vpop.xlane.xlu0 %8732  ;;  %v8879_v49 = vsel %vm36_vm3, %v8817_v52, 0.0  ;;  %v8730_v28 = vmul.f32 %v15246_v58, %v7970_v14 }
 0x610   :  { %v8973_v27 = vsel %vm8502_vm1, %v8645_v6, %v8733_v41  ;;  %v8876_v6 = vsel %vm36_vm3, %v8816_v9, 0.0  ;;  %v8905_v3 = vmul.f32 %v15245_v59, %v7969_v55  ;;  %v15248_v55 = vunpack.c.h.bf16 %v14529_v35 }
 0x611   :  { %v8736_v47 = vpop.xlane.xlu1 %8735  ;;  %v8794_v32 = vsel %vm36_vm3, %v8730_v28, 0.0 }
 0x612   :  { %8959 = vadd.xlane.f32.xlu0 %v8958_v60  ;;  %v15247_v60 = vunpack.c.h.bf16 %v15239_v19 }
 0x613   :  { %8874 = vadd.xlane.f32.xlu1 %v8873_v33  ;;  %v8821_v42 = vpop.xlane.xlu0 %8820  ;;  %v8818_v33 = vmul.f32 %v15248_v55, %v7970_v14 }
 0x614   :  { %v8995_v53 = vsel %vm8525_vm4, %v8973_v27, %v8821_v42  ;;  %v8642_v40 = vmul.f32 %v15247_v60, %v7970_v14 }
 0x615   :  { %v8824_v26 = vpop.xlane.xlu1 %8823  ;;  %v9017_v46 = vsel %vm8548_vm5, %v8995_v53, %v8909_v18  ;;  %v15249_v53 = vunpack.c.h.bf16 %v14546_v1 }
 0x616   :  { %8701 = vadd.xlane.f32.xlu0 %v8700_v38  ;;  %v9039_v43 = vsel %vm8571_vm6, %v9017_v46, 0.0  ;;  %v8706_v42 = vsel %vm36_vm3, %v8642_v40, 0.0  ;;  %v8882_v46 = vsel %vm36_vm3, %v8818_v33, 0.0 }
 0x617   :  { %8962 = vadd.xlane.f32.xlu1 %v8961_v25  ;;  %v8648_v56 = vpop.xlane.xlu0 %8647 }
 0x618   :  { %v8974_v4 = vsel %vm8502_vm1, %v8648_v56, %v8736_v47  ;;  %v8967_v47 = vsel %vm36_vm3, %v8905_v3, 0.0 }
 0x619   :  { %v8651_v17 = vpop.xlane.xlu1 %8650  ;;  %v8996_v54 = vsel %vm8525_vm4, %v8974_v4, %v8824_v26  ;;  %v8906_v26 = vmul.f32 %v15249_v53, %v7970_v14 }
 0x61a   :  { %8789 = vadd.xlane.f32.xlu0 %v8788_v29 }
 0x61b   :  { %8704 = vadd.xlane.f32.xlu1 %v8703_v62  ;;  %v8912_v2 = vpop.xlane.xlu0 %8911  ;;  %v8970_v25 = vsel %vm36_vm3, %v8906_v26, 0.0 }
 0x61c   :  { %v9018_v22 = vsel %vm8548_vm5, %v8996_v54, %v8912_v2 }
 0x61d   :  { %v8827_v31 = vpop.xlane.xlu1 %8826  ;;  %v9040_v51 = vsel %vm8571_vm6, %v9018_v22, 0.0 }
 0x61e   :  { %v9041_v21 = vadd.f32 %v9040_v51, %v9039_v43  ;;  %8877 = vadd.xlane.f32.xlu0 %v8876_v6 }
 0x61f   :  { %8792 = vadd.xlane.f32.xlu1 %v8791_v7  ;;  %v8739_v15 = vpop.xlane.xlu0 %8738 }
 0x620   :  { %v8975_v11 = vsel %vm8502_vm1, %v8651_v17, %v8739_v15 }
 0x621   :  { %v8915_v20 = vpop.xlane.xlu1 %8914  ;;  %v8997_v18 = vsel %vm8525_vm4, %v8975_v11, %v8827_v31 }
 0x622   :  { %v9019_v24 = vsel %vm8548_vm5, %v8997_v18, %v8915_v20  ;;  %8965 = vadd.xlane.f32.xlu0 %v8964_v50 }
 0x623   :  { %v9042_v30 = vsel %vm8571_vm6, %v9019_v24, 0.0  ;;  %8880 = vadd.xlane.f32.xlu1 %v8879_v49  ;;  %v8654_v8 = vpop.xlane.xlu0 %8653 }
 0x624   :  { %v9043_v41 = vadd.f32 %v9042_v30, %v9041_v21 }
 0x625   :  { %v8657_v27 = vpop.xlane.xlu1 %8656 }
 0x626   :  { %8968 = vadd.xlane.f32.xlu0 %v8967_v47 }
 0x627   :  { %8795 = vadd.xlane.f32.xlu1 %v8794_v32  ;;  %v8742_v0 = vpop.xlane.xlu0 %8741 }
 0x628   :  { %v8976_v10 = vsel %vm8502_vm1, %v8654_v8, %v8742_v0 }
 0x629   :  { %v8745_v48 = vpop.xlane.xlu1 %8744 }
 0x62a   :  { %v8977_v45 = vsel %vm8502_vm1, %v8657_v27, %v8745_v48  ;;  %8707 = vadd.xlane.f32.xlu0 %v8706_v42 }
 0x62b   :  { %8883 = vadd.xlane.f32.xlu1 %v8882_v46  ;;  %v8830_v38 = vpop.xlane.xlu0 %8829 }
 0x62c   :  { %v8998_v35 = vsel %vm8525_vm4, %v8976_v10, %v8830_v38 }
 0x62d   :  { %v8833_v13 = vpop.xlane.xlu1 %8832 }
 0x62e   :  { %v8999_v57 = vsel %vm8525_vm4, %v8977_v45, %v8833_v13  ;;  %8971 = vadd.xlane.f32.xlu0 %v8970_v25 }
 0x62f   :  { %v8918_v19 = vpop.xlane.xlu0 %8917 }
 0x630   :  { %v9020_v12 = vsel %vm8548_vm5, %v8998_v35, %v8918_v19 }
 0x631   :  { %v8921_v16 = vpop.xlane.xlu1 %8920  ;;  %v9044_v1 = vsel %vm8571_vm6, %v9020_v12, 0.0 }
 0x632   :  { %v9021_v56 = vsel %vm8548_vm5, %v8999_v57, %v8921_v16  ;;  %v9045_v4 = vadd.f32 %v9044_v1, %v9043_v41 }
 0x633   :  { %v9046_v17 = vsel %vm8571_vm6, %v9021_v56, 0.0  ;;  %v8660_v29 = vpop.xlane.xlu0 %8659 }
 0x634   :  { %v9047_v54 = vadd.f32 %v9046_v17, %v9045_v4 }
 0x637   :  { %v8748_v39 = vpop.xlane.xlu0 %8747  ;;  %v8663_v9 = vpop.xlane.xlu1 %8662 }
 0x638   :  { %v8978_v23 = vsel %vm8502_vm1, %v8660_v29, %v8748_v39 }
 0x63b   :  { %v8836_v44 = vpop.xlane.xlu0 %8835  ;;  %v8751_v62 = vpop.xlane.xlu1 %8750 }
 0x63c   :  { %v9000_v63 = vsel %vm8525_vm4, %v8978_v23, %v8836_v44  ;;  %v8979_v61 = vsel %vm8502_vm1, %v8663_v9, %v8751_v62 }
 0x63f   :  { %v8924_v2 = vpop.xlane.xlu0 %8923  ;;  %v8839_v22 = vpop.xlane.xlu1 %8838 }
 0x640   :  { %v9022_v31 = vsel %vm8548_vm5, %v9000_v63, %v8924_v2  ;;  %v9001_v43 = vsel %vm8525_vm4, %v8979_v61, %v8839_v22 }
 0x641   :  { %v9048_v51 = vsel %vm8571_vm6, %v9022_v31, 0.0 }
 0x642   :  { %v9049_v6 = vadd.f32 %v9048_v51, %v9047_v54 }
 0x643   :  { %v8666_v5 = vpop.xlane.xlu0 %8665  ;;  %v8927_v36 = vpop.xlane.xlu1 %8926 }
 0x644   :  { %v9023_v14 = vsel %vm8548_vm5, %v9001_v43, %v8927_v36 }
 0x645   :  { %v9050_v21 = vsel %vm8571_vm6, %v9023_v14, 0.0 }
 0x646   :  { %v9051_v7 = vadd.f32 %v9050_v21, %v9049_v6 }
 0x647   :  { %v8754_v37 = vpop.xlane.xlu0 %8753  ;;  %v8669_v52 = vpop.xlane.xlu1 %8668 }
 0x648   :  { %v8980_v15 = vsel %vm8502_vm1, %v8666_v5, %v8754_v37 }
 0x64b   :  { %v8842_v11 = vpop.xlane.xlu0 %8841  ;;  %v8757_v20 = vpop.xlane.xlu1 %8756 }
 0x64c   :  { %v9002_v18 = vsel %vm8525_vm4, %v8980_v15, %v8842_v11  ;;  %v8981_v50 = vsel %vm8502_vm1, %v8669_v52, %v8757_v20 }
 0x64f   :  { %v8930_v59 = vpop.xlane.xlu0 %8929  ;;  %v8845_v3 = vpop.xlane.xlu1 %8844 }
 0x650   :  { %v9024_v24 = vsel %vm8548_vm5, %v9002_v18, %v8930_v59  ;;  %v9003_v49 = vsel %vm8525_vm4, %v8981_v50, %v8845_v3 }
 0x651   :  { %v9052_v58 = vsel %vm8571_vm6, %v9024_v24, 0.0 }
 0x652   :  { %v9053_v28 = vadd.f32 %v9052_v58, %v9051_v7 }
 0x653   :  { %v8672_v30 = vpop.xlane.xlu0 %8671  ;;  %v8933_v8 = vpop.xlane.xlu1 %8932 }
 0x654   :  { %v9025_v41 = vsel %vm8548_vm5, %v9003_v49, %v8933_v8 }
 0x655   :  { %v9054_v27 = vsel %vm8571_vm6, %v9025_v41, 0.0 }
 0x656   :  { %v9055_v47 = vadd.f32 %v9054_v27, %v9053_v28 }
 0x657   :  { %v8760_v60 = vpop.xlane.xlu0 %8759 }
 0x658   :  { %v8675_v40 = vpop.xlane.xlu1 %8674  ;;  %v8982_v32 = vsel %vm8502_vm1, %v8672_v30, %v8760_v60 }
 0x65b   :  { %v8848_v55 = vpop.xlane.xlu0 %8847 }
 0x65c   :  { %v8763_v33 = vpop.xlane.xlu1 %8762  ;;  %v9004_v0 = vsel %vm8525_vm4, %v8982_v32, %v8848_v55 }
 0x65d   :  { %v8983_v10 = vsel %vm8502_vm1, %v8675_v40, %v8763_v33 }
 0x65f   :  { %v8936_v48 = vpop.xlane.xlu0 %8935 }
 0x660   :  { %v8851_v45 = vpop.xlane.xlu1 %8850  ;;  %v9026_v42 = vsel %vm8548_vm5, %v9004_v0, %v8936_v48 }
 0x661   :  { %v9005_v53 = vsel %vm8525_vm4, %v8983_v10, %v8851_v45  ;;  %v9056_v26 = vsel %vm8571_vm6, %v9026_v42, 0.0 }
 0x662   :  { %v9057_v46 = vadd.f32 %v9056_v26, %v9055_v47 }
 0x663   :  { %v8678_v38 = vpop.xlane.xlu0 %8677 }
 0x664   :  { %v8939_v35 = vpop.xlane.xlu1 %8938 }
 0x665   :  { %v9027_v13 = vsel %vm8548_vm5, %v9005_v53, %v8939_v35 }
 0x666   :  { %v9058_v57 = vsel %vm8571_vm6, %v9027_v13, 0.0 }
 0x667   :  { %v9059_v25 = vadd.f32 %v9058_v57, %v9057_v46  ;;  %v8766_v19 = vpop.xlane.xlu0 %8765 }
 0x668   :  { %v8681_v12 = vpop.xlane.xlu1 %8680  ;;  %v8984_v56 = vsel %vm8502_vm1, %v8678_v38, %v8766_v19 }
 0x66b   :  { %v8854_v16 = vpop.xlane.xlu0 %8853 }
 0x66c   :  { %v8769_v1 = vpop.xlane.xlu1 %8768  ;;  %v9006_v4 = vsel %vm8525_vm4, %v8984_v56, %v8854_v16 }
 0x66d   :  { %v8985_v24 = vsel %vm8502_vm1, %v8681_v12, %v8769_v1 }
 0x66f   :  { %v8942_v17 = vpop.xlane.xlu0 %8941 }
 0x670   :  { %v8857_v29 = vpop.xlane.xlu1 %8856  ;;  %v9028_v54 = vsel %vm8548_vm5, %v9006_v4, %v8942_v17 }
 0x671   :  { %v9060_v39 = vsel %vm8571_vm6, %v9028_v54, 0.0  ;;  %v9007_v58 = vsel %vm8525_vm4, %v8985_v24, %v8857_v29 }
 0x672   :  { %v9061_v9 = vadd.f32 %v9060_v39, %v9059_v25 }
 0x673   :  { %v8684_v23 = vpop.xlane.xlu0 %8683 }
 0x674   :  { %v8945_v44 = vpop.xlane.xlu1 %8944 }
 0x675   :  { %v9029_v28 = vsel %vm8548_vm5, %v9007_v58, %v8945_v44 }
 0x676   :  { %v9062_v40 = vsel %vm8571_vm6, %v9029_v28, 0.0 }
 0x677   :  { %v8772_v62 = vpop.xlane.xlu0 %8771  ;;  %v9063_v45 = vadd.f32 %v9062_v40, %v9061_v9  ;;  %v9538_v40 = vld [vmem:[%s15064_s8] ss:$0 sm:$0xff] }
 0x678   :  { %v8687_v63 = vpop.xlane.xlu1 %8686  ;;  %v8986_v30 = vsel %vm8502_vm1, %v8684_v23, %v8772_v62 }
 0x67b   :  { %v8860_v61 = vpop.xlane.xlu0 %8859 }
 0x67c   :  { %v8775_v2 = vpop.xlane.xlu1 %8774  ;;  %v9008_v8 = vsel %vm8525_vm4, %v8986_v30, %v8860_v61 }
 0x67d   :  { %v8987_v27 = vsel %vm8502_vm1, %v8687_v63, %v8775_v2 }
 0x67f   :  { %v8948_v22 = vpop.xlane.xlu0 %8947 }
 0x680   :  { %v8863_v31 = vpop.xlane.xlu1 %8862  ;;  %v9030_v47 = vsel %vm8548_vm5, %v9008_v8, %v8948_v22 }
 0x681   :  { %v9009_v32 = vsel %vm8525_vm4, %v8987_v27, %v8863_v31  ;;  %v9064_v0 = vsel %vm8571_vm6, %v9030_v47, 0.0 }
 0x682   :  { %v9065_v35 = vadd.f32 %v9064_v0, %v9063_v45 }
 0x683   :  { %v8690_v43 = vpop.xlane.xlu0 %8689 }
 0x684   :  { %v8951_v51 = vpop.xlane.xlu1 %8950 }
 0x685   :  { %v9031_v55 = vsel %vm8548_vm5, %v9009_v32, %v8951_v51  ;;  %v8615_v51 = vrot.slane %v14902_v34, 4 }
 0x686   :  { %v9066_v46 = vsel %vm8571_vm6, %v9031_v55, 0.0 }
 0x687   :  { %v8778_v6 = vpop.xlane.xlu0 %8777  ;;  %v9067_v16 = vadd.f32 %v9066_v46, %v9065_v35 }
 0x688   :  { %v8693_v5 = vpop.xlane.xlu1 %8692  ;;  %v8988_v33 = vsel %vm8502_vm1, %v8690_v43, %v8778_v6 }
 0x68b   :  { %v8866_v36 = vpop.xlane.xlu0 %8865 }
 0x68c   :  { %v8781_v14 = vpop.xlane.xlu1 %8780  ;;  %v9010_v10 = vsel %vm8525_vm4, %v8988_v33, %v8866_v36 }
 0x68d   :  { %v8989_v42 = vsel %vm8502_vm1, %v8693_v5, %v8781_v14 }
 0x68f   :  { %v8954_v21 = vpop.xlane.xlu0 %8953 }
 0x690   :  { %v8869_v7 = vpop.xlane.xlu1 %8868  ;;  %v9032_v53 = vsel %vm8548_vm5, %v9010_v10, %v8954_v21 }
 0x691   :  { %v9011_v38 = vsel %vm8525_vm4, %v8989_v42, %v8869_v7  ;;  %v9068_v25 = vsel %vm8571_vm6, %v9032_v53, 0.0 }
 0x692   :  { %v9069_v54 = vadd.f32 %v9068_v25, %v9067_v16 }
 0x693   :  { %v8696_v37 = vpop.xlane.xlu0 %8695 }
 0x694   :  { %v8957_v52 = vpop.xlane.xlu1 %8956 }
 0x695   :  { %v9033_v13 = vsel %vm8548_vm5, %v9011_v38, %v8957_v52 }
 0x696   :  { %v9070_v17 = vsel %vm8571_vm6, %v9033_v13, 0.0 }
 0x697   :  { %v8784_v15 = vpop.xlane.xlu0 %8783  ;;  %v9071_v63 = vadd.f32 %v9070_v17, %v9069_v54 }
 0x698   :  { %v8699_v11 = vpop.xlane.xlu1 %8698  ;;  %v8990_v57 = vsel %vm8502_vm1, %v8696_v37, %v8784_v15  ;;  %v8616_v15 = vadd.f32 %v8615_v51, %v14902_v34 }
 0x69a   :  { %v8617_v24 = vrot.slane %v8616_v15, 2 }
 0x69b   :  { %v8872_v20 = vpop.xlane.xlu0 %8871 }
 0x69c   :  { %v8787_v18 = vpop.xlane.xlu1 %8786  ;;  %v9012_v19 = vsel %vm8525_vm4, %v8990_v57, %v8872_v20  ;;  %v8618_v28 = vadd.f32 %v8617_v24, %v8616_v15 }
 0x69d   :  { %v8991_v1 = vsel %vm8502_vm1, %v8699_v11, %v8787_v18 }
 0x69f   :  { %v8960_v50 = vpop.xlane.xlu0 %8959 }
 0x6a0   :  { %v8875_v59 = vpop.xlane.xlu1 %8874  ;;  %v9034_v56 = vsel %vm8548_vm5, %v9012_v19, %v8960_v50 }
 0x6a1   :  { %v9013_v29 = vsel %vm8525_vm4, %v8991_v1, %v8875_v59  ;;  %v9072_v23 = vsel %vm8571_vm6, %v9034_v56, 0.0 }
 0x6a2   :  { %v9073_v6 = vadd.f32 %v9072_v23, %v9071_v63 }
 0x6a3   :  { %v8702_v3 = vpop.xlane.xlu0 %8701 }
 0x6a4   :  { %v8963_v49 = vpop.xlane.xlu1 %8962 }
 0x6a5   :  { %v9035_v39 = vsel %vm8548_vm5, %v9013_v29, %v8963_v49 }
 0x6a6   :  { %v9074_v31 = vsel %vm8571_vm6, %v9035_v39, 0.0 }
 0x6a7   :  { %v8790_v41 = vpop.xlane.xlu0 %8789  ;;  %v9075_v21 = vadd.f32 %v9074_v31, %v9073_v6 }
 0x6a8   :  { %v8705_v60 = vpop.xlane.xlu1 %8704  ;;  %v8992_v9 = vsel %vm8502_vm1, %v8702_v3, %v8790_v41  ;;  %v8619_v41 = vrot.slane %v8618_v28, 1 }
 0x6aa   :  { %v8620_v34 = vadd.f32 %v8619_v41, %v8618_v28 }
 0x6ab   :  { %v8878_v48 = vpop.xlane.xlu0 %8877 }
 0x6ac   :  { %v8793_v26 = vpop.xlane.xlu1 %8792  ;;  %v9014_v44 = vsel %vm8525_vm4, %v8992_v9, %v8878_v48 }
 0x6ad   :  { %v8993_v61 = vsel %vm8502_vm1, %v8705_v60, %v8793_v26 }
 0x6af   :  { %v8966_v12 = vpop.xlane.xlu0 %8965 }
 0x6b0   :  { %v8881_v4 = vpop.xlane.xlu1 %8880  ;;  %v9036_v2 = vsel %vm8548_vm5, %v9014_v44, %v8966_v12 }
 0x6b1   :  { %v9015_v43 = vsel %vm8525_vm4, %v8993_v61, %v8881_v4  ;;  %v9076_v36 = vsel %vm8571_vm6, %v9036_v2, 0.0 }
 0x6b2   :  { %v9077_v11 = vadd.f32 %v9076_v36, %v9075_v21 }
 0x6b3   :  { %v8969_v62 = vpop.xlane.xlu0 %8968 }
 0x6b4   :  { %v8796_v22 = vpop.xlane.xlu1 %8795  ;;  %v9037_v5 = vsel %vm8548_vm5, %v9015_v43, %v8969_v62 }
 0x6b5   :  { %v9078_v52 = vsel %vm8571_vm6, %v9037_v5, 0.0 }
 0x6b6   :  { %v9079_v50 = vadd.f32 %v9078_v52, %v9077_v11 }
 0x6b7   :  { %v8708_v14 = vpop.xlane.xlu0 %8707 }
 0x6b8   :  { %v8884_v7 = vpop.xlane.xlu1 %8883  ;;  %v8994_v37 = vsel %vm8502_vm1, %v8708_v14, %v8796_v22 }
 0x6b9   :  { %v9016_v20 = vsel %vm8525_vm4, %v8994_v37, %v8884_v7 }
 0x6bb   :  { %v8972_v18 = vpop.xlane.xlu0 %8971 }
 0x6bc   :  { %v9038_v59 = vsel %vm8548_vm5, %v9016_v20, %v8972_v18 }
 0x6bd   :  { %v9080_v3 = vsel %vm8571_vm6, %v9038_v59, 0.0 }
 0x6be   :  { %v9081_v49 = vadd.f32 %v9080_v3, %v9079_v50 }
 0x6c0   :  { %v9082_v58 = vrot.slane %v9081_v49, 4 }
 0x6c2   :  { %v9083_v30 = vadd.f32 %v9082_v58, %v9081_v49 }
 0x6c4   :  { %v9084_v8 = vrot.slane %v9083_v30, 2 }
 0x6c6   :  { %v9085_v27 = vadd.f32 %v9084_v8, %v9083_v30 }
 0x6c8   :  { %v9086_v47 = vrot.slane %v9085_v27, 1 }
 0x6ca   :  { %v9087_v60 = vadd.f32 %v9086_v47, %v9085_v27 }
 0x6cc   :  { %v9089_v32 = vsel %vm9088_vm7, %v8620_v34, %v9087_v60 }
 0x6cd   :  { %v9097_v55 = vadd.f32 %v9538_v40, %v9089_v32 }
 0x6cf   :  { %9099 = vst.msk [vmem:[#allocation7] sm:$0x3] %vm9098_vm8, %v9097_v55 }
 0x6d0   :  { %10277 = shalt.err (!%p10274_p4)
}
 0x6d1   :  { %s10278_s1 = scalar_lea.hbm %s15065_s9, 32 }
 0x6d2   :  { %p10279_p5 = scmp.ne.s32.totalorder %s15065_s9, %s10278_s1  ;;  %p10282_p6 = scmp.lt.u32.totalorder %s10278_s1, %s15065_s9 }
 0x6d4   :  { %p10284_p7 = pnand %p10282_p6, %p10279_p5 }
 0x6d6   :  { %10287 = shalt.err (!%p10284_p7)
}
 0x6d7   :  { %9109 = dma.vmem_to_hbm [thread:$0]  %s9107_s15, 32, %s15065_s9, [#allocation8]  }
 0x6d8   :  { %10288 = dma.done.wait [#allocation8], 32  }
 0x6d9   :  { %10289 = vsyncadd [#allocation8], 4294967264 }
 0x6da   :  { %9113 = vsyncpa [#allocation8], 1 }

</bundles_post_ra>
